<compile_context>
chip_gen: v6e
topology: v6e:2x2x1
jax: 0.10.0
libtpu: 0.0.40
codegen_flags: <defaults>
</compile_context>

<pallas_src>
import functools

import jax
import jax.numpy as jnp
from jax.experimental import pallas as pl
from jax.experimental.pallas import tpu as pltpu


def _round_up(x, m):
    return (x + m - 1) // m * m


CFG = dict(nce_layers=(0, 1, 3, 5), num_patches=16, nce_T=0.07,
           lambda_GAN=1.0, lambda_NCE=1.0, batch_size=2)
NCE_FEAT_CHANNELS = (3, 8, 32, 32)   # channels of the features at nce_layers
NETF_NC = 16


# ---------------------------------------------------------------------------
# Pallas kernels
# ---------------------------------------------------------------------------
def _conv_in_act_kernel(p_ref, w_ref, b_ref, o_ref, *, n_rows, norm, act):
    """One image: im2col patches @ weights + bias, optional InstanceNorm, act.
    p_ref: (1, HWp, Kp) bf16, w_ref: (Kp, Np) bf16, b_ref: (1, Np) f32."""
    p = p_ref[0]                                           # (HWp, Kp)
    x = jnp.dot(p, w_ref[...], preferred_element_type=jnp.float32)
    x = x + b_ref[...]                                     # broadcast bias
    if norm:
        inv_n = 1.0 / float(n_rows)
        if x.shape[0] == n_rows:                           # no padded rows
            mean = jnp.sum(x, axis=0, keepdims=True) * inv_n
            d = x - mean
            var = jnp.sum(d * d, axis=0, keepdims=True) * inv_n
        else:                                              # mask padded rows
            row = jax.lax.broadcasted_iota(jnp.int32, x.shape, 0)
            valid = row < n_rows
            xm = jnp.where(valid, x, 0.0)
            mean = jnp.sum(xm, axis=0, keepdims=True) * inv_n
            d = jnp.where(valid, x - mean, 0.0)
            var = jnp.sum(d * d, axis=0, keepdims=True) * inv_n
        x = (x - mean) * jax.lax.rsqrt(var + 1e-5)
    if act == "relu":
        x = jnp.maximum(x, 0.0)
    elif act == "lrelu":
        x = jnp.where(x >= 0.0, x, 0.2 * x)
    elif act == "tanh":
        x = jnp.tanh(x)
    o_ref[0] = x


def _mm_bias_act_kernel(a_ref, b_ref, bias_ref, o_ref, *, act):
    x = jnp.dot(a_ref[...], b_ref[...], preferred_element_type=jnp.float32)
    x = x + bias_ref[...]
    if act == "relu":
        x = jnp.maximum(x, 0.0)
    elif act == "lrelu":
        x = jnp.where(x >= 0.0, x, 0.2 * x)
    elif act == "tanh":
        x = jnp.tanh(x)
    elif act == "l2norm":
        # zero-padded columns contribute nothing to the norm
        n = jnp.sqrt(jnp.sum(x * x, axis=1, keepdims=True))
        x = x / (n + 1e-7)
    o_ref[...] = x


def _gan_loss_kernel(x_ref, o_ref, *, n_valid):
    """Row 0 = pred_fake, row 1 = pred_real (flattened, zero padded).
    Writes [loss_D, loss_G_GAN] to lanes 0/1 of a (1, 128) output."""
    x = x_ref[...]
    col = jax.lax.broadcasted_iota(jnp.int32, x.shape, 1)
    xm = jnp.where(col < n_valid, x, 0.0)
    n = float(n_valid)
    s = jnp.sum(xm, axis=1, keepdims=True)                 # (8, 1)
    ss = jnp.sum(xm * xm, axis=1, keepdims=True)
    mse0 = ss / n                                          # mean((x-0)^2)
    mse1 = (ss - 2.0 * s) / n + 1.0                        # mean((x-1)^2)
    row = jax.lax.broadcasted_iota(jnp.int32, s.shape, 0)
    loss_d = 0.5 * (jnp.sum(jnp.where(row == 0, mse0, 0.0)) +
                    jnp.sum(jnp.where(row == 1, mse1, 0.0)))
    loss_g = jnp.sum(jnp.where(row == 0, mse1, 0.0))
    lane = jax.lax.broadcasted_iota(jnp.int32, (1, 128), 1)
    o_ref[...] = jnp.where(lane == 0, loss_d, jnp.where(lane == 1, loss_g, 0.0))


def _patch_nce_kernel(q_ref, k_ref, o_ref, *, nce_T):
    """Batched PatchNCE: q/k (g, P, Dp) L2-normalized -> per-patch CE (g, P, 1)."""
    q = q_ref[...]
    k = k_ref[...]
    l_pos = jnp.sum(q * k, axis=-1, keepdims=True)         # (g, P, 1)
    l_neg = jnp.einsum("gpd,gqd->gpq", q, k,
                       preferred_element_type=jnp.float32)  # (g, P, P)
    ri = jax.lax.broadcasted_iota(jnp.int32, l_neg.shape, 1)
    ci = jax.lax.broadcasted_iota(jnp.int32, l_neg.shape, 2)
    l_neg = jnp.where(ri == ci, -10.0, l_neg)               # masked_fill diagonal
    lp = l_pos / nce_T
    ln = l_neg / nce_T
    # cross-entropy with target class 0 == positive logit
    m = jnp.maximum(jnp.max(ln, axis=-1, keepdims=True), lp)
    se = jnp.sum(jnp.exp(ln - m), axis=-1, keepdims=True) + jnp.exp(lp - m)
    o_ref[...] = jnp.log(se) + m - lp


# ---------------------------------------------------------------------------
# Kernel wrappers
# ---------------------------------------------------------------------------
def conv2d_fused(x, cw, *, stride=1, norm=False, act="none"):
    """NHWC conv on an already spatially-padded input, fused IN + activation."""
    B, H, W, C = x.shape
    kh, kw, cout = cw["kh"], cw["kw"], cw["cout"]
    Ho = (H - kh) // stride + 1
    Wo = (W - kw) // stride + 1
    cols = []
    for i in range(kh):
        for j in range(kw):
            cols.append(x[:, i:i + stride * (Ho - 1) + 1:stride,
                          j:j + stride * (Wo - 1) + 1:stride, :])
    K = kh * kw * C
    HW = Ho * Wo
    patches = jnp.concatenate(cols, axis=-1).reshape(B, HW, K)
    HWp = _round_up(max(HW, 8), 8)
    Kp, Np = cw["w"].shape
    p = jnp.zeros((B, HWp, Kp), jnp.bfloat16).at[:, :HW, :K].set(
        patches.astype(jnp.bfloat16))
    out = pl.pallas_call(
        functools.partial(_conv_in_act_kernel, n_rows=HW, norm=norm, act=act),
        out_shape=jax.ShapeDtypeStruct((B, HWp, Np), jnp.float32),
        grid=(B,),
        in_specs=[pl.BlockSpec((1, HWp, Kp), lambda b: (b, 0, 0)),
                  pl.BlockSpec((Kp, Np), lambda b: (0, 0)),
                  pl.BlockSpec((1, Np), lambda b: (0, 0))],
        out_specs=pl.BlockSpec((1, HWp, Np), lambda b: (b, 0, 0)),
        compiler_params=pltpu.CompilerParams(dimension_semantics=("parallel",)),
    )(p, cw["w"], cw["b"])
    return out[:, :HW, :cout].reshape(B, Ho, Wo, cout)


def pallas_matmul(a, w_p, bias_p, act="none"):
    """(M,K) @ pre-padded bf16 weights (Kp,Np) + bias, fused activation, f32 out."""
    M, K = a.shape
    Kp, Np = w_p.shape
    TM_MAX = 512
    Mp = _round_up(max(M, 8), 8)
    if Mp <= TM_MAX:
        TM = Mp
    else:
        TM = TM_MAX
        Mp = _round_up(Mp, TM)
    a_p = jnp.zeros((Mp, Kp), jnp.bfloat16).at[:M, :K].set(a.astype(jnp.bfloat16))
    out = pl.pallas_call(
        functools.partial(_mm_bias_act_kernel, act=act),
        out_shape=jax.ShapeDtypeStruct((Mp, Np), jnp.float32),
        grid=(Mp // TM,),
        in_specs=[pl.BlockSpec((TM, Kp), lambda i: (i, 0)),
                  pl.BlockSpec((Kp, Np), lambda i: (0, 0)),
                  pl.BlockSpec((1, Np), lambda i: (0, 0))],
        out_specs=pl.BlockSpec((TM, Np), lambda i: (i, 0)),
        compiler_params=pltpu.CompilerParams(dimension_semantics=("parallel",)),
    )(a_p, w_p, bias_p)
    return out[:M, :]


def gan_losses(pred_fake, pred_real):
    """lsgan losses from one batched D pass: returns (loss_D, loss_G_GAN)."""
    f = pred_fake.reshape(-1).astype(jnp.float32)
    r = pred_real.reshape(-1).astype(jnp.float32)
    L = f.shape[0]
    Lp = _round_up(max(L, 128), 128)
    x = jnp.zeros((8, Lp), jnp.float32).at[0, :L].set(f).at[1, :L].set(r)
    out = pl.pallas_call(
        functools.partial(_gan_loss_kernel, n_valid=L),
        out_shape=jax.ShapeDtypeStruct((1, 128), jnp.float32),
        grid=(1,),
        in_specs=[pl.BlockSpec((8, Lp), lambda i: (0, 0))],
        out_specs=pl.BlockSpec((1, 128), lambda i: (0, 0)),
    )(x)
    return out[0, 0], out[0, 1]


def pallas_patch_nce(q, k, nce_T):
    """q, k: (G, P, nc) L2-normalized.  Returns per-patch CE losses (G, P)."""
    G, P, nc = q.shape
    Dp = _round_up(nc, 128)
    q_p = jnp.zeros((G, P, Dp), jnp.float32).at[:, :, :nc].set(q.astype(jnp.float32))
    k_p = jnp.zeros((G, P, Dp), jnp.float32).at[:, :, :nc].set(k.astype(jnp.float32))
    gsteps = 2 if G % 2 == 0 else 1          # >=2 parallel steps for v7x
    gb = G // gsteps
    losses = pl.pallas_call(
        functools.partial(_patch_nce_kernel, nce_T=float(nce_T)),
        out_shape=jax.ShapeDtypeStruct((G, P, 1), jnp.float32),
        grid=(gsteps,),
        in_specs=[pl.BlockSpec((gb, P, Dp), lambda g: (g, 0, 0)),
                  pl.BlockSpec((gb, P, Dp), lambda g: (g, 0, 0))],
        out_specs=pl.BlockSpec((gb, P, 1), lambda g: (g, 0, 0)),
        compiler_params=pltpu.CompilerParams(dimension_semantics=("parallel",)),
    )(q_p, k_p)
    return losses[..., 0]


# ---------------------------------------------------------------------------
# Parameter preparation (pad to MXU tiles once per forward)
# ---------------------------------------------------------------------------
def prep_conv(w, b):
    cout, cin, kh, kw = w.shape
    K = cin * kh * kw
    Kp = _round_up(K, 128)
    Np = _round_up(cout, 128)
    # im2col channel ordering is (ki, kj, cin) -> weight rows must match
    wm = jnp.transpose(w, (2, 3, 1, 0)).reshape(K, cout)
    w_p = jnp.zeros((Kp, Np), jnp.bfloat16).at[:K, :cout].set(wm.astype(jnp.bfloat16))
    b_p = jnp.zeros((1, Np), jnp.float32).at[0, :cout].set(b.astype(jnp.float32))
    return dict(w=w_p, b=b_p, kh=kh, kw=kw, cout=cout)


def prep_linear(w, b):
    K, N = w.shape
    Kp = _round_up(K, 128)
    Np = _round_up(N, 128)
    w_p = jnp.zeros((Kp, Np), jnp.bfloat16).at[:K, :N].set(w.astype(jnp.bfloat16))
    b_p = jnp.zeros((1, Np), jnp.float32).at[0, :N].set(b.astype(jnp.float32))
    return (w_p, b_p)


# ---------------------------------------------------------------------------
# Networks (NHWC everywhere)
# ---------------------------------------------------------------------------
def _rpad(x, p):
    return jnp.pad(x, ((0, 0), (p, p), (p, p), (0, 0)), mode="reflect")


def _zpad(x, p):
    return jnp.pad(x, ((0, 0), (p, p), (p, p), (0, 0)))


def _upsample2x(x):
    return jnp.repeat(jnp.repeat(x, 2, axis=1), 2, axis=2)


def build_generator_layers(gp):
    def conv(name, stride=1, zpad=0, rpad=0, upsample=False, norm=True, act="relu"):
        cw = gp[name]

        def f(x):
            if upsample:
                x = _upsample2x(x)
            if rpad:
                x = _rpad(x, rpad)
            if zpad:
                x = _zpad(x, zpad)
            return conv2d_fused(x, cw, stride=stride, norm=norm, act=act)
        return f

    def resblock(n1, n2):
        c1 = conv(n1, rpad=1, norm=True, act="relu")
        c2 = conv(n2, rpad=1, norm=True, act="none")
        return lambda x: x + c2(c1(x))

    return [
        lambda x: _rpad(x, 3),                                   # 0 ReflectionPad(3)      [NCE 3ch]
        conv("c1", norm=True, act="relu"),                       # 1 7x7 3->8 +IN+ReLU     [NCE 8ch]
        conv("c2", stride=2, zpad=1, norm=True, act="relu"),     # 2 3x3 s2 8->16 +IN+ReLU
        conv("c3", stride=2, zpad=1, norm=True, act="relu"),     # 3 3x3 s2 16->32 +IN+ReLU [NCE 32ch]
        resblock("r1a", "r1b"),                                  # 4 ResnetBlock(32)
        resblock("r2a", "r2b"),                                  # 5 ResnetBlock(32)        [NCE 32ch]
        conv("u1", zpad=1, upsample=True, norm=True, act="relu"),  # 6 up + 3x3 32->16
        conv("u2", zpad=1, upsample=True, norm=True, act="relu"),  # 7 up + 3x3 16->8
        conv("cout", rpad=3, norm=False, act="tanh"),            # 8 7x7 8->3 + Tanh
    ]


def run_generator(layers, x, nce_layers, encode_only=False):
    feats = []
    last = max(nce_layers)
    for lid, layer in enumerate(layers):
        x = layer(x)
        if lid in nce_layers:
            feats.append(x)
            if encode_only and lid == last:
                return feats
    return x, feats


def run_discriminator(dp, x):
    x = conv2d_fused(_zpad(x, 1), dp["d1"], stride=2, norm=False, act="lrelu")
    x = conv2d_fused(_zpad(x, 1), dp["d2"], stride=2, norm=True, act="lrelu")
    x = conv2d_fused(_zpad(x, 1), dp["d3"], stride=1, norm=True, act="lrelu")
    x = conv2d_fused(_zpad(x, 1), dp["d4"], stride=1, norm=False, act="none")
    return x


def sample_and_project(fp, feats_k, feats_q, key, num_patches, B):
    """feats_k[l] = features of [real_A; real_B]; feats_q[l] = [fake_B; idt_B].
    The PatchSampleF MLP is applied to all four groups of a layer in one
    batched matmul.  Returns per-layer (2, B*P, nc) pools: index 0 -> NCE,
    index 1 -> NCE_Y (q ids are shared with their matching k ids)."""
    k1, k2 = jax.random.split(key)
    q_list, k_list = [], []
    nc = NETF_NC
    for l, (fk, fq) in enumerate(zip(feats_k, feats_q)):
        _, H, W, C = fk.shape
        n = H * W
        P = min(num_patches, n)      # == num_patches at these shapes
        ids1 = jax.random.permutation(jax.random.fold_in(k1, l), n)[:P]
        ids2 = jax.random.permutation(jax.random.fold_in(k2, l), n)[:P]
        fk_flat = fk.reshape(2 * B, n, C)
        fq_flat = fq.reshape(2 * B, n, C)
        kA = fk_flat[:B, ids1]       # (B, P, C) src = real_A
        qF = fq_flat[:B, ids1]       #           tgt = fake_B
        kB = fk_flat[B:, ids2]       #           src = real_B
        qI = fq_flat[B:, ids2]       #           tgt = idt_B
        xs = jnp.concatenate([kA, qF, kB, qI], axis=0).reshape(4 * B * P, C)
        w0, b0, w1, b1 = fp["mlp"][l]
        h = pallas_matmul(xs, w0, b0, act="relu")        # Linear + ReLU
        out = pallas_matmul(h, w1, b1, act="l2norm")     # Linear + L2 normalize
        out = out[:, :nc].reshape(4, B * P, nc)
        k_list.append(jnp.stack([out[0], out[2]]))
        q_list.append(jnp.stack([out[1], out[3]]))
    return q_list, k_list


# ---------------------------------------------------------------------------
# Forward
# ---------------------------------------------------------------------------
def cut_forward_impl(params, batch, key):
    real_A = batch["a"]
    real_B = batch["b"]
    B = real_A.shape[0]

    # pad / reshape weights to MXU-friendly bf16 tiles once
    gp = {k: prep_conv(*v) for k, v in params["G"].items()}
    dp = {k: prep_conv(*v) for k, v in params["D"].items()}
    fp = dict(mlp=[prep_linear(w0, b0) + prep_linear(w1, b1)
                   for (w0, b0, w1, b1) in params["F"]["mlp"]])

    # NHWC activations
    real_A_h = jnp.transpose(real_A, (0, 2, 3, 1)).astype(jnp.float32)
    real_B_h = jnp.transpose(real_B, (0, 2, 3, 1)).astype(jnp.float32)
    real = jnp.concatenate([real_A_h, real_B_h], axis=0)        # nce_idt = True

    layers = build_generator_layers(gp)
    nce_layers = list(CFG["nce_layers"])

    # main generator pass also yields the NCE features of [real_A; real_B]
    fake, feats_k = run_generator(layers, real, nce_layers)
    fake_B_h = fake[:B]

    real_img = 0.5 * real_A + 0.5
    fake_img = 0.5 * jnp.transpose(fake_B_h, (0, 3, 1, 2)) + 0.5
    # TODO(synk): ToPILImage conversion has no JAX/Pallas equivalent; arrays returned.

    # single discriminator pass on [fake_B ; real_B]; reused for loss_D and loss_G_GAN
    pred = run_discriminator(dp, jnp.concatenate([fake_B_h, real_B_h], axis=0))
    loss_D, loss_G_GAN = gan_losses(pred[:B], pred[B:])
    loss_G_GAN = loss_G_GAN * CFG["lambda_GAN"]

    # one extra encode-only pass on [fake_B ; idt_B] gives feat_q of both NCE losses
    feats_q = run_generator(layers, fake, nce_layers, encode_only=True)
    q_list, k_list = sample_and_project(fp, feats_k, feats_q, key,
                                        CFG["num_patches"], B)
    nl = len(nce_layers)
    P = CFG["num_patches"]
    nc = NETF_NC
    q_all = jnp.stack(q_list).reshape(nl * 2 * B, P, nc)
    k_all = jnp.stack(k_list).reshape(nl * 2 * B, P, nc)
    per_patch = pallas_patch_nce(q_all, k_all, CFG["nce_T"])    # (nl*2*B, P)
    per_patch = per_patch.reshape(nl, 2, B, P)
    loss_NCE = jnp.mean(per_patch[:, 0]) * CFG["lambda_NCE"]
    loss_NCE_Y = jnp.mean(per_patch[:, 1]) * CFG["lambda_NCE"]
    loss_NCE_both = 0.5 * (loss_NCE + loss_NCE_Y)

    return dict(lossG=loss_G_GAN, lossF=loss_NCE_both, lossD=loss_D,
                real=real_img, fake=fake_img)


cut_forward = jax.jit(cut_forward_impl)


# ---------------------------------------------------------------------------
# Deterministic parameter init (normal(0, 0.02) weights, zero biases)
# ---------------------------------------------------------------------------
def init_params(key):
    keys = iter(jax.random.split(key, 32))

    def conv_init(cout, cin, k):
        w = 0.02 * jax.random.normal(next(keys), (cout, cin, k, k), jnp.float32)
        return (w, jnp.zeros((cout,), jnp.float32))

    def lin_init(cin, cout):
        w = 0.02 * jax.random.normal(next(keys), (cin, cout), jnp.float32)
        return (w, jnp.zeros((cout,), jnp.float32))

    G = dict(
        c1=conv_init(8, 3, 7), c2=conv_init(16, 8, 3), c3=conv_init(32, 16, 3),
        r1a=conv_init(32, 32, 3), r1b=conv_init(32, 32, 3),
        r2a=conv_init(32, 32, 3), r2b=conv_init(32, 32, 3),
        u1=conv_init(16, 32, 3), u2=conv_init(8, 16, 3),
        cout=conv_init(3, 8, 7),
    )
    D = dict(d1=conv_init(8, 3, 4), d2=conv_init(16, 8, 4),
             d3=conv_init(32, 16, 4), d4=conv_init(1, 32, 4))
    F = dict(mlp=[lin_init(c, NETF_NC) + lin_init(NETF_NC, NETF_NC)
                  for c in NCE_FEAT_CHANNELS])
    return dict(G=G, D=D, F=F)


if __name__ == "__main__":
    root = jax.random.PRNGKey(0)
    k_param, k_a, k_b, k_sample = jax.random.split(root, 4)
    params = init_params(k_param)
    batch = {
        "a": jax.random.normal(k_a, (2, 3, 16, 16), jnp.float32),
        "b": jax.random.normal(k_b, (2, 3, 16, 16), jnp.float32),
    }
    out = cut_forward(params, batch, k_sample)
    out = jax.block_until_ready(out)
    assert out["fake"].shape == (2, 3, 16, 16)
    assert out["real"].shape == (2, 3, 16, 16)
    for name in ("lossG", "lossF", "lossD"):
        assert bool(jnp.isfinite(out[name]))
    print("KERNEL_OK")
</pallas_src>

<mosaic_0001>
module attributes {stable_mosaic.version = 11 : i64} {
  func.func @_conv_in_act_kernel(%arg0: i32, %arg1: memref<1x256x256xbf16, #tpu.memory_space<vmem>>, %arg2: memref<256x128xbf16, #tpu.memory_space<vmem>>, %arg3: memref<1x128xf32, #tpu.memory_space<vmem>>, %arg4: memref<1x256x128xf32, #tpu.memory_space<vmem>>) attributes {dimension_semantics = [#tpu.dimension_semantics<parallel>], iteration_bounds = array<i64: 4>, scalar_prefetch = 0 : i64, scratch_operands = 0 : i64, tpu.core_type = #tpu.core_type<tc>, window_params = [{transform_indices = @transform_0, window_bounds = array<i64: 1, 256, 256>}, {pipeline_mode = #tpu.pipeline_mode<synchronous>, transform_indices = @transform_1, window_bounds = array<i64: 256, 128>}, {pipeline_mode = #tpu.pipeline_mode<synchronous>, transform_indices = @transform_2, window_bounds = array<i64: 1, 128>}, {transform_indices = @transform_3, window_bounds = array<i64: 1, 256, 128>}]} {
    %c0 = arith.constant 0 : index
    %c0_0 = arith.constant 0 : index
    %c0_1 = arith.constant 0 : index
    %0 = vector.load %arg1[%c0, %c0_0, %c0_1] : memref<1x256x256xbf16, #tpu.memory_space<vmem>>, vector<1x256x256xbf16>
    %1 = vector.shape_cast %0 : vector<1x256x256xbf16> to vector<256x256xbf16>
    %c0_2 = arith.constant 0 : index
    %c0_3 = arith.constant 0 : index
    %2 = vector.load %arg2[%c0_2, %c0_3] : memref<256x128xbf16, #tpu.memory_space<vmem>>, vector<256x128xbf16>
    %cst = arith.constant dense<0.000000e+00> : vector<256x128xf32>
    %3 = tpu.matmul %1, %2, %cst {dimension_numbers = #tpu.dot_dimension_numbers<[1], [0], [0], [1], [0, 0, 1, 1], [], []>} : vector<256x256xbf16>, vector<256x128xbf16>, vector<256x128xf32> -> vector<256x128xf32>
    %c0_4 = arith.constant 0 : index
    %c0_5 = arith.constant 0 : index
    %4 = vector.load %arg3[%c0_4, %c0_5] : memref<1x128xf32, #tpu.memory_space<vmem>>, vector<1x128xf32>
    %5 = vector.broadcast %4 : vector<1x128xf32> to vector<256x128xf32>
    %6 = arith.addf %3, %5 : vector<256x128xf32>
    %cst_6 = arith.constant dense<0.000000e+00> : vector<128xf32>
    %7 = vector.multi_reduction <add>, %6, %cst_6 [0] : vector<256x128xf32> to vector<128xf32>
    %8 = vector.shape_cast %7 : vector<128xf32> to vector<1x128xf32>
    %cst_7 = arith.constant 3.906250e-03 : f32
    %9 = vector.broadcast %cst_7 : f32 to vector<1x128xf32>
    %10 = arith.mulf %8, %9 : vector<1x128xf32>
    %11 = vector.broadcast %10 : vector<1x128xf32> to vector<256x128xf32>
    %12 = arith.subf %6, %11 : vector<256x128xf32>
    %13 = arith.mulf %12, %12 : vector<256x128xf32>
    %cst_8 = arith.constant dense<0.000000e+00> : vector<128xf32>
    %14 = vector.multi_reduction <add>, %13, %cst_8 [0] : vector<256x128xf32> to vector<128xf32>
    %15 = vector.shape_cast %14 : vector<128xf32> to vector<1x128xf32>
    %cst_9 = arith.constant 3.906250e-03 : f32
    %16 = vector.broadcast %cst_9 : f32 to vector<1x128xf32>
    %17 = arith.mulf %15, %16 : vector<1x128xf32>
    %18 = vector.broadcast %10 : vector<1x128xf32> to vector<256x128xf32>
    %19 = arith.subf %6, %18 : vector<256x128xf32>
    %cst_10 = arith.constant 9.99999974E-6 : f32
    %20 = vector.broadcast %cst_10 : f32 to vector<1x128xf32>
    %21 = arith.addf %17, %20 : vector<1x128xf32>
    %22 = math.rsqrt %21 : vector<1x128xf32>
    %23 = vector.broadcast %22 : vector<1x128xf32> to vector<256x128xf32>
    %24 = arith.mulf %19, %23 : vector<256x128xf32>
    %cst_11 = arith.constant 0.000000e+00 : f32
    %25 = vector.broadcast %cst_11 : f32 to vector<256x128xf32>
    %26 = arith.maximumf %24, %25 : vector<256x128xf32>
    %c0_12 = arith.constant 0 : index
    %c0_13 = arith.constant 0 : index
    %c0_14 = arith.constant 0 : index
    %27 = vector.load %arg4[%c0_12, %c0_13, %c0_14] : memref<1x256x128xf32, #tpu.memory_space<vmem>>, vector<1x256x128xf32>
    %28 = vector.shape_cast %27 : vector<1x256x128xf32> to vector<256x128xf32>
    %29 = vector.shape_cast %26 : vector<256x128xf32> to vector<1x256x128xf32>
    tpu.vector_store %arg4[%c0_12, %c0_13, %c0_14], %29 {strides = array<i32>} : memref<1x256x128xf32, #tpu.memory_space<vmem>>, vector<1x256x128xf32>,
    return
  }
  func.func @transform_0(%arg0: i32) -> (i32, i32, i32) {
    %c0_i32 = arith.constant 0 : i32
    %c0_i32_0 = arith.constant 0 : i32
    %c0_i32_1 = arith.constant 0 : i32
    return %arg0, %c0_i32, %c0_i32_0 : i32, i32, i32
  }
  func.func @transform_1(%arg0: i32) -> (i32, i32) {
    %c0_i32 = arith.constant 0 : i32
    %c0_i32_0 = arith.constant 0 : i32
    %c0_i32_1 = arith.constant 0 : i32
    return %c0_i32, %c0_i32_0 : i32, i32
  }
  func.func @transform_2(%arg0: i32) -> (i32, i32) {
    %c0_i32 = arith.constant 0 : i32
    %c0_i32_0 = arith.constant 0 : i32
    %c0_i32_1 = arith.constant 0 : i32
    return %c0_i32, %c0_i32_0 : i32, i32
  }
  func.func @transform_3(%arg0: i32) -> (i32, i32, i32) {
    %c0_i32 = arith.constant 0 : i32
    %c0_i32_0 = arith.constant 0 : i32
    %c0_i32_1 = arith.constant 0 : i32
    return %arg0, %c0_i32, %c0_i32_0 : i32, i32, i32
  }
}

module attributes {stable_mosaic.version = 11 : i64} {
  func.func @_conv_in_act_kernel(%arg0: i32, %arg1: memref<1x64x128xbf16, #tpu.memory_space<vmem>>, %arg2: memref<128x128xbf16, #tpu.memory_space<vmem>>, %arg3: memref<1x128xf32, #tpu.memory_space<vmem>>, %arg4: memref<1x64x128xf32, #tpu.memory_space<vmem>>) attributes {dimension_semantics = [#tpu.dimension_semantics<parallel>], iteration_bounds = array<i64: 4>, scalar_prefetch = 0 : i64, scratch_operands = 0 : i64, tpu.core_type = #tpu.core_type<tc>, window_params = [{transform_indices = @transform_0, window_bounds = array<i64: 1, 64, 128>}, {pipeline_mode = #tpu.pipeline_mode<synchronous>, transform_indices = @transform_1, window_bounds = array<i64: 128, 128>}, {pipeline_mode = #tpu.pipeline_mode<synchronous>, transform_indices = @transform_2, window_bounds = array<i64: 1, 128>}, {transform_indices = @transform_3, window_bounds = array<i64: 1, 64, 128>}]} {
    %c0 = arith.constant 0 : index
    %c0_0 = arith.constant 0 : index
    %c0_1 = arith.constant 0 : index
    %0 = vector.load %arg1[%c0, %c0_0, %c0_1] : memref<1x64x128xbf16, #tpu.memory_space<vmem>>, vector<1x64x128xbf16>
    %1 = vector.shape_cast %0 : vector<1x64x128xbf16> to vector<64x128xbf16>
    %c0_2 = arith.constant 0 : index
    %c0_3 = arith.constant 0 : index
    %2 = vector.load %arg2[%c0_2, %c0_3] : memref<128x128xbf16, #tpu.memory_space<vmem>>, vector<128x128xbf16>
    %cst = arith.constant dense<0.000000e+00> : vector<64x128xf32>
    %3 = tpu.matmul %1, %2, %cst {dimension_numbers = #tpu.dot_dimension_numbers<[1], [0], [0], [1], [0, 0, 1, 1], [], []>} : vector<64x128xbf16>, vector<128x128xbf16>, vector<64x128xf32> -> vector<64x128xf32>
    %c0_4 = arith.constant 0 : index
    %c0_5 = arith.constant 0 : index
    %4 = vector.load %arg3[%c0_4, %c0_5] : memref<1x128xf32, #tpu.memory_space<vmem>>, vector<1x128xf32>
    %5 = vector.broadcast %4 : vector<1x128xf32> to vector<64x128xf32>
    %6 = arith.addf %3, %5 : vector<64x128xf32>
    %cst_6 = arith.constant dense<0.000000e+00> : vector<128xf32>
    %7 = vector.multi_reduction <add>, %6, %cst_6 [0] : vector<64x128xf32> to vector<128xf32>
    %8 = vector.shape_cast %7 : vector<128xf32> to vector<1x128xf32>
    %cst_7 = arith.constant 1.562500e-02 : f32
    %9 = vector.broadcast %cst_7 : f32 to vector<1x128xf32>
    %10 = arith.mulf %8, %9 : vector<1x128xf32>
    %11 = vector.broadcast %10 : vector<1x128xf32> to vector<64x128xf32>
    %12 = arith.subf %6, %11 : vector<64x128xf32>
    %13 = arith.mulf %12, %12 : vector<64x128xf32>
    %cst_8 = arith.constant dense<0.000000e+00> : vector<128xf32>
    %14 = vector.multi_reduction <add>, %13, %cst_8 [0] : vector<64x128xf32> to vector<128xf32>
    %15 = vector.shape_cast %14 : vector<128xf32> to vector<1x128xf32>
    %cst_9 = arith.constant 1.562500e-02 : f32
    %16 = vector.broadcast %cst_9 : f32 to vector<1x128xf32>
    %17 = arith.mulf %15, %16 : vector<1x128xf32>
    %18 = vector.broadcast %10 : vector<1x128xf32> to vector<64x128xf32>
    %19 = arith.subf %6, %18 : vector<64x128xf32>
    %cst_10 = arith.constant 9.99999974E-6 : f32
    %20 = vector.broadcast %cst_10 : f32 to vector<1x128xf32>
    %21 = arith.addf %17, %20 : vector<1x128xf32>
    %22 = math.rsqrt %21 : vector<1x128xf32>
    %23 = vector.broadcast %22 : vector<1x128xf32> to vector<64x128xf32>
    %24 = arith.mulf %19, %23 : vector<64x128xf32>
    %cst_11 = arith.constant 0.000000e+00 : f32
    %25 = vector.broadcast %cst_11 : f32 to vector<64x128xf32>
    %26 = arith.maximumf %24, %25 : vector<64x128xf32>
    %c0_12 = arith.constant 0 : index
    %c0_13 = arith.constant 0 : index
    %c0_14 = arith.constant 0 : index
    %27 = vector.load %arg4[%c0_12, %c0_13, %c0_14] : memref<1x64x128xf32, #tpu.memory_space<vmem>>, vector<1x64x128xf32>
    %28 = vector.shape_cast %27 : vector<1x64x128xf32> to vector<64x128xf32>
    %29 = vector.shape_cast %26 : vector<64x128xf32> to vector<1x64x128xf32>
    tpu.vector_store %arg4[%c0_12, %c0_13, %c0_14], %29 {strides = array<i32>} : memref<1x64x128xf32, #tpu.memory_space<vmem>>, vector<1x64x128xf32>,
    return
  }
  func.func @transform_0(%arg0: i32) -> (i32, i32, i32) {
    %c0_i32 = arith.constant 0 : i32
    %c0_i32_0 = arith.constant 0 : i32
    %c0_i32_1 = arith.constant 0 : i32
    return %arg0, %c0_i32, %c0_i32_0 : i32, i32, i32
  }
  func.func @transform_1(%arg0: i32) -> (i32, i32) {
    %c0_i32 = arith.constant 0 : i32
    %c0_i32_0 = arith.constant 0 : i32
    %c0_i32_1 = arith.constant 0 : i32
    return %c0_i32, %c0_i32_0 : i32, i32
  }
  func.func @transform_2(%arg0: i32) -> (i32, i32) {
    %c0_i32 = arith.constant 0 : i32
    %c0_i32_0 = arith.constant 0 : i32
    %c0_i32_1 = arith.constant 0 : i32
    return %c0_i32, %c0_i32_0 : i32, i32
  }
  func.func @transform_3(%arg0: i32) -> (i32, i32, i32) {
    %c0_i32 = arith.constant 0 : i32
    %c0_i32_0 = arith.constant 0 : i32
    %c0_i32_1 = arith.constant 0 : i32
    return %arg0, %c0_i32, %c0_i32_0 : i32, i32, i32
  }
}

module attributes {stable_mosaic.version = 11 : i64} {
  func.func @_conv_in_act_kernel(%arg0: i32, %arg1: memref<1x16x256xbf16, #tpu.memory_space<vmem>>, %arg2: memref<256x128xbf16, #tpu.memory_space<vmem>>, %arg3: memref<1x128xf32, #tpu.memory_space<vmem>>, %arg4: memref<1x16x128xf32, #tpu.memory_space<vmem>>) attributes {dimension_semantics = [#tpu.dimension_semantics<parallel>], iteration_bounds = array<i64: 4>, scalar_prefetch = 0 : i64, scratch_operands = 0 : i64, tpu.core_type = #tpu.core_type<tc>, window_params = [{transform_indices = @transform_0, window_bounds = array<i64: 1, 16, 256>}, {pipeline_mode = #tpu.pipeline_mode<synchronous>, transform_indices = @transform_1, window_bounds = array<i64: 256, 128>}, {pipeline_mode = #tpu.pipeline_mode<synchronous>, transform_indices = @transform_2, window_bounds = array<i64: 1, 128>}, {transform_indices = @transform_3, window_bounds = array<i64: 1, 16, 128>}]} {
    %c0 = arith.constant 0 : index
    %c0_0 = arith.constant 0 : index
    %c0_1 = arith.constant 0 : index
    %0 = vector.load %arg1[%c0, %c0_0, %c0_1] : memref<1x16x256xbf16, #tpu.memory_space<vmem>>, vector<1x16x256xbf16>
    %1 = vector.shape_cast %0 : vector<1x16x256xbf16> to vector<16x256xbf16>
    %c0_2 = arith.constant 0 : index
    %c0_3 = arith.constant 0 : index
    %2 = vector.load %arg2[%c0_2, %c0_3] : memref<256x128xbf16, #tpu.memory_space<vmem>>, vector<256x128xbf16>
    %cst = arith.constant dense<0.000000e+00> : vector<16x128xf32>
    %3 = tpu.matmul %1, %2, %cst {dimension_numbers = #tpu.dot_dimension_numbers<[1], [0], [0], [1], [0, 0, 1, 1], [], []>} : vector<16x256xbf16>, vector<256x128xbf16>, vector<16x128xf32> -> vector<16x128xf32>
    %c0_4 = arith.constant 0 : index
    %c0_5 = arith.constant 0 : index
    %4 = vector.load %arg3[%c0_4, %c0_5] : memref<1x128xf32, #tpu.memory_space<vmem>>, vector<1x128xf32>
    %5 = vector.broadcast %4 : vector<1x128xf32> to vector<16x128xf32>
    %6 = arith.addf %3, %5 : vector<16x128xf32>
    %cst_6 = arith.constant dense<0.000000e+00> : vector<128xf32>
    %7 = vector.multi_reduction <add>, %6, %cst_6 [0] : vector<16x128xf32> to vector<128xf32>
    %8 = vector.shape_cast %7 : vector<128xf32> to vector<1x128xf32>
    %cst_7 = arith.constant 6.250000e-02 : f32
    %9 = vector.broadcast %cst_7 : f32 to vector<1x128xf32>
    %10 = arith.mulf %8, %9 : vector<1x128xf32>
    %11 = vector.broadcast %10 : vector<1x128xf32> to vector<16x128xf32>
    %12 = arith.subf %6, %11 : vector<16x128xf32>
    %13 = arith.mulf %12, %12 : vector<16x128xf32>
    %cst_8 = arith.constant dense<0.000000e+00> : vector<128xf32>
    %14 = vector.multi_reduction <add>, %13, %cst_8 [0] : vector<16x128xf32> to vector<128xf32>
    %15 = vector.shape_cast %14 : vector<128xf32> to vector<1x128xf32>
    %cst_9 = arith.constant 6.250000e-02 : f32
    %16 = vector.broadcast %cst_9 : f32 to vector<1x128xf32>
    %17 = arith.mulf %15, %16 : vector<1x128xf32>
    %18 = vector.broadcast %10 : vector<1x128xf32> to vector<16x128xf32>
    %19 = arith.subf %6, %18 : vector<16x128xf32>
    %cst_10 = arith.constant 9.99999974E-6 : f32
    %20 = vector.broadcast %cst_10 : f32 to vector<1x128xf32>
    %21 = arith.addf %17, %20 : vector<1x128xf32>
    %22 = math.rsqrt %21 : vector<1x128xf32>
    %23 = vector.broadcast %22 : vector<1x128xf32> to vector<16x128xf32>
    %24 = arith.mulf %19, %23 : vector<16x128xf32>
    %cst_11 = arith.constant 0.000000e+00 : f32
    %25 = vector.broadcast %cst_11 : f32 to vector<16x128xf32>
    %26 = arith.maximumf %24, %25 : vector<16x128xf32>
    %c0_12 = arith.constant 0 : index
    %c0_13 = arith.constant 0 : index
    %c0_14 = arith.constant 0 : index
    %27 = vector.load %arg4[%c0_12, %c0_13, %c0_14] : memref<1x16x128xf32, #tpu.memory_space<vmem>>, vector<1x16x128xf32>
    %28 = vector.shape_cast %27 : vector<1x16x128xf32> to vector<16x128xf32>
    %29 = vector.shape_cast %26 : vector<16x128xf32> to vector<1x16x128xf32>
    tpu.vector_store %arg4[%c0_12, %c0_13, %c0_14], %29 {strides = array<i32>} : memref<1x16x128xf32, #tpu.memory_space<vmem>>, vector<1x16x128xf32>,
    return
  }
  func.func @transform_0(%arg0: i32) -> (i32, i32, i32) {
    %c0_i32 = arith.constant 0 : i32
    %c0_i32_0 = arith.constant 0 : i32
    %c0_i32_1 = arith.constant 0 : i32
    return %arg0, %c0_i32, %c0_i32_0 : i32, i32, i32
  }
  func.func @transform_1(%arg0: i32) -> (i32, i32) {
    %c0_i32 = arith.constant 0 : i32
    %c0_i32_0 = arith.constant 0 : i32
    %c0_i32_1 = arith.constant 0 : i32
    return %c0_i32, %c0_i32_0 : i32, i32
  }
  func.func @transform_2(%arg0: i32) -> (i32, i32) {
    %c0_i32 = arith.constant 0 : i32
    %c0_i32_0 = arith.constant 0 : i32
    %c0_i32_1 = arith.constant 0 : i32
    return %c0_i32, %c0_i32_0 : i32, i32
  }
  func.func @transform_3(%arg0: i32) -> (i32, i32, i32) {
    %c0_i32 = arith.constant 0 : i32
    %c0_i32_0 = arith.constant 0 : i32
    %c0_i32_1 = arith.constant 0 : i32
    return %arg0, %c0_i32, %c0_i32_0 : i32, i32, i32
  }
}

module attributes {stable_mosaic.version = 11 : i64} {
  func.func @_conv_in_act_kernel(%arg0: i32, %arg1: memref<1x16x384xbf16, #tpu.memory_space<vmem>>, %arg2: memref<384x128xbf16, #tpu.memory_space<vmem>>, %arg3: memref<1x128xf32, #tpu.memory_space<vmem>>, %arg4: memref<1x16x128xf32, #tpu.memory_space<vmem>>) attributes {dimension_semantics = [#tpu.dimension_semantics<parallel>], iteration_bounds = array<i64: 4>, scalar_prefetch = 0 : i64, scratch_operands = 0 : i64, tpu.core_type = #tpu.core_type<tc>, window_params = [{transform_indices = @transform_0, window_bounds = array<i64: 1, 16, 384>}, {pipeline_mode = #tpu.pipeline_mode<synchronous>, transform_indices = @transform_1, window_bounds = array<i64: 384, 128>}, {pipeline_mode = #tpu.pipeline_mode<synchronous>, transform_indices = @transform_2, window_bounds = array<i64: 1, 128>}, {transform_indices = @transform_3, window_bounds = array<i64: 1, 16, 128>}]} {
    %c0 = arith.constant 0 : index
    %c0_0 = arith.constant 0 : index
    %c0_1 = arith.constant 0 : index
    %0 = vector.load %arg1[%c0, %c0_0, %c0_1] : memref<1x16x384xbf16, #tpu.memory_space<vmem>>, vector<1x16x384xbf16>
    %1 = vector.shape_cast %0 : vector<1x16x384xbf16> to vector<16x384xbf16>
    %c0_2 = arith.constant 0 : index
    %c0_3 = arith.constant 0 : index
    %2 = vector.load %arg2[%c0_2, %c0_3] : memref<384x128xbf16, #tpu.memory_space<vmem>>, vector<384x128xbf16>
    %cst = arith.constant dense<0.000000e+00> : vector<16x128xf32>
    %3 = tpu.matmul %1, %2, %cst {dimension_numbers = #tpu.dot_dimension_numbers<[1], [0], [0], [1], [0, 0, 1, 1], [], []>} : vector<16x384xbf16>, vector<384x128xbf16>, vector<16x128xf32> -> vector<16x128xf32>
    %c0_4 = arith.constant 0 : index
    %c0_5 = arith.constant 0 : index
    %4 = vector.load %arg3[%c0_4, %c0_5] : memref<1x128xf32, #tpu.memory_space<vmem>>, vector<1x128xf32>
    %5 = vector.broadcast %4 : vector<1x128xf32> to vector<16x128xf32>
    %6 = arith.addf %3, %5 : vector<16x128xf32>
    %cst_6 = arith.constant dense<0.000000e+00> : vector<128xf32>
    %7 = vector.multi_reduction <add>, %6, %cst_6 [0] : vector<16x128xf32> to vector<128xf32>
    %8 = vector.shape_cast %7 : vector<128xf32> to vector<1x128xf32>
    %cst_7 = arith.constant 6.250000e-02 : f32
    %9 = vector.broadcast %cst_7 : f32 to vector<1x128xf32>
    %10 = arith.mulf %8, %9 : vector<1x128xf32>
    %11 = vector.broadcast %10 : vector<1x128xf32> to vector<16x128xf32>
    %12 = arith.subf %6, %11 : vector<16x128xf32>
    %13 = arith.mulf %12, %12 : vector<16x128xf32>
    %cst_8 = arith.constant dense<0.000000e+00> : vector<128xf32>
    %14 = vector.multi_reduction <add>, %13, %cst_8 [0] : vector<16x128xf32> to vector<128xf32>
    %15 = vector.shape_cast %14 : vector<128xf32> to vector<1x128xf32>
    %cst_9 = arith.constant 6.250000e-02 : f32
    %16 = vector.broadcast %cst_9 : f32 to vector<1x128xf32>
    %17 = arith.mulf %15, %16 : vector<1x128xf32>
    %18 = vector.broadcast %10 : vector<1x128xf32> to vector<16x128xf32>
    %19 = arith.subf %6, %18 : vector<16x128xf32>
    %cst_10 = arith.constant 9.99999974E-6 : f32
    %20 = vector.broadcast %cst_10 : f32 to vector<1x128xf32>
    %21 = arith.addf %17, %20 : vector<1x128xf32>
    %22 = math.rsqrt %21 : vector<1x128xf32>
    %23 = vector.broadcast %22 : vector<1x128xf32> to vector<16x128xf32>
    %24 = arith.mulf %19, %23 : vector<16x128xf32>
    %c0_11 = arith.constant 0 : index
    %c0_12 = arith.constant 0 : index
    %c0_13 = arith.constant 0 : index
    %25 = vector.load %arg4[%c0_11, %c0_12, %c0_13] : memref<1x16x128xf32, #tpu.memory_space<vmem>>, vector<1x16x128xf32>
    %26 = vector.shape_cast %25 : vector<1x16x128xf32> to vector<16x128xf32>
    %27 = vector.shape_cast %24 : vector<16x128xf32> to vector<1x16x128xf32>
    tpu.vector_store %arg4[%c0_11, %c0_12, %c0_13], %27 {strides = array<i32>} : memref<1x16x128xf32, #tpu.memory_space<vmem>>, vector<1x16x128xf32>,
    return
  }
  func.func @transform_0(%arg0: i32) -> (i32, i32, i32) {
    %c0_i32 = arith.constant 0 : i32
    %c0_i32_0 = arith.constant 0 : i32
    %c0_i32_1 = arith.constant 0 : i32
    return %arg0, %c0_i32, %c0_i32_0 : i32, i32, i32
  }
  func.func @transform_1(%arg0: i32) -> (i32, i32) {
    %c0_i32 = arith.constant 0 : i32
    %c0_i32_0 = arith.constant 0 : i32
    %c0_i32_1 = arith.constant 0 : i32
    return %c0_i32, %c0_i32_0 : i32, i32
  }
  func.func @transform_2(%arg0: i32) -> (i32, i32) {
    %c0_i32 = arith.constant 0 : i32
    %c0_i32_0 = arith.constant 0 : i32
    %c0_i32_1 = arith.constant 0 : i32
    return %c0_i32, %c0_i32_0 : i32, i32
  }
  func.func @transform_3(%arg0: i32) -> (i32, i32, i32) {
    %c0_i32 = arith.constant 0 : i32
    %c0_i32_0 = arith.constant 0 : i32
    %c0_i32_1 = arith.constant 0 : i32
    return %arg0, %c0_i32, %c0_i32_0 : i32, i32, i32
  }
}

module attributes {stable_mosaic.version = 11 : i64} {
  func.func @_conv_in_act_kernel(%arg0: i32, %arg1: memref<1x16x384xbf16, #tpu.memory_space<vmem>>, %arg2: memref<384x128xbf16, #tpu.memory_space<vmem>>, %arg3: memref<1x128xf32, #tpu.memory_space<vmem>>, %arg4: memref<1x16x128xf32, #tpu.memory_space<vmem>>) attributes {dimension_semantics = [#tpu.dimension_semantics<parallel>], iteration_bounds = array<i64: 4>, scalar_prefetch = 0 : i64, scratch_operands = 0 : i64, tpu.core_type = #tpu.core_type<tc>, window_params = [{transform_indices = @transform_0, window_bounds = array<i64: 1, 16, 384>}, {pipeline_mode = #tpu.pipeline_mode<synchronous>, transform_indices = @transform_1, window_bounds = array<i64: 384, 128>}, {pipeline_mode = #tpu.pipeline_mode<synchronous>, transform_indices = @transform_2, window_bounds = array<i64: 1, 128>}, {transform_indices = @transform_3, window_bounds = array<i64: 1, 16, 128>}]} {
    %c0 = arith.constant 0 : index
    %c0_0 = arith.constant 0 : index
    %c0_1 = arith.constant 0 : index
    %0 = vector.load %arg1[%c0, %c0_0, %c0_1] : memref<1x16x384xbf16, #tpu.memory_space<vmem>>, vector<1x16x384xbf16>
    %1 = vector.shape_cast %0 : vector<1x16x384xbf16> to vector<16x384xbf16>
    %c0_2 = arith.constant 0 : index
    %c0_3 = arith.constant 0 : index
    %2 = vector.load %arg2[%c0_2, %c0_3] : memref<384x128xbf16, #tpu.memory_space<vmem>>, vector<384x128xbf16>
    %cst = arith.constant dense<0.000000e+00> : vector<16x128xf32>
    %3 = tpu.matmul %1, %2, %cst {dimension_numbers = #tpu.dot_dimension_numbers<[1], [0], [0], [1], [0, 0, 1, 1], [], []>} : vector<16x384xbf16>, vector<384x128xbf16>, vector<16x128xf32> -> vector<16x128xf32>
    %c0_4 = arith.constant 0 : index
    %c0_5 = arith.constant 0 : index
    %4 = vector.load %arg3[%c0_4, %c0_5] : memref<1x128xf32, #tpu.memory_space<vmem>>, vector<1x128xf32>
    %5 = vector.broadcast %4 : vector<1x128xf32> to vector<16x128xf32>
    %6 = arith.addf %3, %5 : vector<16x128xf32>
    %cst_6 = arith.constant dense<0.000000e+00> : vector<128xf32>
    %7 = vector.multi_reduction <add>, %6, %cst_6 [0] : vector<16x128xf32> to vector<128xf32>
    %8 = vector.shape_cast %7 : vector<128xf32> to vector<1x128xf32>
    %cst_7 = arith.constant 6.250000e-02 : f32
    %9 = vector.broadcast %cst_7 : f32 to vector<1x128xf32>
    %10 = arith.mulf %8, %9 : vector<1x128xf32>
    %11 = vector.broadcast %10 : vector<1x128xf32> to vector<16x128xf32>
    %12 = arith.subf %6, %11 : vector<16x128xf32>
    %13 = arith.mulf %12, %12 : vector<16x128xf32>
    %cst_8 = arith.constant dense<0.000000e+00> : vector<128xf32>
    %14 = vector.multi_reduction <add>, %13, %cst_8 [0] : vector<16x128xf32> to vector<128xf32>
    %15 = vector.shape_cast %14 : vector<128xf32> to vector<1x128xf32>
    %cst_9 = arith.constant 6.250000e-02 : f32
    %16 = vector.broadcast %cst_9 : f32 to vector<1x128xf32>
    %17 = arith.mulf %15, %16 : vector<1x128xf32>
    %18 = vector.broadcast %10 : vector<1x128xf32> to vector<16x128xf32>
    %19 = arith.subf %6, %18 : vector<16x128xf32>
    %cst_10 = arith.constant 9.99999974E-6 : f32
    %20 = vector.broadcast %cst_10 : f32 to vector<1x128xf32>
    %21 = arith.addf %17, %20 : vector<1x128xf32>
    %22 = math.rsqrt %21 : vector<1x128xf32>
    %23 = vector.broadcast %22 : vector<1x128xf32> to vector<16x128xf32>
    %24 = arith.mulf %19, %23 : vector<16x128xf32>
    %cst_11 = arith.constant 0.000000e+00 : f32
    %25 = vector.broadcast %cst_11 : f32 to vector<16x128xf32>
    %26 = arith.maximumf %24, %25 : vector<16x128xf32>
    %c0_12 = arith.constant 0 : index
    %c0_13 = arith.constant 0 : index
    %c0_14 = arith.constant 0 : index
    %27 = vector.load %arg4[%c0_12, %c0_13, %c0_14] : memref<1x16x128xf32, #tpu.memory_space<vmem>>, vector<1x16x128xf32>
    %28 = vector.shape_cast %27 : vector<1x16x128xf32> to vector<16x128xf32>
    %29 = vector.shape_cast %26 : vector<16x128xf32> to vector<1x16x128xf32>
    tpu.vector_store %arg4[%c0_12, %c0_13, %c0_14], %29 {strides = array<i32>} : memref<1x16x128xf32, #tpu.memory_space<vmem>>, vector<1x16x128xf32>,
    return
  }
  func.func @transform_0(%arg0: i32) -> (i32, i32, i32) {
    %c0_i32 = arith.constant 0 : i32
    %c0_i32_0 = arith.constant 0 : i32
    %c0_i32_1 = arith.constant 0 : i32
    return %arg0, %c0_i32, %c0_i32_0 : i32, i32, i32
  }
  func.func @transform_1(%arg0: i32) -> (i32, i32) {
    %c0_i32 = arith.constant 0 : i32
    %c0_i32_0 = arith.constant 0 : i32
    %c0_i32_1 = arith.constant 0 : i32
    return %c0_i32, %c0_i32_0 : i32, i32
  }
  func.func @transform_2(%arg0: i32) -> (i32, i32) {
    %c0_i32 = arith.constant 0 : i32
    %c0_i32_0 = arith.constant 0 : i32
    %c0_i32_1 = arith.constant 0 : i32
    return %c0_i32, %c0_i32_0 : i32, i32
  }
  func.func @transform_3(%arg0: i32) -> (i32, i32, i32) {
    %c0_i32 = arith.constant 0 : i32
    %c0_i32_0 = arith.constant 0 : i32
    %c0_i32_1 = arith.constant 0 : i32
    return %arg0, %c0_i32, %c0_i32_0 : i32, i32, i32
  }
}

module attributes {stable_mosaic.version = 11 : i64} {
  func.func @_conv_in_act_kernel(%arg0: i32, %arg1: memref<1x64x384xbf16, #tpu.memory_space<vmem>>, %arg2: memref<384x128xbf16, #tpu.memory_space<vmem>>, %arg3: memref<1x128xf32, #tpu.memory_space<vmem>>, %arg4: memref<1x64x128xf32, #tpu.memory_space<vmem>>) attributes {dimension_semantics = [#tpu.dimension_semantics<parallel>], iteration_bounds = array<i64: 4>, scalar_prefetch = 0 : i64, scratch_operands = 0 : i64, tpu.core_type = #tpu.core_type<tc>, window_params = [{transform_indices = @transform_0, window_bounds = array<i64: 1, 64, 384>}, {pipeline_mode = #tpu.pipeline_mode<synchronous>, transform_indices = @transform_1, window_bounds = array<i64: 384, 128>}, {pipeline_mode = #tpu.pipeline_mode<synchronous>, transform_indices = @transform_2, window_bounds = array<i64: 1, 128>}, {transform_indices = @transform_3, window_bounds = array<i64: 1, 64, 128>}]} {
    %c0 = arith.constant 0 : index
    %c0_0 = arith.constant 0 : index
    %c0_1 = arith.constant 0 : index
    %0 = vector.load %arg1[%c0, %c0_0, %c0_1] : memref<1x64x384xbf16, #tpu.memory_space<vmem>>, vector<1x64x384xbf16>
    %1 = vector.shape_cast %0 : vector<1x64x384xbf16> to vector<64x384xbf16>
    %c0_2 = arith.constant 0 : index
    %c0_3 = arith.constant 0 : index
    %2 = vector.load %arg2[%c0_2, %c0_3] : memref<384x128xbf16, #tpu.memory_space<vmem>>, vector<384x128xbf16>
    %cst = arith.constant dense<0.000000e+00> : vector<64x128xf32>
    %3 = tpu.matmul %1, %2, %cst {dimension_numbers = #tpu.dot_dimension_numbers<[1], [0], [0], [1], [0, 0, 1, 1], [], []>} : vector<64x384xbf16>, vector<384x128xbf16>, vector<64x128xf32> -> vector<64x128xf32>
    %c0_4 = arith.constant 0 : index
    %c0_5 = arith.constant 0 : index
    %4 = vector.load %arg3[%c0_4, %c0_5] : memref<1x128xf32, #tpu.memory_space<vmem>>, vector<1x128xf32>
    %5 = vector.broadcast %4 : vector<1x128xf32> to vector<64x128xf32>
    %6 = arith.addf %3, %5 : vector<64x128xf32>
    %cst_6 = arith.constant dense<0.000000e+00> : vector<128xf32>
    %7 = vector.multi_reduction <add>, %6, %cst_6 [0] : vector<64x128xf32> to vector<128xf32>
    %8 = vector.shape_cast %7 : vector<128xf32> to vector<1x128xf32>
    %cst_7 = arith.constant 1.562500e-02 : f32
    %9 = vector.broadcast %cst_7 : f32 to vector<1x128xf32>
    %10 = arith.mulf %8, %9 : vector<1x128xf32>
    %11 = vector.broadcast %10 : vector<1x128xf32> to vector<64x128xf32>
    %12 = arith.subf %6, %11 : vector<64x128xf32>
    %13 = arith.mulf %12, %12 : vector<64x128xf32>
    %cst_8 = arith.constant dense<0.000000e+00> : vector<128xf32>
    %14 = vector.multi_reduction <add>, %13, %cst_8 [0] : vector<64x128xf32> to vector<128xf32>
    %15 = vector.shape_cast %14 : vector<128xf32> to vector<1x128xf32>
    %cst_9 = arith.constant 1.562500e-02 : f32
    %16 = vector.broadcast %cst_9 : f32 to vector<1x128xf32>
    %17 = arith.mulf %15, %16 : vector<1x128xf32>
    %18 = vector.broadcast %10 : vector<1x128xf32> to vector<64x128xf32>
    %19 = arith.subf %6, %18 : vector<64x128xf32>
    %cst_10 = arith.constant 9.99999974E-6 : f32
    %20 = vector.broadcast %cst_10 : f32 to vector<1x128xf32>
    %21 = arith.addf %17, %20 : vector<1x128xf32>
    %22 = math.rsqrt %21 : vector<1x128xf32>
    %23 = vector.broadcast %22 : vector<1x128xf32> to vector<64x128xf32>
    %24 = arith.mulf %19, %23 : vector<64x128xf32>
    %cst_11 = arith.constant 0.000000e+00 : f32
    %25 = vector.broadcast %cst_11 : f32 to vector<64x128xf32>
    %26 = arith.maximumf %24, %25 : vector<64x128xf32>
    %c0_12 = arith.constant 0 : index
    %c0_13 = arith.constant 0 : index
    %c0_14 = arith.constant 0 : index
    %27 = vector.load %arg4[%c0_12, %c0_13, %c0_14] : memref<1x64x128xf32, #tpu.memory_space<vmem>>, vector<1x64x128xf32>
    %28 = vector.shape_cast %27 : vector<1x64x128xf32> to vector<64x128xf32>
    %29 = vector.shape_cast %26 : vector<64x128xf32> to vector<1x64x128xf32>
    tpu.vector_store %arg4[%c0_12, %c0_13, %c0_14], %29 {strides = array<i32>} : memref<1x64x128xf32, #tpu.memory_space<vmem>>, vector<1x64x128xf32>,
    return
  }
  func.func @transform_0(%arg0: i32) -> (i32, i32, i32) {
    %c0_i32 = arith.constant 0 : i32
    %c0_i32_0 = arith.constant 0 : i32
    %c0_i32_1 = arith.constant 0 : i32
    return %arg0, %c0_i32, %c0_i32_0 : i32, i32, i32
  }
  func.func @transform_1(%arg0: i32) -> (i32, i32) {
    %c0_i32 = arith.constant 0 : i32
    %c0_i32_0 = arith.constant 0 : i32
    %c0_i32_1 = arith.constant 0 : i32
    return %c0_i32, %c0_i32_0 : i32, i32
  }
  func.func @transform_2(%arg0: i32) -> (i32, i32) {
    %c0_i32 = arith.constant 0 : i32
    %c0_i32_0 = arith.constant 0 : i32
    %c0_i32_1 = arith.constant 0 : i32
    return %c0_i32, %c0_i32_0 : i32, i32
  }
  func.func @transform_3(%arg0: i32) -> (i32, i32, i32) {
    %c0_i32 = arith.constant 0 : i32
    %c0_i32_0 = arith.constant 0 : i32
    %c0_i32_1 = arith.constant 0 : i32
    return %arg0, %c0_i32, %c0_i32_0 : i32, i32, i32
  }
}

module attributes {stable_mosaic.version = 11 : i64} {
  func.func @_conv_in_act_kernel(%arg0: i32, %arg1: memref<1x256x512xbf16, #tpu.memory_space<vmem>>, %arg2: memref<512x128xbf16, #tpu.memory_space<vmem>>, %arg3: memref<1x128xf32, #tpu.memory_space<vmem>>, %arg4: memref<1x256x128xf32, #tpu.memory_space<vmem>>) attributes {dimension_semantics = [#tpu.dimension_semantics<parallel>], iteration_bounds = array<i64: 4>, scalar_prefetch = 0 : i64, scratch_operands = 0 : i64, tpu.core_type = #tpu.core_type<tc>, window_params = [{transform_indices = @transform_0, window_bounds = array<i64: 1, 256, 512>}, {pipeline_mode = #tpu.pipeline_mode<synchronous>, transform_indices = @transform_1, window_bounds = array<i64: 512, 128>}, {pipeline_mode = #tpu.pipeline_mode<synchronous>, transform_indices = @transform_2, window_bounds = array<i64: 1, 128>}, {transform_indices = @transform_3, window_bounds = array<i64: 1, 256, 128>}]} {
    %c0 = arith.constant 0 : index
    %c0_0 = arith.constant 0 : index
    %c0_1 = arith.constant 0 : index
    %0 = vector.load %arg1[%c0, %c0_0, %c0_1] : memref<1x256x512xbf16, #tpu.memory_space<vmem>>, vector<1x256x512xbf16>
    %1 = vector.shape_cast %0 : vector<1x256x512xbf16> to vector<256x512xbf16>
    %c0_2 = arith.constant 0 : index
    %c0_3 = arith.constant 0 : index
    %2 = vector.load %arg2[%c0_2, %c0_3] : memref<512x128xbf16, #tpu.memory_space<vmem>>, vector<512x128xbf16>
    %cst = arith.constant dense<0.000000e+00> : vector<256x128xf32>
    %3 = tpu.matmul %1, %2, %cst {dimension_numbers = #tpu.dot_dimension_numbers<[1], [0], [0], [1], [0, 0, 1, 1], [], []>} : vector<256x512xbf16>, vector<512x128xbf16>, vector<256x128xf32> -> vector<256x128xf32>
    %c0_4 = arith.constant 0 : index
    %c0_5 = arith.constant 0 : index
    %4 = vector.load %arg3[%c0_4, %c0_5] : memref<1x128xf32, #tpu.memory_space<vmem>>, vector<1x128xf32>
    %5 = vector.broadcast %4 : vector<1x128xf32> to vector<256x128xf32>
    %6 = arith.addf %3, %5 : vector<256x128xf32>
    %7 = math.tanh %6 : vector<256x128xf32>
    %c0_6 = arith.constant 0 : index
    %c0_7 = arith.constant 0 : index
    %c0_8 = arith.constant 0 : index
    %8 = vector.load %arg4[%c0_6, %c0_7, %c0_8] : memref<1x256x128xf32, #tpu.memory_space<vmem>>, vector<1x256x128xf32>
    %9 = vector.shape_cast %8 : vector<1x256x128xf32> to vector<256x128xf32>
    %10 = vector.shape_cast %7 : vector<256x128xf32> to vector<1x256x128xf32>
    tpu.vector_store %arg4[%c0_6, %c0_7, %c0_8], %10 {strides = array<i32>} : memref<1x256x128xf32, #tpu.memory_space<vmem>>, vector<1x256x128xf32>,
    return
  }
  func.func @transform_0(%arg0: i32) -> (i32, i32, i32) {
    %c0_i32 = arith.constant 0 : i32
    %c0_i32_0 = arith.constant 0 : i32
    %c0_i32_1 = arith.constant 0 : i32
    return %arg0, %c0_i32, %c0_i32_0 : i32, i32, i32
  }
  func.func @transform_1(%arg0: i32) -> (i32, i32) {
    %c0_i32 = arith.constant 0 : i32
    %c0_i32_0 = arith.constant 0 : i32
    %c0_i32_1 = arith.constant 0 : i32
    return %c0_i32, %c0_i32_0 : i32, i32
  }
  func.func @transform_2(%arg0: i32) -> (i32, i32) {
    %c0_i32 = arith.constant 0 : i32
    %c0_i32_0 = arith.constant 0 : i32
    %c0_i32_1 = arith.constant 0 : i32
    return %c0_i32, %c0_i32_0 : i32, i32
  }
  func.func @transform_3(%arg0: i32) -> (i32, i32, i32) {
    %c0_i32 = arith.constant 0 : i32
    %c0_i32_0 = arith.constant 0 : i32
    %c0_i32_1 = arith.constant 0 : i32
    return %arg0, %c0_i32, %c0_i32_0 : i32, i32, i32
  }
}

module attributes {stable_mosaic.version = 11 : i64} {
  func.func @_conv_in_act_kernel(%arg0: i32, %arg1: memref<1x64x128xbf16, #tpu.memory_space<vmem>>, %arg2: memref<128x128xbf16, #tpu.memory_space<vmem>>, %arg3: memref<1x128xf32, #tpu.memory_space<vmem>>, %arg4: memref<1x64x128xf32, #tpu.memory_space<vmem>>) attributes {dimension_semantics = [#tpu.dimension_semantics<parallel>], iteration_bounds = array<i64: 4>, scalar_prefetch = 0 : i64, scratch_operands = 0 : i64, tpu.core_type = #tpu.core_type<tc>, window_params = [{transform_indices = @transform_0, window_bounds = array<i64: 1, 64, 128>}, {pipeline_mode = #tpu.pipeline_mode<synchronous>, transform_indices = @transform_1, window_bounds = array<i64: 128, 128>}, {pipeline_mode = #tpu.pipeline_mode<synchronous>, transform_indices = @transform_2, window_bounds = array<i64: 1, 128>}, {transform_indices = @transform_3, window_bounds = array<i64: 1, 64, 128>}]} {
    %c0 = arith.constant 0 : index
    %c0_0 = arith.constant 0 : index
    %c0_1 = arith.constant 0 : index
    %0 = vector.load %arg1[%c0, %c0_0, %c0_1] : memref<1x64x128xbf16, #tpu.memory_space<vmem>>, vector<1x64x128xbf16>
    %1 = vector.shape_cast %0 : vector<1x64x128xbf16> to vector<64x128xbf16>
    %c0_2 = arith.constant 0 : index
    %c0_3 = arith.constant 0 : index
    %2 = vector.load %arg2[%c0_2, %c0_3] : memref<128x128xbf16, #tpu.memory_space<vmem>>, vector<128x128xbf16>
    %cst = arith.constant dense<0.000000e+00> : vector<64x128xf32>
    %3 = tpu.matmul %1, %2, %cst {dimension_numbers = #tpu.dot_dimension_numbers<[1], [0], [0], [1], [0, 0, 1, 1], [], []>} : vector<64x128xbf16>, vector<128x128xbf16>, vector<64x128xf32> -> vector<64x128xf32>
    %c0_4 = arith.constant 0 : index
    %c0_5 = arith.constant 0 : index
    %4 = vector.load %arg3[%c0_4, %c0_5] : memref<1x128xf32, #tpu.memory_space<vmem>>, vector<1x128xf32>
    %5 = vector.broadcast %4 : vector<1x128xf32> to vector<64x128xf32>
    %6 = arith.addf %3, %5 : vector<64x128xf32>
    %cst_6 = arith.constant 0.000000e+00 : f32
    %7 = vector.broadcast %cst_6 : f32 to vector<64x128xf32>
    %8 = arith.cmpf oge, %6, %7 : vector<64x128xf32>
    %cst_7 = arith.constant 2.000000e-01 : f32
    %9 = vector.broadcast %cst_7 : f32 to vector<64x128xf32>
    %10 = arith.mulf %9, %6 : vector<64x128xf32>
    %11 = arith.select %8, %6, %10 : vector<64x128xi1>, vector<64x128xf32>
    %c0_8 = arith.constant 0 : index
    %c0_9 = arith.constant 0 : index
    %c0_10 = arith.constant 0 : index
    %12 = vector.load %arg4[%c0_8, %c0_9, %c0_10] : memref<1x64x128xf32, #tpu.memory_space<vmem>>, vector<1x64x128xf32>
    %13 = vector.shape_cast %12 : vector<1x64x128xf32> to vector<64x128xf32>
    %14 = vector.shape_cast %11 : vector<64x128xf32> to vector<1x64x128xf32>
    tpu.vector_store %arg4[%c0_8, %c0_9, %c0_10], %14 {strides = array<i32>} : memref<1x64x128xf32, #tpu.memory_space<vmem>>, vector<1x64x128xf32>,
    return
  }
  func.func @transform_0(%arg0: i32) -> (i32, i32, i32) {
    %c0_i32 = arith.constant 0 : i32
    %c0_i32_0 = arith.constant 0 : i32
    %c0_i32_1 = arith.constant 0 : i32
    return %arg0, %c0_i32, %c0_i32_0 : i32, i32, i32
  }
  func.func @transform_1(%arg0: i32) -> (i32, i32) {
    %c0_i32 = arith.constant 0 : i32
    %c0_i32_0 = arith.constant 0 : i32
    %c0_i32_1 = arith.constant 0 : i32
    return %c0_i32, %c0_i32_0 : i32, i32
  }
  func.func @transform_2(%arg0: i32) -> (i32, i32) {
    %c0_i32 = arith.constant 0 : i32
    %c0_i32_0 = arith.constant 0 : i32
    %c0_i32_1 = arith.constant 0 : i32
    return %c0_i32, %c0_i32_0 : i32, i32
  }
  func.func @transform_3(%arg0: i32) -> (i32, i32, i32) {
    %c0_i32 = arith.constant 0 : i32
    %c0_i32_0 = arith.constant 0 : i32
    %c0_i32_1 = arith.constant 0 : i32
    return %arg0, %c0_i32, %c0_i32_0 : i32, i32, i32
  }
}

module attributes {stable_mosaic.version = 11 : i64} {
  func.func @_conv_in_act_kernel(%arg0: i32, %arg1: memref<1x16x128xbf16, #tpu.memory_space<vmem>>, %arg2: memref<128x128xbf16, #tpu.memory_space<vmem>>, %arg3: memref<1x128xf32, #tpu.memory_space<vmem>>, %arg4: memref<1x16x128xf32, #tpu.memory_space<vmem>>) attributes {dimension_semantics = [#tpu.dimension_semantics<parallel>], iteration_bounds = array<i64: 4>, scalar_prefetch = 0 : i64, scratch_operands = 0 : i64, tpu.core_type = #tpu.core_type<tc>, window_params = [{transform_indices = @transform_0, window_bounds = array<i64: 1, 16, 128>}, {pipeline_mode = #tpu.pipeline_mode<synchronous>, transform_indices = @transform_1, window_bounds = array<i64: 128, 128>}, {pipeline_mode = #tpu.pipeline_mode<synchronous>, transform_indices = @transform_2, window_bounds = array<i64: 1, 128>}, {transform_indices = @transform_3, window_bounds = array<i64: 1, 16, 128>}]} {
    %c0 = arith.constant 0 : index
    %c0_0 = arith.constant 0 : index
    %c0_1 = arith.constant 0 : index
    %0 = vector.load %arg1[%c0, %c0_0, %c0_1] : memref<1x16x128xbf16, #tpu.memory_space<vmem>>, vector<1x16x128xbf16>
    %1 = vector.shape_cast %0 : vector<1x16x128xbf16> to vector<16x128xbf16>
    %c0_2 = arith.constant 0 : index
    %c0_3 = arith.constant 0 : index
    %2 = vector.load %arg2[%c0_2, %c0_3] : memref<128x128xbf16, #tpu.memory_space<vmem>>, vector<128x128xbf16>
    %cst = arith.constant dense<0.000000e+00> : vector<16x128xf32>
    %3 = tpu.matmul %1, %2, %cst {dimension_numbers = #tpu.dot_dimension_numbers<[1], [0], [0], [1], [0, 0, 1, 1], [], []>} : vector<16x128xbf16>, vector<128x128xbf16>, vector<16x128xf32> -> vector<16x128xf32>
    %c0_4 = arith.constant 0 : index
    %c0_5 = arith.constant 0 : index
    %4 = vector.load %arg3[%c0_4, %c0_5] : memref<1x128xf32, #tpu.memory_space<vmem>>, vector<1x128xf32>
    %5 = vector.broadcast %4 : vector<1x128xf32> to vector<16x128xf32>
    %6 = arith.addf %3, %5 : vector<16x128xf32>
    %cst_6 = arith.constant dense<0.000000e+00> : vector<128xf32>
    %7 = vector.multi_reduction <add>, %6, %cst_6 [0] : vector<16x128xf32> to vector<128xf32>
    %8 = vector.shape_cast %7 : vector<128xf32> to vector<1x128xf32>
    %cst_7 = arith.constant 6.250000e-02 : f32
    %9 = vector.broadcast %cst_7 : f32 to vector<1x128xf32>
    %10 = arith.mulf %8, %9 : vector<1x128xf32>
    %11 = vector.broadcast %10 : vector<1x128xf32> to vector<16x128xf32>
    %12 = arith.subf %6, %11 : vector<16x128xf32>
    %13 = arith.mulf %12, %12 : vector<16x128xf32>
    %cst_8 = arith.constant dense<0.000000e+00> : vector<128xf32>
    %14 = vector.multi_reduction <add>, %13, %cst_8 [0] : vector<16x128xf32> to vector<128xf32>
    %15 = vector.shape_cast %14 : vector<128xf32> to vector<1x128xf32>
    %cst_9 = arith.constant 6.250000e-02 : f32
    %16 = vector.broadcast %cst_9 : f32 to vector<1x128xf32>
    %17 = arith.mulf %15, %16 : vector<1x128xf32>
    %18 = vector.broadcast %10 : vector<1x128xf32> to vector<16x128xf32>
    %19 = arith.subf %6, %18 : vector<16x128xf32>
    %cst_10 = arith.constant 9.99999974E-6 : f32
    %20 = vector.broadcast %cst_10 : f32 to vector<1x128xf32>
    %21 = arith.addf %17, %20 : vector<1x128xf32>
    %22 = math.rsqrt %21 : vector<1x128xf32>
    %23 = vector.broadcast %22 : vector<1x128xf32> to vector<16x128xf32>
    %24 = arith.mulf %19, %23 : vector<16x128xf32>
    %cst_11 = arith.constant 0.000000e+00 : f32
    %25 = vector.broadcast %cst_11 : f32 to vector<16x128xf32>
    %26 = arith.cmpf oge, %24, %25 : vector<16x128xf32>
    %cst_12 = arith.constant 2.000000e-01 : f32
    %27 = vector.broadcast %cst_12 : f32 to vector<16x128xf32>
    %28 = arith.mulf %27, %24 : vector<16x128xf32>
    %29 = arith.select %26, %24, %28 : vector<16x128xi1>, vector<16x128xf32>
    %c0_13 = arith.constant 0 : index
    %c0_14 = arith.constant 0 : index
    %c0_15 = arith.constant 0 : index
    %30 = vector.load %arg4[%c0_13, %c0_14, %c0_15] : memref<1x16x128xf32, #tpu.memory_space<vmem>>, vector<1x16x128xf32>
    %31 = vector.shape_cast %30 : vector<1x16x128xf32> to vector<16x128xf32>
    %32 = vector.shape_cast %29 : vector<16x128xf32> to vector<1x16x128xf32>
    tpu.vector_store %arg4[%c0_13, %c0_14, %c0_15], %32 {strides = array<i32>} : memref<1x16x128xf32, #tpu.memory_space<vmem>>, vector<1x16x128xf32>,
    return
  }
  func.func @transform_0(%arg0: i32) -> (i32, i32, i32) {
    %c0_i32 = arith.constant 0 : i32
    %c0_i32_0 = arith.constant 0 : i32
    %c0_i32_1 = arith.constant 0 : i32
    return %arg0, %c0_i32, %c0_i32_0 : i32, i32, i32
  }
  func.func @transform_1(%arg0: i32) -> (i32, i32) {
    %c0_i32 = arith.constant 0 : i32
    %c0_i32_0 = arith.constant 0 : i32
    %c0_i32_1 = arith.constant 0 : i32
    return %c0_i32, %c0_i32_0 : i32, i32
  }
  func.func @transform_2(%arg0: i32) -> (i32, i32) {
    %c0_i32 = arith.constant 0 : i32
    %c0_i32_0 = arith.constant 0 : i32
    %c0_i32_1 = arith.constant 0 : i32
    return %c0_i32, %c0_i32_0 : i32, i32
  }
  func.func @transform_3(%arg0: i32) -> (i32, i32, i32) {
    %c0_i32 = arith.constant 0 : i32
    %c0_i32_0 = arith.constant 0 : i32
    %c0_i32_1 = arith.constant 0 : i32
    return %arg0, %c0_i32, %c0_i32_0 : i32, i32, i32
  }
}

module attributes {stable_mosaic.version = 11 : i64} {
  func.func @_conv_in_act_kernel(%arg0: i32, %arg1: memref<1x16x256xbf16, #tpu.memory_space<vmem>>, %arg2: memref<256x128xbf16, #tpu.memory_space<vmem>>, %arg3: memref<1x128xf32, #tpu.memory_space<vmem>>, %arg4: memref<1x16x128xf32, #tpu.memory_space<vmem>>) attributes {dimension_semantics = [#tpu.dimension_semantics<parallel>], iteration_bounds = array<i64: 4>, scalar_prefetch = 0 : i64, scratch_operands = 0 : i64, tpu.core_type = #tpu.core_type<tc>, window_params = [{transform_indices = @transform_0, window_bounds = array<i64: 1, 16, 256>}, {pipeline_mode = #tpu.pipeline_mode<synchronous>, transform_indices = @transform_1, window_bounds = array<i64: 256, 128>}, {pipeline_mode = #tpu.pipeline_mode<synchronous>, transform_indices = @transform_2, window_bounds = array<i64: 1, 128>}, {transform_indices = @transform_3, window_bounds = array<i64: 1, 16, 128>}]} {
    %c0 = arith.constant 0 : index
    %c0_0 = arith.constant 0 : index
    %c0_1 = arith.constant 0 : index
    %0 = vector.load %arg1[%c0, %c0_0, %c0_1] : memref<1x16x256xbf16, #tpu.memory_space<vmem>>, vector<1x16x256xbf16>
    %1 = vector.shape_cast %0 : vector<1x16x256xbf16> to vector<16x256xbf16>
    %c0_2 = arith.constant 0 : index
    %c0_3 = arith.constant 0 : index
    %2 = vector.load %arg2[%c0_2, %c0_3] : memref<256x128xbf16, #tpu.memory_space<vmem>>, vector<256x128xbf16>
    %cst = arith.constant dense<0.000000e+00> : vector<16x128xf32>
    %3 = tpu.matmul %1, %2, %cst {dimension_numbers = #tpu.dot_dimension_numbers<[1], [0], [0], [1], [0, 0, 1, 1], [], []>} : vector<16x256xbf16>, vector<256x128xbf16>, vector<16x128xf32> -> vector<16x128xf32>
    %c0_4 = arith.constant 0 : index
    %c0_5 = arith.constant 0 : index
    %4 = vector.load %arg3[%c0_4, %c0_5] : memref<1x128xf32, #tpu.memory_space<vmem>>, vector<1x128xf32>
    %5 = vector.broadcast %4 : vector<1x128xf32> to vector<16x128xf32>
    %6 = arith.addf %3, %5 : vector<16x128xf32>
    %7 = tpu.iota {dimensions = array<i32: 0>} : vector<16x128xi32>
    %c9_i32 = arith.constant 9 : i32
    %8 = vector.broadcast %c9_i32 : i32 to vector<16x128xi32>
    %9 = arith.cmpi slt, %7, %8 : vector<16x128xi32>
    %cst_6 = arith.constant 0.000000e+00 : f32
    %10 = vector.broadcast %cst_6 : f32 to vector<16x128xf32>
    %11 = arith.select %9, %6, %10 : vector<16x128xi1>, vector<16x128xf32>
    %cst_7 = arith.constant dense<0.000000e+00> : vector<128xf32>
    %12 = vector.multi_reduction <add>, %11, %cst_7 [0] : vector<16x128xf32> to vector<128xf32>
    %13 = vector.shape_cast %12 : vector<128xf32> to vector<1x128xf32>
    %cst_8 = arith.constant 0.111111112 : f32
    %14 = vector.broadcast %cst_8 : f32 to vector<1x128xf32>
    %15 = arith.mulf %13, %14 : vector<1x128xf32>
    %16 = vector.broadcast %15 : vector<1x128xf32> to vector<16x128xf32>
    %17 = arith.subf %6, %16 : vector<16x128xf32>
    %cst_9 = arith.constant 0.000000e+00 : f32
    %18 = vector.broadcast %cst_9 : f32 to vector<16x128xf32>
    %19 = arith.select %9, %17, %18 : vector<16x128xi1>, vector<16x128xf32>
    %20 = arith.mulf %19, %19 : vector<16x128xf32>
    %cst_10 = arith.constant dense<0.000000e+00> : vector<128xf32>
    %21 = vector.multi_reduction <add>, %20, %cst_10 [0] : vector<16x128xf32> to vector<128xf32>
    %22 = vector.shape_cast %21 : vector<128xf32> to vector<1x128xf32>
    %cst_11 = arith.constant 0.111111112 : f32
    %23 = vector.broadcast %cst_11 : f32 to vector<1x128xf32>
    %24 = arith.mulf %22, %23 : vector<1x128xf32>
    %25 = vector.broadcast %15 : vector<1x128xf32> to vector<16x128xf32>
    %26 = arith.subf %6, %25 : vector<16x128xf32>
    %cst_12 = arith.constant 9.99999974E-6 : f32
    %27 = vector.broadcast %cst_12 : f32 to vector<1x128xf32>
    %28 = arith.addf %24, %27 : vector<1x128xf32>
    %29 = math.rsqrt %28 : vector<1x128xf32>
    %30 = vector.broadcast %29 : vector<1x128xf32> to vector<16x128xf32>
    %31 = arith.mulf %26, %30 : vector<16x128xf32>
    %cst_13 = arith.constant 0.000000e+00 : f32
    %32 = vector.broadcast %cst_13 : f32 to vector<16x128xf32>
    %33 = arith.cmpf oge, %31, %32 : vector<16x128xf32>
    %cst_14 = arith.constant 2.000000e-01 : f32
    %34 = vector.broadcast %cst_14 : f32 to vector<16x128xf32>
    %35 = arith.mulf %34, %31 : vector<16x128xf32>
    %36 = arith.select %33, %31, %35 : vector<16x128xi1>, vector<16x128xf32>
    %c0_15 = arith.constant 0 : index
    %c0_16 = arith.constant 0 : index
    %c0_17 = arith.constant 0 : index
    %37 = vector.load %arg4[%c0_15, %c0_16, %c0_17] : memref<1x16x128xf32, #tpu.memory_space<vmem>>, vector<1x16x128xf32>
    %38 = vector.shape_cast %37 : vector<1x16x128xf32> to vector<16x128xf32>
    %39 = vector.shape_cast %36 : vector<16x128xf32> to vector<1x16x128xf32>
    tpu.vector_store %arg4[%c0_15, %c0_16, %c0_17], %39 {strides = array<i32>} : memref<1x16x128xf32, #tpu.memory_space<vmem>>, vector<1x16x128xf32>,
    return
  }
  func.func @transform_0(%arg0: i32) -> (i32, i32, i32) {
    %c0_i32 = arith.constant 0 : i32
    %c0_i32_0 = arith.constant 0 : i32
    %c0_i32_1 = arith.constant 0 : i32
    return %arg0, %c0_i32, %c0_i32_0 : i32, i32, i32
  }
  func.func @transform_1(%arg0: i32) -> (i32, i32) {
    %c0_i32 = arith.constant 0 : i32
    %c0_i32_0 = arith.constant 0 : i32
    %c0_i32_1 = arith.constant 0 : i32
    return %c0_i32, %c0_i32_0 : i32, i32
  }
  func.func @transform_2(%arg0: i32) -> (i32, i32) {
    %c0_i32 = arith.constant 0 : i32
    %c0_i32_0 = arith.constant 0 : i32
    %c0_i32_1 = arith.constant 0 : i32
    return %c0_i32, %c0_i32_0 : i32, i32
  }
  func.func @transform_3(%arg0: i32) -> (i32, i32, i32) {
    %c0_i32 = arith.constant 0 : i32
    %c0_i32_0 = arith.constant 0 : i32
    %c0_i32_1 = arith.constant 0 : i32
    return %arg0, %c0_i32, %c0_i32_0 : i32, i32, i32
  }
}

module attributes {stable_mosaic.version = 11 : i64} {
  func.func @_conv_in_act_kernel(%arg0: i32, %arg1: memref<1x8x512xbf16, #tpu.memory_space<vmem>>, %arg2: memref<512x128xbf16, #tpu.memory_space<vmem>>, %arg3: memref<1x128xf32, #tpu.memory_space<vmem>>, %arg4: memref<1x8x128xf32, #tpu.memory_space<vmem>>) attributes {dimension_semantics = [#tpu.dimension_semantics<parallel>], iteration_bounds = array<i64: 4>, scalar_prefetch = 0 : i64, scratch_operands = 0 : i64, tpu.core_type = #tpu.core_type<tc>, window_params = [{transform_indices = @transform_0, window_bounds = array<i64: 1, 8, 512>}, {pipeline_mode = #tpu.pipeline_mode<synchronous>, transform_indices = @transform_1, window_bounds = array<i64: 512, 128>}, {pipeline_mode = #tpu.pipeline_mode<synchronous>, transform_indices = @transform_2, window_bounds = array<i64: 1, 128>}, {transform_indices = @transform_3, window_bounds = array<i64: 1, 8, 128>}]} {
    %c0 = arith.constant 0 : index
    %c0_0 = arith.constant 0 : index
    %c0_1 = arith.constant 0 : index
    %0 = vector.load %arg1[%c0, %c0_0, %c0_1] : memref<1x8x512xbf16, #tpu.memory_space<vmem>>, vector<1x8x512xbf16>
    %1 = vector.shape_cast %0 : vector<1x8x512xbf16> to vector<8x512xbf16>
    %c0_2 = arith.constant 0 : index
    %c0_3 = arith.constant 0 : index
    %2 = vector.load %arg2[%c0_2, %c0_3] : memref<512x128xbf16, #tpu.memory_space<vmem>>, vector<512x128xbf16>
    %cst = arith.constant dense<0.000000e+00> : vector<8x128xf32>
    %3 = tpu.matmul %1, %2, %cst {dimension_numbers = #tpu.dot_dimension_numbers<[1], [0], [0], [1], [0, 0, 1, 1], [], []>} : vector<8x512xbf16>, vector<512x128xbf16>, vector<8x128xf32> -> vector<8x128xf32>
    %c0_4 = arith.constant 0 : index
    %c0_5 = arith.constant 0 : index
    %4 = vector.load %arg3[%c0_4, %c0_5] : memref<1x128xf32, #tpu.memory_space<vmem>>, vector<1x128xf32>
    %5 = vector.broadcast %4 : vector<1x128xf32> to vector<8x128xf32>
    %6 = arith.addf %3, %5 : vector<8x128xf32>
    %c0_6 = arith.constant 0 : index
    %c0_7 = arith.constant 0 : index
    %c0_8 = arith.constant 0 : index
    %7 = vector.load %arg4[%c0_6, %c0_7, %c0_8] : memref<1x8x128xf32, #tpu.memory_space<vmem>>, vector<1x8x128xf32>
    %8 = vector.shape_cast %7 : vector<1x8x128xf32> to vector<8x128xf32>
    %9 = vector.shape_cast %6 : vector<8x128xf32> to vector<1x8x128xf32>
    tpu.vector_store %arg4[%c0_6, %c0_7, %c0_8], %9 {strides = array<i32>} : memref<1x8x128xf32, #tpu.memory_space<vmem>>, vector<1x8x128xf32>,
    return
  }
  func.func @transform_0(%arg0: i32) -> (i32, i32, i32) {
    %c0_i32 = arith.constant 0 : i32
    %c0_i32_0 = arith.constant 0 : i32
    %c0_i32_1 = arith.constant 0 : i32
    return %arg0, %c0_i32, %c0_i32_0 : i32, i32, i32
  }
  func.func @transform_1(%arg0: i32) -> (i32, i32) {
    %c0_i32 = arith.constant 0 : i32
    %c0_i32_0 = arith.constant 0 : i32
    %c0_i32_1 = arith.constant 0 : i32
    return %c0_i32, %c0_i32_0 : i32, i32
  }
  func.func @transform_2(%arg0: i32) -> (i32, i32) {
    %c0_i32 = arith.constant 0 : i32
    %c0_i32_0 = arith.constant 0 : i32
    %c0_i32_1 = arith.constant 0 : i32
    return %c0_i32, %c0_i32_0 : i32, i32
  }
  func.func @transform_3(%arg0: i32) -> (i32, i32, i32) {
    %c0_i32 = arith.constant 0 : i32
    %c0_i32_0 = arith.constant 0 : i32
    %c0_i32_1 = arith.constant 0 : i32
    return %arg0, %c0_i32, %c0_i32_0 : i32, i32, i32
  }
}

module attributes {stable_mosaic.version = 11 : i64} {
  func.func @_gan_loss_kernel(%arg0: i32, %arg1: memref<8x128xf32, #tpu.memory_space<vmem>>, %arg2: memref<1x128xf32, #tpu.memory_space<vmem>>) attributes {dimension_semantics = [#tpu.dimension_semantics<arbitrary>], iteration_bounds = array<i64: 1>, scalar_prefetch = 0 : i64, scratch_operands = 0 : i64, tpu.core_type = #tpu.core_type<tc>, window_params = [{pipeline_mode = #tpu.pipeline_mode<synchronous>, transform_indices = @transform_0, window_bounds = array<i64: 8, 128>}, {pipeline_mode = #tpu.pipeline_mode<synchronous>, transform_indices = @transform_1, window_bounds = array<i64: 1, 128>}]} {
    %c0 = arith.constant 0 : index
    %c0_0 = arith.constant 0 : index
    %0 = vector.load %arg1[%c0, %c0_0] : memref<8x128xf32, #tpu.memory_space<vmem>>, vector<8x128xf32>
    %1 = tpu.iota {dimensions = array<i32: 1>} : vector<8x128xi32>
    %c8_i32 = arith.constant 8 : i32
    %2 = vector.broadcast %c8_i32 : i32 to vector<8x128xi32>
    %3 = arith.cmpi slt, %1, %2 : vector<8x128xi32>
    %cst = arith.constant 0.000000e+00 : f32
    %4 = vector.broadcast %cst : f32 to vector<8x128xf32>
    %5 = arith.select %3, %0, %4 : vector<8x128xi1>, vector<8x128xf32>
    %cst_1 = arith.constant dense<0.000000e+00> : vector<8xf32>
    %6 = vector.multi_reduction <add>, %5, %cst_1 [1] : vector<8x128xf32> to vector<8xf32>
    %7 = vector.shape_cast %6 : vector<8xf32> to vector<8x1xf32>
    %8 = arith.mulf %5, %5 : vector<8x128xf32>
    %cst_2 = arith.constant dense<0.000000e+00> : vector<8xf32>
    %9 = vector.multi_reduction <add>, %8, %cst_2 [1] : vector<8x128xf32> to vector<8xf32>
    %10 = vector.shape_cast %9 : vector<8xf32> to vector<8x1xf32>
    %cst_3 = arith.constant 8.000000e+00 : f32
    %11 = vector.broadcast %cst_3 : f32 to vector<8x1xf32>
    %12 = arith.divf %10, %11 : vector<8x1xf32>
    %cst_4 = arith.constant 2.000000e+00 : f32
    %13 = vector.broadcast %cst_4 : f32 to vector<8x1xf32>
    %14 = arith.mulf %13, %7 : vector<8x1xf32>
    %15 = arith.subf %10, %14 : vector<8x1xf32>
    %cst_5 = arith.constant 8.000000e+00 : f32
    %16 = vector.broadcast %cst_5 : f32 to vector<8x1xf32>
    %17 = arith.divf %15, %16 : vector<8x1xf32>
    %cst_6 = arith.constant 1.000000e+00 : f32
    %18 = vector.broadcast %cst_6 : f32 to vector<8x1xf32>
    %19 = arith.addf %17, %18 : vector<8x1xf32>
    %20 = tpu.iota {dimensions = array<i32: 0>} : vector<8x1xi32>
    %c0_i32 = arith.constant 0 : i32
    %21 = vector.broadcast %c0_i32 : i32 to vector<8x1xi32>
    %22 = arith.cmpi eq, %20, %21 : vector<8x1xi32>
    %cst_7 = arith.constant 0.000000e+00 : f32
    %23 = vector.broadcast %cst_7 : f32 to vector<8x1xf32>
    %24 = arith.select %22, %12, %23 : vector<8x1xi1>, vector<8x1xf32>
    %25 = vector.shape_cast %24 : vector<8x1xf32> to vector<1x8x1xf32>
    %cst_8 = arith.constant dense<0.000000e+00> : vector<1xf32>
    %26 = vector.multi_reduction <add>, %25, %cst_8 [1, 2] : vector<1x8x1xf32> to vector<1xf32>
    %27 = vector.shape_cast %26 : vector<1xf32> to vector<1x1x1xf32>
    %28 = vector.extract %27[0, 0, 0] : f32 from vector<1x1x1xf32>
    %c1_i32 = arith.constant 1 : i32
    %29 = vector.broadcast %c1_i32 : i32 to vector<8x1xi32>
    %30 = arith.cmpi eq, %20, %29 : vector<8x1xi32>
    %cst_9 = arith.constant 0.000000e+00 : f32
    %31 = vector.broadcast %cst_9 : f32 to vector<8x1xf32>
    %32 = arith.select %30, %19, %31 : vector<8x1xi1>, vector<8x1xf32>
    %33 = vector.shape_cast %32 : vector<8x1xf32> to vector<1x8x1xf32>
    %cst_10 = arith.constant dense<0.000000e+00> : vector<1xf32>
    %34 = vector.multi_reduction <add>, %33, %cst_10 [1, 2] : vector<1x8x1xf32> to vector<1xf32>
    %35 = vector.shape_cast %34 : vector<1xf32> to vector<1x1x1xf32>
    %36 = vector.extract %35[0, 0, 0] : f32 from vector<1x1x1xf32>
    %37 = arith.addf %28, %36 : f32
    %cst_11 = arith.constant 5.000000e-01 : f32
    %38 = arith.mulf %cst_11, %37 : f32
    %c0_i32_12 = arith.constant 0 : i32
    %39 = vector.broadcast %c0_i32_12 : i32 to vector<8x1xi32>
    %40 = arith.cmpi eq, %20, %39 : vector<8x1xi32>
    %cst_13 = arith.constant 0.000000e+00 : f32
    %41 = vector.broadcast %cst_13 : f32 to vector<8x1xf32>
    %42 = arith.select %40, %19, %41 : vector<8x1xi1>, vector<8x1xf32>
    %43 = vector.shape_cast %42 : vector<8x1xf32> to vector<1x8x1xf32>
    %cst_14 = arith.constant dense<0.000000e+00> : vector<1xf32>
    %44 = vector.multi_reduction <add>, %43, %cst_14 [1, 2] : vector<1x8x1xf32> to vector<1xf32>
    %45 = vector.shape_cast %44 : vector<1xf32> to vector<1x1x1xf32>
    %46 = vector.extract %45[0, 0, 0] : f32 from vector<1x1x1xf32>
    %47 = tpu.iota {dimensions = array<i32: 1>} : vector<1x128xi32>
    %c0_i32_15 = arith.constant 0 : i32
    %48 = vector.broadcast %c0_i32_15 : i32 to vector<1x128xi32>
    %49 = arith.cmpi eq, %47, %48 : vector<1x128xi32>
    %c1_i32_16 = arith.constant 1 : i32
    %50 = vector.broadcast %c1_i32_16 : i32 to vector<1x128xi32>
    %51 = arith.cmpi eq, %47, %50 : vector<1x128xi32>
    %cst_17 = arith.constant 0.000000e+00 : f32
    %52 = vector.broadcast %46 : f32 to vector<1x128xf32>
    %53 = vector.broadcast %cst_17 : f32 to vector<1x128xf32>
    %54 = arith.select %51, %52, %53 : vector<1x128xi1>, vector<1x128xf32>
    %55 = vector.broadcast %38 : f32 to vector<1x128xf32>
    %56 = arith.select %49, %55, %54 : vector<1x128xi1>, vector<1x128xf32>
    %c0_18 = arith.constant 0 : index
    %c0_19 = arith.constant 0 : index
    %57 = vector.load %arg2[%c0_18, %c0_19] : memref<1x128xf32, #tpu.memory_space<vmem>>, vector<1x128xf32>
    tpu.vector_store %arg2[%c0_18, %c0_19], %56 {strides = array<i32>} : memref<1x128xf32, #tpu.memory_space<vmem>>, vector<1x128xf32>,
    return
  }
  func.func @transform_0(%arg0: i32) -> (i32, i32) {
    %c0_i32 = arith.constant 0 : i32
    %c0_i32_0 = arith.constant 0 : i32
    %c0_i32_1 = arith.constant 0 : i32
    return %c0_i32, %c0_i32_0 : i32, i32
  }
  func.func @transform_1(%arg0: i32) -> (i32, i32) {
    %c0_i32 = arith.constant 0 : i32
    %c0_i32_0 = arith.constant 0 : i32
    %c0_i32_1 = arith.constant 0 : i32
    return %c0_i32, %c0_i32_0 : i32, i32
  }
}

module attributes {stable_mosaic.version = 11 : i64} {
  func.func @_mm_bias_act_kernel(%arg0: i32, %arg1: memref<128x128xbf16, #tpu.memory_space<vmem>>, %arg2: memref<128x128xbf16, #tpu.memory_space<vmem>>, %arg3: memref<1x128xf32, #tpu.memory_space<vmem>>, %arg4: memref<128x128xf32, #tpu.memory_space<vmem>>) attributes {dimension_semantics = [#tpu.dimension_semantics<parallel>], iteration_bounds = array<i64: 1>, scalar_prefetch = 0 : i64, scratch_operands = 0 : i64, tpu.core_type = #tpu.core_type<tc>, window_params = [{transform_indices = @transform_0, window_bounds = array<i64: 128, 128>}, {pipeline_mode = #tpu.pipeline_mode<synchronous>, transform_indices = @transform_1, window_bounds = array<i64: 128, 128>}, {pipeline_mode = #tpu.pipeline_mode<synchronous>, transform_indices = @transform_2, window_bounds = array<i64: 1, 128>}, {transform_indices = @transform_3, window_bounds = array<i64: 128, 128>}]} {
    %c0 = arith.constant 0 : index
    %c0_0 = arith.constant 0 : index
    %0 = vector.load %arg1[%c0, %c0_0] : memref<128x128xbf16, #tpu.memory_space<vmem>>, vector<128x128xbf16>
    %c0_1 = arith.constant 0 : index
    %c0_2 = arith.constant 0 : index
    %1 = vector.load %arg2[%c0_1, %c0_2] : memref<128x128xbf16, #tpu.memory_space<vmem>>, vector<128x128xbf16>
    %cst = arith.constant dense<0.000000e+00> : vector<128x128xf32>
    %2 = tpu.matmul %0, %1, %cst {dimension_numbers = #tpu.dot_dimension_numbers<[1], [0], [0], [1], [0, 0, 1, 1], [], []>} : vector<128x128xbf16>, vector<128x128xbf16>, vector<128x128xf32> -> vector<128x128xf32>
    %c0_3 = arith.constant 0 : index
    %c0_4 = arith.constant 0 : index
    %3 = vector.load %arg3[%c0_3, %c0_4] : memref<1x128xf32, #tpu.memory_space<vmem>>, vector<1x128xf32>
    %4 = vector.broadcast %3 : vector<1x128xf32> to vector<128x128xf32>
    %5 = arith.addf %2, %4 : vector<128x128xf32>
    %cst_5 = arith.constant 0.000000e+00 : f32
    %6 = vector.broadcast %cst_5 : f32 to vector<128x128xf32>
    %7 = arith.maximumf %5, %6 : vector<128x128xf32>
    %c0_6 = arith.constant 0 : index
    %c0_7 = arith.constant 0 : index
    %8 = vector.load %arg4[%c0_6, %c0_7] : memref<128x128xf32, #tpu.memory_space<vmem>>, vector<128x128xf32>
    tpu.vector_store %arg4[%c0_6, %c0_7], %7 {strides = array<i32>} : memref<128x128xf32, #tpu.memory_space<vmem>>, vector<128x128xf32>,
    return
  }
  func.func @transform_0(%arg0: i32) -> (i32, i32) {
    %c0_i32 = arith.constant 0 : i32
    %c0_i32_0 = arith.constant 0 : i32
    return %arg0, %c0_i32 : i32, i32
  }
  func.func @transform_1(%arg0: i32) -> (i32, i32) {
    %c0_i32 = arith.constant 0 : i32
    %c0_i32_0 = arith.constant 0 : i32
    %c0_i32_1 = arith.constant 0 : i32
    return %c0_i32, %c0_i32_0 : i32, i32
  }
  func.func @transform_2(%arg0: i32) -> (i32, i32) {
    %c0_i32 = arith.constant 0 : i32
    %c0_i32_0 = arith.constant 0 : i32
    %c0_i32_1 = arith.constant 0 : i32
    return %c0_i32, %c0_i32_0 : i32, i32
  }
  func.func @transform_3(%arg0: i32) -> (i32, i32) {
    %c0_i32 = arith.constant 0 : i32
    %c0_i32_0 = arith.constant 0 : i32
    return %arg0, %c0_i32 : i32, i32
  }
}

module attributes {stable_mosaic.version = 11 : i64} {
  func.func @_mm_bias_act_kernel(%arg0: i32, %arg1: memref<128x128xbf16, #tpu.memory_space<vmem>>, %arg2: memref<128x128xbf16, #tpu.memory_space<vmem>>, %arg3: memref<1x128xf32, #tpu.memory_space<vmem>>, %arg4: memref<128x128xf32, #tpu.memory_space<vmem>>) attributes {dimension_semantics = [#tpu.dimension_semantics<parallel>], iteration_bounds = array<i64: 1>, scalar_prefetch = 0 : i64, scratch_operands = 0 : i64, tpu.core_type = #tpu.core_type<tc>, window_params = [{transform_indices = @transform_0, window_bounds = array<i64: 128, 128>}, {pipeline_mode = #tpu.pipeline_mode<synchronous>, transform_indices = @transform_1, window_bounds = array<i64: 128, 128>}, {pipeline_mode = #tpu.pipeline_mode<synchronous>, transform_indices = @transform_2, window_bounds = array<i64: 1, 128>}, {transform_indices = @transform_3, window_bounds = array<i64: 128, 128>}]} {
    %c0 = arith.constant 0 : index
    %c0_0 = arith.constant 0 : index
    %0 = vector.load %arg1[%c0, %c0_0] : memref<128x128xbf16, #tpu.memory_space<vmem>>, vector<128x128xbf16>
    %c0_1 = arith.constant 0 : index
    %c0_2 = arith.constant 0 : index
    %1 = vector.load %arg2[%c0_1, %c0_2] : memref<128x128xbf16, #tpu.memory_space<vmem>>, vector<128x128xbf16>
    %cst = arith.constant dense<0.000000e+00> : vector<128x128xf32>
    %2 = tpu.matmul %0, %1, %cst {dimension_numbers = #tpu.dot_dimension_numbers<[1], [0], [0], [1], [0, 0, 1, 1], [], []>} : vector<128x128xbf16>, vector<128x128xbf16>, vector<128x128xf32> -> vector<128x128xf32>
    %c0_3 = arith.constant 0 : index
    %c0_4 = arith.constant 0 : index
    %3 = vector.load %arg3[%c0_3, %c0_4] : memref<1x128xf32, #tpu.memory_space<vmem>>, vector<1x128xf32>
    %4 = vector.broadcast %3 : vector<1x128xf32> to vector<128x128xf32>
    %5 = arith.addf %2, %4 : vector<128x128xf32>
    %6 = arith.mulf %5, %5 : vector<128x128xf32>
    %cst_5 = arith.constant dense<0.000000e+00> : vector<128xf32>
    %7 = vector.multi_reduction <add>, %6, %cst_5 [1] : vector<128x128xf32> to vector<128xf32>
    %8 = vector.shape_cast %7 : vector<128xf32> to vector<128x1xf32>
    %9 = math.sqrt %8 : vector<128x1xf32>
    %cst_6 = arith.constant 1.000000e-07 : f32
    %10 = vector.broadcast %cst_6 : f32 to vector<128x1xf32>
    %11 = arith.addf %9, %10 : vector<128x1xf32>
    %12 = vector.broadcast %11 : vector<128x1xf32> to vector<128x128xf32>
    %13 = arith.divf %5, %12 : vector<128x128xf32>
    %c0_7 = arith.constant 0 : index
    %c0_8 = arith.constant 0 : index
    %14 = vector.load %arg4[%c0_7, %c0_8] : memref<128x128xf32, #tpu.memory_space<vmem>>, vector<128x128xf32>
    tpu.vector_store %arg4[%c0_7, %c0_8], %13 {strides = array<i32>} : memref<128x128xf32, #tpu.memory_space<vmem>>, vector<128x128xf32>,
    return
  }
  func.func @transform_0(%arg0: i32) -> (i32, i32) {
    %c0_i32 = arith.constant 0 : i32
    %c0_i32_0 = arith.constant 0 : i32
    return %arg0, %c0_i32 : i32, i32
  }
  func.func @transform_1(%arg0: i32) -> (i32, i32) {
    %c0_i32 = arith.constant 0 : i32
    %c0_i32_0 = arith.constant 0 : i32
    %c0_i32_1 = arith.constant 0 : i32
    return %c0_i32, %c0_i32_0 : i32, i32
  }
  func.func @transform_2(%arg0: i32) -> (i32, i32) {
    %c0_i32 = arith.constant 0 : i32
    %c0_i32_0 = arith.constant 0 : i32
    %c0_i32_1 = arith.constant 0 : i32
    return %c0_i32, %c0_i32_0 : i32, i32
  }
  func.func @transform_3(%arg0: i32) -> (i32, i32) {
    %c0_i32 = arith.constant 0 : i32
    %c0_i32_0 = arith.constant 0 : i32
    return %arg0, %c0_i32 : i32, i32
  }
}

module attributes {stable_mosaic.version = 11 : i64} {
  func.func @_patch_nce_kernel(%arg0: i32, %arg1: memref<8x16x128xf32, #tpu.memory_space<vmem>>, %arg2: memref<8x16x128xf32, #tpu.memory_space<vmem>>, %arg3: memref<8x16x1xf32, #tpu.memory_space<vmem>>) attributes {dimension_semantics = [#tpu.dimension_semantics<parallel>], iteration_bounds = array<i64: 2>, scalar_prefetch = 0 : i64, scratch_operands = 0 : i64, tpu.core_type = #tpu.core_type<tc>, window_params = [{transform_indices = @transform_0, window_bounds = array<i64: 8, 16, 128>}, {transform_indices = @transform_1, window_bounds = array<i64: 8, 16, 128>}, {transform_indices = @transform_2, window_bounds = array<i64: 8, 16, 1>}]} {
    %c0 = arith.constant 0 : index
    %c0_0 = arith.constant 0 : index
    %c0_1 = arith.constant 0 : index
    %0 = vector.load %arg1[%c0, %c0_0, %c0_1] : memref<8x16x128xf32, #tpu.memory_space<vmem>>, vector<8x16x128xf32>
    %c0_2 = arith.constant 0 : index
    %c0_3 = arith.constant 0 : index
    %c0_4 = arith.constant 0 : index
    %1 = vector.load %arg2[%c0_2, %c0_3, %c0_4] : memref<8x16x128xf32, #tpu.memory_space<vmem>>, vector<8x16x128xf32>
    %2 = arith.mulf %0, %1 : vector<8x16x128xf32>
    %cst = arith.constant dense<0.000000e+00> : vector<8x16xf32>
    %3 = vector.multi_reduction <add>, %2, %cst [2] : vector<8x16x128xf32> to vector<8x16xf32>
    %4 = vector.shape_cast %3 : vector<8x16xf32> to vector<8x16x1xf32>
    "tpu.trace_start"() <{level = 10 : i32, message = "gpd,gqd->gpq"}> : () -> ()
    %cst_5 = arith.constant dense<0.000000e+00> : vector<8x16x16xf32>
    %5 = tpu.matmul %0, %1, %cst_5 {dimension_numbers = #tpu.dot_dimension_numbers<[2], [2], [1], [1], [0, 0, 0, 1, 1, 1], [0], [0]>} : vector<8x16x128xf32>, vector<8x16x128xf32>, vector<8x16x16xf32> -> vector<8x16x16xf32>
    "tpu.trace_stop"() : () -> ()
    %6 = tpu.iota {dimensions = array<i32: 1>} : vector<8x16x16xi32>
    %7 = tpu.iota {dimensions = array<i32: 2>} : vector<8x16x16xi32>
    %8 = arith.cmpi eq, %6, %7 : vector<8x16x16xi32>
    %cst_6 = arith.constant -1.000000e+01 : f32
    %9 = vector.broadcast %cst_6 : f32 to vector<8x16x16xf32>
    %10 = arith.select %8, %9, %5 : vector<8x16x16xi1>, vector<8x16x16xf32>
    %cst_7 = arith.constant 7.000000e-02 : f32
    %11 = vector.broadcast %cst_7 : f32 to vector<8x16x1xf32>
    %12 = arith.divf %4, %11 : vector<8x16x1xf32>
    %cst_8 = arith.constant 7.000000e-02 : f32
    %13 = vector.broadcast %cst_8 : f32 to vector<8x16x16xf32>
    %14 = arith.divf %10, %13 : vector<8x16x16xf32>
    %cst_9 = arith.constant dense<0xFF800000> : vector<8x16xf32>
    %15 = vector.multi_reduction <maximumf>, %14, %cst_9 [2] : vector<8x16x16xf32> to vector<8x16xf32>
    %16 = vector.shape_cast %15 : vector<8x16xf32> to vector<8x16x1xf32>
    %17 = arith.maximumf %16, %12 : vector<8x16x1xf32>
    %18 = vector.broadcast %17 : vector<8x16x1xf32> to vector<8x16x16xf32>
    %19 = arith.subf %14, %18 : vector<8x16x16xf32>
    %20 = math.exp %19 : vector<8x16x16xf32>
    %cst_10 = arith.constant dense<0.000000e+00> : vector<8x16xf32>
    %21 = vector.multi_reduction <add>, %20, %cst_10 [2] : vector<8x16x16xf32> to vector<8x16xf32>
    %22 = vector.shape_cast %21 : vector<8x16xf32> to vector<8x16x1xf32>
    %23 = arith.subf %12, %17 : vector<8x16x1xf32>
    %24 = math.exp %23 : vector<8x16x1xf32>
    %25 = arith.addf %22, %24 : vector<8x16x1xf32>
    %26 = math.log %25 : vector<8x16x1xf32>
    %27 = arith.addf %26, %17 : vector<8x16x1xf32>
    %28 = arith.subf %27, %12 : vector<8x16x1xf32>
    %c0_11 = arith.constant 0 : index
    %c0_12 = arith.constant 0 : index
    %c0_13 = arith.constant 0 : index
    %29 = vector.load %arg3[%c0_11, %c0_12, %c0_13] : memref<8x16x1xf32, #tpu.memory_space<vmem>>, vector<8x16x1xf32>
    tpu.vector_store %arg3[%c0_11, %c0_12, %c0_13], %28 {strides = array<i32>} : memref<8x16x1xf32, #tpu.memory_space<vmem>>, vector<8x16x1xf32>,
    return
  }
  func.func @transform_0(%arg0: i32) -> (i32, i32, i32) {
    %c0_i32 = arith.constant 0 : i32
    %c0_i32_0 = arith.constant 0 : i32
    %c0_i32_1 = arith.constant 0 : i32
    return %arg0, %c0_i32, %c0_i32_0 : i32, i32, i32
  }
  func.func @transform_1(%arg0: i32) -> (i32, i32, i32) {
    %c0_i32 = arith.constant 0 : i32
    %c0_i32_0 = arith.constant 0 : i32
    %c0_i32_1 = arith.constant 0 : i32
    return %arg0, %c0_i32, %c0_i32_0 : i32, i32, i32
  }
  func.func @transform_2(%arg0: i32) -> (i32, i32, i32) {
    %c0_i32 = arith.constant 0 : i32
    %c0_i32_0 = arith.constant 0 : i32
    %c0_i32_1 = arith.constant 0 : i32
    return %arg0, %c0_i32, %c0_i32_0 : i32, i32, i32
  }
}

</mosaic_0001>

<bundles_post_ra>
// kernel: cut_forward_impl.31
= control target key start
LH: loop header
LB: loop body
LE: loop exit
PB: predicated region body
PF: predicated region fallthrough
CT: control target
= control target key end

     0   :  { %s1245_s12 = smov 0   ;;  %s1811_s0 = inlined_call_operand.vmem [shape: bf16[4,256,256], index: 0, kind: input, shape index: {}]   ;;  %s1812_s1 = inlined_call_operand.vmem [shape: bf16[256,128], index: 1, kind: input, shape index: {}]   ;;  %s1813_s2 = inlined_call_operand.vmem [shape: f32[1,128], index: 2, kind: input, shape index: {}]   ;;  %s1814_s3 = inlined_call_operand.vmem [shape: f32[4,256,128], index: 3, kind: output, shape index: {}]  }
   0x1 LB: > { %s953_s13 = sadd.s32 4294967295, %s1223_s12   ;;  %p957_p0 = scmp.ge.s32.totalorder %s1223_s12, 1  ;;  %s1223_s12 = sphi %s1245_s12, %s13_s12  }
   0x2   : > { %p137_p1 = scmp.lt.s32.totalorder %s1223_s12, 5 }
   0x4   : > { %p138_p2 = pnand %p957_p0, %p137_p1 }
   0x5   : > { %p161_p3 = scmp.lt.s32.totalorder (!%p138_p2), %s953_s13, 3 }
   0x6   : > { %141 = sbr.rel (%p138_p2) target bundleno = 473 (0x1d9), region = 32 }
   0xb   : > { %v1151_v0 = vld [vmem:[%s1812_s1 + $0x78] sm:$0xff]   ;;  %v1153_v2 = vld [vmem:[%s1812_s1 + $0x70] sm:$0xff]   ;;  %v1155_v4 = vld [vmem:[%s1812_s1 + $0x68] sm:$0xff]   ;;  %s1816_s13 = smov (!%p161_p3, %s953_s13), 3 }
   0xc   : > { %v1152_v1 = vld [vmem:[%s1812_s1 + $0x38] sm:$0xff]   ;;  %1015 = vmatprep.subr.bf16.mxu0 %v1151_v0  ;;  %1127 = vmatprep.subr.bf16.mxu1 %v1151_v0  ;;  %v1154_v3 = vld [vmem:[%s1812_s1 + $0x30] sm:$0xff]   ;;  %v1156_v5 = vld [vmem:[%s1812_s1 + $0x28] sm:$0xff]   ;;  %s1013_s30 = sshll.u32 %s1816_s13, 8 }
   0xd   : > { %1016 = vmatpush3.bf16.msra.mxu0 %v1152_v1  ;;  %1135 = vmatpush3.bf16.msra.mxu1 %v1152_v1  ;;  %v1157_v6 = vld [vmem:[%s1812_s1 + $0x60] sm:$0xff]   ;;  %v1159_v8 = vld [vmem:[%s1812_s1 + $0x58] sm:$0xff]   ;;  %s1288_s8 = scalar_lea.vmem %s1811_s0, %s1013_s30  ;;  %v1161_v10 = vld [vmem:[%s1812_s1 + $0x50] sm:$0xff]   ;;  %s1754_s29 = scalar_lea.vmem %s1814_s3, %s1013_s30 }
   0xe   : > { %1017 = vmatprep.subr.bf16.mxu0 %v1153_v2  ;;  %1128 = vmatprep.subr.bf16.mxu1 %v1153_v2  ;;  %v1158_v7 = vld [vmem:[%s1812_s1 + $0x20] sm:$0xff]   ;;  %v1160_v9 = vld [vmem:[%s1812_s1 + $0x18] sm:$0xff]   ;;  %v1162_v12 = vld [vmem:[%s1812_s1 + $0x10] sm:$0xff]  }
   0xf   : > { %v1169_v11 = vld [vmem:[%s1288_s8 + $0x4] ss:$8 sps:$4 sm:$0xff]   ;;  %v1167_v18 = vld [vmem:[%s1288_s8] ss:$8 sps:$4 sm:$0xff]   ;;  %v1170_v19 = vld [vmem:[%s1288_s8 + $0x14] ss:$8 sps:$4 sm:$0xff]  }
  0x10   : > { %531 = vmatprep.mubr.bf16.mxu0 %v1169_v11  ;;  %v1163_v13 = vld [vmem:[%s1812_s1 + $0x48] sm:$0xff]   ;;  %v1165_v16 = vld [vmem:[%s1812_s1 + $0x40] sm:$0xff]   ;;  %v1185_v21 = vld [vmem:[%s1288_s8 + $0x94] ss:$8 sps:$4 sm:$0xff]  }
  0x11   : > { %1018 = vmatpush3.bf16.msra.mxu0 %v1154_v3  ;;  %1136 = vmatpush3.bf16.msra.mxu1 %v1154_v3  ;;  %v1181_v14 = vld [vmem:[%s1288_s8 + $0x84] ss:$8 sps:$4 sm:$0xff]   ;;  %v1179_v20 = vld [vmem:[%s1288_s8 + $0x80] ss:$8 sps:$4 sm:$0xff]   ;;  %v1172_v22 = vld [vmem:[%s1288_s8 + $0x10] ss:$8 sps:$4 sm:$0xff]  }
  0x12   : > { %1019 = vmatprep.subr.bf16.mxu0 %v1155_v4  ;;  %1129 = vmatprep.subr.bf16.mxu1 %v1155_v4  ;;  %v1164_v15 = vld [vmem:[%s1812_s1 + $0x8] sm:$0xff]   ;;  %v1166_v17 = vld [vmem:[%s1812_s1] sm:$0xff]   ;;  %v1187_v24 = vld [vmem:[%s1288_s8 + $0x90] ss:$8 sps:$4 sm:$0xff]  }
  0x13   : > { %595 = vmatprep.mubr.bf16.mxu1 %v1181_v14  ;;  %v1173_v23 = vld [vmem:[%s1288_s8 + $0x24] ss:$8 sps:$4 sm:$0xff]   ;;  %v1175_v26 = vld [vmem:[%s1288_s8 + $0x20] ss:$8 sps:$4 sm:$0xff]   ;;  %v1176_v27 = vld [vmem:[%s1288_s8 + $0x34] ss:$8 sps:$4 sm:$0xff]  }
  0x14   : > { %v1191_v25 = vld [vmem:[%s1288_s8 + $0xa4] ss:$8 sps:$4 sm:$0xff]   ;;  %v1193_v28 = vld [vmem:[%s1288_s8 + $0xa0] ss:$8 sps:$4 sm:$0xff]   ;;  %v1197_v29 = vld [vmem:[%s1288_s8 + $0xb4] ss:$8 sps:$4 sm:$0xff]  }
  0x15   : > { %1020 = vmatpush3.bf16.msra.mxu0 %v1156_v5  ;;  %1137 = vmatpush3.bf16.msra.mxu1 %v1156_v5  ;;  %v1178_v30 = vld [vmem:[%s1288_s8 + $0x30] ss:$8 sps:$4 sm:$0xff]   ;;  %v1182_v31 = vld [vmem:[%s1288_s8 + $0x44] ss:$8 sps:$4 sm:$0xff]   ;;  %v1184_v34 = vld [vmem:[%s1288_s8 + $0x40] ss:$8 sps:$4 sm:$0xff]  }
  0x16   : > { %1021 = vmatprep.subr.bf16.mxu0 %v1157_v6  ;;  %1130 = vmatprep.subr.bf16.mxu1 %v1157_v6  ;;  %v1199_v32 = vld [vmem:[%s1288_s8 + $0xb0] ss:$8 sps:$4 sm:$0xff]   ;;  %v1203_v33 = vld [vmem:[%s1288_s8 + $0xc4] ss:$8 sps:$4 sm:$0xff]   ;;  %v1188_v35 = vld [vmem:[%s1288_s8 + $0x54] ss:$8 sps:$4 sm:$0xff]  }
  0x17   : > { %v1205_v36 = vld [vmem:[%s1288_s8 + $0xc0] ss:$8 sps:$4 sm:$0xff]   ;;  %v1206_v37 = vld [vmem:[%s1288_s8 + $0xd4] ss:$8 sps:$4 sm:$0xff]   ;;  %v1190_v38 = vld [vmem:[%s1288_s8 + $0x50] ss:$8 sps:$4 sm:$0xff]  }
  0x18   : > { %v1194_v39 = vld [vmem:[%s1288_s8 + $0x64] ss:$8 sps:$4 sm:$0xff]   ;;  %v1208_v40 = vld [vmem:[%s1288_s8 + $0xd0] ss:$8 sps:$4 sm:$0xff]   ;;  %v1196_v42 = vld [vmem:[%s1288_s8 + $0x60] ss:$8 sps:$4 sm:$0xff]  }
  0x19   : > { %1022 = vmatpush3.bf16.msra.mxu0 %v1158_v7  ;;  %1138 = vmatpush3.bf16.msra.mxu1 %v1158_v7  ;;  %v1209_v41 = vld [vmem:[%s1288_s8 + $0xe4] ss:$8 sps:$4 sm:$0xff]   ;;  %v1200_v43 = vld [vmem:[%s1288_s8 + $0x74] ss:$8 sps:$4 sm:$0xff]   ;;  %v1211_v44 = vld [vmem:[%s1288_s8 + $0xe0] ss:$8 sps:$4 sm:$0xff]  }
  0x1a   : > { %1023 = vmatprep.subr.bf16.mxu0 %v1159_v8  ;;  %1131 = vmatprep.subr.bf16.mxu1 %v1159_v8  ;;  %v1212_v45 = vld [vmem:[%s1288_s8 + $0xf4] ss:$8 sps:$4 sm:$0xff]   ;;  %v1202_v46 = vld [vmem:[%s1288_s8 + $0x70] ss:$8 sps:$4 sm:$0xff]  }
  0x1b   : > { %v1214_v47 = vld [vmem:[%s1288_s8 + $0xf0] ss:$8 sps:$4 sm:$0xff]  }
  0x1d   : > { %1024 = vmatpush3.bf16.msra.mxu0 %v1160_v9  ;;  %1139 = vmatpush3.bf16.msra.mxu1 %v1160_v9 }
  0x1e   : > { %1025 = vmatprep.subr.bf16.mxu0 %v1161_v10  ;;  %1132 = vmatprep.subr.bf16.mxu1 %v1161_v10 }
  0x21   : > { %1026 = vmatpush3.bf16.msra.mxu0 %v1162_v12  ;;  %1140 = vmatpush3.bf16.msra.mxu1 %v1162_v12 }
  0x22   : > { %1027 = vmatprep.subr.bf16.mxu0 %v1163_v13  ;;  %1133 = vmatprep.subr.bf16.mxu1 %v1163_v13 }
  0x25   : > { %1028 = vmatpush3.bf16.msra.mxu0 %v1164_v15  ;;  %1141 = vmatpush3.bf16.msra.mxu1 %v1164_v15 }
  0x26   : > { %1029 = vmatprep.subr.bf16.mxu0 %v1165_v16  ;;  %1134 = vmatprep.subr.bf16.mxu1 %v1165_v16 }
  0x29   : > { %1030 = vmatpush3.bf16.msra.mxu0 %v1166_v17  ;;  %1142 = vmatpush3.bf16.msra.mxu1 %v1166_v17 }
  0x2c   : > { %532 = vmatmul.mubr.bf16.vlgmr.msra.gmra.mxu0 %v1167_v18  ;;  %596 = vmatmul.mubr.bf16.vlgmr.msra.gmra.mxu1 %v1179_v20 }
  0x2d   : > { %539 = vmatprep.mubr.bf16.mxu0 %v1170_v19  ;;  %603 = vmatprep.mubr.bf16.mxu1 %v1185_v21  ;;  %v1380_v21 = vld [vmem:[%s1813_s2] ss:$0 sm:$0xff] }
  0x34   : > { %540 = vmatmul.mubr.bf16.gmra.mxu0 %v1172_v22  ;;  %604 = vmatmul.mubr.bf16.gmra.mxu1 %v1187_v24 }
  0x35   : > { %547 = vmatprep.mubr.bf16.mxu0 %v1173_v23  ;;  %611 = vmatprep.mubr.bf16.mxu1 %v1191_v25 }
  0x3c   : > { %548 = vmatmul.mubr.bf16.gmra.mxu0 %v1175_v26  ;;  %612 = vmatmul.mubr.bf16.gmra.mxu1 %v1193_v28 }
  0x3d   : > { %555 = vmatprep.mubr.bf16.mxu0 %v1176_v27  ;;  %619 = vmatprep.mubr.bf16.mxu1 %v1197_v29 }
  0x44   : > { %556 = vmatmul.mubr.bf16.gmra.mxu0 %v1178_v30  ;;  %620 = vmatmul.mubr.bf16.gmra.mxu1 %v1199_v32 }
  0x45   : > { %563 = vmatprep.mubr.bf16.mxu0 %v1182_v31  ;;  %627 = vmatprep.mubr.bf16.mxu1 %v1203_v33 }
  0x4c   : > { %564 = vmatmul.mubr.bf16.gmra.mxu0 %v1184_v34  ;;  %628 = vmatmul.mubr.bf16.gmra.mxu1 %v1205_v36 }
  0x4d   : > { %571 = vmatprep.mubr.bf16.mxu0 %v1188_v35  ;;  %635 = vmatprep.mubr.bf16.mxu1 %v1206_v37 }
  0x54   : > { %572 = vmatmul.mubr.bf16.gmra.mxu0 %v1190_v38  ;;  %636 = vmatmul.mubr.bf16.gmra.mxu1 %v1208_v40 }
  0x55   : > { %579 = vmatprep.mubr.bf16.mxu0 %v1194_v39  ;;  %643 = vmatprep.mubr.bf16.mxu1 %v1209_v41 }
  0x5c   : > { %580 = vmatmul.mubr.bf16.gmra.mxu0 %v1196_v42  ;;  %644 = vmatmul.mubr.bf16.gmra.mxu1 %v1211_v44 }
  0x5d   : > { %587 = vmatprep.mubr.bf16.mxu0 %v1200_v43  ;;  %651 = vmatprep.mubr.bf16.mxu1 %v1212_v45 }
  0x64   : > { %588 = vmatmul.mubr.bf16.gmra.mxu0 %v1202_v46  ;;  %652 = vmatmul.mubr.bf16.gmra.mxu1 %v1214_v47 }
  0xec   : > { %v1031_v48 = vpop.f32.mrf.mxu0  ;;  %v1343_v49 = vpop.f32.mrf.mxu1 }
  0xee   : > { %v1032_v50 = vpop.f32.mrf.mxu0  ;;  %v1345_v51 = vpop.f32.mrf.mxu1 }
  0xef   : > { %v1033_v18 = vadd.f32 %v1032_v50, %v1031_v48 }
  0xf0   : > { %v1034_v52 = vpop.f32.mrf.mxu0  ;;  %v1347_v53 = vpop.f32.mrf.mxu1 }
  0xf1   : > { %v1388_v27 = vadd.f32 %v1033_v18, %v1380_v21 }
  0xf2   : > { %v1035_v54 = vpop.f32.mrf.mxu0  ;;  %v1349_v55 = vpop.f32.mrf.mxu1 }
  0xf3   : > { %v1036_v15 = vadd.f32 %v1035_v54, %v1034_v52 }
  0xf4   : > { %v1037_v56 = vpop.f32.mrf.mxu0  ;;  %v1351_v57 = vpop.f32.mrf.mxu1 }
  0xf5   : > { %v1383_v23 = vadd.f32 %v1036_v15, %v1380_v21 }
  0xf6   : > { %v1038_v58 = vpop.f32.mrf.mxu0  ;;  %v1353_v59 = vpop.f32.mrf.mxu1 }
  0xf7   : > { %v1039_v19 = vadd.f32 %v1038_v58, %v1037_v56  ;;  %v660_v32 = vadd.f32 %v1383_v23, %v1388_v27 }
  0xf8   : > { %v1040_v60 = vpop.f32.mrf.mxu0  ;;  %v1355_v61 = vpop.f32.mrf.mxu1 }
  0xf9   : > { %v1391_v28 = vadd.f32 %v1039_v19, %v1380_v21 }
  0xfa   : > { %v1041_v62 = vpop.f32.mrf.mxu0  ;;  %v1357_v63 = vpop.f32.mrf.mxu1 }
  0xfb   : > { %v1042_v24 = vadd.f32 %v1041_v62, %v1040_v60  ;;  %v661_v36 = vadd.f32 %v660_v32, %v1391_v28 }
  0xfc   : > { %v1043_v0 = vpop.f32.mrf.mxu0  ;;  %v1359_v1 = vpop.f32.mrf.mxu1 }
  0xfd   : > { %v1398_v33 = vadd.f32 %v1042_v24, %v1380_v21 }
  0xfe   : > { %v1044_v2 = vpop.f32.mrf.mxu0  ;;  %v1361_v3 = vpop.f32.mrf.mxu1 }
  0xff   : > { %v1045_v29 = vadd.f32 %v1044_v2, %v1043_v0  ;;  %v662_v41 = vadd.f32 %v661_v36, %v1398_v33 }
 0x100   : > { %v1046_v4 = vpop.f32.mrf.mxu0  ;;  %v1363_v5 = vpop.f32.mrf.mxu1 }
 0x101   : > { %v1402_v37 = vadd.f32 %v1045_v29, %v1380_v21 }
 0x102   : > { %v1047_v6 = vpop.f32.mrf.mxu0  ;;  %v1365_v7 = vpop.f32.mrf.mxu1 }
 0x103   : > { %v1048_v34 = vadd.f32 %v1047_v6, %v1046_v4  ;;  %v663_v45 = vadd.f32 %v662_v41, %v1402_v37 }
 0x104   : > { %v1049_v8 = vpop.f32.mrf.mxu0  ;;  %v1367_v9 = vpop.f32.mrf.mxu1 }
 0x105   : > { %v1408_v42 = vadd.f32 %v1048_v34, %v1380_v21 }
 0x106   : > { %v1050_v10 = vpop.f32.mrf.mxu0  ;;  %v1369_v11 = vpop.f32.mrf.mxu1 }
 0x107   : > { %v1051_v38 = vadd.f32 %v1050_v10, %v1049_v8  ;;  %v664_v52 = vadd.f32 %v663_v45, %v1408_v42 }
 0x108   : > { %v1052_v12 = vpop.f32.mrf.mxu0  ;;  %v1371_v13 = vpop.f32.mrf.mxu1 }
 0x109   : > { %v1412_v46 = vadd.f32 %v1051_v38, %v1380_v21 }
 0x10a   : > { %v1053_v14 = vpop.f32.mrf.mxu0  ;;  %v1373_v16 = vpop.f32.mrf.mxu1 }
 0x10b   : > { %v1054_v43 = vadd.f32 %v1053_v14, %v1052_v12  ;;  %v665_v60 = vadd.f32 %v664_v52, %v1412_v46 }
 0x10c   : > { %v1055_v17 = vpop.f32.mrf.mxu0  ;;  %v1375_v20 = vpop.f32.mrf.mxu1 }
 0x10d   : > { %v1418_v54 = vadd.f32 %v1054_v43, %v1380_v21 }
 0x10e   : > { %v1056_v22 = vpop.f32.mrf.mxu0  ;;  %v1385_v25 = vpop.f32.mrf.mxu1 }
 0x10f   : > { %v1057_v47 = vadd.f32 %v1056_v22, %v1055_v17  ;;  %v666_v6 = vadd.f32 %v665_v60, %v1418_v54 }
 0x110   : > { %v1058_v26 = vpop.f32.mrf.mxu0  ;;  %v1393_v31 = vpop.f32.mrf.mxu1 }
 0x111   : > { %v1422_v62 = vadd.f32 %v1057_v47, %v1380_v21 }
 0x112   : > { %v1059_v30 = vpop.f32.mrf.mxu0  ;;  %v1404_v40 = vpop.f32.mrf.mxu1 }
 0x113   : > { %v1060_v56 = vadd.f32 %v1059_v30, %v1058_v26  ;;  %v667_v14 = vadd.f32 %v666_v6, %v1422_v62 }
 0x114   : > { %v1061_v35 = vpop.f32.mrf.mxu0  ;;  %v1414_v50 = vpop.f32.mrf.mxu1 }
 0x115   : > { %v1428_v8 = vadd.f32 %v1060_v56, %v1380_v21 }
 0x116   : > { %v1062_v39 = vpop.f32.mrf.mxu0  ;;  %v1424_v4 = vpop.f32.mrf.mxu1 }
 0x117   : > { %v1063_v0 = vadd.f32 %v1062_v39, %v1061_v35  ;;  %v668_v22 = vadd.f32 %v667_v14, %v1428_v8 }
 0x118   : > { %v1064_v44 = vpop.f32.mrf.mxu0  ;;  %v1112_v19 = vpop.f32.mrf.mxu1 }
 0x119   : > { %v1432_v15 = vadd.f32 %v1063_v0, %v1380_v21 }
 0x11a   : > { %v1065_v48 = vpop.f32.mrf.mxu0  ;;  %v1113_v35 = vpop.f32.mrf.mxu1 }
 0x11b   : > { %v1066_v10 = vadd.f32 %v1065_v48, %v1064_v44  ;;  %v669_v30 = vadd.f32 %v668_v22, %v1432_v15  ;;  %v1081_v48 = vadd.f32 %v1345_v51, %v1343_v49 }
 0x11c   : > { %v1067_v58 = vpop.f32.mrf.mxu0  ;;  %v1115_v47 = vpop.f32.mrf.mxu1 }
 0x11d   : > { %v1436_v24 = vadd.f32 %v1066_v10, %v1380_v21  ;;  %v1460_v6 = vadd.f32 %v1081_v48, %v1380_v21  ;;  %v1087_v10 = vadd.f32 %v1353_v59, %v1351_v57  ;;  %v1096_v59 = vadd.f32 %v1365_v7, %v1363_v5 }
 0x11e   : > { %v1068_v2 = vpop.f32.mrf.mxu0 }
 0x11f   : > { %v1069_v17 = vadd.f32 %v1068_v2, %v1067_v58  ;;  %v670_v36 = vadd.f32 %v669_v30, %v1436_v24  ;;  %v1084_v58 = vadd.f32 %v1349_v55, %v1347_v53  ;;  %v1116_v2 = vpop.f32.mrf.mxu1  ;;  %v1090_v53 = vadd.f32 %v1357_v63, %v1355_v61 }
 0x120   : > { %v1070_v12 = vpop.f32.mrf.mxu0  ;;  %v1472_v14 = vadd.f32 %v1087_v10, %v1380_v21 }
 0x121   : > { %v1440_v32 = vadd.f32 %v1069_v17, %v1380_v21  ;;  %v1466_v51 = vadd.f32 %v1084_v58, %v1380_v21  ;;  %v1093_v17 = vadd.f32 %v1361_v3, %v1359_v1  ;;  %v1478_v57 = vadd.f32 %v1090_v53, %v1380_v21 }
 0x122   : > { %v1071_v18 = vpop.f32.mrf.mxu0  ;;  %v1490_v1 = vadd.f32 %v1096_v59, %v1380_v21  ;;  %v1102_v3 = vadd.f32 %v1373_v16, %v1371_v13 }
 0x123   : > { %v1072_v26 = vadd.f32 %v1071_v18, %v1070_v12  ;;  %v671_v43 = vadd.f32 %v670_v36, %v1440_v32  ;;  %v1118_v12 = vpop.f32.mrf.mxu1  ;;  %v1484_v63 = vadd.f32 %v1093_v17, %v1380_v21 }
 0x124   : > { %v1073_v29 = vpop.f32.mrf.mxu0 }
 0x125   : > { %v1444_v38 = vadd.f32 %v1072_v26, %v1380_v21  ;;  %v1119_v61 = vpop.f32.mrf.mxu1  ;;  %v1099_v26 = vadd.f32 %v1369_v11, %v1367_v9  ;;  %v1502_v9 = vadd.f32 %v1102_v3, %v1380_v21  ;;  %v1108_v11 = vadd.f32 %v1404_v40, %v1393_v31 }
 0x126   : > { %v1074_v34 = vpop.f32.mrf.mxu0 }
 0x127   : > { %v1075_v39 = vadd.f32 %v1074_v34, %v1073_v29  ;;  %v672_v52 = vadd.f32 %v671_v43, %v1444_v38  ;;  %v1121_v5 = vpop.f32.mrf.mxu1  ;;  %v1496_v7 = vadd.f32 %v1099_v26, %v1380_v21  ;;  %v1105_v34 = vadd.f32 %v1385_v25, %v1375_v20 }
 0x128   : > { %v1076_v41 = vpop.f32.mrf.mxu0  ;;  %v1111_v43 = vadd.f32 %v1424_v4, %v1414_v50  ;;  %v1514_v20 = vadd.f32 %v1108_v11, %v1380_v21 }
 0x129   : > { %v1448_v44 = vadd.f32 %v1075_v39, %v1380_v21  ;;  %v1122_v13 = vpop.f32.mrf.mxu1  ;;  %v1508_v16 = vadd.f32 %v1105_v34, %v1380_v21 }
 0x12a   : > { %v1077_v45 = vpop.f32.mrf.mxu0  ;;  %v1519_v40 = vadd.f32 %v1111_v43, %v1380_v21 }
 0x12b   : > { %v1078_v56 = vadd.f32 %v1077_v45, %v1076_v41  ;;  %v673_v60 = vadd.f32 %v672_v52, %v1448_v44  ;;  %v1114_v45 = vadd.f32 %v1113_v35, %v1112_v19  ;;  %v1124_v48 = vpop.f32.mrf.mxu1  ;;  %v1117_v52 = vadd.f32 %v1116_v2, %v1115_v47 }
 0x12c   : > { %v1123_v19 = vadd.f32 %v1122_v13, %v1121_v5 }
 0x12d   : > { %v1457_v0 = vadd.f32 %v1078_v56, %v1380_v21  ;;  %v1523_v58 = vadd.f32 %v1114_v45, %v1380_v21  ;;  %v1125_v50 = vpop.f32.mrf.mxu1  ;;  %v1527_v10 = vadd.f32 %v1117_v52, %v1380_v21 }
 0x12e   : > { %v1126_v53 = vadd.f32 %v1125_v50, %v1124_v48  ;;  %v1535_v2 = vadd.f32 %v1123_v19, %v1380_v21 }
 0x12f   : > { %v674_v49 = vadd.f32 %v673_v60, %v1457_v0  ;;  %v1120_v60 = vadd.f32 %v1119_v61, %v1118_v12 }
 0x130   : > { %v1539_v12 = vadd.f32 %v1126_v53, %v1380_v21 }
 0x131   : > { %v675_v55 = vadd.f32 %v674_v49, %v1460_v6  ;;  %v1531_v49 = vadd.f32 %v1120_v60, %v1380_v21 }
 0x133   : > { %v676_v18 = vadd.f32 %v675_v55, %v1466_v51 }
 0x135   : > { %v677_v22 = vadd.f32 %v676_v18, %v1472_v14 }
 0x137   : > { %v678_v29 = vadd.f32 %v677_v22, %v1478_v57 }
 0x139   : > { %v679_v30 = vadd.f32 %v678_v29, %v1484_v63 }
 0x13b   : > { %v680_v36 = vadd.f32 %v679_v30, %v1490_v1 }
 0x13d   : > { %v681_v39 = vadd.f32 %v680_v36, %v1496_v7 }
 0x13f   : > { %v682_v41 = vadd.f32 %v681_v39, %v1502_v9 }
 0x141   : > { %v683_v25 = vadd.f32 %v682_v41, %v1508_v16 }
 0x143   : > { %v684_v31 = vadd.f32 %v683_v25, %v1514_v20 }
 0x145   : > { %v685_v56 = vadd.f32 %v684_v31, %v1519_v40 }
 0x147   : > { %v686_v4 = vadd.f32 %v685_v56, %v1523_v58 }
 0x149   : > { %v687_v35 = vadd.f32 %v686_v4, %v1527_v10 }
 0x14b   : > { %v688_v47 = vadd.f32 %v687_v35, %v1531_v49 }
 0x14d   : > { %v689_v55 = vadd.f32 %v688_v47, %v1535_v2 }
 0x14f   : > { %v690_v17 = vadd.f32 %v689_v55, %v1539_v12 }
 0x151   : > { %v691_v18 = vrot.slane %v690_v17, 4 }
 0x153   : > { %v692_v59 = vadd.f32 %v691_v18, %v690_v17 }
 0x155   : > { %v693_v22 = vrot.slane %v692_v59, 2 }
 0x157   : > { %v694_v61 = vadd.f32 %v693_v22, %v692_v59 }
 0x159   : > { %v695_v26 = vrot.slane %v694_v61, 1 }
 0x15b   : > { %v696_v29 = vadd.f32 %v695_v26, %v694_v61 }
 0x15d   : > { %v1542_v3 = vmul.f32 0.00390625, %v696_v29 }
 0x15f   : > { %v1546_v30 = vsub.f32 %v1388_v27, %v1542_v3  ;;  %v1550_v5 = vsub.f32 %v1383_v23, %v1542_v3  ;;  %v1554_v21 = vsub.f32 %v1391_v28, %v1542_v3  ;;  %v1562_v11 = vsub.f32 %v1398_v33, %v1542_v3 }
 0x160   : > { %v1566_v27 = vsub.f32 %v1402_v37, %v1542_v3  ;;  %v1572_v28 = vsub.f32 %v1408_v42, %v1542_v3  ;;  %v1578_v33 = vsub.f32 %v1412_v46, %v1542_v3  ;;  %v1584_v25 = vsub.f32 %v1418_v54, %v1542_v3 }
 0x161   : > { %v730_v34 = vmul.f32 %v1546_v30, %v1546_v30  ;;  %v731_v36 = vmul.f32 %v1550_v5, %v1550_v5  ;;  %v732_v23 = vmul.f32 %v1554_v21, %v1554_v21  ;;  %v733_v13 = vmul.f32 %v1562_v11, %v1562_v11 }
 0x162   : > { %v734_v37 = vmul.f32 %v1566_v27, %v1566_v27  ;;  %v735_v42 = vmul.f32 %v1572_v28, %v1572_v28  ;;  %v1590_v48 = vsub.f32 %v1422_v62, %v1542_v3  ;;  %v736_v46 = vmul.f32 %v1578_v33, %v1578_v33 }
 0x163   : > { %v762_v39 = vadd.f32 %v731_v36, %v730_v34  ;;  %v1596_v52 = vsub.f32 %v1428_v8, %v1542_v3  ;;  %v737_v54 = vmul.f32 %v1584_v25, %v1584_v25  ;;  %v1602_v60 = vsub.f32 %v1432_v15, %v1542_v3 }
 0x164   : > { %v738_v62 = vmul.f32 %v1590_v48, %v1590_v48  ;;  %v1608_v4 = vsub.f32 %v1436_v24, %v1542_v3  ;;  %v1614_v35 = vsub.f32 %v1440_v32, %v1542_v3  ;;  %v1620_v47 = vsub.f32 %v1444_v38, %v1542_v3 }
 0x165   : > { %v763_v41 = vadd.f32 %v762_v39, %v732_v23  ;;  %v739_v8 = vmul.f32 %v1596_v52, %v1596_v52  ;;  %v740_v15 = vmul.f32 %v1602_v60, %v1602_v60  ;;  %v1626_v17 = vsub.f32 %v1448_v44, %v1542_v3 }
 0x166   : > { %v741_v24 = vmul.f32 %v1608_v4, %v1608_v4  ;;  %v742_v32 = vmul.f32 %v1614_v35, %v1614_v35  ;;  %v1632_v59 = vsub.f32 %v1457_v0, %v1542_v3  ;;  %v743_v38 = vmul.f32 %v1620_v47, %v1620_v47 }
 0x167   : > { %v764_v43 = vadd.f32 %v763_v41, %v733_v13  ;;  %v1638_v61 = vsub.f32 %v1460_v6, %v1542_v3  ;;  %v744_v44 = vmul.f32 %v1626_v17, %v1626_v17  ;;  %v1644_v29 = vsub.f32 %v1466_v51, %v1542_v3 }
 0x168   : > { %v745_v0 = vmul.f32 %v1632_v59, %v1632_v59  ;;  %v1650_v36 = vsub.f32 %v1472_v14, %v1542_v3  ;;  %v1656_v39 = vsub.f32 %v1478_v57, %v1542_v3  ;;  %v1662_v41 = vsub.f32 %v1484_v63, %v1542_v3 }
 0x169   : > { %v765_v45 = vadd.f32 %v764_v43, %v734_v37  ;;  %v746_v6 = vmul.f32 %v1638_v61, %v1638_v61  ;;  %v747_v51 = vmul.f32 %v1644_v29, %v1644_v29  ;;  %v1668_v43 = vsub.f32 %v1490_v1, %v1542_v3 }
 0x16a   : > { %v748_v14 = vmul.f32 %v1650_v36, %v1650_v36  ;;  %v749_v57 = vmul.f32 %v1656_v39, %v1656_v39  ;;  %v750_v63 = vmul.f32 %v1662_v41, %v1662_v41 }
 0x16b   : > { %v766_v31 = vadd.f32 %v765_v45, %v735_v42  ;;  %v1674_v45 = vsub.f32 %v1496_v7, %v1542_v3  ;;  %v751_v1 = vmul.f32 %v1668_v43, %v1668_v43 }
 0x16d   : > { %v767_v56 = vadd.f32 %v766_v31, %v736_v46  ;;  %v1680_v31 = vsub.f32 %v1502_v9, %v1542_v3  ;;  %v752_v7 = vmul.f32 %v1674_v45, %v1674_v45 }
 0x16f   : > { %v768_v50 = vadd.f32 %v767_v56, %v737_v54  ;;  %v1686_v56 = vsub.f32 %v1508_v16, %v1542_v3  ;;  %v725_v16 = vsub.f32 %v1523_v58, %v1542_v3  ;;  %v729_v58 = vsub.f32 %v1539_v12, %v1542_v3 }
 0x171   : > { %v769_v19 = vadd.f32 %v768_v50, %v738_v62  ;;  %v723_v50 = vsub.f32 %v1514_v20, %v1542_v3 }
 0x173   : > { %v770_v53 = vadd.f32 %v769_v19, %v739_v8  ;;  %v753_v8 = vmul.f32 %v1680_v31, %v1680_v31  ;;  %v724_v19 = vsub.f32 %v1519_v40, %v1542_v3  ;;  %v728_v40 = vsub.f32 %v1535_v2, %v1542_v3 }
 0x175   : > { %v771_v55 = vadd.f32 %v770_v53, %v740_v15  ;;  %v754_v15 = vmul.f32 %v1686_v56, %v1686_v56  ;;  %v756_v20 = vmul.f32 %v724_v19, %v724_v19 }
 0x177   : > { %v772_v18 = vadd.f32 %v771_v55, %v741_v24  ;;  %v755_v24 = vmul.f32 %v723_v50, %v723_v50 }
 0x179   : > { %v773_v22 = vadd.f32 %v772_v18, %v742_v32  ;;  %v726_v32 = vsub.f32 %v1527_v10, %v1542_v3  ;;  %v761_v10 = vmul.f32 %v729_v58, %v729_v58 }
 0x17b   : > { %v774_v26 = vadd.f32 %v773_v22, %v743_v38  ;;  %v727_v38 = vsub.f32 %v1531_v49, %v1542_v3  ;;  %v757_v22 = vmul.f32 %v725_v16, %v725_v16 }
 0x17d   : > { %v775_v34 = vadd.f32 %v774_v26, %v744_v44  ;;  %v758_v26 = vmul.f32 %v726_v32, %v726_v32 }
 0x17f   : > { %v776_v23 = vadd.f32 %v775_v34, %v745_v0  ;;  %v759_v34 = vmul.f32 %v727_v38, %v727_v38 }
 0x181   : > { %v777_v13 = vadd.f32 %v776_v23, %v746_v6  ;;  %v760_v23 = vmul.f32 %v728_v40, %v728_v40 }
 0x183   : > { %v778_v37 = vadd.f32 %v777_v13, %v747_v51 }
 0x185   : > { %v779_v42 = vadd.f32 %v778_v37, %v748_v14 }
 0x187   : > { %v780_v46 = vadd.f32 %v779_v42, %v749_v57 }
 0x189   : > { %v781_v54 = vadd.f32 %v780_v46, %v750_v63 }
 0x18b   : > { %v782_v62 = vadd.f32 %v781_v54, %v751_v1 }
 0x18d   : > { %v783_v9 = vadd.f32 %v782_v62, %v752_v7 }
 0x18f   : > { %v784_v53 = vadd.f32 %v783_v9, %v753_v8 }
 0x191   : > { %v785_v55 = vadd.f32 %v784_v53, %v754_v15 }
 0x193   : > { %v786_v18 = vadd.f32 %v785_v55, %v755_v24 }
 0x195   : > { %v787_v44 = vadd.f32 %v786_v18, %v756_v20 }
 0x197   : > { %v788_v0 = vadd.f32 %v787_v44, %v757_v22 }
 0x199   : > { %v789_v6 = vadd.f32 %v788_v0, %v758_v26 }
 0x19b   : > { %v790_v51 = vadd.f32 %v789_v6, %v759_v34 }
 0x19d   : > { %v791_v13 = vadd.f32 %v790_v51, %v760_v23 }
 0x19f   : > { %v792_v14 = vadd.f32 %v791_v13, %v761_v10 }
 0x1a1   : > { %v793_v37 = vrot.slane %v792_v14, 4 }
 0x1a3   : > { %v794_v57 = vadd.f32 %v793_v37, %v792_v14 }
 0x1a5   : > { %v795_v49 = vrot.slane %v794_v57, 2 }
 0x1a7   : > { %v796_v42 = vadd.f32 %v795_v49, %v794_v57 }
 0x1a9   : > { %v797_v63 = vrot.slane %v796_v42, 1 }
 0x1ab   : > { %v798_v46 = vadd.f32 %v797_v63, %v796_v42 }
 0x1ad   : > { %v799_v1 = vmul.f32 0.00390625, %v798_v46 }
 0x1af   : > { %v800_v2 = vadd.f32 1e-05, %v799_v1 }
 0x1b1   : > { %1215 = vrsqrt.f32 %v800_v2 }
 0x1be   : > { %v1216_v54 = vpop.eup %1215 }
 0x1bf   : > { %v802_v7 = vmul.f32 %v1216_v54, %v1546_v30  ;;  %v803_v12 = vmul.f32 %v1216_v54, %v1550_v5  ;;  %v804_v3 = vmul.f32 %v1216_v54, %v1554_v21  ;;  %v805_v62 = vmul.f32 %v1216_v54, %v1562_v11 }
 0x1c0   : > { %v806_v8 = vmul.f32 %v1216_v54, %v1566_v27  ;;  %v807_v9 = vmul.f32 %v1216_v54, %v1572_v28  ;;  %v808_v15 = vmul.f32 %v1216_v54, %v1578_v33  ;;  %v809_v53 = vmul.f32 %v1216_v54, %v1584_v25 }
 0x1c1   : > { %v810_v24 = vmul.f32 %v1216_v54, %v1590_v48  ;;  %v811_v55 = vmul.f32 %v1216_v54, %v1596_v52  ;;  %v812_v30 = vmul.f32 %v1216_v54, %v1602_v60  ;;  %v813_v5 = vmul.f32 %v1216_v54, %v1608_v4 }
 0x1c2   : > { %v814_v21 = vmul.f32 %v1216_v54, %v1614_v35  ;;  %v815_v11 = vmul.f32 %v1216_v54, %v1620_v47  ;;  %v816_v27 = vmul.f32 %v1216_v54, %v1626_v17  ;;  %v817_v28 = vmul.f32 %v1216_v54, %v1632_v59 }
 0x1c3   : > { %v818_v33 = vmul.f32 %v1216_v54, %v1638_v61  ;;  %v819_v25 = vmul.f32 %v1216_v54, %v1644_v29  ;;  %v820_v48 = vmul.f32 %v1216_v54, %v1650_v36  ;;  %v821_v52 = vmul.f32 %v1216_v54, %v1656_v39 }
 0x1c4   : > { %v1729_v60 = vmul.f32 %v1216_v54, %v1662_v41  ;;  %v1732_v4 = vmul.f32 %v1216_v54, %v1668_v43  ;;  %v1735_v35 = vmul.f32 %v1216_v54, %v1674_v45  ;;  %v1738_v47 = vmul.f32 %v1216_v54, %v1680_v31 }
 0x1c5   : > { %v1741_v17 = vmul.f32 %v1216_v54, %v1686_v56  ;;  %v1743_v59 = vmul.f32 %v1216_v54, %v723_v50  ;;  %v1745_v61 = vmul.f32 %v1216_v54, %v724_v19  ;;  %v1747_v29 = vmul.f32 %v1216_v54, %v725_v16 }
 0x1c6   : > { %v1756_v36 = vmul.f32 %v1216_v54, %v726_v32  ;;  %v1758_v39 = vmul.f32 %v1216_v54, %v727_v38  ;;  %v1760_v41 = vmul.f32 %v1216_v54, %v728_v40  ;;  %v1762_v43 = vmul.f32 %v1216_v54, %v729_v58 }
 0x1c7   : > { %v834_v45 = vmax.f32 %v802_v7, 0.0  ;;  %v835_v31 = vmax.f32 %v803_v12, 0.0  ;;  %v836_v56 = vmax.f32 %v804_v3, 0.0  ;;  %v837_v50 = vmax.f32 %v805_v62, 0.0 }
 0x1c8   : > { %v838_v19 = vmax.f32 %v806_v8, 0.0  ;;  %v839_v16 = vmax.f32 %v807_v9, 0.0  ;;  %v840_v32 = vmax.f32 %v808_v15, 0.0  ;;  %v841_v20 = vmax.f32 %v809_v53, 0.0 }
 0x1c9   : > { %v842_v18 = vmax.f32 %v810_v24, 0.0  ;;  %v843_v38 = vmax.f32 %v811_v55, 0.0  ;;  %v844_v22 = vmax.f32 %v812_v30, 0.0  ;;  %v845_v44 = vmax.f32 %v813_v5, 0.0  ;;  %866 = vst [vmem:[%s1754_s29] sm:$0xff] %v834_v45  ;;  %867 = vst [vmem:[%s1754_s29 + $0x8] sm:$0xff] %v835_v31 }
 0x1ca   : > { %868 = vst [vmem:[%s1754_s29 + $0x10] sm:$0xff] %v836_v56  ;;  %869 = vst [vmem:[%s1754_s29 + $0x18] sm:$0xff] %v837_v50  ;;  %v846_v40 = vmax.f32 %v814_v21, 0.0  ;;  %v847_v26 = vmax.f32 %v815_v11, 0.0  ;;  %v848_v0 = vmax.f32 %v816_v27, 0.0  ;;  %v849_v58 = vmax.f32 %v817_v28, 0.0 }
 0x1cb   : > { %870 = vst [vmem:[%s1754_s29 + $0x20] sm:$0xff] %v838_v19  ;;  %871 = vst [vmem:[%s1754_s29 + $0x28] sm:$0xff] %v839_v16  ;;  %v850_v34 = vmax.f32 %v818_v33, 0.0  ;;  %v851_v6 = vmax.f32 %v819_v25, 0.0  ;;  %v852_v23 = vmax.f32 %v820_v48, 0.0  ;;  %v853_v51 = vmax.f32 %v821_v52, 0.0 }
 0x1cc   : > { %872 = vst [vmem:[%s1754_s29 + $0x30] sm:$0xff] %v840_v32  ;;  %873 = vst [vmem:[%s1754_s29 + $0x38] sm:$0xff] %v841_v20  ;;  %v854_v10 = vmax.f32 %v1729_v60, 0.0  ;;  %v855_v13 = vmax.f32 %v1732_v4, 0.0  ;;  %v856_v14 = vmax.f32 %v1735_v35, 0.0  ;;  %v857_v37 = vmax.f32 %v1738_v47, 0.0 }
 0x1cd   : > { %874 = vst [vmem:[%s1754_s29 + $0x40] sm:$0xff] %v842_v18  ;;  %875 = vst [vmem:[%s1754_s29 + $0x48] sm:$0xff] %v843_v38  ;;  %v858_v57 = vmax.f32 %v1741_v17, 0.0  ;;  %v859_v49 = vmax.f32 %v1743_v59, 0.0  ;;  %v860_v42 = vmax.f32 %v1745_v61, 0.0  ;;  %v861_v63 = vmax.f32 %v1747_v29, 0.0 }
 0x1ce   : > { %876 = vst [vmem:[%s1754_s29 + $0x50] sm:$0xff] %v844_v22  ;;  %877 = vst [vmem:[%s1754_s29 + $0x58] sm:$0xff] %v845_v44  ;;  %v862_v46 = vmax.f32 %v1756_v36, 0.0  ;;  %v863_v1 = vmax.f32 %v1758_v39, 0.0  ;;  %v864_v2 = vmax.f32 %v1760_v41, 0.0  ;;  %v865_v54 = vmax.f32 %v1762_v43, 0.0 }
 0x1cf   : > { %878 = vst [vmem:[%s1754_s29 + $0x60] sm:$0xff] %v846_v40  ;;  %879 = vst [vmem:[%s1754_s29 + $0x68] sm:$0xff] %v847_v26 }
 0x1d0   : > { %880 = vst [vmem:[%s1754_s29 + $0x70] sm:$0xff] %v848_v0  ;;  %881 = vst [vmem:[%s1754_s29 + $0x78] sm:$0xff] %v849_v58 }
 0x1d1   : > { %882 = vst [vmem:[%s1754_s29 + $0x80] sm:$0xff] %v850_v34  ;;  %883 = vst [vmem:[%s1754_s29 + $0x88] sm:$0xff] %v851_v6 }
 0x1d2   : > { %884 = vst [vmem:[%s1754_s29 + $0x90] sm:$0xff] %v852_v23  ;;  %885 = vst [vmem:[%s1754_s29 + $0x98] sm:$0xff] %v853_v51 }
 0x1d3   : > { %886 = vst [vmem:[%s1754_s29 + $0xa0] sm:$0xff] %v854_v10  ;;  %887 = vst [vmem:[%s1754_s29 + $0xa8] sm:$0xff] %v855_v13 }
 0x1d4   : > { %888 = vst [vmem:[%s1754_s29 + $0xb0] sm:$0xff] %v856_v14  ;;  %889 = vst [vmem:[%s1754_s29 + $0xb8] sm:$0xff] %v857_v37 }
 0x1d5   : > { %890 = vst [vmem:[%s1754_s29 + $0xc0] sm:$0xff] %v858_v57  ;;  %891 = vst [vmem:[%s1754_s29 + $0xc8] sm:$0xff] %v859_v49 }
 0x1d6   : > { %892 = vst [vmem:[%s1754_s29 + $0xd0] sm:$0xff] %v860_v42  ;;  %893 = vst [vmem:[%s1754_s29 + $0xd8] sm:$0xff] %v861_v63 }
 0x1d7   : > { %894 = vst [vmem:[%s1754_s29 + $0xe0] sm:$0xff] %v862_v46  ;;  %895 = vst [vmem:[%s1754_s29 + $0xe8] sm:$0xff] %v863_v1 }
 0x1d8   : > { %896 = vst [vmem:[%s1754_s29 + $0xf0] sm:$0xff] %v864_v2  ;;  %897 = vst [vmem:[%s1754_s29 + $0xf8] sm:$0xff] %v865_v54 }
 0x1d9 PF: > { %s13_s12 = sadd.s32 1, %s1223_s12  }
 0x1da   : > { %p10_p4 = scmp.ge.s32.totalorder %s13_s12, 6  }
 0x1dc   :  { %12 = sbr.rel (!%p10_p4) target bundleno = 1 (0x1), region = 62 }

// kernel: cut_forward_impl.32
= control target key start
LH: loop header
LB: loop body
LE: loop exit
PB: predicated region body
PF: predicated region fallthrough
CT: control target
= control target key end

     0   :  { %s593_s12 = smov 0   ;;  %s647_s0 = inlined_call_operand.vmem [shape: bf16[4,64,128], index: 0, kind: input, shape index: {}]   ;;  %s648_s1 = inlined_call_operand.vmem [shape: bf16[128,128], index: 1, kind: input, shape index: {}]   ;;  %s649_s2 = inlined_call_operand.vmem [shape: f32[1,128], index: 2, kind: input, shape index: {}]   ;;  %s650_s3 = inlined_call_operand.vmem [shape: f32[4,64,128], index: 3, kind: output, shape index: {}]  }
   0x1 LB: > { %s465_s13 = sadd.s32 4294967295, %s571_s12   ;;  %p469_p0 = scmp.ge.s32.totalorder %s571_s12, 1  ;;  %s571_s12 = sphi %s593_s12, %s13_s12  }
   0x2   : > { %p137_p1 = scmp.lt.s32.totalorder %s571_s12, 5 }
   0x4   : > { %p138_p2 = pnand %p469_p0, %p137_p1 }
   0x5   : > { %p161_p3 = scmp.lt.s32.totalorder (!%p138_p2), %s465_s13, 3 }
   0x6   : > { %141 = sbr.rel (%p138_p2) target bundleno = 329 (0x149), region = 32 }
   0xb   : > { %v551_v0 = vld [vmem:[%s648_s1 + $0x38] sm:$0xff]   ;;  %v552_v1 = vld [vmem:[%s648_s1 + $0x30] sm:$0xff]   ;;  %s652_s13 = smov (!%p161_p3, %s465_s13), 3  ;;  %v553_v2 = vld [vmem:[%s648_s1 + $0x28] sm:$0xff]  }
   0xc   : > { %503 = vmatprep.subr.bf16.mxu0 %v551_v0  ;;  %527 = vmatprep.subr.bf16.mxu1 %v551_v0  ;;  %s489_s20 = sshll.u32 %s652_s13, 5  ;;  %v554_v3 = vld [vmem:[%s648_s1 + $0x20] sm:$0xff]   ;;  %v555_v6 = vld [vmem:[%s648_s1 + $0x18] sm:$0xff]   ;;  %v556_v7 = vld [vmem:[%s648_s1 + $0x10] sm:$0xff]   ;;  %s490_s9 = sshll.u32 %s652_s13, 6 }
   0xd   : > { %504 = vmatpush3.bf16.msra.mxu0 %v551_v0  ;;  %535 = vmatpush3.bf16.msra.mxu1 %v551_v0  ;;  %s616_s23 = scalar_lea.vmem %s647_s0, %s489_s20  ;;  %v557_v8 = vld [vmem:[%s648_s1 + $0x8] sm:$0xff]   ;;  %v558_v9 = vld [vmem:[%s648_s1] sm:$0xff]   ;;  %s170_s14 = scalar_lea.vmem %s650_s3, %s490_s9 }
   0xe   : > { %505 = vmatprep.subr.bf16.mxu0 %v552_v1  ;;  %528 = vmatprep.subr.bf16.mxu1 %v552_v1  ;;  %v559_v4 = vld [vmem:[%s616_s23] sm:$0xff]   ;;  %v561_v5 = vld [vmem:[%s616_s23 + $0x10] sm:$0xff]   ;;  %v560_v10 = vld [vmem:[%s616_s23 + $0x8] sm:$0xff]  }
   0xf   : > { %519 = vmatprep.mubr.bf16.mxu0 %v559_v4  ;;  %523 = vmatprep.mubr.bf16.mxu1 %v561_v5  ;;  %v562_v11 = vld [vmem:[%s616_s23 + $0x18] sm:$0xff]   ;;  %v474_v17 = vld [vmem:[%s649_s2] ss:$0 sm:$0xff] }
  0x11   : > { %506 = vmatpush3.bf16.msra.mxu0 %v552_v1  ;;  %536 = vmatpush3.bf16.msra.mxu1 %v552_v1 }
  0x12   : > { %507 = vmatprep.subr.bf16.mxu0 %v553_v2  ;;  %529 = vmatprep.subr.bf16.mxu1 %v553_v2 }
  0x15   : > { %508 = vmatpush3.bf16.msra.mxu0 %v553_v2  ;;  %537 = vmatpush3.bf16.msra.mxu1 %v553_v2 }
  0x16   : > { %509 = vmatprep.subr.bf16.mxu0 %v554_v3  ;;  %530 = vmatprep.subr.bf16.mxu1 %v554_v3 }
  0x19   : > { %510 = vmatpush3.bf16.msra.mxu0 %v554_v3  ;;  %538 = vmatpush3.bf16.msra.mxu1 %v554_v3 }
  0x1a   : > { %511 = vmatprep.subr.bf16.mxu0 %v555_v6  ;;  %531 = vmatprep.subr.bf16.mxu1 %v555_v6 }
  0x1d   : > { %512 = vmatpush3.bf16.msra.mxu0 %v555_v6  ;;  %539 = vmatpush3.bf16.msra.mxu1 %v555_v6 }
  0x1e   : > { %513 = vmatprep.subr.bf16.mxu0 %v556_v7  ;;  %532 = vmatprep.subr.bf16.mxu1 %v556_v7 }
  0x21   : > { %514 = vmatpush3.bf16.msra.mxu0 %v556_v7  ;;  %540 = vmatpush3.bf16.msra.mxu1 %v556_v7 }
  0x22   : > { %515 = vmatprep.subr.bf16.mxu0 %v557_v8  ;;  %533 = vmatprep.subr.bf16.mxu1 %v557_v8 }
  0x25   : > { %516 = vmatpush3.bf16.msra.mxu0 %v557_v8  ;;  %541 = vmatpush3.bf16.msra.mxu1 %v557_v8 }
  0x26   : > { %517 = vmatprep.subr.bf16.mxu0 %v558_v9  ;;  %534 = vmatprep.subr.bf16.mxu1 %v558_v9 }
  0x29   : > { %518 = vmatpush3.bf16.msra.mxu0 %v558_v9  ;;  %542 = vmatpush3.bf16.msra.mxu1 %v558_v9 }
  0x2c   : > { %520 = vmatmul.mubr.bf16.vlgmr.msra.gmra.mxu0 %v560_v10  ;;  %524 = vmatmul.mubr.bf16.vlgmr.msra.gmra.mxu1 %v562_v11 }
  0xec   : > { %v521_v12 = vpop.f32.mrf.mxu0  ;;  %v525_v13 = vpop.f32.mrf.mxu1 }
  0xed   : > { %v318_v22 = vadd.f32 %v521_v12, %v474_v17  ;;  %v334_v31 = vadd.f32 %v525_v13, %v474_v17 }
  0xee   : > { %v309_v14 = vpop.f32.mrf.mxu0  ;;  %v325_v16 = vpop.f32.mrf.mxu1 }
  0xef   : > { %v310_v19 = vadd.f32 %v474_v17, %v309_v14  ;;  %v326_v27 = vadd.f32 %v474_v17, %v325_v16 }
  0xf0   : > { %v522_v15 = vpop.f32.mrf.mxu0  ;;  %v526_v21 = vpop.f32.mrf.mxu1 }
  0xf1   : > { %v321_v24 = vadd.f32 %v522_v15, %v474_v17  ;;  %v337_v33 = vadd.f32 %v526_v21, %v474_v17 }
  0xf2   : > { %v312_v18 = vpop.f32.mrf.mxu0  ;;  %v328_v26 = vpop.f32.mrf.mxu1 }
  0xf3   : > { %v313_v20 = vadd.f32 %v474_v17, %v312_v18  ;;  %v329_v29 = vadd.f32 %v474_v17, %v328_v26 }
  0xf5   : > { %v340_v23 = vadd.f32 %v313_v20, %v310_v19 }
  0xf7   : > { %v341_v25 = vadd.f32 %v340_v23, %v318_v22 }
  0xf9   : > { %v342_v28 = vadd.f32 %v341_v25, %v321_v24 }
  0xfb   : > { %v343_v30 = vadd.f32 %v342_v28, %v326_v27 }
  0xfd   : > { %v344_v32 = vadd.f32 %v343_v30, %v329_v29 }
  0xff   : > { %v345_v34 = vadd.f32 %v344_v32, %v334_v31 }
 0x101   : > { %v346_v35 = vadd.f32 %v345_v34, %v337_v33 }
 0x103   : > { %v347_v36 = vrot.slane %v346_v35, 4 }
 0x105   : > { %v348_v37 = vadd.f32 %v347_v36, %v346_v35 }
 0x107   : > { %v349_v38 = vrot.slane %v348_v37, 2 }
 0x109   : > { %v350_v39 = vadd.f32 %v349_v38, %v348_v37 }
 0x10b   : > { %v351_v40 = vrot.slane %v350_v39, 1 }
 0x10d   : > { %v352_v41 = vadd.f32 %v351_v40, %v350_v39 }
 0x10f   : > { %v353_v42 = vmul.f32 0.015625, %v352_v41 }
 0x111   : > { %v354_v43 = vsub.f32 %v310_v19, %v353_v42  ;;  %v355_v44 = vsub.f32 %v313_v20, %v353_v42  ;;  %v356_v45 = vsub.f32 %v318_v22, %v353_v42  ;;  %v357_v46 = vsub.f32 %v321_v24, %v353_v42 }
 0x112   : > { %v358_v49 = vsub.f32 %v326_v27, %v353_v42  ;;  %v359_v52 = vsub.f32 %v329_v29, %v353_v42  ;;  %v360_v55 = vsub.f32 %v334_v31, %v353_v42  ;;  %v361_v58 = vsub.f32 %v337_v33, %v353_v42 }
 0x113   : > { %v362_v47 = vmul.f32 %v354_v43, %v354_v43  ;;  %v363_v48 = vmul.f32 %v355_v44, %v355_v44  ;;  %v364_v50 = vmul.f32 %v356_v45, %v356_v45  ;;  %v365_v53 = vmul.f32 %v357_v46, %v357_v46 }
 0x114   : > { %v366_v56 = vmul.f32 %v358_v49, %v358_v49  ;;  %v367_v59 = vmul.f32 %v359_v52, %v359_v52  ;;  %v368_v61 = vmul.f32 %v360_v55, %v360_v55  ;;  %v369_v63 = vmul.f32 %v361_v58, %v361_v58 }
 0x115   : > { %v370_v51 = vadd.f32 %v363_v48, %v362_v47 }
 0x117   : > { %v371_v54 = vadd.f32 %v370_v51, %v364_v50 }
 0x119   : > { %v372_v57 = vadd.f32 %v371_v54, %v365_v53 }
 0x11b   : > { %v373_v60 = vadd.f32 %v372_v57, %v366_v56 }
 0x11d   : > { %v374_v62 = vadd.f32 %v373_v60, %v367_v59 }
 0x11f   : > { %v375_v0 = vadd.f32 %v374_v62, %v368_v61 }
 0x121   : > { %v376_v1 = vadd.f32 %v375_v0, %v369_v63 }
 0x123   : > { %v377_v2 = vrot.slane %v376_v1, 4 }
 0x125   : > { %v378_v3 = vadd.f32 %v377_v2, %v376_v1 }
 0x127   : > { %v379_v4 = vrot.slane %v378_v3, 2 }
 0x129   : > { %v380_v5 = vadd.f32 %v379_v4, %v378_v3 }
 0x12b   : > { %v381_v6 = vrot.slane %v380_v5, 1 }
 0x12d   : > { %v382_v7 = vadd.f32 %v381_v6, %v380_v5 }
 0x12f   : > { %v383_v8 = vmul.f32 0.015625, %v382_v7 }
 0x131   : > { %v384_v9 = vadd.f32 1e-05, %v383_v8 }
 0x133   : > { %563 = vrsqrt.f32 %v384_v9 }
 0x140   : > { %v564_v10 = vpop.eup %563 }
 0x141   : > { %v386_v11 = vmul.f32 %v564_v10, %v354_v43  ;;  %v387_v12 = vmul.f32 %v564_v10, %v355_v44  ;;  %v388_v13 = vmul.f32 %v564_v10, %v356_v45  ;;  %v389_v14 = vmul.f32 %v564_v10, %v357_v46 }
 0x142   : > { %v390_v15 = vmul.f32 %v564_v10, %v358_v49  ;;  %v391_v16 = vmul.f32 %v564_v10, %v359_v52  ;;  %v392_v17 = vmul.f32 %v564_v10, %v360_v55  ;;  %v393_v18 = vmul.f32 %v564_v10, %v361_v58 }
 0x143   : > { %v394_v19 = vmax.f32 %v386_v11, 0.0  ;;  %v395_v20 = vmax.f32 %v387_v12, 0.0  ;;  %v396_v21 = vmax.f32 %v388_v13, 0.0  ;;  %v397_v22 = vmax.f32 %v389_v14, 0.0 }
 0x144   : > { %v398_v23 = vmax.f32 %v390_v15, 0.0  ;;  %v399_v24 = vmax.f32 %v391_v16, 0.0  ;;  %v400_v25 = vmax.f32 %v392_v17, 0.0  ;;  %v401_v26 = vmax.f32 %v393_v18, 0.0 }
 0x145   : > { %402 = vst [vmem:[%s170_s14] sm:$0xff] %v394_v19  ;;  %403 = vst [vmem:[%s170_s14 + $0x8] sm:$0xff] %v395_v20 }
 0x146   : > { %404 = vst [vmem:[%s170_s14 + $0x10] sm:$0xff] %v396_v21  ;;  %405 = vst [vmem:[%s170_s14 + $0x18] sm:$0xff] %v397_v22 }
 0x147   : > { %406 = vst [vmem:[%s170_s14 + $0x20] sm:$0xff] %v398_v23  ;;  %407 = vst [vmem:[%s170_s14 + $0x28] sm:$0xff] %v399_v24 }
 0x148   : > { %408 = vst [vmem:[%s170_s14 + $0x30] sm:$0xff] %v400_v25  ;;  %409 = vst [vmem:[%s170_s14 + $0x38] sm:$0xff] %v401_v26 }
 0x149 PF: > { %s13_s12 = sadd.s32 1, %s571_s12  }
 0x14a   : > { %p10_p4 = scmp.ge.s32.totalorder %s13_s12, 6  }
 0x14c   :  { %12 = sbr.rel (!%p10_p4) target bundleno = 1 (0x1), region = 62 }

// kernel: cut_forward_impl.33
= control target key start
LH: loop header
LB: loop body
LE: loop exit
PB: predicated region body
PF: predicated region fallthrough
CT: control target
= control target key end

     0   :  { %s554_s12 = smov 0   ;;  %s629_s0 = inlined_call_operand.vmem [shape: bf16[4,16,256], index: 0, kind: input, shape index: {}]   ;;  %s630_s1 = inlined_call_operand.vmem [shape: bf16[256,128], index: 1, kind: input, shape index: {}]   ;;  %s631_s2 = inlined_call_operand.vmem [shape: f32[1,128], index: 2, kind: input, shape index: {}]   ;;  %s632_s3 = inlined_call_operand.vmem [shape: f32[4,16,128], index: 3, kind: output, shape index: {}]  }
   0x1 LB: > { %s443_s13 = sadd.s32 4294967295, %s532_s12   ;;  %p447_p0 = scmp.ge.s32.totalorder %s532_s12, 1  ;;  %s532_s12 = sphi %s554_s12, %s13_s12  }
   0x2   : > { %p137_p1 = scmp.lt.s32.totalorder %s532_s12, 5 }
   0x4   : > { %p138_p2 = pnand %p447_p0, %p137_p1 }
   0x5   : > { %p161_p3 = scmp.lt.s32.totalorder (!%p138_p2), %s443_s13, 3 }
   0x6   : > { %141 = sbr.rel (%p138_p2) target bundleno = 304 (0x130), region = 32 }
   0xb   : > { %v505_v0 = vld [vmem:[%s630_s1 + $0x78] sm:$0xff]   ;;  %v507_v2 = vld [vmem:[%s630_s1 + $0x70] sm:$0xff]   ;;  %v509_v4 = vld [vmem:[%s630_s1 + $0x68] sm:$0xff]   ;;  %s634_s13 = smov (!%p161_p3, %s443_s13), 3 }
   0xc   : > { %v506_v1 = vld [vmem:[%s630_s1 + $0x38] sm:$0xff]   ;;  %475 = vmatprep.subr.bf16.mxu0 %v505_v0  ;;  %v508_v3 = vld [vmem:[%s630_s1 + $0x30] sm:$0xff]   ;;  %v510_v5 = vld [vmem:[%s630_s1 + $0x28] sm:$0xff]   ;;  %s473_s30 = sshll.u32 %s634_s13, 4 }
   0xd   : > { %476 = vmatpush3.bf16.msra.mxu0 %v506_v1  ;;  %v511_v6 = vld [vmem:[%s630_s1 + $0x60] sm:$0xff]   ;;  %v513_v8 = vld [vmem:[%s630_s1 + $0x58] sm:$0xff]   ;;  %s165_s8 = scalar_lea.vmem %s629_s0, %s473_s30  ;;  %v515_v10 = vld [vmem:[%s630_s1 + $0x50] sm:$0xff]   ;;  %s170_s29 = scalar_lea.vmem %s632_s3, %s473_s30 }
   0xe   : > { %477 = vmatprep.subr.bf16.mxu0 %v507_v2  ;;  %v512_v7 = vld [vmem:[%s630_s1 + $0x20] sm:$0xff]   ;;  %v514_v9 = vld [vmem:[%s630_s1 + $0x18] sm:$0xff]   ;;  %v516_v12 = vld [vmem:[%s630_s1 + $0x10] sm:$0xff]  }
   0xf   : > { %v523_v11 = vld [vmem:[%s165_s8 + $0x4] ss:$8 sps:$4 sm:$0xff]   ;;  %v521_v17 = vld [vmem:[%s165_s8] ss:$8 sps:$4 sm:$0xff]  }
  0x10   : > { %351 = vmatprep.mubr.bf16.mxu0 %v523_v11  ;;  %v517_v13 = vld [vmem:[%s630_s1 + $0x48] sm:$0xff]   ;;  %v519_v15 = vld [vmem:[%s630_s1 + $0x40] sm:$0xff]  }
  0x11   : > { %478 = vmatpush3.bf16.msra.mxu0 %v508_v3  ;;  %v518_v14 = vld [vmem:[%s630_s1 + $0x8] sm:$0xff]   ;;  %v520_v16 = vld [vmem:[%s630_s1] sm:$0xff]  }
  0x12   : > { %479 = vmatprep.subr.bf16.mxu0 %v509_v4  ;;  %v452_v22 = vld [vmem:[%s631_s2] ss:$0 sm:$0xff] }
  0x15   : > { %480 = vmatpush3.bf16.msra.mxu0 %v510_v5 }
  0x16   : > { %481 = vmatprep.subr.bf16.mxu0 %v511_v6 }
  0x19   : > { %482 = vmatpush3.bf16.msra.mxu0 %v512_v7 }
  0x1a   : > { %483 = vmatprep.subr.bf16.mxu0 %v513_v8 }
  0x1d   : > { %484 = vmatpush3.bf16.msra.mxu0 %v514_v9 }
  0x1e   : > { %485 = vmatprep.subr.bf16.mxu0 %v515_v10 }
  0x21   : > { %486 = vmatpush3.bf16.msra.mxu0 %v516_v12 }
  0x22   : > { %487 = vmatprep.subr.bf16.mxu0 %v517_v13 }
  0x25   : > { %488 = vmatpush3.bf16.msra.mxu0 %v518_v14 }
  0x26   : > { %489 = vmatprep.subr.bf16.mxu0 %v519_v15 }
  0x29   : > { %490 = vmatpush3.bf16.msra.mxu0 %v520_v16 }
  0x2c   : > { %352 = vmatmul.mubr.bf16.vlgmr.msra.gmra.mxu0 %v521_v17 }
  0xec   : > { %v491_v18 = vpop.f32.mrf.mxu0 }
  0xee   : > { %v492_v19 = vpop.f32.mrf.mxu0 }
  0xef   : > { %v493_v21 = vadd.f32 %v492_v19, %v491_v18 }
  0xf0   : > { %v494_v20 = vpop.f32.mrf.mxu0 }
  0xf1   : > { %v354_v25 = vadd.f32 %v493_v21, %v452_v22 }
  0xf2   : > { %v495_v23 = vpop.f32.mrf.mxu0 }
  0xf3   : > { %v496_v24 = vadd.f32 %v495_v23, %v494_v20 }
  0xf5   : > { %v357_v26 = vadd.f32 %v496_v24, %v452_v22 }
  0xf7   : > { %v360_v27 = vadd.f32 %v357_v26, %v354_v25 }
  0xf9   : > { %v361_v28 = vrot.slane %v360_v27, 4 }
  0xfb   : > { %v362_v29 = vadd.f32 %v361_v28, %v360_v27 }
  0xfd   : > { %v363_v30 = vrot.slane %v362_v29, 2 }
  0xff   : > { %v364_v31 = vadd.f32 %v363_v30, %v362_v29 }
 0x101   : > { %v365_v32 = vrot.slane %v364_v31, 1 }
 0x103   : > { %v366_v33 = vadd.f32 %v365_v32, %v364_v31 }
 0x105   : > { %v367_v34 = vmul.f32 0.0625, %v366_v33 }
 0x107   : > { %v368_v35 = vsub.f32 %v354_v25, %v367_v34  ;;  %v369_v36 = vsub.f32 %v357_v26, %v367_v34 }
 0x109   : > { %v370_v37 = vmul.f32 %v368_v35, %v368_v35  ;;  %v371_v38 = vmul.f32 %v369_v36, %v369_v36 }
 0x10b   : > { %v372_v39 = vadd.f32 %v371_v38, %v370_v37 }
 0x10d   : > { %v373_v40 = vrot.slane %v372_v39, 4 }
 0x10f   : > { %v374_v41 = vadd.f32 %v373_v40, %v372_v39 }
 0x111   : > { %v375_v42 = vrot.slane %v374_v41, 2 }
 0x113   : > { %v376_v43 = vadd.f32 %v375_v42, %v374_v41 }
 0x115   : > { %v377_v44 = vrot.slane %v376_v43, 1 }
 0x117   : > { %v378_v45 = vadd.f32 %v377_v44, %v376_v43 }
 0x119   : > { %v379_v46 = vmul.f32 0.0625, %v378_v45 }
 0x11b   : > { %v380_v47 = vadd.f32 1e-05, %v379_v46 }
 0x11d   : > { %524 = vrsqrt.f32 %v380_v47 }
 0x12a   : > { %v525_v48 = vpop.eup %524 }
 0x12b   : > { %v382_v49 = vmul.f32 %v525_v48, %v368_v35  ;;  %v383_v50 = vmul.f32 %v525_v48, %v369_v36 }
 0x12d   : > { %v384_v51 = vmax.f32 %v382_v49, 0.0  ;;  %v385_v52 = vmax.f32 %v383_v50, 0.0 }
 0x12f   : > { %386 = vst [vmem:[%s170_s29] sm:$0xff] %v384_v51  ;;  %387 = vst [vmem:[%s170_s29 + $0x8] sm:$0xff] %v385_v52 }
 0x130 PF: > { %s13_s12 = sadd.s32 1, %s532_s12  }
 0x131   : > { %p10_p4 = scmp.ge.s32.totalorder %s13_s12, 6  }
 0x133   :  { %12 = sbr.rel (!%p10_p4) target bundleno = 1 (0x1), region = 62 }

// kernel: cut_forward_impl.35
= control target key start
LH: loop header
LB: loop body
LE: loop exit
PB: predicated region body
PF: predicated region fallthrough
CT: control target
= control target key end

     0   :  { %s715_s12 = smov 0   ;;  %s815_s0 = inlined_call_operand.vmem [shape: bf16[4,16,384], index: 0, kind: input, shape index: {}]   ;;  %s816_s1 = inlined_call_operand.vmem [shape: bf16[384,128], index: 1, kind: input, shape index: {}]   ;;  %s817_s2 = inlined_call_operand.vmem [shape: f32[1,128], index: 2, kind: input, shape index: {}]   ;;  %s818_s3 = inlined_call_operand.vmem [shape: f32[4,16,128], index: 3, kind: output, shape index: {}]  }
   0x1 LB: > { %s554_s13 = sadd.s32 4294967295, %s691_s12   ;;  %p558_p0 = scmp.ge.s32.totalorder %s691_s12, 1  ;;  %s691_s12 = sphi %s715_s12, %s13_s12  }
   0x2   : > { %p137_p1 = scmp.lt.s32.totalorder %s691_s12, 5 }
   0x4   : > { %p138_p2 = pnand %p558_p0, %p137_p1 }
   0x5   : > { %p161_p3 = scmp.lt.s32.totalorder (!%p138_p2), %s554_s13, 3 }
   0x6   : > { %141 = sbr.rel (%p138_p2) target bundleno = 304 (0x130), region = 32 }
   0xb   : > { %v655_v0 = vld [vmem:[%s816_s1 + $0x78] sm:$0xff]   ;;  %v693_v1 = vmov 0.0   ;;  %v658_v4 = vld [vmem:[%s816_s1 + $0x70] sm:$0xff]   ;;  %vm694_vm0 = vmmov 0   ;;  %v661_v7 = vld [vmem:[%s816_s1 + $0x68] sm:$0xff]   ;;  %s820_s13 = smov (!%p161_p3, %s554_s13), 3 }
   0xc   : > { %624 = vmatprep.subr.bf16.mxu1 %v693_v1  ;;  %v656_v2 = vld [vmem:[%s816_s1 + $0x38] sm:$0xff]   ;;  %593 = vmatprep.subr.bf16.mxu0 %v655_v0  ;;  %v659_v5 = vld [vmem:[%s816_s1 + $0x30] sm:$0xff]   ;;  %v662_v8 = vld [vmem:[%s816_s1 + $0x28] sm:$0xff]   ;;  %s644_s23 = smul.u32 24, %s820_s13  ;;  %s592_s18 = sshll.u32 %s820_s13, 4 }
   0xd   : > { %v657_v3 = vld [vmem:[%s816_s1 + $0xb8] sm:$0xff]   ;;  %594 = vmatpush3.bf16.msra.mxu0 %v656_v2  ;;  %640 = vmatprep.mubr.msk.bf16.mxu1 %vm694_vm0, %v693_v1  ;;  %v660_v6 = vld [vmem:[%s816_s1 + $0xb0] sm:$0xff]   ;;  %v663_v9 = vld [vmem:[%s816_s1 + $0xa8] sm:$0xff]   ;;  %s170_s21 = scalar_lea.vmem %s818_s3, %s592_s18 }
   0xe   : > { %625 = vmatpush3.bf16.msra.mxu1 %v657_v3  ;;  %595 = vmatprep.subr.bf16.mxu0 %v658_v4  ;;  %v664_v10 = vld [vmem:[%s816_s1 + $0x60] sm:$0xff]   ;;  %v667_v13 = vld [vmem:[%s816_s1 + $0x58] sm:$0xff]   ;;  %v670_v16 = vld [vmem:[%s816_s1 + $0x50] sm:$0xff]   ;;  %s165_s5 = scalar_lea.vmem %s815_s0, %s644_s23 }
   0xf   : > { %626 = vmatprep.subr.bf16.mxu1 %v693_v1  ;;  %v665_v11 = vld [vmem:[%s816_s1 + $0x20] sm:$0xff]   ;;  %v668_v14 = vld [vmem:[%s816_s1 + $0x18] sm:$0xff]   ;;  %v671_v17 = vld [vmem:[%s816_s1 + $0x10] sm:$0xff]  }
  0x10   : > { %v666_v12 = vld [vmem:[%s816_s1 + $0xa0] sm:$0xff]   ;;  %v669_v15 = vld [vmem:[%s816_s1 + $0x98] sm:$0xff]   ;;  %v672_v18 = vld [vmem:[%s816_s1 + $0x90] sm:$0xff]  }
  0x11   : > { %596 = vmatpush3.bf16.msra.mxu0 %v659_v5  ;;  %v673_v19 = vld [vmem:[%s816_s1 + $0x48] sm:$0xff]   ;;  %v676_v22 = vld [vmem:[%s816_s1 + $0x40] sm:$0xff]  }
  0x12   : > { %627 = vmatpush3.bf16.msra.mxu1 %v660_v6  ;;  %597 = vmatprep.subr.bf16.mxu0 %v661_v7  ;;  %v674_v20 = vld [vmem:[%s816_s1 + $0x8] sm:$0xff]   ;;  %v681_v23 = vld [vmem:[%s165_s5 + $0x4] ss:$12 sps:$4 sm:$0xff]   ;;  %v562_v33 = vld [vmem:[%s817_s2] ss:$0 sm:$0xff] }
  0x13   : > { %628 = vmatprep.subr.bf16.mxu1 %v693_v1  ;;  %v675_v21 = vld [vmem:[%s816_s1 + $0x88] sm:$0xff]   ;;  %v677_v24 = vld [vmem:[%s816_s1] sm:$0xff]   ;;  %423 = vmatprep.mubr.bf16.mxu0 %v681_v23 }
  0x14   : > { %v678_v25 = vld [vmem:[%s816_s1 + $0x80] sm:$0xff]   ;;  %v682_v27 = vld [vmem:[%s165_s5 + $0x8] ss:$12 sps:$4 sm:$0xff]  }
  0x15   : > { %598 = vmatpush3.bf16.msra.mxu0 %v662_v8  ;;  %v679_v26 = vld [vmem:[%s165_s5] ss:$12 sps:$4 sm:$0xff]  }
  0x16   : > { %629 = vmatpush3.bf16.msra.mxu1 %v663_v9  ;;  %599 = vmatprep.subr.bf16.mxu0 %v664_v10 }
  0x17   : > { %630 = vmatprep.subr.bf16.mxu1 %v693_v1 }
  0x19   : > { %600 = vmatpush3.bf16.msra.mxu0 %v665_v11 }
  0x1a   : > { %631 = vmatpush3.bf16.msra.mxu1 %v666_v12  ;;  %601 = vmatprep.subr.bf16.mxu0 %v667_v13 }
  0x1b   : > { %632 = vmatprep.subr.bf16.mxu1 %v693_v1 }
  0x1d   : > { %602 = vmatpush3.bf16.msra.mxu0 %v668_v14 }
  0x1e   : > { %633 = vmatpush3.bf16.msra.mxu1 %v669_v15  ;;  %603 = vmatprep.subr.bf16.mxu0 %v670_v16 }
  0x1f   : > { %634 = vmatprep.subr.bf16.mxu1 %v693_v1 }
  0x21   : > { %604 = vmatpush3.bf16.msra.mxu0 %v671_v17 }
  0x22   : > { %635 = vmatpush3.bf16.msra.mxu1 %v672_v18  ;;  %605 = vmatprep.subr.bf16.mxu0 %v673_v19 }
  0x23   : > { %636 = vmatprep.subr.bf16.mxu1 %v693_v1 }
  0x25   : > { %606 = vmatpush3.bf16.msra.mxu0 %v674_v20 }
  0x26   : > { %637 = vmatpush3.bf16.msra.mxu1 %v675_v21  ;;  %607 = vmatprep.subr.bf16.mxu0 %v676_v22 }
  0x27   : > { %638 = vmatprep.subr.bf16.mxu1 %v693_v1 }
  0x29   : > { %608 = vmatpush3.bf16.msra.mxu0 %v677_v24 }
  0x2a   : > { %639 = vmatpush3.bf16.msra.mxu1 %v678_v25 }
  0x2c   : > { %424 = vmatmul.mubr.bf16.vlgmr.msra.gmra.mxu0 %v679_v26 }
  0x2d   : > { %641 = vmatmul.mubr.bf16.vlgmr.msra.gmra.mxu1 %v682_v27 }
  0xec   : > { %v609_v28 = vpop.f32.mrf.mxu0 }
  0xed   : > { %v466_v29 = vpop.f32.mrf.mxu1 }
  0xee   : > { %v610_v30 = vpop.f32.mrf.mxu0 }
  0xef   : > { %v611_v31 = vadd.f32 %v610_v30, %v609_v28  ;;  %v642_v32 = vpop.f32.mrf.mxu1 }
  0xf0   : > { %v612_v34 = vpop.f32.mrf.mxu0 }
  0xf1   : > { %v469_v35 = vpop.f32.mrf.mxu1  ;;  %v426_v37 = vadd.f32 %v611_v31, %v562_v33 }
  0xf2   : > { %v613_v36 = vpop.f32.mrf.mxu0 }
  0xf3   : > { %v614_v38 = vadd.f32 %v613_v36, %v612_v34  ;;  %v643_v39 = vpop.f32.mrf.mxu1  ;;  %v467_v41 = vadd.f32 %v466_v29, %v426_v37 }
  0xf5   : > { %v429_v40 = vadd.f32 %v614_v38, %v562_v33 }
  0xf7   : > { %v470_v42 = vadd.f32 %v469_v35, %v429_v40 }
  0xf9   : > { %v473_v43 = vadd.f32 %v470_v42, %v467_v41 }
  0xfb   : > { %v474_v44 = vrot.slane %v473_v43, 4 }
  0xfd   : > { %v475_v45 = vadd.f32 %v474_v44, %v473_v43 }
  0xff   : > { %v476_v46 = vrot.slane %v475_v45, 2 }
 0x101   : > { %v477_v47 = vadd.f32 %v476_v46, %v475_v45 }
 0x103   : > { %v478_v48 = vrot.slane %v477_v47, 1 }
 0x105   : > { %v479_v49 = vadd.f32 %v478_v48, %v477_v47 }
 0x107   : > { %v480_v50 = vmul.f32 0.0625, %v479_v49 }
 0x109   : > { %v481_v51 = vsub.f32 %v467_v41, %v480_v50  ;;  %v482_v52 = vsub.f32 %v470_v42, %v480_v50 }
 0x10b   : > { %v483_v53 = vmul.f32 %v481_v51, %v481_v51  ;;  %v484_v54 = vmul.f32 %v482_v52, %v482_v52 }
 0x10d   : > { %v485_v55 = vadd.f32 %v484_v54, %v483_v53 }
 0x10f   : > { %v486_v56 = vrot.slane %v485_v55, 4 }
 0x111   : > { %v487_v57 = vadd.f32 %v486_v56, %v485_v55 }
 0x113   : > { %v488_v58 = vrot.slane %v487_v57, 2 }
 0x115   : > { %v489_v59 = vadd.f32 %v488_v58, %v487_v57 }
 0x117   : > { %v490_v60 = vrot.slane %v489_v59, 1 }
 0x119   : > { %v491_v61 = vadd.f32 %v490_v60, %v489_v59 }
 0x11b   : > { %v492_v62 = vmul.f32 0.0625, %v491_v61 }
 0x11d   : > { %v493_v63 = vadd.f32 1e-05, %v492_v62 }
 0x11f   : > { %683 = vrsqrt.f32 %v493_v63 }
 0x12c   : > { %v684_v0 = vpop.eup %683 }
 0x12d   : > { %v495_v1 = vmul.f32 %v684_v0, %v481_v51  ;;  %v496_v2 = vmul.f32 %v684_v0, %v482_v52 }
 0x12f   : > { %497 = vst [vmem:[%s170_s21] sm:$0xff] %v495_v1  ;;  %498 = vst [vmem:[%s170_s21 + $0x8] sm:$0xff] %v496_v2 }
 0x130 PF: > { %s13_s12 = sadd.s32 1, %s691_s12  }
 0x131   : > { %p10_p4 = scmp.ge.s32.totalorder %s13_s12, 6  }
 0x133   :  { %12 = sbr.rel (!%p10_p4) target bundleno = 1 (0x1), region = 62 }

// kernel: cut_forward_impl.34
= control target key start
LH: loop header
LB: loop body
LE: loop exit
PB: predicated region body
PF: predicated region fallthrough
CT: control target
= control target key end

     0   :  { %s717_s12 = smov 0   ;;  %s817_s0 = inlined_call_operand.vmem [shape: bf16[4,16,384], index: 0, kind: input, shape index: {}]   ;;  %s818_s1 = inlined_call_operand.vmem [shape: bf16[384,128], index: 1, kind: input, shape index: {}]   ;;  %s819_s2 = inlined_call_operand.vmem [shape: f32[1,128], index: 2, kind: input, shape index: {}]   ;;  %s820_s3 = inlined_call_operand.vmem [shape: f32[4,16,128], index: 3, kind: output, shape index: {}]  }
   0x1 LB: > { %s556_s13 = sadd.s32 4294967295, %s693_s12   ;;  %p560_p0 = scmp.ge.s32.totalorder %s693_s12, 1  ;;  %s693_s12 = sphi %s717_s12, %s13_s12  }
   0x2   : > { %p137_p1 = scmp.lt.s32.totalorder %s693_s12, 5 }
   0x4   : > { %p138_p2 = pnand %p560_p0, %p137_p1 }
   0x5   : > { %p161_p3 = scmp.lt.s32.totalorder (!%p138_p2), %s556_s13, 3 }
   0x6   : > { %141 = sbr.rel (%p138_p2) target bundleno = 306 (0x132), region = 32 }
   0xb   : > { %v657_v0 = vld [vmem:[%s818_s1 + $0x78] sm:$0xff]   ;;  %v695_v1 = vmov 0.0   ;;  %v660_v4 = vld [vmem:[%s818_s1 + $0x70] sm:$0xff]   ;;  %vm696_vm0 = vmmov 0   ;;  %v663_v7 = vld [vmem:[%s818_s1 + $0x68] sm:$0xff]   ;;  %s822_s13 = smov (!%p161_p3, %s556_s13), 3 }
   0xc   : > { %626 = vmatprep.subr.bf16.mxu1 %v695_v1  ;;  %v658_v2 = vld [vmem:[%s818_s1 + $0x38] sm:$0xff]   ;;  %595 = vmatprep.subr.bf16.mxu0 %v657_v0  ;;  %v661_v5 = vld [vmem:[%s818_s1 + $0x30] sm:$0xff]   ;;  %v664_v8 = vld [vmem:[%s818_s1 + $0x28] sm:$0xff]   ;;  %s646_s23 = smul.u32 24, %s822_s13  ;;  %s594_s18 = sshll.u32 %s822_s13, 4 }
   0xd   : > { %v659_v3 = vld [vmem:[%s818_s1 + $0xb8] sm:$0xff]   ;;  %596 = vmatpush3.bf16.msra.mxu0 %v658_v2  ;;  %642 = vmatprep.mubr.msk.bf16.mxu1 %vm696_vm0, %v695_v1  ;;  %v662_v6 = vld [vmem:[%s818_s1 + $0xb0] sm:$0xff]   ;;  %v665_v9 = vld [vmem:[%s818_s1 + $0xa8] sm:$0xff]   ;;  %s170_s21 = scalar_lea.vmem %s820_s3, %s594_s18 }
   0xe   : > { %627 = vmatpush3.bf16.msra.mxu1 %v659_v3  ;;  %597 = vmatprep.subr.bf16.mxu0 %v660_v4  ;;  %v666_v10 = vld [vmem:[%s818_s1 + $0x60] sm:$0xff]   ;;  %v669_v13 = vld [vmem:[%s818_s1 + $0x58] sm:$0xff]   ;;  %v672_v16 = vld [vmem:[%s818_s1 + $0x50] sm:$0xff]   ;;  %s165_s5 = scalar_lea.vmem %s817_s0, %s646_s23 }
   0xf   : > { %628 = vmatprep.subr.bf16.mxu1 %v695_v1  ;;  %v667_v11 = vld [vmem:[%s818_s1 + $0x20] sm:$0xff]   ;;  %v670_v14 = vld [vmem:[%s818_s1 + $0x18] sm:$0xff]   ;;  %v673_v17 = vld [vmem:[%s818_s1 + $0x10] sm:$0xff]  }
  0x10   : > { %v668_v12 = vld [vmem:[%s818_s1 + $0xa0] sm:$0xff]   ;;  %v671_v15 = vld [vmem:[%s818_s1 + $0x98] sm:$0xff]   ;;  %v674_v18 = vld [vmem:[%s818_s1 + $0x90] sm:$0xff]  }
  0x11   : > { %598 = vmatpush3.bf16.msra.mxu0 %v661_v5  ;;  %v675_v19 = vld [vmem:[%s818_s1 + $0x48] sm:$0xff]   ;;  %v678_v22 = vld [vmem:[%s818_s1 + $0x40] sm:$0xff]  }
  0x12   : > { %629 = vmatpush3.bf16.msra.mxu1 %v662_v6  ;;  %599 = vmatprep.subr.bf16.mxu0 %v663_v7  ;;  %v676_v20 = vld [vmem:[%s818_s1 + $0x8] sm:$0xff]   ;;  %v683_v23 = vld [vmem:[%s165_s5 + $0x4] ss:$12 sps:$4 sm:$0xff]   ;;  %v564_v33 = vld [vmem:[%s819_s2] ss:$0 sm:$0xff] }
  0x13   : > { %630 = vmatprep.subr.bf16.mxu1 %v695_v1  ;;  %v677_v21 = vld [vmem:[%s818_s1 + $0x88] sm:$0xff]   ;;  %v679_v24 = vld [vmem:[%s818_s1] sm:$0xff]   ;;  %423 = vmatprep.mubr.bf16.mxu0 %v683_v23 }
  0x14   : > { %v680_v25 = vld [vmem:[%s818_s1 + $0x80] sm:$0xff]   ;;  %v684_v27 = vld [vmem:[%s165_s5 + $0x8] ss:$12 sps:$4 sm:$0xff]  }
  0x15   : > { %600 = vmatpush3.bf16.msra.mxu0 %v664_v8  ;;  %v681_v26 = vld [vmem:[%s165_s5] ss:$12 sps:$4 sm:$0xff]  }
  0x16   : > { %631 = vmatpush3.bf16.msra.mxu1 %v665_v9  ;;  %601 = vmatprep.subr.bf16.mxu0 %v666_v10 }
  0x17   : > { %632 = vmatprep.subr.bf16.mxu1 %v695_v1 }
  0x19   : > { %602 = vmatpush3.bf16.msra.mxu0 %v667_v11 }
  0x1a   : > { %633 = vmatpush3.bf16.msra.mxu1 %v668_v12  ;;  %603 = vmatprep.subr.bf16.mxu0 %v669_v13 }
  0x1b   : > { %634 = vmatprep.subr.bf16.mxu1 %v695_v1 }
  0x1d   : > { %604 = vmatpush3.bf16.msra.mxu0 %v670_v14 }
  0x1e   : > { %635 = vmatpush3.bf16.msra.mxu1 %v671_v15  ;;  %605 = vmatprep.subr.bf16.mxu0 %v672_v16 }
  0x1f   : > { %636 = vmatprep.subr.bf16.mxu1 %v695_v1 }
  0x21   : > { %606 = vmatpush3.bf16.msra.mxu0 %v673_v17 }
  0x22   : > { %637 = vmatpush3.bf16.msra.mxu1 %v674_v18  ;;  %607 = vmatprep.subr.bf16.mxu0 %v675_v19 }
  0x23   : > { %638 = vmatprep.subr.bf16.mxu1 %v695_v1 }
  0x25   : > { %608 = vmatpush3.bf16.msra.mxu0 %v676_v20 }
  0x26   : > { %639 = vmatpush3.bf16.msra.mxu1 %v677_v21  ;;  %609 = vmatprep.subr.bf16.mxu0 %v678_v22 }
  0x27   : > { %640 = vmatprep.subr.bf16.mxu1 %v695_v1 }
  0x29   : > { %610 = vmatpush3.bf16.msra.mxu0 %v679_v24 }
  0x2a   : > { %641 = vmatpush3.bf16.msra.mxu1 %v680_v25 }
  0x2c   : > { %424 = vmatmul.mubr.bf16.vlgmr.msra.gmra.mxu0 %v681_v26 }
  0x2d   : > { %643 = vmatmul.mubr.bf16.vlgmr.msra.gmra.mxu1 %v684_v27 }
  0xec   : > { %v611_v28 = vpop.f32.mrf.mxu0 }
  0xed   : > { %v466_v29 = vpop.f32.mrf.mxu1 }
  0xee   : > { %v612_v30 = vpop.f32.mrf.mxu0 }
  0xef   : > { %v613_v31 = vadd.f32 %v612_v30, %v611_v28  ;;  %v644_v32 = vpop.f32.mrf.mxu1 }
  0xf0   : > { %v614_v34 = vpop.f32.mrf.mxu0 }
  0xf1   : > { %v469_v35 = vpop.f32.mrf.mxu1  ;;  %v426_v37 = vadd.f32 %v613_v31, %v564_v33 }
  0xf2   : > { %v615_v36 = vpop.f32.mrf.mxu0 }
  0xf3   : > { %v616_v38 = vadd.f32 %v615_v36, %v614_v34  ;;  %v645_v39 = vpop.f32.mrf.mxu1  ;;  %v467_v41 = vadd.f32 %v466_v29, %v426_v37 }
  0xf5   : > { %v429_v40 = vadd.f32 %v616_v38, %v564_v33 }
  0xf7   : > { %v470_v42 = vadd.f32 %v469_v35, %v429_v40 }
  0xf9   : > { %v473_v43 = vadd.f32 %v470_v42, %v467_v41 }
  0xfb   : > { %v474_v44 = vrot.slane %v473_v43, 4 }
  0xfd   : > { %v475_v45 = vadd.f32 %v474_v44, %v473_v43 }
  0xff   : > { %v476_v46 = vrot.slane %v475_v45, 2 }
 0x101   : > { %v477_v47 = vadd.f32 %v476_v46, %v475_v45 }
 0x103   : > { %v478_v48 = vrot.slane %v477_v47, 1 }
 0x105   : > { %v479_v49 = vadd.f32 %v478_v48, %v477_v47 }
 0x107   : > { %v480_v50 = vmul.f32 0.0625, %v479_v49 }
 0x109   : > { %v481_v51 = vsub.f32 %v467_v41, %v480_v50  ;;  %v482_v52 = vsub.f32 %v470_v42, %v480_v50 }
 0x10b   : > { %v483_v53 = vmul.f32 %v481_v51, %v481_v51  ;;  %v484_v54 = vmul.f32 %v482_v52, %v482_v52 }
 0x10d   : > { %v485_v55 = vadd.f32 %v484_v54, %v483_v53 }
 0x10f   : > { %v486_v56 = vrot.slane %v485_v55, 4 }
 0x111   : > { %v487_v57 = vadd.f32 %v486_v56, %v485_v55 }
 0x113   : > { %v488_v58 = vrot.slane %v487_v57, 2 }
 0x115   : > { %v489_v59 = vadd.f32 %v488_v58, %v487_v57 }
 0x117   : > { %v490_v60 = vrot.slane %v489_v59, 1 }
 0x119   : > { %v491_v61 = vadd.f32 %v490_v60, %v489_v59 }
 0x11b   : > { %v492_v62 = vmul.f32 0.0625, %v491_v61 }
 0x11d   : > { %v493_v63 = vadd.f32 1e-05, %v492_v62 }
 0x11f   : > { %685 = vrsqrt.f32 %v493_v63 }
 0x12c   : > { %v686_v0 = vpop.eup %685 }
 0x12d   : > { %v495_v1 = vmul.f32 %v686_v0, %v481_v51  ;;  %v496_v2 = vmul.f32 %v686_v0, %v482_v52 }
 0x12f   : > { %v497_v3 = vmax.f32 %v495_v1, 0.0  ;;  %v498_v4 = vmax.f32 %v496_v2, 0.0 }
 0x131   : > { %499 = vst [vmem:[%s170_s21] sm:$0xff] %v497_v3  ;;  %500 = vst [vmem:[%s170_s21 + $0x8] sm:$0xff] %v498_v4 }
 0x132 PF: > { %s13_s12 = sadd.s32 1, %s693_s12  }
 0x133   : > { %p10_p4 = scmp.ge.s32.totalorder %s13_s12, 6  }
 0x135   :  { %12 = sbr.rel (!%p10_p4) target bundleno = 1 (0x1), region = 62 }

// kernel: cut_forward_impl.38
= control target key start
LH: loop header
LB: loop body
LE: loop exit
PB: predicated region body
PF: predicated region fallthrough
CT: control target
= control target key end

     0   :  { %s909_s12 = smov 0   ;;  %s1023_s0 = inlined_call_operand.vmem [shape: bf16[4,64,384], index: 0, kind: input, shape index: {}]   ;;  %s1024_s1 = inlined_call_operand.vmem [shape: bf16[384,128], index: 1, kind: input, shape index: {}]   ;;  %s1025_s2 = inlined_call_operand.vmem [shape: f32[1,128], index: 2, kind: input, shape index: {}]   ;;  %s1026_s3 = inlined_call_operand.vmem [shape: f32[4,64,128], index: 3, kind: output, shape index: {}]  }
   0x1 LB: > { %s706_s13 = sadd.s32 4294967295, %s887_s12   ;;  %p710_p0 = scmp.ge.s32.totalorder %s887_s12, 1  ;;  %s887_s12 = sphi %s909_s12, %s13_s12  }
   0x2   : > { %p137_p1 = scmp.lt.s32.totalorder %s887_s12, 5 }
   0x4   : > { %p138_p2 = pnand %p710_p0, %p137_p1 }
   0x5   : > { %p161_p3 = scmp.lt.s32.totalorder (!%p138_p2), %s706_s13, 3 }
   0x6   : > { %141 = sbr.rel (%p138_p2) target bundleno = 345 (0x159), region = 32 }
   0xb   : > { %v839_v0 = vld [vmem:[%s1024_s1 + $0x78] sm:$0xff]   ;;  %v841_v2 = vld [vmem:[%s1024_s1 + $0x70] sm:$0xff]   ;;  %v844_v5 = vld [vmem:[%s1024_s1 + $0x68] sm:$0xff]   ;;  %s1028_s13 = smov (!%p161_p3, %s706_s13), 3 }
   0xc   : > { %v840_v1 = vld [vmem:[%s1024_s1 + $0x38] sm:$0xff]   ;;  %754 = vmatprep.subr.bf16.mxu0 %v839_v0  ;;  %v843_v4 = vld [vmem:[%s1024_s1 + $0x30] sm:$0xff]   ;;  %v846_v7 = vld [vmem:[%s1024_s1 + $0x28] sm:$0xff]   ;;  %s830_s21 = smul.u32 96, %s1028_s13  ;;  %s753_s18 = sshll.u32 %s1028_s13, 6 }
   0xd   : > { %755 = vmatpush3.bf16.msra.mxu0 %v840_v1  ;;  %v842_v3 = vld [vmem:[%s1024_s1 + $0xb8] sm:$0xff]   ;;  %v845_v6 = vld [vmem:[%s1024_s1 + $0xb0] sm:$0xff]   ;;  %v847_v8 = vld [vmem:[%s1024_s1 + $0x60] sm:$0xff]  }
   0xe   : > { %756 = vmatprep.subr.bf16.mxu0 %v841_v2  ;;  %806 = vmatprep.subr.bf16.mxu1 %v842_v3  ;;  %v848_v9 = vld [vmem:[%s1024_s1 + $0xa8] sm:$0xff]   ;;  %v849_v10 = vld [vmem:[%s1024_s1 + $0x20] sm:$0xff]   ;;  %v850_v11 = vld [vmem:[%s1024_s1 + $0x58] sm:$0xff]   ;;  %s987_s5 = scalar_lea.vmem %s1023_s0, %s830_s21  ;;  %s170_s21 = scalar_lea.vmem %s1026_s3, %s753_s18 }
   0xf   : > { %807 = vmatpush3.bf16.msra.mxu1 %v842_v3  ;;  %v851_v12 = vld [vmem:[%s1024_s1 + $0xa0] sm:$0xff]   ;;  %v852_v13 = vld [vmem:[%s1024_s1 + $0x18] sm:$0xff]   ;;  %v853_v15 = vld [vmem:[%s1024_s1 + $0x50] sm:$0xff]  }
  0x10   : > { %808 = vmatprep.subr.bf16.mxu1 %v845_v6  ;;  %v854_v14 = vld [vmem:[%s1024_s1 + $0x98] sm:$0xff]   ;;  %v855_v16 = vld [vmem:[%s1024_s1 + $0x10] sm:$0xff]   ;;  %v856_v18 = vld [vmem:[%s1024_s1 + $0x48] sm:$0xff]  }
  0x11   : > { %757 = vmatpush3.bf16.msra.mxu0 %v843_v4  ;;  %v857_v17 = vld [vmem:[%s1024_s1 + $0x90] sm:$0xff]   ;;  %v858_v19 = vld [vmem:[%s1024_s1 + $0x8] sm:$0xff]   ;;  %v859_v20 = vld [vmem:[%s1024_s1 + $0x40] sm:$0xff]  }
  0x12   : > { %758 = vmatprep.subr.bf16.mxu0 %v844_v5  ;;  %v860_v21 = vld [vmem:[%s1024_s1 + $0x88] sm:$0xff]   ;;  %v864_v22 = vld [vmem:[%s987_s5 + $0x4] ss:$12 sps:$4 sm:$0xff]   ;;  %v871_v31 = vld [vmem:[%s987_s5 + $0x34] ss:$12 sps:$4 sm:$0xff]  }
  0x13   : > { %809 = vmatpush3.bf16.msra.mxu1 %v845_v6  ;;  %v861_v23 = vld [vmem:[%s1024_s1] sm:$0xff]   ;;  %483 = vmatprep.mubr.bf16.mxu0 %v864_v22  ;;  %v866_v24 = vld [vmem:[%s987_s5 + $0x8] ss:$12 sps:$4 sm:$0xff]   ;;  %v875_v32 = vld [vmem:[%s987_s5 + $0x50] ss:$12 sps:$4 sm:$0xff]  }
  0x14   : > { %810 = vmatprep.subr.bf16.mxu1 %v848_v9  ;;  %v865_v25 = vld [vmem:[%s1024_s1 + $0x80] sm:$0xff]   ;;  %822 = vmatprep.mubr.bf16.mxu1 %v866_v24  ;;  %v868_v27 = vld [vmem:[%s987_s5 + $0x1c] ss:$12 sps:$4 sm:$0xff]   ;;  %v876_v34 = vld [vmem:[%s987_s5 + $0x4c] ss:$12 sps:$4 sm:$0xff]  }
  0x15   : > { %759 = vmatpush3.bf16.msra.mxu0 %v846_v7  ;;  %v862_v26 = vld [vmem:[%s987_s5] ss:$12 sps:$4 sm:$0xff]   ;;  %v874_v29 = vld [vmem:[%s987_s5 + $0x38] ss:$12 sps:$4 sm:$0xff]   ;;  %v873_v33 = vld [vmem:[%s987_s5 + $0x30] ss:$12 sps:$4 sm:$0xff]  }
  0x16   : > { %760 = vmatprep.subr.bf16.mxu0 %v847_v8  ;;  %v867_v28 = vld [vmem:[%s987_s5 + $0x20] ss:$12 sps:$4 sm:$0xff]   ;;  %v870_v30 = vld [vmem:[%s987_s5 + $0x18] ss:$12 sps:$4 sm:$0xff]   ;;  %v878_v35 = vld [vmem:[%s987_s5 + $0x48] ss:$12 sps:$4 sm:$0xff]  }
  0x17   : > { %811 = vmatpush3.bf16.msra.mxu1 %v848_v9  ;;  %v714_v51 = vld [vmem:[%s1025_s2] ss:$0 sm:$0xff] }
  0x18   : > { %812 = vmatprep.subr.bf16.mxu1 %v851_v12 }
  0x19   : > { %761 = vmatpush3.bf16.msra.mxu0 %v849_v10 }
  0x1a   : > { %762 = vmatprep.subr.bf16.mxu0 %v850_v11 }
  0x1b   : > { %813 = vmatpush3.bf16.msra.mxu1 %v851_v12 }
  0x1c   : > { %814 = vmatprep.subr.bf16.mxu1 %v854_v14 }
  0x1d   : > { %763 = vmatpush3.bf16.msra.mxu0 %v852_v13 }
  0x1e   : > { %764 = vmatprep.subr.bf16.mxu0 %v853_v15 }
  0x1f   : > { %815 = vmatpush3.bf16.msra.mxu1 %v854_v14 }
  0x20   : > { %816 = vmatprep.subr.bf16.mxu1 %v857_v17 }
  0x21   : > { %765 = vmatpush3.bf16.msra.mxu0 %v855_v16 }
  0x22   : > { %766 = vmatprep.subr.bf16.mxu0 %v856_v18 }
  0x23   : > { %817 = vmatpush3.bf16.msra.mxu1 %v857_v17 }
  0x24   : > { %818 = vmatprep.subr.bf16.mxu1 %v860_v21 }
  0x25   : > { %767 = vmatpush3.bf16.msra.mxu0 %v858_v19 }
  0x26   : > { %768 = vmatprep.subr.bf16.mxu0 %v859_v20 }
  0x27   : > { %819 = vmatpush3.bf16.msra.mxu1 %v860_v21 }
  0x28   : > { %820 = vmatprep.subr.bf16.mxu1 %v865_v25 }
  0x29   : > { %769 = vmatpush3.bf16.msra.mxu0 %v861_v23 }
  0x2b   : > { %821 = vmatpush3.bf16.msra.mxu1 %v865_v25 }
  0x2c   : > { %484 = vmatmul.mubr.bf16.vlgmr.msra.gmra.mxu0 %v862_v26 }
  0x2d   : > { %491 = vmatprep.mubr.bf16.mxu0 %v868_v27 }
  0x2e   : > { %823 = vmatmul.mubr.bf16.vlgmr.msra.gmra.mxu1 %v867_v28 }
  0x2f   : > { %826 = vmatprep.mubr.bf16.mxu1 %v874_v29 }
  0x34   : > { %492 = vmatmul.mubr.bf16.gmra.mxu0 %v870_v30 }
  0x35   : > { %499 = vmatprep.mubr.bf16.mxu0 %v871_v31 }
  0x36   : > { %827 = vmatmul.mubr.bf16.gmra.mxu1 %v875_v32 }
  0x3c   : > { %500 = vmatmul.mubr.bf16.gmra.mxu0 %v873_v33 }
  0x3d   : > { %507 = vmatprep.mubr.bf16.mxu0 %v876_v34 }
  0x44   : > { %508 = vmatmul.mubr.bf16.gmra.mxu0 %v878_v35 }
  0xec   : > { %v770_v36 = vpop.f32.mrf.mxu0 }
  0xee   : > { %v771_v37 = vpop.f32.mrf.mxu0  ;;  %v824_v38 = vpop.f32.mrf.mxu1 }
  0xef   : > { %v772_v49 = vadd.f32 %v771_v37, %v770_v36 }
  0xf0   : > { %v773_v39 = vpop.f32.mrf.mxu0  ;;  %v550_v41 = vpop.f32.mrf.mxu1 }
  0xf1   : > { %v486_v57 = vadd.f32 %v772_v49, %v714_v51 }
  0xf2   : > { %v774_v40 = vpop.f32.mrf.mxu0  ;;  %v825_v43 = vpop.f32.mrf.mxu1 }
  0xf3   : > { %v775_v46 = vadd.f32 %v774_v40, %v773_v39  ;;  %v551_v1 = vadd.f32 %v550_v41, %v486_v57 }
  0xf4   : > { %v776_v42 = vpop.f32.mrf.mxu0  ;;  %v553_v47 = vpop.f32.mrf.mxu1 }
  0xf5   : > { %v489_v54 = vadd.f32 %v775_v46, %v714_v51 }
  0xf6   : > { %v777_v44 = vpop.f32.mrf.mxu0  ;;  %v828_v53 = vpop.f32.mrf.mxu1 }
  0xf7   : > { %v778_v50 = vadd.f32 %v777_v44, %v776_v42  ;;  %v554_v62 = vadd.f32 %v553_v47, %v489_v54 }
  0xf8   : > { %v779_v45 = vpop.f32.mrf.mxu0  ;;  %v566_v61 = vpop.f32.mrf.mxu1 }
  0xf9   : > { %v494_v58 = vadd.f32 %v778_v50, %v714_v51  ;;  %v581_v7 = vadd.f32 %v554_v62, %v551_v1 }
  0xfa   : > { %v780_v48 = vpop.f32.mrf.mxu0  ;;  %v829_v5 = vpop.f32.mrf.mxu1 }
  0xfb   : > { %v781_v55 = vadd.f32 %v780_v48, %v779_v45  ;;  %v559_v2 = vadd.f32 %v824_v38, %v494_v58 }
  0xfc   : > { %v782_v52 = vpop.f32.mrf.mxu0  ;;  %v569_v14 = vpop.f32.mrf.mxu1 }
  0xfd   : > { %v497_v63 = vadd.f32 %v781_v55, %v714_v51  ;;  %v582_v11 = vadd.f32 %v581_v7, %v559_v2 }
  0xfe   : > { %v783_v56 = vpop.f32.mrf.mxu0 }
  0xff   : > { %v784_v59 = vadd.f32 %v783_v56, %v782_v52  ;;  %v562_v8 = vadd.f32 %v825_v43, %v497_v63 }
 0x100   : > { %v785_v60 = vpop.f32.mrf.mxu0 }
 0x101   : > { %v502_v3 = vadd.f32 %v784_v59, %v714_v51  ;;  %v583_v16 = vadd.f32 %v582_v11, %v562_v8 }
 0x102   : > { %v786_v0 = vpop.f32.mrf.mxu0 }
 0x103   : > { %v787_v4 = vadd.f32 %v786_v0, %v785_v60  ;;  %v567_v12 = vadd.f32 %v566_v61, %v502_v3 }
 0x104   : > { %v788_v6 = vpop.f32.mrf.mxu0 }
 0x105   : > { %v505_v9 = vadd.f32 %v787_v4, %v714_v51  ;;  %v584_v20 = vadd.f32 %v583_v16, %v567_v12 }
 0x106   : > { %v789_v10 = vpop.f32.mrf.mxu0 }
 0x107   : > { %v790_v13 = vadd.f32 %v789_v10, %v788_v6  ;;  %v570_v17 = vadd.f32 %v569_v14, %v505_v9 }
 0x108   : > { %v791_v15 = vpop.f32.mrf.mxu0 }
 0x109   : > { %v510_v18 = vadd.f32 %v790_v13, %v714_v51  ;;  %v585_v23 = vadd.f32 %v584_v20, %v570_v17 }
 0x10a   : > { %v792_v19 = vpop.f32.mrf.mxu0 }
 0x10b   : > { %v575_v21 = vadd.f32 %v828_v53, %v510_v18  ;;  %v793_v22 = vadd.f32 %v792_v19, %v791_v15 }
 0x10d   : > { %v513_v24 = vadd.f32 %v793_v22, %v714_v51  ;;  %v586_v25 = vadd.f32 %v585_v23, %v575_v21 }
 0x10f   : > { %v578_v26 = vadd.f32 %v829_v5, %v513_v24 }
 0x111   : > { %v587_v27 = vadd.f32 %v586_v25, %v578_v26 }
 0x113   : > { %v588_v28 = vrot.slane %v587_v27, 4 }
 0x115   : > { %v589_v29 = vadd.f32 %v588_v28, %v587_v27 }
 0x117   : > { %v590_v30 = vrot.slane %v589_v29, 2 }
 0x119   : > { %v591_v31 = vadd.f32 %v590_v30, %v589_v29 }
 0x11b   : > { %v592_v32 = vrot.slane %v591_v31, 1 }
 0x11d   : > { %v593_v33 = vadd.f32 %v592_v32, %v591_v31 }
 0x11f   : > { %v594_v34 = vmul.f32 0.015625, %v593_v33 }
 0x121   : > { %v595_v35 = vsub.f32 %v551_v1, %v594_v34  ;;  %v596_v36 = vsub.f32 %v554_v62, %v594_v34  ;;  %v597_v37 = vsub.f32 %v559_v2, %v594_v34  ;;  %v598_v38 = vsub.f32 %v562_v8, %v594_v34 }
 0x122   : > { %v599_v41 = vsub.f32 %v567_v12, %v594_v34  ;;  %v600_v44 = vsub.f32 %v570_v17, %v594_v34  ;;  %v601_v47 = vsub.f32 %v575_v21, %v594_v34  ;;  %v602_v50 = vsub.f32 %v578_v26, %v594_v34 }
 0x123   : > { %v603_v39 = vmul.f32 %v595_v35, %v595_v35  ;;  %v604_v40 = vmul.f32 %v596_v36, %v596_v36  ;;  %v605_v42 = vmul.f32 %v597_v37, %v597_v37  ;;  %v606_v45 = vmul.f32 %v598_v38, %v598_v38 }
 0x124   : > { %v607_v48 = vmul.f32 %v599_v41, %v599_v41  ;;  %v608_v51 = vmul.f32 %v600_v44, %v600_v44  ;;  %v609_v53 = vmul.f32 %v601_v47, %v601_v47  ;;  %v610_v55 = vmul.f32 %v602_v50, %v602_v50 }
 0x125   : > { %v611_v43 = vadd.f32 %v604_v40, %v603_v39 }
 0x127   : > { %v612_v46 = vadd.f32 %v611_v43, %v605_v42 }
 0x129   : > { %v613_v49 = vadd.f32 %v612_v46, %v606_v45 }
 0x12b   : > { %v614_v52 = vadd.f32 %v613_v49, %v607_v48 }
 0x12d   : > { %v615_v54 = vadd.f32 %v614_v52, %v608_v51 }
 0x12f   : > { %v616_v56 = vadd.f32 %v615_v54, %v609_v53 }
 0x131   : > { %v617_v57 = vadd.f32 %v616_v56, %v610_v55 }
 0x133   : > { %v618_v58 = vrot.slane %v617_v57, 4 }
 0x135   : > { %v619_v59 = vadd.f32 %v618_v58, %v617_v57 }
 0x137   : > { %v620_v60 = vrot.slane %v619_v59, 2 }
 0x139   : > { %v621_v61 = vadd.f32 %v620_v60, %v619_v59 }
 0x13b   : > { %v622_v62 = vrot.slane %v621_v61, 1 }
 0x13d   : > { %v623_v63 = vadd.f32 %v622_v62, %v621_v61 }
 0x13f   : > { %v624_v0 = vmul.f32 0.015625, %v623_v63 }
 0x141   : > { %v625_v1 = vadd.f32 1e-05, %v624_v0 }
 0x143   : > { %879 = vrsqrt.f32 %v625_v1 }
 0x150   : > { %v880_v2 = vpop.eup %879 }
 0x151   : > { %v627_v3 = vmul.f32 %v880_v2, %v595_v35  ;;  %v628_v4 = vmul.f32 %v880_v2, %v596_v36  ;;  %v629_v5 = vmul.f32 %v880_v2, %v597_v37  ;;  %v630_v6 = vmul.f32 %v880_v2, %v598_v38 }
 0x152   : > { %v631_v7 = vmul.f32 %v880_v2, %v599_v41  ;;  %v632_v8 = vmul.f32 %v880_v2, %v600_v44  ;;  %v633_v9 = vmul.f32 %v880_v2, %v601_v47  ;;  %v634_v10 = vmul.f32 %v880_v2, %v602_v50 }
 0x153   : > { %v635_v11 = vmax.f32 %v627_v3, 0.0  ;;  %v636_v12 = vmax.f32 %v628_v4, 0.0  ;;  %v637_v13 = vmax.f32 %v629_v5, 0.0  ;;  %v638_v14 = vmax.f32 %v630_v6, 0.0 }
 0x154   : > { %v639_v15 = vmax.f32 %v631_v7, 0.0  ;;  %v640_v16 = vmax.f32 %v632_v8, 0.0  ;;  %v641_v17 = vmax.f32 %v633_v9, 0.0  ;;  %v642_v18 = vmax.f32 %v634_v10, 0.0 }
 0x155   : > { %643 = vst [vmem:[%s170_s21] sm:$0xff] %v635_v11  ;;  %644 = vst [vmem:[%s170_s21 + $0x8] sm:$0xff] %v636_v12 }
 0x156   : > { %645 = vst [vmem:[%s170_s21 + $0x10] sm:$0xff] %v637_v13  ;;  %646 = vst [vmem:[%s170_s21 + $0x18] sm:$0xff] %v638_v14 }
 0x157   : > { %647 = vst [vmem:[%s170_s21 + $0x20] sm:$0xff] %v639_v15  ;;  %648 = vst [vmem:[%s170_s21 + $0x28] sm:$0xff] %v640_v16 }
 0x158   : > { %649 = vst [vmem:[%s170_s21 + $0x30] sm:$0xff] %v641_v17  ;;  %650 = vst [vmem:[%s170_s21 + $0x38] sm:$0xff] %v642_v18 }
 0x159 PF: > { %s13_s12 = sadd.s32 1, %s887_s12  }
 0x15a   : > { %p10_p4 = scmp.ge.s32.totalorder %s13_s12, 6  }
 0x15c   :  { %12 = sbr.rel (!%p10_p4) target bundleno = 1 (0x1), region = 62 }

// kernel: cut_forward_impl.40
= control target key start
LH: loop header
LB: loop body
LE: loop exit
PB: predicated region body
PF: predicated region fallthrough
CT: control target
= control target key end

     0   :  { %s1822_s12 = smov 0   ;;  %s2080_s0 = inlined_call_operand.vmem [shape: bf16[4,256,512], index: 0, kind: input, shape index: {}]   ;;  %s2081_s1 = inlined_call_operand.vmem [shape: bf16[512,128], index: 1, kind: input, shape index: {}]   ;;  %s2082_s2 = inlined_call_operand.vmem [shape: f32[1,128], index: 2, kind: input, shape index: {}]   ;;  %s2083_s3 = inlined_call_operand.vmem [shape: f32[4,256,128], index: 3, kind: output, shape index: {}]  }
   0x1 LB: > { %s1260_s13 = sadd.s32 4294967295, %s1800_s12   ;;  %p1264_p0 = scmp.ge.s32.totalorder %s1800_s12, 1  ;;  %s1800_s12 = sphi %s1822_s12, %s13_s12  }
   0x2   : > { %p137_p1 = scmp.lt.s32.totalorder %s1800_s12, 5 }
   0x4   : > { %p138_p2 = pnand %p1264_p0, %p137_p1 }
   0x5   : > { %p161_p3 = scmp.lt.s32.totalorder (!%p138_p2), %s1260_s13, 3 }
   0x6   : > { %141 = sbr.rel (%p138_p2) target bundleno = 385 (0x181), region = 32 }
   0xb   : > { %v1602_v0 = vld [vmem:[%s2081_s1 + $0x78] sm:$0xff]   ;;  %v1606_v4 = vld [vmem:[%s2081_s1 + $0x70] sm:$0xff]   ;;  %v1610_v8 = vld [vmem:[%s2081_s1 + $0x68] sm:$0xff]   ;;  %s2085_s13 = smov (!%p161_p3, %s1260_s13), 3 }
   0xc   : > { %v1603_v1 = vld [vmem:[%s2081_s1 + $0xf8] sm:$0xff]   ;;  %1370 = vmatprep.subr.bf16.mxu0 %v1602_v0  ;;  %v1607_v5 = vld [vmem:[%s2081_s1 + $0xf0] sm:$0xff]   ;;  %v1611_v9 = vld [vmem:[%s2081_s1 + $0xe8] sm:$0xff]   ;;  %s1368_s18 = sshll.u32 %s2085_s13, 9  ;;  %s1369_s7 = sshll.u32 %s2085_s13, 8 }
   0xd   : > { %v1604_v2 = vld [vmem:[%s2081_s1 + $0x38] sm:$0xff]   ;;  %1482 = vmatprep.subr.bf16.mxu1 %v1603_v1  ;;  %v1608_v6 = vld [vmem:[%s2081_s1 + $0x30] sm:$0xff]   ;;  %v1612_v10 = vld [vmem:[%s2081_s1 + $0x28] sm:$0xff]   ;;  %s1930_s27 = scalar_lea.vmem %s2080_s0, %s1368_s18  ;;  %s2015_s10 = scalar_lea.vmem %s2083_s3, %s1369_s7 }
   0xe   : > { %v1605_v3 = vld [vmem:[%s2081_s1 + $0xb8] sm:$0xff]   ;;  %1371 = vmatpush3.bf16.msra.mxu0 %v1604_v2  ;;  %v1609_v7 = vld [vmem:[%s2081_s1 + $0xb0] sm:$0xff]   ;;  %v1613_v11 = vld [vmem:[%s2081_s1 + $0xa8] sm:$0xff]  }
   0xf   : > { %1483 = vmatpush3.bf16.msra.mxu1 %v1605_v3  ;;  %1372 = vmatprep.subr.bf16.mxu0 %v1606_v4  ;;  %v1614_v12 = vld [vmem:[%s2081_s1 + $0x60] sm:$0xff]   ;;  %v1618_v16 = vld [vmem:[%s2081_s1 + $0x58] sm:$0xff]   ;;  %v1622_v20 = vld [vmem:[%s2081_s1 + $0x50] sm:$0xff]  }
  0x10   : > { %1484 = vmatprep.subr.bf16.mxu1 %v1607_v5  ;;  %v1615_v13 = vld [vmem:[%s2081_s1 + $0xe0] sm:$0xff]   ;;  %v1619_v17 = vld [vmem:[%s2081_s1 + $0xd8] sm:$0xff]   ;;  %v1623_v21 = vld [vmem:[%s2081_s1 + $0xd0] sm:$0xff]  }
  0x11   : > { %v1616_v14 = vld [vmem:[%s2081_s1 + $0x20] sm:$0xff]   ;;  %v1620_v18 = vld [vmem:[%s2081_s1 + $0x18] sm:$0xff]   ;;  %v1624_v22 = vld [vmem:[%s2081_s1 + $0x10] sm:$0xff]  }
  0x12   : > { %1373 = vmatpush3.bf16.msra.mxu0 %v1608_v6  ;;  %v1617_v15 = vld [vmem:[%s2081_s1 + $0xa0] sm:$0xff]   ;;  %v1621_v19 = vld [vmem:[%s2081_s1 + $0x98] sm:$0xff]   ;;  %v1625_v23 = vld [vmem:[%s2081_s1 + $0x90] sm:$0xff]  }
  0x13   : > { %1485 = vmatpush3.bf16.msra.mxu1 %v1609_v7  ;;  %1374 = vmatprep.subr.bf16.mxu0 %v1610_v8  ;;  %v1626_v24 = vld [vmem:[%s2081_s1 + $0x48] sm:$0xff]   ;;  %v1630_v28 = vld [vmem:[%s2081_s1 + $0x40] sm:$0xff]  }
  0x14   : > { %1486 = vmatprep.subr.bf16.mxu1 %v1611_v9  ;;  %v1627_v25 = vld [vmem:[%s2081_s1 + $0xc8] sm:$0xff]   ;;  %v1631_v29 = vld [vmem:[%s2081_s1 + $0xc0] sm:$0xff]  }
  0x15   : > { %v1628_v26 = vld [vmem:[%s2081_s1 + $0x8] sm:$0xff]   ;;  %v1632_v30 = vld [vmem:[%s2081_s1] sm:$0xff]  }
  0x16   : > { %1375 = vmatpush3.bf16.msra.mxu0 %v1612_v10  ;;  %v1629_v27 = vld [vmem:[%s2081_s1 + $0x88] sm:$0xff]   ;;  %v1633_v31 = vld [vmem:[%s2081_s1 + $0x80] sm:$0xff]  }
  0x17   : > { %1487 = vmatpush3.bf16.msra.mxu1 %v1613_v11  ;;  %1376 = vmatprep.subr.bf16.mxu0 %v1614_v12  ;;  %v1634_v32 = vld [vmem:[%s1930_s27] ss:$16 sps:$4 sm:$0xff]   ;;  %v1636_v33 = vld [vmem:[%s1930_s27 + $0x4] ss:$16 sps:$4 sm:$0xff]   ;;  %v1637_v34 = vld [vmem:[%s1930_s27 + $0x8] ss:$16 sps:$4 sm:$0xff]  }
  0x18   : > { %1488 = vmatprep.subr.bf16.mxu1 %v1615_v13  ;;  %v1639_v35 = vld [vmem:[%s1930_s27 + $0xc] ss:$16 sps:$4 sm:$0xff]   ;;  %851 = vmatprep.mubr.bf16.mxu0 %v1636_v33  ;;  %v1640_v36 = vld [vmem:[%s1930_s27 + $0x24] ss:$16 sps:$4 sm:$0xff]   ;;  %v1644_v38 = vld [vmem:[%s1930_s27 + $0x20] ss:$16 sps:$4 sm:$0xff]  }
  0x19   : > { %1012 = vmatprep.mubr.bf16.mxu1 %v1639_v35  ;;  %v1642_v37 = vld [vmem:[%s1930_s27 + $0x2c] ss:$16 sps:$4 sm:$0xff]   ;;  %v1645_v39 = vld [vmem:[%s1930_s27 + $0x28] ss:$16 sps:$4 sm:$0xff]   ;;  %v1646_v40 = vld [vmem:[%s1930_s27 + $0x44] ss:$16 sps:$4 sm:$0xff]  }
  0x1a   : > { %1377 = vmatpush3.bf16.msra.mxu0 %v1616_v14  ;;  %v1648_v41 = vld [vmem:[%s1930_s27 + $0x4c] ss:$16 sps:$4 sm:$0xff]   ;;  %v1650_v42 = vld [vmem:[%s1930_s27 + $0x40] ss:$16 sps:$4 sm:$0xff]   ;;  %v1651_v43 = vld [vmem:[%s1930_s27 + $0x48] ss:$16 sps:$4 sm:$0xff]  }
  0x1b   : > { %1489 = vmatpush3.bf16.msra.mxu1 %v1617_v15  ;;  %1378 = vmatprep.subr.bf16.mxu0 %v1618_v16  ;;  %v1652_v44 = vld [vmem:[%s1930_s27 + $0x64] ss:$16 sps:$4 sm:$0xff]   ;;  %v1654_v45 = vld [vmem:[%s1930_s27 + $0x6c] ss:$16 sps:$4 sm:$0xff]   ;;  %v1656_v46 = vld [vmem:[%s1930_s27 + $0x60] ss:$16 sps:$4 sm:$0xff]  }
  0x1c   : > { %1490 = vmatprep.subr.bf16.mxu1 %v1619_v17  ;;  %v1657_v47 = vld [vmem:[%s1930_s27 + $0x68] ss:$16 sps:$4 sm:$0xff]   ;;  %v1658_v48 = vld [vmem:[%s1930_s27 + $0x84] ss:$16 sps:$4 sm:$0xff]   ;;  %v1660_v49 = vld [vmem:[%s1930_s27 + $0x8c] ss:$16 sps:$4 sm:$0xff]  }
  0x1d   : > { %v1662_v50 = vld [vmem:[%s1930_s27 + $0x80] ss:$16 sps:$4 sm:$0xff]   ;;  %v1663_v51 = vld [vmem:[%s1930_s27 + $0x88] ss:$16 sps:$4 sm:$0xff]   ;;  %v1664_v52 = vld [vmem:[%s1930_s27 + $0xa4] ss:$16 sps:$4 sm:$0xff]  }
  0x1e   : > { %1379 = vmatpush3.bf16.msra.mxu0 %v1620_v18  ;;  %v1666_v53 = vld [vmem:[%s1930_s27 + $0xac] ss:$16 sps:$4 sm:$0xff]   ;;  %v1668_v54 = vld [vmem:[%s1930_s27 + $0xa0] ss:$16 sps:$4 sm:$0xff]   ;;  %v1669_v55 = vld [vmem:[%s1930_s27 + $0xa8] ss:$16 sps:$4 sm:$0xff]  }
  0x1f   : > { %1491 = vmatpush3.bf16.msra.mxu1 %v1621_v19  ;;  %1380 = vmatprep.subr.bf16.mxu0 %v1622_v20  ;;  %v1670_v56 = vld [vmem:[%s1930_s27 + $0xc4] ss:$16 sps:$4 sm:$0xff]   ;;  %v1672_v57 = vld [vmem:[%s1930_s27 + $0xcc] ss:$16 sps:$4 sm:$0xff]   ;;  %v1674_v58 = vld [vmem:[%s1930_s27 + $0xc0] ss:$16 sps:$4 sm:$0xff]  }
  0x20   : > { %1492 = vmatprep.subr.bf16.mxu1 %v1623_v21  ;;  %v1675_v59 = vld [vmem:[%s1930_s27 + $0xc8] ss:$16 sps:$4 sm:$0xff]   ;;  %v1676_v60 = vld [vmem:[%s1930_s27 + $0xe4] ss:$16 sps:$4 sm:$0xff]   ;;  %v1678_v61 = vld [vmem:[%s1930_s27 + $0xec] ss:$16 sps:$4 sm:$0xff]  }
  0x21   : > { %v1680_v62 = vld [vmem:[%s1930_s27 + $0xe0] ss:$16 sps:$4 sm:$0xff]   ;;  %v1681_v63 = vld [vmem:[%s1930_s27 + $0xe8] ss:$16 sps:$4 sm:$0xff]   ;;  %v1682_v0 = vld [vmem:[%s1930_s27 + $0x104] ss:$16 sps:$4 sm:$0xff]  }
  0x22   : > { %1381 = vmatpush3.bf16.msra.mxu0 %v1624_v22  ;;  %v1684_v1 = vld [vmem:[%s1930_s27 + $0x10c] ss:$16 sps:$4 sm:$0xff]   ;;  %v1686_v2 = vld [vmem:[%s1930_s27 + $0x100] ss:$16 sps:$4 sm:$0xff]   ;;  %v1687_v3 = vld [vmem:[%s1930_s27 + $0x108] ss:$16 sps:$4 sm:$0xff]  }
  0x23   : > { %1493 = vmatpush3.bf16.msra.mxu1 %v1625_v23  ;;  %1382 = vmatprep.subr.bf16.mxu0 %v1626_v24  ;;  %v1688_v4 = vld [vmem:[%s1930_s27 + $0x124] ss:$16 sps:$4 sm:$0xff]   ;;  %v1690_v5 = vld [vmem:[%s1930_s27 + $0x12c] ss:$16 sps:$4 sm:$0xff]   ;;  %v1692_v6 = vld [vmem:[%s1930_s27 + $0x120] ss:$16 sps:$4 sm:$0xff]  }
  0x24   : > { %1494 = vmatprep.subr.bf16.mxu1 %v1627_v25  ;;  %v1693_v7 = vld [vmem:[%s1930_s27 + $0x128] ss:$16 sps:$4 sm:$0xff]   ;;  %v1694_v8 = vld [vmem:[%s1930_s27 + $0x144] ss:$16 sps:$4 sm:$0xff]   ;;  %v1696_v9 = vld [vmem:[%s1930_s27 + $0x14c] ss:$16 sps:$4 sm:$0xff]  }
  0x25   : > { %v1698_v10 = vld [vmem:[%s1930_s27 + $0x140] ss:$16 sps:$4 sm:$0xff]   ;;  %v1699_v11 = vld [vmem:[%s1930_s27 + $0x148] ss:$16 sps:$4 sm:$0xff]   ;;  %v1700_v12 = vld [vmem:[%s1930_s27 + $0x164] ss:$16 sps:$4 sm:$0xff]  }
  0x26   : > { %1383 = vmatpush3.bf16.msra.mxu0 %v1628_v26  ;;  %v1702_v13 = vld [vmem:[%s1930_s27 + $0x16c] ss:$16 sps:$4 sm:$0xff]   ;;  %v1704_v14 = vld [vmem:[%s1930_s27 + $0x160] ss:$16 sps:$4 sm:$0xff]   ;;  %v1705_v15 = vld [vmem:[%s1930_s27 + $0x168] ss:$16 sps:$4 sm:$0xff]  }
  0x27   : > { %1495 = vmatpush3.bf16.msra.mxu1 %v1629_v27  ;;  %1384 = vmatprep.subr.bf16.mxu0 %v1630_v28  ;;  %v1706_v16 = vld [vmem:[%s1930_s27 + $0x184] ss:$16 sps:$4 sm:$0xff]   ;;  %v1708_v17 = vld [vmem:[%s1930_s27 + $0x18c] ss:$16 sps:$4 sm:$0xff]   ;;  %v1710_v18 = vld [vmem:[%s1930_s27 + $0x180] ss:$16 sps:$4 sm:$0xff]  }
  0x28   : > { %1496 = vmatprep.subr.bf16.mxu1 %v1631_v29  ;;  %v1711_v19 = vld [vmem:[%s1930_s27 + $0x188] ss:$16 sps:$4 sm:$0xff]   ;;  %v1712_v20 = vld [vmem:[%s1930_s27 + $0x1a4] ss:$16 sps:$4 sm:$0xff]   ;;  %v1714_v21 = vld [vmem:[%s1930_s27 + $0x1ac] ss:$16 sps:$4 sm:$0xff]  }
  0x29   : > { %v1716_v22 = vld [vmem:[%s1930_s27 + $0x1a0] ss:$16 sps:$4 sm:$0xff]   ;;  %v1717_v23 = vld [vmem:[%s1930_s27 + $0x1a8] ss:$16 sps:$4 sm:$0xff]   ;;  %v1718_v24 = vld [vmem:[%s1930_s27 + $0x1c4] ss:$16 sps:$4 sm:$0xff]  }
  0x2a   : > { %1385 = vmatpush3.bf16.msra.mxu0 %v1632_v30  ;;  %v1720_v25 = vld [vmem:[%s1930_s27 + $0x1cc] ss:$16 sps:$4 sm:$0xff]   ;;  %v1722_v26 = vld [vmem:[%s1930_s27 + $0x1c0] ss:$16 sps:$4 sm:$0xff]   ;;  %v1723_v27 = vld [vmem:[%s1930_s27 + $0x1c8] ss:$16 sps:$4 sm:$0xff]  }
  0x2b   : > { %1497 = vmatpush3.bf16.msra.mxu1 %v1633_v31  ;;  %v1724_v28 = vld [vmem:[%s1930_s27 + $0x1e4] ss:$16 sps:$4 sm:$0xff]   ;;  %v1726_v29 = vld [vmem:[%s1930_s27 + $0x1ec] ss:$16 sps:$4 sm:$0xff]   ;;  %v1728_v30 = vld [vmem:[%s1930_s27 + $0x1e0] ss:$16 sps:$4 sm:$0xff]  }
  0x2c   : > { %v1729_v31 = vld [vmem:[%s1930_s27 + $0x1e8] ss:$16 sps:$4 sm:$0xff]  }
  0x2d   : > { %852 = vmatmul.mubr.bf16.vlgmr.msra.gmra.mxu0 %v1634_v32 }
  0x2e   : > { %1013 = vmatmul.mubr.bf16.vlgmr.msra.gmra.mxu1 %v1637_v34  ;;  %859 = vmatprep.mubr.bf16.mxu0 %v1640_v36  ;;  %v2005_v34 = vld [vmem:[%s2082_s2] ss:$0 sm:$0xff] }
  0x2f   : > { %1020 = vmatprep.mubr.bf16.mxu1 %v1642_v37 }
  0x35   : > { %860 = vmatmul.mubr.bf16.gmra.mxu0 %v1644_v38 }
  0x36   : > { %1021 = vmatmul.mubr.bf16.gmra.mxu1 %v1645_v39  ;;  %867 = vmatprep.mubr.bf16.mxu0 %v1646_v40 }
  0x37   : > { %1028 = vmatprep.mubr.bf16.mxu1 %v1648_v41 }
  0x3d   : > { %868 = vmatmul.mubr.bf16.gmra.mxu0 %v1650_v42 }
  0x3e   : > { %1029 = vmatmul.mubr.bf16.gmra.mxu1 %v1651_v43  ;;  %875 = vmatprep.mubr.bf16.mxu0 %v1652_v44 }
  0x3f   : > { %1036 = vmatprep.mubr.bf16.mxu1 %v1654_v45 }
  0x45   : > { %876 = vmatmul.mubr.bf16.gmra.mxu0 %v1656_v46 }
  0x46   : > { %1037 = vmatmul.mubr.bf16.gmra.mxu1 %v1657_v47  ;;  %883 = vmatprep.mubr.bf16.mxu0 %v1658_v48 }
  0x47   : > { %1044 = vmatprep.mubr.bf16.mxu1 %v1660_v49 }
  0x4d   : > { %884 = vmatmul.mubr.bf16.gmra.mxu0 %v1662_v50 }
  0x4e   : > { %1045 = vmatmul.mubr.bf16.gmra.mxu1 %v1663_v51  ;;  %891 = vmatprep.mubr.bf16.mxu0 %v1664_v52 }
  0x4f   : > { %1052 = vmatprep.mubr.bf16.mxu1 %v1666_v53 }
  0x55   : > { %892 = vmatmul.mubr.bf16.gmra.mxu0 %v1668_v54 }
  0x56   : > { %1053 = vmatmul.mubr.bf16.gmra.mxu1 %v1669_v55  ;;  %899 = vmatprep.mubr.bf16.mxu0 %v1670_v56 }
  0x57   : > { %1060 = vmatprep.mubr.bf16.mxu1 %v1672_v57 }
  0x5d   : > { %900 = vmatmul.mubr.bf16.gmra.mxu0 %v1674_v58 }
  0x5e   : > { %1061 = vmatmul.mubr.bf16.gmra.mxu1 %v1675_v59  ;;  %907 = vmatprep.mubr.bf16.mxu0 %v1676_v60 }
  0x5f   : > { %1068 = vmatprep.mubr.bf16.mxu1 %v1678_v61 }
  0x65   : > { %908 = vmatmul.mubr.bf16.gmra.mxu0 %v1680_v62 }
  0x66   : > { %1069 = vmatmul.mubr.bf16.gmra.mxu1 %v1681_v63  ;;  %915 = vmatprep.mubr.bf16.mxu0 %v1682_v0 }
  0x67   : > { %1076 = vmatprep.mubr.bf16.mxu1 %v1684_v1 }
  0x6d   : > { %916 = vmatmul.mubr.bf16.gmra.mxu0 %v1686_v2 }
  0x6e   : > { %1077 = vmatmul.mubr.bf16.gmra.mxu1 %v1687_v3  ;;  %923 = vmatprep.mubr.bf16.mxu0 %v1688_v4 }
  0x6f   : > { %1084 = vmatprep.mubr.bf16.mxu1 %v1690_v5 }
  0x75   : > { %924 = vmatmul.mubr.bf16.gmra.mxu0 %v1692_v6 }
  0x76   : > { %1085 = vmatmul.mubr.bf16.gmra.mxu1 %v1693_v7  ;;  %931 = vmatprep.mubr.bf16.mxu0 %v1694_v8 }
  0x77   : > { %1092 = vmatprep.mubr.bf16.mxu1 %v1696_v9 }
  0x7d   : > { %932 = vmatmul.mubr.bf16.gmra.mxu0 %v1698_v10 }
  0x7e   : > { %1093 = vmatmul.mubr.bf16.gmra.mxu1 %v1699_v11  ;;  %939 = vmatprep.mubr.bf16.mxu0 %v1700_v12 }
  0x7f   : > { %1100 = vmatprep.mubr.bf16.mxu1 %v1702_v13 }
  0x85   : > { %940 = vmatmul.mubr.bf16.gmra.mxu0 %v1704_v14 }
  0x86   : > { %1101 = vmatmul.mubr.bf16.gmra.mxu1 %v1705_v15  ;;  %947 = vmatprep.mubr.bf16.mxu0 %v1706_v16 }
  0x87   : > { %1108 = vmatprep.mubr.bf16.mxu1 %v1708_v17 }
  0x8d   : > { %948 = vmatmul.mubr.bf16.gmra.mxu0 %v1710_v18 }
  0x8e   : > { %1109 = vmatmul.mubr.bf16.gmra.mxu1 %v1711_v19  ;;  %955 = vmatprep.mubr.bf16.mxu0 %v1712_v20 }
  0x8f   : > { %1116 = vmatprep.mubr.bf16.mxu1 %v1714_v21 }
  0x95   : > { %956 = vmatmul.mubr.bf16.gmra.mxu0 %v1716_v22 }
  0x96   : > { %1117 = vmatmul.mubr.bf16.gmra.mxu1 %v1717_v23  ;;  %963 = vmatprep.mubr.bf16.mxu0 %v1718_v24 }
  0x97   : > { %1124 = vmatprep.mubr.bf16.mxu1 %v1720_v25 }
  0x9d   : > { %964 = vmatmul.mubr.bf16.gmra.mxu0 %v1722_v26 }
  0x9e   : > { %1125 = vmatmul.mubr.bf16.gmra.mxu1 %v1723_v27  ;;  %971 = vmatprep.mubr.bf16.mxu0 %v1724_v28 }
  0x9f   : > { %1132 = vmatprep.mubr.bf16.mxu1 %v1726_v29 }
  0xa5   : > { %972 = vmatmul.mubr.bf16.gmra.mxu0 %v1728_v30 }
  0xa6   : > { %1133 = vmatmul.mubr.bf16.gmra.mxu1 %v1729_v31 }
  0xed   : > { %v1386_v32 = vpop.f32.mrf.mxu0 }
  0xee   : > { %v1498_v33 = vpop.f32.mrf.mxu1 }
  0xef   : > { %v1387_v35 = vpop.f32.mrf.mxu0 }
  0xf0   : > { %v1388_v36 = vadd.f32 %v1387_v35, %v1386_v32  ;;  %v1499_v37 = vpop.f32.mrf.mxu1 }
  0xf1   : > { %v1389_v38 = vpop.f32.mrf.mxu0  ;;  %v1500_v40 = vadd.f32 %v1499_v37, %v1498_v33 }
  0xf2   : > { %v854_v39 = vadd.f32 %v1388_v36, %v2005_v34  ;;  %v1501_v41 = vpop.f32.mrf.mxu1 }
  0xf3   : > { %v1390_v42 = vpop.f32.mrf.mxu0 }
  0xf4   : > { %v1015_v43 = vadd.f32 %v1500_v40, %v854_v39  ;;  %v1391_v44 = vadd.f32 %v1390_v42, %v1389_v38  ;;  %v1502_v45 = vpop.f32.mrf.mxu1 }
  0xf5   : > { %v1392_v46 = vpop.f32.mrf.mxu0  ;;  %v1503_v48 = vadd.f32 %v1502_v45, %v1501_v41 }
  0xf6   : > { %1730 = vtanh.f32 %v1015_v43  ;;  %v857_v47 = vadd.f32 %v1391_v44, %v2005_v34  ;;  %v1504_v49 = vpop.f32.mrf.mxu1 }
  0xf7   : > { %v1393_v50 = vpop.f32.mrf.mxu0 }
  0xf8   : > { %v1018_v51 = vadd.f32 %v1503_v48, %v857_v47  ;;  %v1394_v52 = vadd.f32 %v1393_v50, %v1392_v46  ;;  %v1505_v53 = vpop.f32.mrf.mxu1 }
  0xf9   : > { %v1395_v54 = vpop.f32.mrf.mxu0  ;;  %v1506_v56 = vadd.f32 %v1505_v53, %v1504_v49 }
  0xfa   : > { %1732 = vtanh.f32 %v1018_v51  ;;  %v862_v55 = vadd.f32 %v1394_v52, %v2005_v34  ;;  %v1507_v57 = vpop.f32.mrf.mxu1 }
  0xfb   : > { %v1396_v58 = vpop.f32.mrf.mxu0 }
  0xfc   : > { %v1023_v59 = vadd.f32 %v1506_v56, %v862_v55  ;;  %v1397_v60 = vadd.f32 %v1396_v58, %v1395_v54  ;;  %v1508_v61 = vpop.f32.mrf.mxu1 }
  0xfd   : > { %v1398_v62 = vpop.f32.mrf.mxu0  ;;  %v1509_v0 = vadd.f32 %v1508_v61, %v1507_v57 }
  0xfe   : > { %1734 = vtanh.f32 %v1023_v59  ;;  %v865_v63 = vadd.f32 %v1397_v60, %v2005_v34  ;;  %v1510_v1 = vpop.f32.mrf.mxu1 }
  0xff   : > { %v1399_v2 = vpop.f32.mrf.mxu0 }
 0x100   : > { %v1026_v3 = vadd.f32 %v1509_v0, %v865_v63  ;;  %v1400_v4 = vadd.f32 %v1399_v2, %v1398_v62  ;;  %v1511_v5 = vpop.f32.mrf.mxu1 }
 0x101   : > { %v1401_v6 = vpop.f32.mrf.mxu0  ;;  %v1512_v8 = vadd.f32 %v1511_v5, %v1510_v1 }
 0x102   : > { %1736 = vtanh.f32 %v1026_v3  ;;  %v870_v7 = vadd.f32 %v1400_v4, %v2005_v34  ;;  %v1513_v9 = vpop.f32.mrf.mxu1 }
 0x103   : > { %v1731_v10 = vpop.eup %1730  ;;  %v1402_v11 = vpop.f32.mrf.mxu0 }
 0x104   : > { %1173 = vst [vmem:[%s2015_s10] sm:$0xff] %v1731_v10  ;;  %v1031_v12 = vadd.f32 %v1512_v8, %v870_v7  ;;  %v1403_v13 = vadd.f32 %v1402_v11, %v1401_v6  ;;  %v1514_v14 = vpop.f32.mrf.mxu1 }
 0x105   : > { %v1404_v15 = vpop.f32.mrf.mxu0  ;;  %v1515_v17 = vadd.f32 %v1514_v14, %v1513_v9 }
 0x106   : > { %1738 = vtanh.f32 %v1031_v12  ;;  %v873_v16 = vadd.f32 %v1403_v13, %v2005_v34  ;;  %v1516_v18 = vpop.f32.mrf.mxu1 }
 0x107   : > { %v1733_v19 = vpop.eup %1732  ;;  %v1405_v20 = vpop.f32.mrf.mxu0 }
 0x108   : > { %1174 = vst [vmem:[%s2015_s10 + $0x8] sm:$0xff] %v1733_v19  ;;  %v1034_v21 = vadd.f32 %v1515_v17, %v873_v16  ;;  %v1406_v22 = vadd.f32 %v1405_v20, %v1404_v15  ;;  %v1517_v23 = vpop.f32.mrf.mxu1 }
 0x109   : > { %v1407_v24 = vpop.f32.mrf.mxu0  ;;  %v1518_v26 = vadd.f32 %v1517_v23, %v1516_v18 }
 0x10a   : > { %1740 = vtanh.f32 %v1034_v21  ;;  %v878_v25 = vadd.f32 %v1406_v22, %v2005_v34  ;;  %v1519_v27 = vpop.f32.mrf.mxu1 }
 0x10b   : > { %v1735_v28 = vpop.eup %1734  ;;  %v1408_v29 = vpop.f32.mrf.mxu0 }
 0x10c   : > { %1175 = vst [vmem:[%s2015_s10 + $0x10] sm:$0xff] %v1735_v28  ;;  %v1039_v30 = vadd.f32 %v1518_v26, %v878_v25  ;;  %v1409_v31 = vadd.f32 %v1408_v29, %v1407_v24  ;;  %v1520_v32 = vpop.f32.mrf.mxu1 }
 0x10d   : > { %v1410_v33 = vpop.f32.mrf.mxu0  ;;  %v1521_v36 = vadd.f32 %v1520_v32, %v1519_v27 }
 0x10e   : > { %1742 = vtanh.f32 %v1039_v30  ;;  %v881_v35 = vadd.f32 %v1409_v31, %v2005_v34  ;;  %v1522_v37 = vpop.f32.mrf.mxu1 }
 0x10f   : > { %v1737_v38 = vpop.eup %1736  ;;  %v1411_v39 = vpop.f32.mrf.mxu0 }
 0x110   : > { %1176 = vst [vmem:[%s2015_s10 + $0x18] sm:$0xff] %v1737_v38  ;;  %v1042_v40 = vadd.f32 %v1521_v36, %v881_v35  ;;  %v1412_v41 = vadd.f32 %v1411_v39, %v1410_v33  ;;  %v1523_v42 = vpop.f32.mrf.mxu1 }
 0x111   : > { %v1413_v43 = vpop.f32.mrf.mxu0  ;;  %v1524_v45 = vadd.f32 %v1523_v42, %v1522_v37 }
 0x112   : > { %1744 = vtanh.f32 %v1042_v40  ;;  %v886_v44 = vadd.f32 %v1412_v41, %v2005_v34  ;;  %v1525_v46 = vpop.f32.mrf.mxu1 }
 0x113   : > { %v1739_v47 = vpop.eup %1738  ;;  %v1414_v48 = vpop.f32.mrf.mxu0 }
 0x114   : > { %1177 = vst [vmem:[%s2015_s10 + $0x20] sm:$0xff] %v1739_v47  ;;  %v1047_v49 = vadd.f32 %v1524_v45, %v886_v44  ;;  %v1415_v50 = vadd.f32 %v1414_v48, %v1413_v43  ;;  %v1526_v51 = vpop.f32.mrf.mxu1 }
 0x115   : > { %v1416_v52 = vpop.f32.mrf.mxu0  ;;  %v1527_v54 = vadd.f32 %v1526_v51, %v1525_v46 }
 0x116   : > { %1746 = vtanh.f32 %v1047_v49  ;;  %v889_v53 = vadd.f32 %v1415_v50, %v2005_v34  ;;  %v1528_v55 = vpop.f32.mrf.mxu1 }
 0x117   : > { %v1741_v56 = vpop.eup %1740  ;;  %v1417_v57 = vpop.f32.mrf.mxu0 }
 0x118   : > { %1178 = vst [vmem:[%s2015_s10 + $0x28] sm:$0xff] %v1741_v56  ;;  %v1050_v58 = vadd.f32 %v1527_v54, %v889_v53  ;;  %v1418_v59 = vadd.f32 %v1417_v57, %v1416_v52  ;;  %v1529_v60 = vpop.f32.mrf.mxu1 }
 0x119   : > { %v1419_v61 = vpop.f32.mrf.mxu0  ;;  %v1530_v63 = vadd.f32 %v1529_v60, %v1528_v55 }
 0x11a   : > { %1748 = vtanh.f32 %v1050_v58  ;;  %v894_v62 = vadd.f32 %v1418_v59, %v2005_v34  ;;  %v1531_v0 = vpop.f32.mrf.mxu1 }
 0x11b   : > { %v1743_v1 = vpop.eup %1742  ;;  %v1420_v2 = vpop.f32.mrf.mxu0 }
 0x11c   : > { %1179 = vst [vmem:[%s2015_s10 + $0x30] sm:$0xff] %v1743_v1  ;;  %v1055_v3 = vadd.f32 %v1530_v63, %v894_v62  ;;  %v1421_v4 = vadd.f32 %v1420_v2, %v1419_v61  ;;  %v1532_v5 = vpop.f32.mrf.mxu1 }
 0x11d   : > { %v1422_v6 = vpop.f32.mrf.mxu0  ;;  %v1533_v8 = vadd.f32 %v1532_v5, %v1531_v0 }
 0x11e   : > { %1750 = vtanh.f32 %v1055_v3  ;;  %v897_v7 = vadd.f32 %v1421_v4, %v2005_v34  ;;  %v1534_v9 = vpop.f32.mrf.mxu1 }
 0x11f   : > { %v1745_v10 = vpop.eup %1744  ;;  %v1423_v11 = vpop.f32.mrf.mxu0 }
 0x120   : > { %1180 = vst [vmem:[%s2015_s10 + $0x38] sm:$0xff] %v1745_v10  ;;  %v1058_v12 = vadd.f32 %v1533_v8, %v897_v7  ;;  %v1424_v13 = vadd.f32 %v1423_v11, %v1422_v6  ;;  %v1535_v14 = vpop.f32.mrf.mxu1 }
 0x121   : > { %v1425_v15 = vpop.f32.mrf.mxu0  ;;  %v1536_v17 = vadd.f32 %v1535_v14, %v1534_v9 }
 0x122   : > { %1752 = vtanh.f32 %v1058_v12  ;;  %v902_v16 = vadd.f32 %v1424_v13, %v2005_v34  ;;  %v1537_v18 = vpop.f32.mrf.mxu1 }
 0x123   : > { %v1747_v19 = vpop.eup %1746  ;;  %v1426_v20 = vpop.f32.mrf.mxu0 }
 0x124   : > { %1181 = vst [vmem:[%s2015_s10 + $0x40] sm:$0xff] %v1747_v19  ;;  %v1063_v21 = vadd.f32 %v1536_v17, %v902_v16  ;;  %v1427_v22 = vadd.f32 %v1426_v20, %v1425_v15  ;;  %v1538_v23 = vpop.f32.mrf.mxu1 }
 0x125   : > { %v1428_v24 = vpop.f32.mrf.mxu0  ;;  %v1539_v26 = vadd.f32 %v1538_v23, %v1537_v18 }
 0x126   : > { %1754 = vtanh.f32 %v1063_v21  ;;  %v905_v25 = vadd.f32 %v1427_v22, %v2005_v34  ;;  %v1540_v27 = vpop.f32.mrf.mxu1 }
 0x127   : > { %v1749_v28 = vpop.eup %1748  ;;  %v1429_v29 = vpop.f32.mrf.mxu0 }
 0x128   : > { %1182 = vst [vmem:[%s2015_s10 + $0x48] sm:$0xff] %v1749_v28  ;;  %v1066_v30 = vadd.f32 %v1539_v26, %v905_v25  ;;  %v1430_v31 = vadd.f32 %v1429_v29, %v1428_v24  ;;  %v1541_v32 = vpop.f32.mrf.mxu1 }
 0x129   : > { %v1431_v33 = vpop.f32.mrf.mxu0  ;;  %v1542_v36 = vadd.f32 %v1541_v32, %v1540_v27 }
 0x12a   : > { %1756 = vtanh.f32 %v1066_v30  ;;  %v910_v35 = vadd.f32 %v1430_v31, %v2005_v34  ;;  %v1543_v37 = vpop.f32.mrf.mxu1 }
 0x12b   : > { %v1751_v38 = vpop.eup %1750  ;;  %v1432_v39 = vpop.f32.mrf.mxu0 }
 0x12c   : > { %1183 = vst [vmem:[%s2015_s10 + $0x50] sm:$0xff] %v1751_v38  ;;  %v1071_v40 = vadd.f32 %v1542_v36, %v910_v35  ;;  %v1433_v41 = vadd.f32 %v1432_v39, %v1431_v33  ;;  %v1544_v42 = vpop.f32.mrf.mxu1 }
 0x12d   : > { %v1434_v43 = vpop.f32.mrf.mxu0  ;;  %v1545_v45 = vadd.f32 %v1544_v42, %v1543_v37 }
 0x12e   : > { %1758 = vtanh.f32 %v1071_v40  ;;  %v913_v44 = vadd.f32 %v1433_v41, %v2005_v34  ;;  %v1546_v46 = vpop.f32.mrf.mxu1 }
 0x12f   : > { %v1753_v47 = vpop.eup %1752  ;;  %v1435_v48 = vpop.f32.mrf.mxu0 }
 0x130   : > { %1184 = vst [vmem:[%s2015_s10 + $0x58] sm:$0xff] %v1753_v47  ;;  %v1074_v49 = vadd.f32 %v1545_v45, %v913_v44  ;;  %v1436_v50 = vadd.f32 %v1435_v48, %v1434_v43  ;;  %v1547_v51 = vpop.f32.mrf.mxu1 }
 0x131   : > { %v1437_v52 = vpop.f32.mrf.mxu0  ;;  %v1548_v54 = vadd.f32 %v1547_v51, %v1546_v46 }
 0x132   : > { %1760 = vtanh.f32 %v1074_v49  ;;  %v918_v53 = vadd.f32 %v1436_v50, %v2005_v34  ;;  %v1549_v55 = vpop.f32.mrf.mxu1 }
 0x133   : > { %v1755_v56 = vpop.eup %1754  ;;  %v1438_v57 = vpop.f32.mrf.mxu0 }
 0x134   : > { %1185 = vst [vmem:[%s2015_s10 + $0x60] sm:$0xff] %v1755_v56  ;;  %v1079_v58 = vadd.f32 %v1548_v54, %v918_v53  ;;  %v1439_v59 = vadd.f32 %v1438_v57, %v1437_v52  ;;  %v1550_v60 = vpop.f32.mrf.mxu1 }
 0x135   : > { %v1440_v61 = vpop.f32.mrf.mxu0  ;;  %v1551_v63 = vadd.f32 %v1550_v60, %v1549_v55 }
 0x136   : > { %1762 = vtanh.f32 %v1079_v58  ;;  %v921_v62 = vadd.f32 %v1439_v59, %v2005_v34  ;;  %v1552_v0 = vpop.f32.mrf.mxu1 }
 0x137   : > { %v1757_v1 = vpop.eup %1756  ;;  %v1441_v2 = vpop.f32.mrf.mxu0 }
 0x138   : > { %1186 = vst [vmem:[%s2015_s10 + $0x68] sm:$0xff] %v1757_v1  ;;  %v1082_v3 = vadd.f32 %v1551_v63, %v921_v62  ;;  %v1442_v4 = vadd.f32 %v1441_v2, %v1440_v61  ;;  %v1553_v5 = vpop.f32.mrf.mxu1 }
 0x139   : > { %v1443_v6 = vpop.f32.mrf.mxu0  ;;  %v1554_v8 = vadd.f32 %v1553_v5, %v1552_v0 }
 0x13a   : > { %1764 = vtanh.f32 %v1082_v3  ;;  %v926_v7 = vadd.f32 %v1442_v4, %v2005_v34  ;;  %v1555_v9 = vpop.f32.mrf.mxu1 }
 0x13b   : > { %v1759_v10 = vpop.eup %1758  ;;  %v1444_v11 = vpop.f32.mrf.mxu0 }
 0x13c   : > { %1187 = vst [vmem:[%s2015_s10 + $0x70] sm:$0xff] %v1759_v10  ;;  %v1087_v12 = vadd.f32 %v1554_v8, %v926_v7  ;;  %v1445_v13 = vadd.f32 %v1444_v11, %v1443_v6  ;;  %v1556_v14 = vpop.f32.mrf.mxu1 }
 0x13d   : > { %v1446_v15 = vpop.f32.mrf.mxu0  ;;  %v1557_v17 = vadd.f32 %v1556_v14, %v1555_v9 }
 0x13e   : > { %1766 = vtanh.f32 %v1087_v12  ;;  %v929_v16 = vadd.f32 %v1445_v13, %v2005_v34  ;;  %v1558_v18 = vpop.f32.mrf.mxu1 }
 0x13f   : > { %v1761_v19 = vpop.eup %1760  ;;  %v1447_v20 = vpop.f32.mrf.mxu0 }
 0x140   : > { %1188 = vst [vmem:[%s2015_s10 + $0x78] sm:$0xff] %v1761_v19  ;;  %v1090_v21 = vadd.f32 %v1557_v17, %v929_v16  ;;  %v1448_v22 = vadd.f32 %v1447_v20, %v1446_v15  ;;  %v1559_v23 = vpop.f32.mrf.mxu1 }
 0x141   : > { %v1449_v24 = vpop.f32.mrf.mxu0  ;;  %v1560_v26 = vadd.f32 %v1559_v23, %v1558_v18 }
 0x142   : > { %1768 = vtanh.f32 %v1090_v21  ;;  %v934_v25 = vadd.f32 %v1448_v22, %v2005_v34  ;;  %v1561_v27 = vpop.f32.mrf.mxu1 }
 0x143   : > { %v1763_v28 = vpop.eup %1762  ;;  %v1450_v29 = vpop.f32.mrf.mxu0 }
 0x144   : > { %1189 = vst [vmem:[%s2015_s10 + $0x80] sm:$0xff] %v1763_v28  ;;  %v1095_v30 = vadd.f32 %v1560_v26, %v934_v25  ;;  %v1451_v31 = vadd.f32 %v1450_v29, %v1449_v24  ;;  %v1562_v32 = vpop.f32.mrf.mxu1 }
 0x145   : > { %v1452_v33 = vpop.f32.mrf.mxu0  ;;  %v1563_v36 = vadd.f32 %v1562_v32, %v1561_v27 }
 0x146   : > { %1770 = vtanh.f32 %v1095_v30  ;;  %v937_v35 = vadd.f32 %v1451_v31, %v2005_v34  ;;  %v1564_v37 = vpop.f32.mrf.mxu1 }
 0x147   : > { %v1765_v38 = vpop.eup %1764  ;;  %v1453_v39 = vpop.f32.mrf.mxu0 }
 0x148   : > { %1190 = vst [vmem:[%s2015_s10 + $0x88] sm:$0xff] %v1765_v38  ;;  %v1098_v40 = vadd.f32 %v1563_v36, %v937_v35  ;;  %v1454_v41 = vadd.f32 %v1453_v39, %v1452_v33  ;;  %v1565_v42 = vpop.f32.mrf.mxu1 }
 0x149   : > { %v1455_v43 = vpop.f32.mrf.mxu0  ;;  %v1566_v45 = vadd.f32 %v1565_v42, %v1564_v37 }
 0x14a   : > { %1772 = vtanh.f32 %v1098_v40  ;;  %v942_v44 = vadd.f32 %v1454_v41, %v2005_v34  ;;  %v1567_v46 = vpop.f32.mrf.mxu1 }
 0x14b   : > { %v1767_v47 = vpop.eup %1766  ;;  %v1456_v48 = vpop.f32.mrf.mxu0 }
 0x14c   : > { %1191 = vst [vmem:[%s2015_s10 + $0x90] sm:$0xff] %v1767_v47  ;;  %v1103_v49 = vadd.f32 %v1566_v45, %v942_v44  ;;  %v1457_v50 = vadd.f32 %v1456_v48, %v1455_v43  ;;  %v1568_v51 = vpop.f32.mrf.mxu1 }
 0x14d   : > { %v1458_v52 = vpop.f32.mrf.mxu0  ;;  %v1569_v54 = vadd.f32 %v1568_v51, %v1567_v46 }
 0x14e   : > { %1774 = vtanh.f32 %v1103_v49  ;;  %v945_v53 = vadd.f32 %v1457_v50, %v2005_v34  ;;  %v1570_v55 = vpop.f32.mrf.mxu1 }
 0x14f   : > { %v1769_v56 = vpop.eup %1768  ;;  %v1459_v57 = vpop.f32.mrf.mxu0 }
 0x150   : > { %1192 = vst [vmem:[%s2015_s10 + $0x98] sm:$0xff] %v1769_v56  ;;  %v1106_v58 = vadd.f32 %v1569_v54, %v945_v53  ;;  %v1460_v59 = vadd.f32 %v1459_v57, %v1458_v52  ;;  %v1571_v60 = vpop.f32.mrf.mxu1 }
 0x151   : > { %v1461_v61 = vpop.f32.mrf.mxu0  ;;  %v1572_v63 = vadd.f32 %v1571_v60, %v1570_v55 }
 0x152   : > { %1776 = vtanh.f32 %v1106_v58  ;;  %v950_v62 = vadd.f32 %v1460_v59, %v2005_v34  ;;  %v1573_v0 = vpop.f32.mrf.mxu1 }
 0x153   : > { %v1771_v1 = vpop.eup %1770  ;;  %v1462_v2 = vpop.f32.mrf.mxu0 }
 0x154   : > { %1193 = vst [vmem:[%s2015_s10 + $0xa0] sm:$0xff] %v1771_v1  ;;  %v1111_v3 = vadd.f32 %v1572_v63, %v950_v62  ;;  %v1463_v4 = vadd.f32 %v1462_v2, %v1461_v61  ;;  %v1574_v5 = vpop.f32.mrf.mxu1 }
 0x155   : > { %v1464_v6 = vpop.f32.mrf.mxu0  ;;  %v1575_v8 = vadd.f32 %v1574_v5, %v1573_v0 }
 0x156   : > { %1778 = vtanh.f32 %v1111_v3  ;;  %v953_v7 = vadd.f32 %v1463_v4, %v2005_v34  ;;  %v1576_v9 = vpop.f32.mrf.mxu1 }
 0x157   : > { %v1773_v10 = vpop.eup %1772  ;;  %v1465_v11 = vpop.f32.mrf.mxu0 }
 0x158   : > { %1194 = vst [vmem:[%s2015_s10 + $0xa8] sm:$0xff] %v1773_v10  ;;  %v1114_v12 = vadd.f32 %v1575_v8, %v953_v7  ;;  %v1466_v13 = vadd.f32 %v1465_v11, %v1464_v6  ;;  %v1577_v14 = vpop.f32.mrf.mxu1 }
 0x159   : > { %v1467_v15 = vpop.f32.mrf.mxu0  ;;  %v1578_v17 = vadd.f32 %v1577_v14, %v1576_v9 }
 0x15a   : > { %1780 = vtanh.f32 %v1114_v12  ;;  %v958_v16 = vadd.f32 %v1466_v13, %v2005_v34  ;;  %v1579_v18 = vpop.f32.mrf.mxu1 }
 0x15b   : > { %v1775_v19 = vpop.eup %1774  ;;  %v1468_v20 = vpop.f32.mrf.mxu0 }
 0x15c   : > { %1195 = vst [vmem:[%s2015_s10 + $0xb0] sm:$0xff] %v1775_v19  ;;  %v1119_v21 = vadd.f32 %v1578_v17, %v958_v16  ;;  %v1469_v22 = vadd.f32 %v1468_v20, %v1467_v15  ;;  %v1580_v23 = vpop.f32.mrf.mxu1 }
 0x15d   : > { %v1470_v24 = vpop.f32.mrf.mxu0  ;;  %v1581_v26 = vadd.f32 %v1580_v23, %v1579_v18 }
 0x15e   : > { %1782 = vtanh.f32 %v1119_v21  ;;  %v961_v25 = vadd.f32 %v1469_v22, %v2005_v34  ;;  %v1582_v27 = vpop.f32.mrf.mxu1 }
 0x15f   : > { %v1777_v28 = vpop.eup %1776  ;;  %v1471_v29 = vpop.f32.mrf.mxu0 }
 0x160   : > { %1196 = vst [vmem:[%s2015_s10 + $0xb8] sm:$0xff] %v1777_v28  ;;  %v1122_v30 = vadd.f32 %v1581_v26, %v961_v25  ;;  %v1472_v31 = vadd.f32 %v1471_v29, %v1470_v24  ;;  %v1583_v32 = vpop.f32.mrf.mxu1 }
 0x161   : > { %v1473_v33 = vpop.f32.mrf.mxu0  ;;  %v1584_v36 = vadd.f32 %v1583_v32, %v1582_v27 }
 0x162   : > { %1784 = vtanh.f32 %v1122_v30  ;;  %v966_v35 = vadd.f32 %v1472_v31, %v2005_v34  ;;  %v1585_v37 = vpop.f32.mrf.mxu1 }
 0x163   : > { %v1779_v38 = vpop.eup %1778  ;;  %v1474_v39 = vpop.f32.mrf.mxu0 }
 0x164   : > { %1197 = vst [vmem:[%s2015_s10 + $0xc0] sm:$0xff] %v1779_v38  ;;  %v1127_v40 = vadd.f32 %v1584_v36, %v966_v35  ;;  %v1475_v41 = vadd.f32 %v1474_v39, %v1473_v33  ;;  %v1586_v42 = vpop.f32.mrf.mxu1 }
 0x165   : > { %v1476_v43 = vpop.f32.mrf.mxu0  ;;  %v1587_v45 = vadd.f32 %v1586_v42, %v1585_v37 }
 0x166   : > { %1786 = vtanh.f32 %v1127_v40  ;;  %v969_v44 = vadd.f32 %v1475_v41, %v2005_v34  ;;  %v1588_v46 = vpop.f32.mrf.mxu1 }
 0x167   : > { %v1781_v47 = vpop.eup %1780  ;;  %v1477_v48 = vpop.f32.mrf.mxu0 }
 0x168   : > { %1198 = vst [vmem:[%s2015_s10 + $0xc8] sm:$0xff] %v1781_v47  ;;  %v1130_v49 = vadd.f32 %v1587_v45, %v969_v44  ;;  %v1478_v50 = vadd.f32 %v1477_v48, %v1476_v43  ;;  %v1589_v51 = vpop.f32.mrf.mxu1 }
 0x169   : > { %v1479_v52 = vpop.f32.mrf.mxu0  ;;  %v1590_v54 = vadd.f32 %v1589_v51, %v1588_v46 }
 0x16a   : > { %1788 = vtanh.f32 %v1130_v49  ;;  %v974_v53 = vadd.f32 %v1478_v50, %v2005_v34  ;;  %v1591_v55 = vpop.f32.mrf.mxu1 }
 0x16b   : > { %v1783_v56 = vpop.eup %1782  ;;  %v1480_v57 = vpop.f32.mrf.mxu0 }
 0x16c   : > { %1199 = vst [vmem:[%s2015_s10 + $0xd0] sm:$0xff] %v1783_v56  ;;  %v1135_v58 = vadd.f32 %v1590_v54, %v974_v53  ;;  %v1481_v59 = vadd.f32 %v1480_v57, %v1479_v52  ;;  %v1592_v60 = vpop.f32.mrf.mxu1 }
 0x16d   : > { %v1593_v62 = vadd.f32 %v1592_v60, %v1591_v55 }
 0x16e   : > { %1790 = vtanh.f32 %v1135_v58  ;;  %v977_v61 = vadd.f32 %v1481_v59, %v2005_v34 }
 0x16f   : > { %v1785_v63 = vpop.eup %1784 }
 0x170   : > { %1200 = vst [vmem:[%s2015_s10 + $0xd8] sm:$0xff] %v1785_v63  ;;  %v1138_v0 = vadd.f32 %v1593_v62, %v977_v61 }
 0x172   : > { %1792 = vtanh.f32 %v1138_v0 }
 0x173   : > { %v1787_v1 = vpop.eup %1786 }
 0x174   : > { %1201 = vst [vmem:[%s2015_s10 + $0xe0] sm:$0xff] %v1787_v1 }
 0x177   : > { %v1789_v2 = vpop.eup %1788 }
 0x178   : > { %1202 = vst [vmem:[%s2015_s10 + $0xe8] sm:$0xff] %v1789_v2 }
 0x17b   : > { %v1791_v3 = vpop.eup %1790 }
 0x17c   : > { %1203 = vst [vmem:[%s2015_s10 + $0xf0] sm:$0xff] %v1791_v3 }
 0x17f   : > { %v1793_v4 = vpop.eup %1792 }
 0x180   : > { %1204 = vst [vmem:[%s2015_s10 + $0xf8] sm:$0xff] %v1793_v4 }
 0x181 PF: > { %s13_s12 = sadd.s32 1, %s1800_s12  }
 0x182   : > { %p10_p4 = scmp.ge.s32.totalorder %s13_s12, 6  }
 0x184   :  { %12 = sbr.rel (!%p10_p4) target bundleno = 1 (0x1), region = 62 }

// kernel: cut_forward_impl.41
= control target key start
LH: loop header
LB: loop body
LE: loop exit
PB: predicated region body
PF: predicated region fallthrough
CT: control target
= control target key end

     0   :  { %s553_s12 = smov 0   ;;  %s617_s0 = inlined_call_operand.vmem [shape: bf16[4,64,128], index: 0, kind: input, shape index: {}]   ;;  %s618_s1 = inlined_call_operand.vmem [shape: bf16[128,128], index: 1, kind: input, shape index: {}]   ;;  %s619_s2 = inlined_call_operand.vmem [shape: f32[1,128], index: 2, kind: input, shape index: {}]   ;;  %s620_s3 = inlined_call_operand.vmem [shape: f32[4,64,128], index: 3, kind: output, shape index: {}]  }
   0x1 LB: > { %s427_s13 = sadd.s32 4294967295, %s531_s12   ;;  %p431_p0 = scmp.ge.s32.totalorder %s531_s12, 1  ;;  %s531_s12 = sphi %s553_s12, %s13_s12  }
   0x2   : > { %p137_p1 = scmp.lt.s32.totalorder %s531_s12, 5 }
   0x4   : > { %p138_p2 = pnand %p431_p0, %p137_p1 }
   0x5   : > { %p161_p3 = scmp.lt.s32.totalorder (!%p138_p2), %s427_s13, 3 }
   0x6   : > { %141 = sbr.rel (%p138_p2) target bundleno = 251 (0xfb), region = 32 }
   0xb   : > { %v513_v0 = vld [vmem:[%s618_s1 + $0x38] sm:$0xff]   ;;  %v514_v1 = vld [vmem:[%s618_s1 + $0x30] sm:$0xff]   ;;  %s622_s13 = smov (!%p161_p3, %s427_s13), 3  ;;  %v515_v2 = vld [vmem:[%s618_s1 + $0x28] sm:$0xff]  }
   0xc   : > { %465 = vmatprep.subr.bf16.mxu0 %v513_v0  ;;  %489 = vmatprep.subr.bf16.mxu1 %v513_v0  ;;  %s451_s20 = sshll.u32 %s622_s13, 5  ;;  %v516_v3 = vld [vmem:[%s618_s1 + $0x20] sm:$0xff]   ;;  %v517_v6 = vld [vmem:[%s618_s1 + $0x18] sm:$0xff]   ;;  %v518_v7 = vld [vmem:[%s618_s1 + $0x10] sm:$0xff]   ;;  %s452_s9 = sshll.u32 %s622_s13, 6 }
   0xd   : > { %466 = vmatpush3.bf16.msra.mxu0 %v513_v0  ;;  %497 = vmatpush3.bf16.msra.mxu1 %v513_v0  ;;  %s576_s23 = scalar_lea.vmem %s617_s0, %s451_s20  ;;  %v519_v8 = vld [vmem:[%s618_s1 + $0x8] sm:$0xff]   ;;  %v520_v9 = vld [vmem:[%s618_s1] sm:$0xff]   ;;  %s604_s14 = scalar_lea.vmem %s620_s3, %s452_s9 }
   0xe   : > { %467 = vmatprep.subr.bf16.mxu0 %v514_v1  ;;  %490 = vmatprep.subr.bf16.mxu1 %v514_v1  ;;  %v521_v4 = vld [vmem:[%s576_s23] sm:$0xff]   ;;  %v522_v5 = vld [vmem:[%s576_s23 + $0x10] sm:$0xff]   ;;  %v523_v10 = vld [vmem:[%s576_s23 + $0x8] sm:$0xff]  }
   0xf   : > { %481 = vmatprep.mubr.bf16.mxu0 %v521_v4  ;;  %485 = vmatprep.mubr.bf16.mxu1 %v522_v5  ;;  %v524_v11 = vld [vmem:[%s576_s23 + $0x18] sm:$0xff]   ;;  %v436_v12 = vld [vmem:[%s619_s2] ss:$0 sm:$0xff] }
  0x11   : > { %468 = vmatpush3.bf16.msra.mxu0 %v514_v1  ;;  %498 = vmatpush3.bf16.msra.mxu1 %v514_v1 }
  0x12   : > { %469 = vmatprep.subr.bf16.mxu0 %v515_v2  ;;  %491 = vmatprep.subr.bf16.mxu1 %v515_v2 }
  0x15   : > { %470 = vmatpush3.bf16.msra.mxu0 %v515_v2  ;;  %499 = vmatpush3.bf16.msra.mxu1 %v515_v2 }
  0x16   : > { %471 = vmatprep.subr.bf16.mxu0 %v516_v3  ;;  %492 = vmatprep.subr.bf16.mxu1 %v516_v3 }
  0x19   : > { %472 = vmatpush3.bf16.msra.mxu0 %v516_v3  ;;  %500 = vmatpush3.bf16.msra.mxu1 %v516_v3 }
  0x1a   : > { %473 = vmatprep.subr.bf16.mxu0 %v517_v6  ;;  %493 = vmatprep.subr.bf16.mxu1 %v517_v6 }
  0x1d   : > { %474 = vmatpush3.bf16.msra.mxu0 %v517_v6  ;;  %501 = vmatpush3.bf16.msra.mxu1 %v517_v6 }
  0x1e   : > { %475 = vmatprep.subr.bf16.mxu0 %v518_v7  ;;  %494 = vmatprep.subr.bf16.mxu1 %v518_v7 }
  0x21   : > { %476 = vmatpush3.bf16.msra.mxu0 %v518_v7  ;;  %502 = vmatpush3.bf16.msra.mxu1 %v518_v7 }
  0x22   : > { %477 = vmatprep.subr.bf16.mxu0 %v519_v8  ;;  %495 = vmatprep.subr.bf16.mxu1 %v519_v8 }
  0x25   : > { %478 = vmatpush3.bf16.msra.mxu0 %v519_v8  ;;  %503 = vmatpush3.bf16.msra.mxu1 %v519_v8 }
  0x26   : > { %479 = vmatprep.subr.bf16.mxu0 %v520_v9  ;;  %496 = vmatprep.subr.bf16.mxu1 %v520_v9 }
  0x29   : > { %480 = vmatpush3.bf16.msra.mxu0 %v520_v9  ;;  %504 = vmatpush3.bf16.msra.mxu1 %v520_v9 }
  0x2c   : > { %482 = vmatmul.mubr.bf16.vlgmr.msra.gmra.mxu0 %v523_v10  ;;  %486 = vmatmul.mubr.bf16.vlgmr.msra.gmra.mxu1 %v524_v11 }
  0xec   : > { %v483_v13 = vpop.f32.mrf.mxu0  ;;  %v487_v14 = vpop.f32.mrf.mxu1 }
  0xed   : > { %v318_v15 = vadd.f32 %v483_v13, %v436_v12  ;;  %v334_v16 = vadd.f32 %v487_v14, %v436_v12 }
  0xee   : > { %v309_v17 = vpop.f32.mrf.mxu0  ;;  %v325_v18 = vpop.f32.mrf.mxu1 }
  0xef   : > { %vm342_vm0 = vcmp.ge.f32.partialorder %v318_v15, 0.0  ;;  %v350_v19 = vmul.f32 0.2, %v318_v15  ;;  %vm346_vm1 = vcmp.ge.f32.partialorder %v334_v16, 0.0  ;;  %v354_v20 = vmul.f32 0.2, %v334_v16 }
  0xf0   : > { %v310_v21 = vadd.f32 %v436_v12, %v309_v17  ;;  %v326_v22 = vadd.f32 %v436_v12, %v325_v18  ;;  %v484_v23 = vpop.f32.mrf.mxu0  ;;  %v488_v24 = vpop.f32.mrf.mxu1 }
  0xf1   : > { %v358_v25 = vsel %vm342_vm0, %v318_v15, %v350_v19  ;;  %v362_v26 = vsel %vm346_vm1, %v334_v16, %v354_v20  ;;  %v321_v27 = vadd.f32 %v484_v23, %v436_v12  ;;  %v337_v28 = vadd.f32 %v488_v24, %v436_v12 }
  0xf2   : > { %366 = vst [vmem:[%s604_s14 + $0x10] sm:$0xff] %v358_v25  ;;  %370 = vst [vmem:[%s604_s14 + $0x30] sm:$0xff] %v362_v26  ;;  %vm340_vm2 = vcmp.ge.f32.partialorder %v310_v21, 0.0  ;;  %v348_v29 = vmul.f32 0.2, %v310_v21  ;;  %vm344_vm3 = vcmp.ge.f32.partialorder %v326_v22, 0.0  ;;  %v312_v31 = vpop.f32.mrf.mxu0  ;;  %v328_v32 = vpop.f32.mrf.mxu1 }
  0xf3   : > { %v352_v30 = vmul.f32 0.2, %v326_v22  ;;  %vm343_vm4 = vcmp.ge.f32.partialorder %v321_v27, 0.0  ;;  %v351_v33 = vmul.f32 0.2, %v321_v27  ;;  %vm347_vm5 = vcmp.ge.f32.partialorder %v337_v28, 0.0 }
  0xf4   : > { %v355_v34 = vmul.f32 0.2, %v337_v28  ;;  %v356_v35 = vsel %vm340_vm2, %v310_v21, %v348_v29  ;;  %v313_v37 = vadd.f32 %v436_v12, %v312_v31  ;;  %v329_v38 = vadd.f32 %v436_v12, %v328_v32 }
  0xf5   : > { %v360_v36 = vsel %vm344_vm3, %v326_v22, %v352_v30  ;;  %364 = vst [vmem:[%s604_s14] sm:$0xff] %v356_v35  ;;  %v359_v39 = vsel %vm343_vm4, %v321_v27, %v351_v33 }
  0xf6   : > { %368 = vst [vmem:[%s604_s14 + $0x20] sm:$0xff] %v360_v36  ;;  %v363_v40 = vsel %vm347_vm5, %v337_v28, %v355_v34  ;;  %367 = vst [vmem:[%s604_s14 + $0x18] sm:$0xff] %v359_v39  ;;  %vm341_vm6 = vcmp.ge.f32.partialorder %v313_v37, 0.0  ;;  %v349_v41 = vmul.f32 0.2, %v313_v37  ;;  %vm345_vm7 = vcmp.ge.f32.partialorder %v329_v38, 0.0 }
  0xf7   : > { %371 = vst [vmem:[%s604_s14 + $0x38] sm:$0xff] %v363_v40  ;;  %v353_v42 = vmul.f32 0.2, %v329_v38 }
  0xf8   : > { %v357_v43 = vsel %vm341_vm6, %v313_v37, %v349_v41 }
  0xf9   : > { %v361_v44 = vsel %vm345_vm7, %v329_v38, %v353_v42  ;;  %365 = vst [vmem:[%s604_s14 + $0x8] sm:$0xff] %v357_v43 }
  0xfa   : > { %369 = vst [vmem:[%s604_s14 + $0x28] sm:$0xff] %v361_v44 }
  0xfb PF: > { %s13_s12 = sadd.s32 1, %s531_s12  }
  0xfc   : > { %p10_p4 = scmp.ge.s32.totalorder %s13_s12, 6  }
  0xfe   :  { %12 = sbr.rel (!%p10_p4) target bundleno = 1 (0x1), region = 62 }

// kernel: cut_forward_impl.42
= control target key start
LH: loop header
LB: loop body
LE: loop exit
PB: predicated region body
PF: predicated region fallthrough
CT: control target
= control target key end

     0   :  { %s482_s12 = smov 0   ;;  %s530_s0 = inlined_call_operand.vmem [shape: bf16[4,16,128], index: 0, kind: input, shape index: {}]   ;;  %s531_s1 = inlined_call_operand.vmem [shape: bf16[128,128], index: 1, kind: input, shape index: {}]   ;;  %s532_s2 = inlined_call_operand.vmem [shape: f32[1,128], index: 2, kind: input, shape index: {}]   ;;  %s533_s3 = inlined_call_operand.vmem [shape: f32[4,16,128], index: 3, kind: output, shape index: {}]  }
   0x1 LB: > { %s379_s13 = sadd.s32 4294967295, %s458_s12   ;;  %p383_p0 = scmp.ge.s32.totalorder %s458_s12, 1  ;;  %s458_s12 = sphi %s482_s12, %s13_s12  }
   0x2   : > { %p137_p1 = scmp.lt.s32.totalorder %s458_s12, 5 }
   0x4   : > { %p138_p2 = pnand %p383_p0, %p137_p1 }
   0x5   : > { %p161_p3 = scmp.lt.s32.totalorder (!%p138_p2), %s379_s13, 3 }
   0x6   : > { %141 = sbr.rel (%p138_p2) target bundleno = 301 (0x12d), region = 32 }
   0xb   : > { %v441_v0 = vld [vmem:[%s531_s1 + $0x38] sm:$0xff]   ;;  %v460_v1 = vmov 0.0   ;;  %v442_v2 = vld [vmem:[%s531_s1 + $0x30] sm:$0xff]   ;;  %vm461_vm0 = vmmov 0   ;;  %s535_s13 = smov (!%p161_p3, %s379_s13), 3  ;;  %v443_v3 = vld [vmem:[%s531_s1 + $0x28] sm:$0xff]  }
   0xc   : > { %411 = vmatprep.subr.bf16.mxu0 %v460_v1  ;;  %427 = vmatprep.mubr.msk.bf16.mxu0 %vm461_vm0, %v460_v1  ;;  %s400_s20 = sshll.u32 %s535_s13, 3  ;;  %v444_v4 = vld [vmem:[%s531_s1 + $0x20] sm:$0xff]   ;;  %v445_v5 = vld [vmem:[%s531_s1 + $0x18] sm:$0xff]   ;;  %v446_v6 = vld [vmem:[%s531_s1 + $0x10] sm:$0xff]   ;;  %s401_s9 = sshll.u32 %s535_s13, 4 }
   0xd   : > { %412 = vmatpush3.bf16.msra.mxu0 %v441_v0  ;;  %s165_s23 = scalar_lea.vmem %s530_s0, %s400_s20  ;;  %v447_v7 = vld [vmem:[%s531_s1 + $0x8] sm:$0xff]   ;;  %v448_v8 = vld [vmem:[%s531_s1] sm:$0xff]   ;;  %s170_s14 = scalar_lea.vmem %s533_s3, %s401_s9 }
   0xe   : > { %413 = vmatprep.subr.bf16.mxu0 %v460_v1  ;;  %v449_v9 = vld [vmem:[%s165_s23] sm:$0xff]  }
   0xf   : > { %v388_v11 = vld [vmem:[%s532_s2] ss:$0 sm:$0xff] }
  0x11   : > { %414 = vmatpush3.bf16.msra.mxu0 %v442_v2 }
  0x12   : > { %415 = vmatprep.subr.bf16.mxu0 %v460_v1 }
  0x15   : > { %416 = vmatpush3.bf16.msra.mxu0 %v443_v3 }
  0x16   : > { %417 = vmatprep.subr.bf16.mxu0 %v460_v1 }
  0x19   : > { %418 = vmatpush3.bf16.msra.mxu0 %v444_v4 }
  0x1a   : > { %419 = vmatprep.subr.bf16.mxu0 %v460_v1 }
  0x1d   : > { %420 = vmatpush3.bf16.msra.mxu0 %v445_v5 }
  0x1e   : > { %421 = vmatprep.subr.bf16.mxu0 %v460_v1 }
  0x21   : > { %422 = vmatpush3.bf16.msra.mxu0 %v446_v6 }
  0x22   : > { %423 = vmatprep.subr.bf16.mxu0 %v460_v1 }
  0x25   : > { %424 = vmatpush3.bf16.msra.mxu0 %v447_v7 }
  0x26   : > { %425 = vmatprep.subr.bf16.mxu0 %v460_v1 }
  0x29   : > { %426 = vmatpush3.bf16.msra.mxu0 %v448_v8 }
  0x2c   : > { %428 = vmatmul.mubr.bf16.vlgmr.msra.gmra.mxu0 %v449_v9 }
  0xec   : > { %v285_v10 = vpop.f32.mrf.mxu0 }
  0xed   : > { %v286_v14 = vadd.f32 %v388_v11, %v285_v10 }
  0xee   : > { %v429_v12 = vpop.f32.mrf.mxu0 }
  0xf0   : > { %v288_v13 = vpop.f32.mrf.mxu0 }
  0xf1   : > { %v289_v15 = vadd.f32 %v388_v11, %v288_v13 }
  0xf2   : > { %v430_v16 = vpop.f32.mrf.mxu0 }
  0xf3   : > { %v292_v17 = vadd.f32 %v289_v15, %v286_v14 }
  0xf5   : > { %v293_v18 = vrot.slane %v292_v17, 4 }
  0xf7   : > { %v294_v19 = vadd.f32 %v293_v18, %v292_v17 }
  0xf9   : > { %v295_v20 = vrot.slane %v294_v19, 2 }
  0xfb   : > { %v296_v21 = vadd.f32 %v295_v20, %v294_v19 }
  0xfd   : > { %v297_v22 = vrot.slane %v296_v21, 1 }
  0xff   : > { %v298_v23 = vadd.f32 %v297_v22, %v296_v21 }
 0x101   : > { %v299_v24 = vmul.f32 0.0625, %v298_v23 }
 0x103   : > { %v300_v25 = vsub.f32 %v286_v14, %v299_v24  ;;  %v301_v26 = vsub.f32 %v289_v15, %v299_v24 }
 0x105   : > { %v302_v27 = vmul.f32 %v300_v25, %v300_v25  ;;  %v303_v28 = vmul.f32 %v301_v26, %v301_v26 }
 0x107   : > { %v304_v29 = vadd.f32 %v303_v28, %v302_v27 }
 0x109   : > { %v305_v30 = vrot.slane %v304_v29, 4 }
 0x10b   : > { %v306_v31 = vadd.f32 %v305_v30, %v304_v29 }
 0x10d   : > { %v307_v32 = vrot.slane %v306_v31, 2 }
 0x10f   : > { %v308_v33 = vadd.f32 %v307_v32, %v306_v31 }
 0x111   : > { %v309_v34 = vrot.slane %v308_v33, 1 }
 0x113   : > { %v310_v35 = vadd.f32 %v309_v34, %v308_v33 }
 0x115   : > { %v311_v36 = vmul.f32 0.0625, %v310_v35 }
 0x117   : > { %v312_v37 = vadd.f32 1e-05, %v311_v36 }
 0x119   : > { %450 = vrsqrt.f32 %v312_v37 }
 0x126   : > { %v451_v38 = vpop.eup %450 }
 0x127   : > { %v314_v39 = vmul.f32 %v451_v38, %v300_v25  ;;  %v315_v40 = vmul.f32 %v451_v38, %v301_v26 }
 0x129   : > { %vm316_vm1 = vcmp.ge.f32.partialorder %v314_v39, 0.0  ;;  %vm317_vm2 = vcmp.ge.f32.partialorder %v315_v40, 0.0  ;;  %v318_v41 = vmul.f32 0.2, %v314_v39  ;;  %v319_v42 = vmul.f32 0.2, %v315_v40 }
 0x12b   : > { %v320_v43 = vsel %vm316_vm1, %v314_v39, %v318_v41  ;;  %v321_v44 = vsel %vm317_vm2, %v315_v40, %v319_v42 }
 0x12c   : > { %322 = vst [vmem:[%s170_s14] sm:$0xff] %v320_v43  ;;  %323 = vst [vmem:[%s170_s14 + $0x8] sm:$0xff] %v321_v44 }
 0x12d PF: > { %s13_s12 = sadd.s32 1, %s458_s12  }
 0x12e   : > { %p10_p4 = scmp.ge.s32.totalorder %s13_s12, 6  }
 0x130   :  { %12 = sbr.rel (!%p10_p4) target bundleno = 1 (0x1), region = 62 }

// kernel: cut_forward_impl.44
= control target key start
LH: loop header
LB: loop body
LE: loop exit
PB: predicated region body
PF: predicated region fallthrough
CT: control target
= control target key end

     0   :  { %s747_s12 = smov 0   ;;  %s871_s0 = inlined_call_operand.vmem [shape: bf16[4,8,512], index: 0, kind: input, shape index: {}]   ;;  %s872_s1 = inlined_call_operand.vmem [shape: bf16[512,128], index: 1, kind: input, shape index: {}]   ;;  %s873_s2 = inlined_call_operand.vmem [shape: f32[1,128], index: 2, kind: input, shape index: {}]   ;;  %s874_s3 = inlined_call_operand.vmem [shape: f32[4,8,128], index: 3, kind: output, shape index: {}]  }
   0x1 LB: > { %s583_s13 = sadd.s32 4294967295, %s725_s12   ;;  %p587_p0 = scmp.ge.s32.totalorder %s725_s12, 1  ;;  %s725_s12 = sphi %s747_s12, %s13_s12  }
   0x2   : > { %p137_p1 = scmp.lt.s32.totalorder %s725_s12, 5 }
   0x4   : > { %p138_p2 = pnand %p587_p0, %p137_p1 }
   0x5   : > { %p160_p3 = scmp.lt.s32.totalorder (!%p138_p2), %s583_s13, 3 }
   0x6   : > { %141 = sbr.rel (%p138_p2) target bundleno = 247 (0xf7), region = 32 }
   0xb   : > { %v683_v0 = vld [vmem:[%s872_s1 + $0x78] sm:$0xff]   ;;  %v687_v4 = vld [vmem:[%s872_s1 + $0x70] sm:$0xff]   ;;  %v691_v8 = vld [vmem:[%s872_s1 + $0x68] sm:$0xff]   ;;  %s876_s13 = smov (!%p160_p3, %s583_s13), 3 }
   0xc   : > { %v684_v1 = vld [vmem:[%s872_s1 + $0xf8] sm:$0xff]   ;;  %631 = vmatprep.subr.bf16.mxu0 %v683_v0  ;;  %v688_v5 = vld [vmem:[%s872_s1 + $0xf0] sm:$0xff]   ;;  %v692_v9 = vld [vmem:[%s872_s1 + $0xe8] sm:$0xff]   ;;  %s630_s18 = sshll.u32 %s876_s13, 4  ;;  %s590_s7 = sshll.u32 %s876_s13, 3 }
   0xd   : > { %v685_v2 = vld [vmem:[%s872_s1 + $0x38] sm:$0xff]   ;;  %653 = vmatprep.subr.bf16.mxu1 %v684_v1  ;;  %v689_v6 = vld [vmem:[%s872_s1 + $0x30] sm:$0xff]   ;;  %v693_v10 = vld [vmem:[%s872_s1 + $0x28] sm:$0xff]   ;;  %s164_s27 = scalar_lea.vmem %s871_s0, %s630_s18  ;;  %s168_s10 = scalar_lea.vmem %s874_s3, %s590_s7 }
   0xe   : > { %v686_v3 = vld [vmem:[%s872_s1 + $0xb8] sm:$0xff]   ;;  %632 = vmatpush3.bf16.msra.mxu0 %v685_v2  ;;  %v690_v7 = vld [vmem:[%s872_s1 + $0xb0] sm:$0xff]   ;;  %v694_v11 = vld [vmem:[%s872_s1 + $0xa8] sm:$0xff]  }
   0xf   : > { %654 = vmatpush3.bf16.msra.mxu1 %v686_v3  ;;  %633 = vmatprep.subr.bf16.mxu0 %v687_v4  ;;  %v695_v12 = vld [vmem:[%s872_s1 + $0x60] sm:$0xff]   ;;  %v699_v16 = vld [vmem:[%s872_s1 + $0x58] sm:$0xff]   ;;  %v703_v20 = vld [vmem:[%s872_s1 + $0x50] sm:$0xff]  }
  0x10   : > { %655 = vmatprep.subr.bf16.mxu1 %v688_v5  ;;  %v696_v13 = vld [vmem:[%s872_s1 + $0xe0] sm:$0xff]   ;;  %v700_v17 = vld [vmem:[%s872_s1 + $0xd8] sm:$0xff]   ;;  %v704_v21 = vld [vmem:[%s872_s1 + $0xd0] sm:$0xff]  }
  0x11   : > { %v697_v14 = vld [vmem:[%s872_s1 + $0x20] sm:$0xff]   ;;  %v701_v18 = vld [vmem:[%s872_s1 + $0x18] sm:$0xff]   ;;  %v705_v22 = vld [vmem:[%s872_s1 + $0x10] sm:$0xff]  }
  0x12   : > { %634 = vmatpush3.bf16.msra.mxu0 %v689_v6  ;;  %v698_v15 = vld [vmem:[%s872_s1 + $0xa0] sm:$0xff]   ;;  %v702_v19 = vld [vmem:[%s872_s1 + $0x98] sm:$0xff]   ;;  %v706_v23 = vld [vmem:[%s872_s1 + $0x90] sm:$0xff]  }
  0x13   : > { %656 = vmatpush3.bf16.msra.mxu1 %v690_v7  ;;  %635 = vmatprep.subr.bf16.mxu0 %v691_v8  ;;  %v707_v24 = vld [vmem:[%s872_s1 + $0x48] sm:$0xff]   ;;  %v711_v28 = vld [vmem:[%s872_s1 + $0x40] sm:$0xff]  }
  0x14   : > { %657 = vmatprep.subr.bf16.mxu1 %v692_v9  ;;  %v708_v25 = vld [vmem:[%s872_s1 + $0xc8] sm:$0xff]   ;;  %v712_v29 = vld [vmem:[%s872_s1 + $0xc0] sm:$0xff]  }
  0x15   : > { %v709_v26 = vld [vmem:[%s872_s1 + $0x8] sm:$0xff]   ;;  %v713_v30 = vld [vmem:[%s872_s1] sm:$0xff]  }
  0x16   : > { %636 = vmatpush3.bf16.msra.mxu0 %v693_v10  ;;  %v710_v27 = vld [vmem:[%s872_s1 + $0x88] sm:$0xff]   ;;  %v714_v31 = vld [vmem:[%s872_s1 + $0x80] sm:$0xff]  }
  0x17   : > { %658 = vmatpush3.bf16.msra.mxu1 %v694_v11  ;;  %637 = vmatprep.subr.bf16.mxu0 %v695_v12  ;;  %v170_v32 = vld [vmem:[%s164_s27] sm:$0xff]  ;;  %v171_v33 = vld [vmem:[%s164_s27 + $0x8] sm:$0xff] }
  0x18   : > { %659 = vmatprep.subr.bf16.mxu1 %v696_v13  ;;  %v592_v34 = vcombine.low %v170_v32, %v170_v32  ;;  %v593_v35 = vcombine.high %v170_v32, %v170_v32  ;;  %v594_v36 = vcombine.low %v171_v33, %v171_v33  ;;  %v595_v37 = vcombine.high %v171_v33, %v171_v33  ;;  %v591_v40 = vld [vmem:[%s873_s2] ss:$0 sm:$0xff] }
  0x1a   : > { %638 = vmatpush3.bf16.msra.mxu0 %v697_v14  ;;  %481 = vmatprep.mubr.bf16.mxu0 %v593_v35 }
  0x1b   : > { %660 = vmatpush3.bf16.msra.mxu1 %v698_v15  ;;  %639 = vmatprep.subr.bf16.mxu0 %v699_v16 }
  0x1c   : > { %661 = vmatprep.subr.bf16.mxu1 %v700_v17  ;;  %521 = vmatprep.mubr.bf16.mxu1 %v595_v37 }
  0x1e   : > { %640 = vmatpush3.bf16.msra.mxu0 %v701_v18 }
  0x1f   : > { %662 = vmatpush3.bf16.msra.mxu1 %v702_v19  ;;  %641 = vmatprep.subr.bf16.mxu0 %v703_v20 }
  0x20   : > { %663 = vmatprep.subr.bf16.mxu1 %v704_v21 }
  0x22   : > { %642 = vmatpush3.bf16.msra.mxu0 %v705_v22 }
  0x23   : > { %664 = vmatpush3.bf16.msra.mxu1 %v706_v23  ;;  %643 = vmatprep.subr.bf16.mxu0 %v707_v24 }
  0x24   : > { %665 = vmatprep.subr.bf16.mxu1 %v708_v25 }
  0x26   : > { %644 = vmatpush3.bf16.msra.mxu0 %v709_v26 }
  0x27   : > { %666 = vmatpush3.bf16.msra.mxu1 %v710_v27  ;;  %645 = vmatprep.subr.bf16.mxu0 %v711_v28 }
  0x28   : > { %667 = vmatprep.subr.bf16.mxu1 %v712_v29 }
  0x2a   : > { %646 = vmatpush3.bf16.msra.mxu0 %v713_v30 }
  0x2b   : > { %668 = vmatpush3.bf16.msra.mxu1 %v714_v31 }
  0x2d   : > { %482 = vmatmul.mubr.bf16.vlgmr.msra.gmra.mxu0 %v592_v34 }
  0x2e   : > { %522 = vmatmul.mubr.bf16.vlgmr.msra.gmra.mxu1 %v594_v36 }
  0xed   : > { %v647_v38 = vpop.f32.mrf.mxu0 }
  0xee   : > { %v669_v39 = vpop.f32.mrf.mxu1 }
  0xef   : > { %v648_v41 = vpop.f32.mrf.mxu0 }
  0xf0   : > { %v670_v42 = vpop.f32.mrf.mxu1  ;;  %v649_v43 = vadd.f32 %v648_v41, %v647_v38 }
  0xf1   : > { %v650_v44 = vpop.f32.mrf.mxu0  ;;  %v671_v47 = vadd.f32 %v670_v42, %v669_v39 }
  0xf2   : > { %v672_v45 = vpop.f32.mrf.mxu1  ;;  %v484_v46 = vadd.f32 %v649_v43, %v591_v40 }
  0xf3   : > { %v651_v48 = vpop.f32.mrf.mxu0 }
  0xf4   : > { %v673_v49 = vpop.f32.mrf.mxu1  ;;  %v524_v50 = vadd.f32 %v671_v47, %v484_v46 }
  0xf6   : > { %529 = vst [vmem:[%s168_s10] sm:$0xff] %v524_v50 }
  0xf7 PF: > { %s13_s12 = sadd.s32 1, %s725_s12  }
  0xf8   : > { %p10_p4 = scmp.ge.s32.totalorder %s13_s12, 6  }
  0xfa   :  { %12 = sbr.rel (!%p10_p4) target bundleno = 1 (0x1), region = 62 }

// kernel: cut_forward_impl.43
= control target key start
LH: loop header
LB: loop body
LE: loop exit
PB: predicated region body
PF: predicated region fallthrough
CT: control target
= control target key end

     0   :  { %s567_s12 = smov 0   ;;  %s642_s0 = inlined_call_operand.vmem [shape: bf16[4,16,256], index: 0, kind: input, shape index: {}]   ;;  %s643_s1 = inlined_call_operand.vmem [shape: bf16[256,128], index: 1, kind: input, shape index: {}]   ;;  %s644_s2 = inlined_call_operand.vmem [shape: f32[1,128], index: 2, kind: input, shape index: {}]   ;;  %s645_s3 = inlined_call_operand.vmem [shape: f32[4,16,128], index: 3, kind: output, shape index: {}]  }
   0x1 LB: > { %s456_s13 = sadd.s32 4294967295, %s545_s12   ;;  %p460_p0 = scmp.ge.s32.totalorder %s545_s12, 1  ;;  %s545_s12 = sphi %s567_s12, %s13_s12  }
   0x2   : > { %p137_p1 = scmp.lt.s32.totalorder %s545_s12, 5 }
   0x4   : > { %p138_p2 = pnand %p460_p0, %p137_p1 }
   0x5   : > { %p161_p3 = scmp.lt.s32.totalorder (!%p138_p2), %s456_s13, 3 }
   0x6   : > { %141 = sbr.rel (%p138_p2) target bundleno = 307 (0x133), region = 32 }
   0xb   : > { %v518_v0 = vld [vmem:[%s643_s1 + $0x78] sm:$0xff]   ;;  %v520_v2 = vld [vmem:[%s643_s1 + $0x70] sm:$0xff]   ;;  %v522_v4 = vld [vmem:[%s643_s1 + $0x68] sm:$0xff]   ;;  %s647_s13 = smov (!%p161_p3, %s456_s13), 3  ;;  %v360_v18 = vlaneseq }
   0xc   : > { %v519_v1 = vld [vmem:[%s643_s1 + $0x38] sm:$0xff]   ;;  %488 = vmatprep.subr.bf16.mxu0 %v518_v0  ;;  %v521_v3 = vld [vmem:[%s643_s1 + $0x30] sm:$0xff]   ;;  %v523_v5 = vld [vmem:[%s643_s1 + $0x28] sm:$0xff]   ;;  %s486_s30 = sshll.u32 %s647_s13, 4 }
   0xd   : > { %489 = vmatpush3.bf16.msra.mxu0 %v519_v1  ;;  %v524_v6 = vld [vmem:[%s643_s1 + $0x60] sm:$0xff]   ;;  %v526_v8 = vld [vmem:[%s643_s1 + $0x58] sm:$0xff]   ;;  %s165_s8 = scalar_lea.vmem %s642_s0, %s486_s30  ;;  %v528_v10 = vld [vmem:[%s643_s1 + $0x50] sm:$0xff]   ;;  %v361_v20 = vshrl.u32 %v360_v18, 7  ;;  %s170_s29 = scalar_lea.vmem %s645_s3, %s486_s30 }
   0xe   : > { %490 = vmatprep.subr.bf16.mxu0 %v520_v2  ;;  %v525_v7 = vld [vmem:[%s643_s1 + $0x20] sm:$0xff]   ;;  %v527_v9 = vld [vmem:[%s643_s1 + $0x18] sm:$0xff]   ;;  %v529_v12 = vld [vmem:[%s643_s1 + $0x10] sm:$0xff]  }
   0xf   : > { %v536_v11 = vld [vmem:[%s165_s8 + $0x4] ss:$8 sps:$4 sm:$0xff]   ;;  %v534_v17 = vld [vmem:[%s165_s8] ss:$8 sps:$4 sm:$0xff]   ;;  %v362_v23 = vadd.s32 8, %v361_v20 }
  0x10   : > { %351 = vmatprep.mubr.bf16.mxu0 %v536_v11  ;;  %v530_v13 = vld [vmem:[%s643_s1 + $0x48] sm:$0xff]   ;;  %v532_v15 = vld [vmem:[%s643_s1 + $0x40] sm:$0xff]  }
  0x11   : > { %491 = vmatpush3.bf16.msra.mxu0 %v521_v3  ;;  %v531_v14 = vld [vmem:[%s643_s1 + $0x8] sm:$0xff]   ;;  %v533_v16 = vld [vmem:[%s643_s1] sm:$0xff]   ;;  %vm364_vm0 = vcmp.lt.s32.totalorder %v362_v23, 9 }
  0x12   : > { %492 = vmatprep.subr.bf16.mxu0 %v522_v4  ;;  %v465_v26 = vld [vmem:[%s644_s2] ss:$0 sm:$0xff] }
  0x15   : > { %493 = vmatpush3.bf16.msra.mxu0 %v523_v5 }
  0x16   : > { %494 = vmatprep.subr.bf16.mxu0 %v524_v6 }
  0x19   : > { %495 = vmatpush3.bf16.msra.mxu0 %v525_v7 }
  0x1a   : > { %496 = vmatprep.subr.bf16.mxu0 %v526_v8 }
  0x1d   : > { %497 = vmatpush3.bf16.msra.mxu0 %v527_v9 }
  0x1e   : > { %498 = vmatprep.subr.bf16.mxu0 %v528_v10 }
  0x21   : > { %499 = vmatpush3.bf16.msra.mxu0 %v529_v12 }
  0x22   : > { %500 = vmatprep.subr.bf16.mxu0 %v530_v13 }
  0x25   : > { %501 = vmatpush3.bf16.msra.mxu0 %v531_v14 }
  0x26   : > { %502 = vmatprep.subr.bf16.mxu0 %v532_v15 }
  0x29   : > { %503 = vmatpush3.bf16.msra.mxu0 %v533_v16 }
  0x2c   : > { %352 = vmatmul.mubr.bf16.vlgmr.msra.gmra.mxu0 %v534_v17 }
  0xec   : > { %v504_v19 = vpop.f32.mrf.mxu0 }
  0xee   : > { %v505_v21 = vpop.f32.mrf.mxu0 }
  0xef   : > { %v506_v24 = vadd.f32 %v505_v21, %v504_v19 }
  0xf0   : > { %v507_v22 = vpop.f32.mrf.mxu0 }
  0xf1   : > { %v354_v29 = vadd.f32 %v506_v24, %v465_v26 }
  0xf2   : > { %v508_v25 = vpop.f32.mrf.mxu0 }
  0xf3   : > { %v509_v27 = vadd.f32 %v508_v25, %v507_v22 }
  0xf5   : > { %v357_v28 = vadd.f32 %v509_v27, %v465_v26 }
  0xf7   : > { %v366_v30 = vsel %vm364_vm0, %v357_v28, 0.0 }
  0xf8   : > { %v367_v31 = vadd.f32 %v366_v30, %v354_v29 }
  0xfa   : > { %v368_v32 = vrot.slane %v367_v31, 4 }
  0xfc   : > { %v369_v33 = vadd.f32 %v368_v32, %v367_v31 }
  0xfe   : > { %v370_v34 = vrot.slane %v369_v33, 2 }
 0x100   : > { %v371_v35 = vadd.f32 %v370_v34, %v369_v33 }
 0x102   : > { %v372_v36 = vrot.slane %v371_v35, 1 }
 0x104   : > { %v373_v37 = vadd.f32 %v372_v36, %v371_v35 }
 0x106   : > { %v374_v38 = vmul.f32 0.11111111, %v373_v37 }
 0x108   : > { %v375_v39 = vsub.f32 %v354_v29, %v374_v38  ;;  %v376_v40 = vsub.f32 %v357_v28, %v374_v38 }
 0x10a   : > { %v378_v41 = vsel %vm364_vm0, %v376_v40, 0.0  ;;  %v379_v42 = vmul.f32 %v375_v39, %v375_v39 }
 0x10b   : > { %v380_v43 = vmul.f32 %v378_v41, %v378_v41 }
 0x10d   : > { %v381_v44 = vadd.f32 %v380_v43, %v379_v42 }
 0x10f   : > { %v382_v45 = vrot.slane %v381_v44, 4 }
 0x111   : > { %v383_v46 = vadd.f32 %v382_v45, %v381_v44 }
 0x113   : > { %v384_v47 = vrot.slane %v383_v46, 2 }
 0x115   : > { %v385_v48 = vadd.f32 %v384_v47, %v383_v46 }
 0x117   : > { %v386_v49 = vrot.slane %v385_v48, 1 }
 0x119   : > { %v387_v50 = vadd.f32 %v386_v49, %v385_v48 }
 0x11b   : > { %v388_v51 = vmul.f32 0.11111111, %v387_v50 }
 0x11d   : > { %v389_v52 = vadd.f32 1e-05, %v388_v51 }
 0x11f   : > { %537 = vrsqrt.f32 %v389_v52 }
 0x12c   : > { %v538_v53 = vpop.eup %537 }
 0x12d   : > { %v391_v54 = vmul.f32 %v538_v53, %v375_v39  ;;  %v392_v55 = vmul.f32 %v538_v53, %v376_v40 }
 0x12f   : > { %vm393_vm1 = vcmp.ge.f32.partialorder %v391_v54, 0.0  ;;  %vm394_vm2 = vcmp.ge.f32.partialorder %v392_v55, 0.0  ;;  %v395_v56 = vmul.f32 0.2, %v391_v54  ;;  %v396_v57 = vmul.f32 0.2, %v392_v55 }
 0x131   : > { %v397_v58 = vsel %vm393_vm1, %v391_v54, %v395_v56  ;;  %v398_v59 = vsel %vm394_vm2, %v392_v55, %v396_v57 }
 0x132   : > { %399 = vst [vmem:[%s170_s29] sm:$0xff] %v397_v58  ;;  %400 = vst [vmem:[%s170_s29 + $0x8] sm:$0xff] %v398_v59 }
 0x133 PF: > { %s13_s12 = sadd.s32 1, %s545_s12  }
 0x134   : > { %p10_p4 = scmp.ge.s32.totalorder %s13_s12, 6  }
 0x136   :  { %12 = sbr.rel (!%p10_p4) target bundleno = 1 (0x1), region = 62 }

// kernel: cut_forward_impl.45
= control target key start
LH: loop header
LB: loop body
LE: loop exit
PB: predicated region body
PF: predicated region fallthrough
CT: control target
= control target key end

     0   :  { %v9_v0 = vlaneseq  ;;  %vm28_vm2 = vcmask 7168   ;;  %s102_s0 = inlined_call_operand.vmem [shape: f32[8,128], index: 0, kind: input, shape index: {}]   ;;  %s103_s1 = inlined_call_operand.vmem [shape: f32[1,128], index: 1, kind: output, shape index: {}]  }
   0x1   :  { %v8_v1 = vld [vmem:[%s102_s0] sm:$0xff] }
   0x2   :  { %v94_v2 = vand.u32 127, %v9_v0  ;;  %v25_v6 = vshrl.u32 %v9_v0, 7 }
   0x4   :  { %vm11_vm0 = vcmp.lt.s32.totalorder %v94_v2, 8  ;;  %vm26_vm1 = vcmp.eq.s32.totalorder %v25_v6, 0  ;;  %vm39_vm3 = vcmp.eq.s32.totalorder %v25_v6, 1  ;;  %vm65_vm4 = vcmp.eq.s32.totalorder %v94_v2, 1 }
   0x5   :  { %v12_v3 = vsel %vm11_vm0, %v8_v1, 0.0  ;;  %vm64_vm5 = vcmp.eq.s32.totalorder %v94_v2, 0 }
   0x6   :  { %13 = vadd.xlane.f32.xlu0 %v12_v3  ;;  %v15_v4 = vmul.f32 %v12_v3, %v12_v3 }
   0xa   :  { %16 = vadd.xlane.f32.xlu0 %v15_v4 }
  0x8f   :  { %v14_v5 = vpop.xlane.xlu0 %13 }
  0x90   :  { %v20_v7 = vmul.f32 2.0, %v14_v5 }
  0x93   :  { %v17_v8 = vpop.xlane.xlu0 %16 }
  0x94   :  { %v19_v9 = vmul.f32 0.125, %v17_v8  ;;  %v21_v10 = vsub.f32 %v17_v8, %v20_v7 }
  0x96   :  { %v22_v11 = vmul.f32 0.125, %v21_v10  ;;  %v27_v12 = vsel %vm26_vm1, %v19_v9, 0.0 }
  0x97   :  { %v29_v13 = vsel %vm28_vm2, %v27_v12, 0.0 }
  0x98   :  { %v23_v14 = vadd.f32 1.0, %v22_v11  ;;  %30 = vadd.xlane.f32.xlu1 %v29_v13 }
  0x9a   :  { %v53_v15 = vsel %vm26_vm1, %v23_v14, 0.0  ;;  %v40_v16 = vsel %vm39_vm3, %v23_v14, 0.0 }
  0x9b   :  { %v54_v17 = vsel %vm28_vm2, %v53_v15, 0.0  ;;  %v41_v18 = vsel %vm28_vm2, %v40_v16, 0.0 }
  0x9c   :  { %55 = vadd.xlane.f32.xlu0 %v54_v17  ;;  %42 = vadd.xlane.f32.xlu1 %v41_v18 }
 0x121   :  { %v31_v19 = vpop.xlane.xlu1 %30 }
 0x122   :  { %v32_v20 = vrot.slane %v31_v19, 4 }
 0x124   :  { %v33_v21 = vadd.f32 %v32_v20, %v31_v19 }
 0x125   :  { %v56_v22 = vpop.xlane.xlu0 %55  ;;  %v43_v23 = vpop.xlane.xlu1 %42 }
 0x126   :  { %v34_v24 = vrot.slane %v33_v21, 2  ;;  %v57_v25 = vrot.slane %v56_v22, 4  ;;  %v44_v26 = vrot.slane %v43_v23, 4 }
 0x128   :  { %v58_v27 = vadd.f32 %v57_v25, %v56_v22  ;;  %v45_v28 = vadd.f32 %v44_v26, %v43_v23  ;;  %v35_v29 = vadd.f32 %v34_v24, %v33_v21 }
 0x12a   :  { %v59_v30 = vrot.slane %v58_v27, 2  ;;  %v46_v31 = vrot.slane %v45_v28, 2  ;;  %v36_v32 = vrot.slane %v35_v29, 1 }
 0x12c   :  { %v60_v33 = vadd.f32 %v59_v30, %v58_v27  ;;  %v47_v34 = vadd.f32 %v46_v31, %v45_v28  ;;  %v37_v35 = vadd.f32 %v36_v32, %v35_v29 }
 0x12e   :  { %75 = vpush %v37_v35  ;;  %v48_v36 = vrot.slane %v47_v34, 1  ;;  %v61_v37 = vrot.slane %v60_v33, 1 }
 0x130   :  { %v49_v38 = vadd.f32 %v48_v36, %v47_v34  ;;  %v62_v39 = vadd.f32 %v61_v37, %v60_v33 }
 0x132   :  { %77 = vpush %v49_v38 }
 0x133   :  { %79 = vpush %v62_v39 }
 0x15f   :  { %s76_s0 = spop %75 }
 0x163   :  { %s78_s8 = spop %77 }
 0x164   :  { %s51_s9 = sadd.f32 %s78_s8, %s76_s0  ;;  %s80_s10 = spop %79 }
 0x165   :  { %v66_v40 = vstv %s80_s10 }
 0x166   :  { %s52_s11 = smul.f32 0.5, %s51_s9  ;;  %v67_v42 = vsel %vm65_vm4, %v66_v40, 0.0 }
 0x168   :  { %v68_v41 = vstv %s52_s11 }
 0x169   :  { %v69_v43 = vsel %vm64_vm5, %v68_v41, %v67_v42 }
 0x16a   :  { %70 = vst [vmem:[%s103_s1] sm:$0x1] %v69_v43 }

// kernel: cut_forward_impl.59
= control target key start
LH: loop header
LB: loop body
LE: loop exit
PB: predicated region body
PF: predicated region fallthrough
CT: control target
= control target key end

     0   :  { %s499_s1 = inlined_call_operand.vmem [shape: bf16[128,128], index: 1, kind: input, shape index: {}]   ;;  %s500_s0 = inlined_call_operand.vmem [shape: bf16[128,128], index: 0, kind: input, shape index: {}]   ;;  %s501_s2 = inlined_call_operand.vmem [shape: f32[1,128], index: 2, kind: input, shape index: {}]   ;;  %s502_s3 = inlined_call_operand.vmem [shape: f32[128,128], index: 3, kind: output, shape index: {}]  }
   0x1   :  { %v364_v0 = vld [vmem:[%s499_s1 + $0x38] sm:$0xff]   ;;  %v365_v1 = vld [vmem:[%s499_s1 + $0x30] sm:$0xff]   ;;  %v366_v2 = vld [vmem:[%s499_s1 + $0x28] sm:$0xff]  }
   0x2   :  { %316 = vmatprep.subr.bf16.mxu0 %v364_v0  ;;  %348 = vmatprep.subr.bf16.mxu1 %v364_v0  ;;  %v367_v3 = vld [vmem:[%s499_s1 + $0x20] sm:$0xff]   ;;  %v368_v6 = vld [vmem:[%s499_s1 + $0x18] sm:$0xff]   ;;  %v369_v7 = vld [vmem:[%s499_s1 + $0x10] sm:$0xff]  }
   0x3   :  { %317 = vmatpush3.bf16.msra.mxu0 %v364_v0  ;;  %356 = vmatpush3.bf16.msra.mxu1 %v364_v0  ;;  %v372_v4 = vld [vmem:[%s500_s0] sm:$0xff]   ;;  %v370_v8 = vld [vmem:[%s499_s1 + $0x8] sm:$0xff]   ;;  %v376_v12 = vld [vmem:[%s500_s0 + $0x10] sm:$0xff]  }
   0x4   :  { %318 = vmatprep.subr.bf16.mxu0 %v365_v1  ;;  %349 = vmatprep.subr.bf16.mxu1 %v365_v1  ;;  %v373_v5 = vld [vmem:[%s500_s0 + $0x20] sm:$0xff]   ;;  %v374_v10 = vld [vmem:[%s500_s0 + $0x8] sm:$0xff]   ;;  %v377_v13 = vld [vmem:[%s500_s0 + $0x30] sm:$0xff]  }
   0x5   :  { %332 = vmatprep.mubr.bf16.mxu0 %v372_v4  ;;  %340 = vmatprep.mubr.bf16.mxu1 %v373_v5  ;;  %v371_v9 = vld [vmem:[%s499_s1] sm:$0xff]   ;;  %v375_v11 = vld [vmem:[%s500_s0 + $0x28] sm:$0xff]   ;;  %v378_v14 = vld [vmem:[%s500_s0 + $0x18] sm:$0xff]  }
   0x6   :  { %v379_v15 = vld [vmem:[%s500_s0 + $0x38] sm:$0xff]   ;;  %v283_v16 = vld [vmem:[%s501_s2] ss:$0 sm:$0xff] }
   0x7   :  { %319 = vmatpush3.bf16.msra.mxu0 %v365_v1  ;;  %357 = vmatpush3.bf16.msra.mxu1 %v365_v1 }
   0x8   :  { %320 = vmatprep.subr.bf16.mxu0 %v366_v2  ;;  %350 = vmatprep.subr.bf16.mxu1 %v366_v2 }
   0xb   :  { %321 = vmatpush3.bf16.msra.mxu0 %v366_v2  ;;  %358 = vmatpush3.bf16.msra.mxu1 %v366_v2 }
   0xc   :  { %322 = vmatprep.subr.bf16.mxu0 %v367_v3  ;;  %351 = vmatprep.subr.bf16.mxu1 %v367_v3 }
   0xf   :  { %323 = vmatpush3.bf16.msra.mxu0 %v367_v3  ;;  %359 = vmatpush3.bf16.msra.mxu1 %v367_v3 }
  0x10   :  { %324 = vmatprep.subr.bf16.mxu0 %v368_v6  ;;  %352 = vmatprep.subr.bf16.mxu1 %v368_v6 }
  0x13   :  { %325 = vmatpush3.bf16.msra.mxu0 %v368_v6  ;;  %360 = vmatpush3.bf16.msra.mxu1 %v368_v6 }
  0x14   :  { %326 = vmatprep.subr.bf16.mxu0 %v369_v7  ;;  %353 = vmatprep.subr.bf16.mxu1 %v369_v7 }
  0x17   :  { %327 = vmatpush3.bf16.msra.mxu0 %v369_v7  ;;  %361 = vmatpush3.bf16.msra.mxu1 %v369_v7 }
  0x18   :  { %328 = vmatprep.subr.bf16.mxu0 %v370_v8  ;;  %354 = vmatprep.subr.bf16.mxu1 %v370_v8 }
  0x1b   :  { %329 = vmatpush3.bf16.msra.mxu0 %v370_v8  ;;  %362 = vmatpush3.bf16.msra.mxu1 %v370_v8 }
  0x1c   :  { %330 = vmatprep.subr.bf16.mxu0 %v371_v9  ;;  %355 = vmatprep.subr.bf16.mxu1 %v371_v9 }
  0x1f   :  { %331 = vmatpush3.bf16.msra.mxu0 %v371_v9  ;;  %363 = vmatpush3.bf16.msra.mxu1 %v371_v9 }
  0x22   :  { %333 = vmatmul.mubr.bf16.vlgmr.msra.gmra.mxu0 %v374_v10  ;;  %341 = vmatmul.mubr.bf16.vlgmr.msra.gmra.mxu1 %v375_v11 }
  0x23   :  { %336 = vmatprep.mubr.bf16.mxu0 %v376_v12  ;;  %344 = vmatprep.mubr.bf16.mxu1 %v377_v13 }
  0x2a   :  { %337 = vmatmul.mubr.bf16.gmra.mxu0 %v378_v14  ;;  %345 = vmatmul.mubr.bf16.gmra.mxu1 %v379_v15 }
  0xe2   :  { %v334_v17 = vpop.f32.mrf.mxu0  ;;  %v342_v18 = vpop.f32.mrf.mxu1 }
  0xe3   :  { %v193_v19 = vadd.f32 %v334_v17, %v283_v16  ;;  %v225_v20 = vadd.f32 %v342_v18, %v283_v16 }
  0xe4   :  { %v184_v21 = vpop.f32.mrf.mxu0  ;;  %v216_v22 = vpop.f32.mrf.mxu1 }
  0xe5   :  { %v249_v23 = vmax.f32 %v193_v19, 0.0  ;;  %v257_v24 = vmax.f32 %v225_v20, 0.0  ;;  %v185_v25 = vadd.f32 %v283_v16, %v184_v21  ;;  %v217_v26 = vadd.f32 %v283_v16, %v216_v22 }
  0xe6   :  { %v335_v27 = vpop.f32.mrf.mxu0  ;;  %v343_v28 = vpop.f32.mrf.mxu1 }
  0xe7   :  { %265 = vst [vmem:[%s502_s3 + $0x10] sm:$0xff] %v249_v23  ;;  %273 = vst [vmem:[%s502_s3 + $0x50] sm:$0xff] %v257_v24  ;;  %v247_v29 = vmax.f32 %v185_v25, 0.0  ;;  %v255_v30 = vmax.f32 %v217_v26, 0.0  ;;  %v196_v31 = vadd.f32 %v335_v27, %v283_v16  ;;  %v228_v32 = vadd.f32 %v343_v28, %v283_v16 }
  0xe8   :  { %v187_v33 = vpop.f32.mrf.mxu0  ;;  %v219_v34 = vpop.f32.mrf.mxu1 }
  0xe9   :  { %263 = vst [vmem:[%s502_s3] sm:$0xff] %v247_v29  ;;  %271 = vst [vmem:[%s502_s3 + $0x40] sm:$0xff] %v255_v30  ;;  %v250_v35 = vmax.f32 %v196_v31, 0.0  ;;  %v258_v36 = vmax.f32 %v228_v32, 0.0  ;;  %v188_v37 = vadd.f32 %v283_v16, %v187_v33  ;;  %v220_v38 = vadd.f32 %v283_v16, %v219_v34 }
  0xea   :  { %v338_v39 = vpop.f32.mrf.mxu0  ;;  %v346_v40 = vpop.f32.mrf.mxu1 }
  0xeb   :  { %266 = vst [vmem:[%s502_s3 + $0x18] sm:$0xff] %v250_v35  ;;  %274 = vst [vmem:[%s502_s3 + $0x58] sm:$0xff] %v258_v36  ;;  %v248_v41 = vmax.f32 %v188_v37, 0.0  ;;  %v256_v42 = vmax.f32 %v220_v38, 0.0  ;;  %v209_v43 = vadd.f32 %v338_v39, %v283_v16  ;;  %v241_v44 = vadd.f32 %v346_v40, %v283_v16 }
  0xec   :  { %v200_v45 = vpop.f32.mrf.mxu0  ;;  %v232_v46 = vpop.f32.mrf.mxu1 }
  0xed   :  { %264 = vst [vmem:[%s502_s3 + $0x8] sm:$0xff] %v248_v41  ;;  %272 = vst [vmem:[%s502_s3 + $0x48] sm:$0xff] %v256_v42  ;;  %v253_v47 = vmax.f32 %v209_v43, 0.0  ;;  %v261_v48 = vmax.f32 %v241_v44, 0.0  ;;  %v201_v49 = vadd.f32 %v283_v16, %v200_v45  ;;  %v233_v50 = vadd.f32 %v283_v16, %v232_v46 }
  0xee   :  { %v339_v51 = vpop.f32.mrf.mxu0  ;;  %v347_v52 = vpop.f32.mrf.mxu1 }
  0xef   :  { %269 = vst [vmem:[%s502_s3 + $0x30] sm:$0xff] %v253_v47  ;;  %277 = vst [vmem:[%s502_s3 + $0x70] sm:$0xff] %v261_v48  ;;  %v251_v53 = vmax.f32 %v201_v49, 0.0  ;;  %v259_v54 = vmax.f32 %v233_v50, 0.0  ;;  %v212_v55 = vadd.f32 %v339_v51, %v283_v16  ;;  %v244_v56 = vadd.f32 %v347_v52, %v283_v16 }
  0xf0   :  { %v203_v57 = vpop.f32.mrf.mxu0  ;;  %v235_v58 = vpop.f32.mrf.mxu1 }
  0xf1   :  { %267 = vst [vmem:[%s502_s3 + $0x20] sm:$0xff] %v251_v53  ;;  %275 = vst [vmem:[%s502_s3 + $0x60] sm:$0xff] %v259_v54  ;;  %v254_v59 = vmax.f32 %v212_v55, 0.0  ;;  %v262_v60 = vmax.f32 %v244_v56, 0.0  ;;  %v204_v61 = vadd.f32 %v283_v16, %v203_v57  ;;  %v236_v62 = vadd.f32 %v283_v16, %v235_v58 }
  0xf3   :  { %270 = vst [vmem:[%s502_s3 + $0x38] sm:$0xff] %v254_v59  ;;  %278 = vst [vmem:[%s502_s3 + $0x78] sm:$0xff] %v262_v60  ;;  %v252_v63 = vmax.f32 %v204_v61, 0.0  ;;  %v260_v0 = vmax.f32 %v236_v62, 0.0 }
  0xf5   :  { %268 = vst [vmem:[%s502_s3 + $0x28] sm:$0xff] %v252_v63  ;;  %276 = vst [vmem:[%s502_s3 + $0x68] sm:$0xff] %v260_v0 }

// kernel: cut_forward_impl.60
= control target key start
LH: loop header
LB: loop body
LE: loop exit
PB: predicated region body
PF: predicated region fallthrough
CT: control target
= control target key end

     0   :  { %s953_s1 = inlined_call_operand.vmem [shape: bf16[128,128], index: 1, kind: input, shape index: {}]   ;;  %s954_s0 = inlined_call_operand.vmem [shape: bf16[128,128], index: 0, kind: input, shape index: {}]   ;;  %s955_s2 = inlined_call_operand.vmem [shape: f32[1,128], index: 2, kind: input, shape index: {}]   ;;  %s956_s3 = inlined_call_operand.vmem [shape: f32[128,128], index: 3, kind: output, shape index: {}]  }
   0x1   :  { %v556_v0 = vld [vmem:[%s953_s1 + $0x38] sm:$0xff]   ;;  %v557_v1 = vld [vmem:[%s953_s1 + $0x30] sm:$0xff]   ;;  %v558_v2 = vld [vmem:[%s953_s1 + $0x28] sm:$0xff]  }
   0x2   :  { %508 = vmatprep.subr.bf16.mxu0 %v556_v0  ;;  %540 = vmatprep.subr.bf16.mxu1 %v556_v0  ;;  %v559_v3 = vld [vmem:[%s953_s1 + $0x20] sm:$0xff]   ;;  %v560_v6 = vld [vmem:[%s953_s1 + $0x18] sm:$0xff]   ;;  %v561_v7 = vld [vmem:[%s953_s1 + $0x10] sm:$0xff]  }
   0x3   :  { %509 = vmatpush3.bf16.msra.mxu0 %v556_v0  ;;  %548 = vmatpush3.bf16.msra.mxu1 %v556_v0  ;;  %v564_v4 = vld [vmem:[%s954_s0] sm:$0xff]   ;;  %v562_v8 = vld [vmem:[%s953_s1 + $0x8] sm:$0xff]   ;;  %v568_v12 = vld [vmem:[%s954_s0 + $0x10] sm:$0xff]  }
   0x4   :  { %510 = vmatprep.subr.bf16.mxu0 %v557_v1  ;;  %541 = vmatprep.subr.bf16.mxu1 %v557_v1  ;;  %v565_v5 = vld [vmem:[%s954_s0 + $0x20] sm:$0xff]   ;;  %v566_v10 = vld [vmem:[%s954_s0 + $0x8] sm:$0xff]   ;;  %v570_v13 = vld [vmem:[%s954_s0 + $0x30] sm:$0xff]  }
   0x5   :  { %524 = vmatprep.mubr.bf16.mxu0 %v564_v4  ;;  %532 = vmatprep.mubr.bf16.mxu1 %v565_v5  ;;  %v563_v9 = vld [vmem:[%s953_s1] sm:$0xff]   ;;  %v567_v11 = vld [vmem:[%s954_s0 + $0x28] sm:$0xff]   ;;  %v569_v14 = vld [vmem:[%s954_s0 + $0x18] sm:$0xff]  }
   0x6   :  { %v571_v15 = vld [vmem:[%s954_s0 + $0x38] sm:$0xff]   ;;  %v475_v16 = vld [vmem:[%s955_s2] ss:$0 sm:$0xff] }
   0x7   :  { %511 = vmatpush3.bf16.msra.mxu0 %v557_v1  ;;  %549 = vmatpush3.bf16.msra.mxu1 %v557_v1 }
   0x8   :  { %512 = vmatprep.subr.bf16.mxu0 %v558_v2  ;;  %542 = vmatprep.subr.bf16.mxu1 %v558_v2 }
   0xb   :  { %513 = vmatpush3.bf16.msra.mxu0 %v558_v2  ;;  %550 = vmatpush3.bf16.msra.mxu1 %v558_v2 }
   0xc   :  { %514 = vmatprep.subr.bf16.mxu0 %v559_v3  ;;  %543 = vmatprep.subr.bf16.mxu1 %v559_v3 }
   0xf   :  { %515 = vmatpush3.bf16.msra.mxu0 %v559_v3  ;;  %551 = vmatpush3.bf16.msra.mxu1 %v559_v3 }
  0x10   :  { %516 = vmatprep.subr.bf16.mxu0 %v560_v6  ;;  %544 = vmatprep.subr.bf16.mxu1 %v560_v6 }
  0x13   :  { %517 = vmatpush3.bf16.msra.mxu0 %v560_v6  ;;  %552 = vmatpush3.bf16.msra.mxu1 %v560_v6 }
  0x14   :  { %518 = vmatprep.subr.bf16.mxu0 %v561_v7  ;;  %545 = vmatprep.subr.bf16.mxu1 %v561_v7 }
  0x17   :  { %519 = vmatpush3.bf16.msra.mxu0 %v561_v7  ;;  %553 = vmatpush3.bf16.msra.mxu1 %v561_v7 }
  0x18   :  { %520 = vmatprep.subr.bf16.mxu0 %v562_v8  ;;  %546 = vmatprep.subr.bf16.mxu1 %v562_v8 }
  0x1b   :  { %521 = vmatpush3.bf16.msra.mxu0 %v562_v8  ;;  %554 = vmatpush3.bf16.msra.mxu1 %v562_v8 }
  0x1c   :  { %522 = vmatprep.subr.bf16.mxu0 %v563_v9  ;;  %547 = vmatprep.subr.bf16.mxu1 %v563_v9 }
  0x1f   :  { %523 = vmatpush3.bf16.msra.mxu0 %v563_v9  ;;  %555 = vmatpush3.bf16.msra.mxu1 %v563_v9 }
  0x22   :  { %525 = vmatmul.mubr.bf16.vlgmr.msra.gmra.mxu0 %v566_v10  ;;  %533 = vmatmul.mubr.bf16.vlgmr.msra.gmra.mxu1 %v567_v11 }
  0x23   :  { %528 = vmatprep.mubr.bf16.mxu0 %v568_v12  ;;  %536 = vmatprep.mubr.bf16.mxu1 %v570_v13 }
  0x2a   :  { %529 = vmatmul.mubr.bf16.gmra.mxu0 %v569_v14  ;;  %537 = vmatmul.mubr.bf16.gmra.mxu1 %v571_v15 }
  0xe2   :  { %v526_v17 = vpop.f32.mrf.mxu0  ;;  %v534_v18 = vpop.f32.mrf.mxu1 }
  0xe3   :  { %v707_v19 = vadd.f32 %v526_v17, %v475_v16  ;;  %v709_v20 = vadd.f32 %v534_v18, %v475_v16 }
  0xe4   :  { %v184_v21 = vpop.f32.mrf.mxu0  ;;  %v216_v22 = vpop.f32.mrf.mxu1 }
  0xe5   :  { %v711_v23 = vadd.f32 %v475_v16, %v184_v21  ;;  %v257_v24 = vmul.f32 %v709_v20, %v709_v20  ;;  %v249_v25 = vmul.f32 %v707_v19, %v707_v19  ;;  %v719_v31 = vadd.f32 %v475_v16, %v216_v22 }
  0xe6   :  { %v527_v26 = vpop.f32.mrf.mxu0  ;;  %v535_v27 = vpop.f32.mrf.mxu1 }
  0xe7   :  { %v717_v28 = vadd.f32 %v527_v26, %v475_v16  ;;  %283 = vadd.xlane.f32.xlu0 %v257_v24  ;;  %267 = vadd.xlane.f32.xlu1 %v249_v25  ;;  %v721_v32 = vadd.f32 %v535_v27, %v475_v16  ;;  %v247_v34 = vmul.f32 %v711_v23, %v711_v23 }
  0xe8   :  { %v187_v29 = vpop.f32.mrf.mxu0  ;;  %v219_v30 = vpop.f32.mrf.mxu1  ;;  %v255_v41 = vmul.f32 %v719_v31, %v719_v31 }
  0xe9   :  { %v250_v33 = vmul.f32 %v717_v28, %v717_v28  ;;  %v727_v38 = vadd.f32 %v475_v16, %v187_v29  ;;  %v729_v39 = vadd.f32 %v475_v16, %v219_v30  ;;  %v258_v40 = vmul.f32 %v721_v32, %v721_v32 }
  0xea   :  { %v530_v35 = vpop.f32.mrf.mxu0  ;;  %v538_v36 = vpop.f32.mrf.mxu1 }
  0xeb   :  { %269 = vadd.xlane.f32.xlu1 %v250_v33  ;;  %263 = vadd.xlane.f32.xlu0 %v247_v34  ;;  %v735_v44 = vadd.f32 %v530_v35, %v475_v16  ;;  %v256_v46 = vmul.f32 %v729_v39, %v729_v39  ;;  %v248_v47 = vmul.f32 %v727_v38, %v727_v38 }
  0xec   :  { %v200_v37 = vpop.f32.mrf.mxu0  ;;  %v232_v43 = vpop.f32.mrf.mxu1  ;;  %v759_v59 = vadd.f32 %v538_v36, %v475_v16 }
  0xed   :  { %v743_v50 = vadd.f32 %v475_v16, %v200_v37  ;;  %v253_v53 = vmul.f32 %v735_v44, %v735_v44  ;;  %v751_v55 = vadd.f32 %v475_v16, %v232_v43 }
  0xee   :  { %v531_v42 = vpop.f32.mrf.mxu0  ;;  %v539_v49 = vpop.f32.mrf.mxu1  ;;  %v261_v0 = vmul.f32 %v759_v59, %v759_v59 }
  0xef   :  { %285 = vadd.xlane.f32.xlu1 %v258_v40  ;;  %279 = vadd.xlane.f32.xlu0 %v255_v41  ;;  %v737_v45 = vadd.f32 %v531_v42, %v475_v16  ;;  %v251_v58 = vmul.f32 %v743_v50, %v743_v50  ;;  %v761_v60 = vadd.f32 %v539_v49, %v475_v16 }
  0xf0   :  { %v203_v48 = vpop.f32.mrf.mxu0  ;;  %v235_v54 = vpop.f32.mrf.mxu1  ;;  %v259_v62 = vmul.f32 %v751_v55, %v751_v55 }
  0xf1   :  { %v745_v51 = vadd.f32 %v475_v16, %v203_v48  ;;  %v254_v52 = vmul.f32 %v737_v45, %v737_v45  ;;  %v753_v56 = vadd.f32 %v475_v16, %v235_v54  ;;  %v262_v63 = vmul.f32 %v761_v60, %v761_v60 }
  0xf3   :  { %281 = vadd.xlane.f32.xlu1 %v256_v46  ;;  %265 = vadd.xlane.f32.xlu0 %v248_v47  ;;  %v252_v57 = vmul.f32 %v745_v51, %v745_v51  ;;  %v260_v61 = vmul.f32 %v753_v56, %v753_v56 }
  0xf7   :  { %277 = vadd.xlane.f32.xlu1 %v254_v52  ;;  %275 = vadd.xlane.f32.xlu0 %v253_v53 }
  0xfb   :  { %273 = vadd.xlane.f32.xlu1 %v252_v57  ;;  %271 = vadd.xlane.f32.xlu0 %v251_v58 }
  0xff   :  { %289 = vadd.xlane.f32.xlu1 %v260_v61  ;;  %287 = vadd.xlane.f32.xlu0 %v259_v62 }
 0x103   :  { %293 = vadd.xlane.f32.xlu1 %v262_v63  ;;  %291 = vadd.xlane.f32.xlu0 %v261_v0 }
 0x170   :  { %v284_v1 = vpop.xlane.xlu0 %283  ;;  %v268_v2 = vpop.xlane.xlu1 %267 }
 0x171   :  { %572 = vrsqrt.f32 %v284_v1  ;;  %vm367_vm0 = vcmp.eq.f32.partialorder %v284_v1, inf  ;;  %vm369_vm1 = vcmp.eq.f32.partialorder %v284_v1, 0.0  ;;  %v370_v12 = vand.u32 2147483648, %v284_v1 }
 0x172   :  { %574 = vrsqrt.f32 %v268_v2  ;;  %vm311_vm2 = vcmp.eq.f32.partialorder %v268_v2, inf  ;;  %vm313_vm3 = vcmp.eq.f32.partialorder %v268_v2, 0.0  ;;  %v314_v14 = vand.u32 2147483648, %v268_v2 }
 0x174   :  { %v270_v3 = vpop.xlane.xlu1 %269  ;;  %v264_v4 = vpop.xlane.xlu0 %263 }
 0x175   :  { %576 = vrsqrt.f32 %v270_v3  ;;  %vm318_vm4 = vcmp.eq.f32.partialorder %v270_v3, inf  ;;  %vm320_vm5 = vcmp.eq.f32.partialorder %v270_v3, 0.0  ;;  %v321_v18 = vand.u32 2147483648, %v270_v3 }
 0x176   :  { %578 = vrsqrt.f32 %v264_v4  ;;  %vm297_vm6 = vcmp.eq.f32.partialorder %v264_v4, inf  ;;  %vm299_vm7 = vcmp.eq.f32.partialorder %v264_v4, 0.0  ;;  %v300_v30 = vand.u32 2147483648, %v264_v4 }
 0x178   :  { %v771_v5 = vpop.xlane.xlu1 %285  ;;  %v773_v6 = vpop.xlane.xlu0 %279 }
 0x179   :  { %580 = vrsqrt.f32 %v771_v5  ;;  %vm374_vm8 = vcmp.eq.f32.partialorder %v771_v5, inf  ;;  %vm376_vm9 = vcmp.eq.f32.partialorder %v771_v5, 0.0  ;;  %v377_v40 = vand.u32 2147483648, %v771_v5 }
 0x17a   :  { %582 = vrsqrt.f32 %v773_v6  ;;  %vm353_vm10 = vcmp.eq.f32.partialorder %v773_v6, inf  ;;  %vm355_vm11 = vcmp.eq.f32.partialorder %v773_v6, 0.0  ;;  %v356_v54 = vand.u32 2147483648, %v773_v6 }
 0x17c   :  { %v777_v7 = vpop.xlane.xlu1 %281  ;;  %v779_v8 = vpop.xlane.xlu0 %265 }
 0x17d   :  { %584 = vrsqrt.f32 %v777_v7  ;;  %vm360_vm12 = vcmp.eq.f32.partialorder %v777_v7, inf  ;;  %vm362_vm13 = vcmp.eq.f32.partialorder %v777_v7, 0.0  ;;  %v363_v0 = vand.u32 2147483648, %v777_v7 }
 0x17e   :  { %v573_v9 = vpop.eup %572  ;;  %586 = vrsqrt.f32 %v779_v8  ;;  %vm304_vm14 = vcmp.eq.f32.partialorder %v779_v8, inf  ;;  %vm306_vm15 = vcmp.eq.f32.partialorder %v779_v8, 0.0 }
 0x17f   :  { %v575_v10 = vpop.eup %574  ;;  %v366_v11 = vmul.f32 %v573_v9, %v284_v1 }
 0x180   :  { %v310_v13 = vmul.f32 %v575_v10, %v268_v2  ;;  %v783_v15 = vpop.xlane.xlu1 %277  ;;  %v785_v16 = vpop.xlane.xlu0 %275 }
 0x181   :  { %v368_v17 = vsel %vm367_vm0, %v284_v1, %v366_v11  ;;  %588 = vrsqrt.f32 %v783_v15  ;;  %vm346_vm0 = vcmp.eq.f32.partialorder %v783_v15, inf }
 0x182   :  { %v577_v21 = vpop.eup %576  ;;  %v371_v22 = vsel %vm369_vm1, %v370_v12, %v368_v17  ;;  %v312_v24 = vsel %vm311_vm2, %v268_v2, %v310_v13  ;;  %590 = vrsqrt.f32 %v785_v16  ;;  %v307_v12 = vand.u32 2147483648, %v779_v8 }
 0x183   :  { %v579_v25 = vpop.eup %578  ;;  %v417_v26 = vadd.f32 1e-07, %v371_v22  ;;  %v315_v27 = vsel %vm313_vm3, %v314_v14, %v312_v24  ;;  %v317_v29 = vmul.f32 %v577_v21, %v270_v3  ;;  %vm348_vm1 = vcmp.eq.f32.partialorder %v783_v15, 0.0 }
 0x184   :  { %v409_v33 = vadd.f32 1e-07, %v315_v27  ;;  %v296_v34 = vmul.f32 %v579_v25, %v264_v4  ;;  %v793_v35 = vpop.xlane.xlu1 %273  ;;  %v795_v36 = vpop.xlane.xlu0 %271  ;;  %vm339_vm2 = vcmp.eq.f32.partialorder %v785_v16, inf  ;;  %vm341_vm3 = vcmp.eq.f32.partialorder %v785_v16, 0.0 }
 0x185   :  { %592 = vrcp.f32 %v417_v26  ;;  %v319_v37 = vsel %vm318_vm4, %v270_v3, %v317_v29  ;;  %v349_v26 = vand.u32 2147483648, %v783_v15  ;;  %v342_v29 = vand.u32 2147483648, %v785_v16 }
 0x186   :  { %v581_v41 = vpop.eup %580  ;;  %594 = vrcp.f32 %v409_v33  ;;  %v322_v42 = vsel %vm320_vm5, %v321_v18, %v319_v37  ;;  %v298_v43 = vsel %vm297_vm6, %v264_v4, %v296_v34  ;;  %vm332_vm4 = vcmp.eq.f32.partialorder %v793_v35, inf }
 0x187   :  { %v583_v46 = vpop.eup %582  ;;  %v410_v47 = vadd.f32 1e-07, %v322_v42  ;;  %v301_v48 = vsel %vm299_vm7, %v300_v30, %v298_v43  ;;  %v373_v49 = vmul.f32 %v581_v41, %v771_v5  ;;  %596 = vrsqrt.f32 %v793_v35 }
 0x188   :  { %v407_v52 = vadd.f32 1e-07, %v301_v48  ;;  %v352_v53 = vmul.f32 %v583_v46, %v773_v6  ;;  %598 = vrsqrt.f32 %v795_v36  ;;  %v809_v57 = vpop.xlane.xlu1 %289  ;;  %v822_v1 = vpop.xlane.xlu0 %287  ;;  %vm334_vm5 = vcmp.eq.f32.partialorder %v793_v35, 0.0 }
 0x189   :  { %600 = vrcp.f32 %v410_v47  ;;  %v375_v58 = vsel %vm374_vm8, %v771_v5, %v373_v49  ;;  %vm325_vm6 = vcmp.eq.f32.partialorder %v795_v36, inf  ;;  %vm327_vm7 = vcmp.eq.f32.partialorder %v795_v36, 0.0 }
 0x18a   :  { %v585_v61 = vpop.eup %584  ;;  %602 = vrcp.f32 %v407_v52  ;;  %v378_v62 = vsel %vm376_vm9, %v377_v40, %v375_v58  ;;  %v354_v63 = vsel %vm353_vm10, %v773_v6, %v352_v53  ;;  %vm388_vm8 = vcmp.eq.f32.partialorder %v809_v57, inf }
 0x18b   :  { %v587_v2 = vpop.eup %586  ;;  %v418_v3 = vadd.f32 1e-07, %v378_v62  ;;  %v357_v4 = vsel %vm355_vm11, %v356_v54, %v354_v63  ;;  %v359_v9 = vmul.f32 %v585_v61, %v777_v7  ;;  %604 = vrsqrt.f32 %v809_v57 }
 0x18c   :  { %v415_v10 = vadd.f32 1e-07, %v357_v4  ;;  %v303_v5 = vmul.f32 %v587_v2, %v779_v8  ;;  %v836_v6 = vpop.xlane.xlu1 %293  ;;  %v328_v54 = vand.u32 2147483648, %v795_v36  ;;  %vm390_vm9 = vcmp.eq.f32.partialorder %v809_v57, 0.0 }
 0x18d   :  { %606 = vrcp.f32 %v418_v3  ;;  %v361_v11 = vsel %vm360_vm12, %v777_v7, %v359_v9  ;;  %v847_v7 = vpop.xlane.xlu0 %291  ;;  %vm381_vm10 = vcmp.eq.f32.partialorder %v822_v1, inf  ;;  %vm383_vm11 = vcmp.eq.f32.partialorder %v822_v1, 0.0 }
 0x18e   :  { %v589_v13 = vpop.eup %588  ;;  %608 = vrcp.f32 %v415_v10  ;;  %v364_v14 = vsel %vm362_vm13, %v363_v0, %v361_v11  ;;  %v305_v17 = vsel %vm304_vm14, %v779_v8, %v303_v5  ;;  %vm402_vm12 = vcmp.eq.f32.partialorder %v836_v6, inf }
 0x18f   :  { %v591_v18 = vpop.eup %590  ;;  %v416_v21 = vadd.f32 1e-07, %v364_v14  ;;  %v308_v22 = vsel %vm306_vm15, %v307_v12, %v305_v17  ;;  %v345_v24 = vmul.f32 %v589_v13, %v783_v15  ;;  %610 = vrsqrt.f32 %v822_v1 }
 0x190   :  { %v408_v25 = vadd.f32 1e-07, %v308_v22  ;;  %v338_v27 = vmul.f32 %v591_v18, %v785_v16  ;;  %612 = vrsqrt.f32 %v836_v6  ;;  %v405_v22 = vand.u32 2147483648, %v836_v6 }
 0x191   :  { %614 = vrcp.f32 %v416_v21  ;;  %v347_v8 = vsel %vm346_vm0, %v783_v15, %v345_v24  ;;  %vm404_vm13 = vcmp.eq.f32.partialorder %v836_v6, 0.0  ;;  %vm395_vm14 = vcmp.eq.f32.partialorder %v847_v7, inf }
 0x192   :  { %v593_v30 = vpop.eup %592  ;;  %616 = vrcp.f32 %v408_v25  ;;  %v350_v33 = vsel %vm348_vm1, %v349_v26, %v347_v8  ;;  %v340_v34 = vsel %vm339_vm2, %v785_v16, %v338_v27  ;;  %vm397_vm15 = vcmp.eq.f32.partialorder %v847_v7, 0.0 }
 0x193   :  { %v595_v37 = vpop.eup %594  ;;  %v444_v40 = vmul.f32 %v593_v30, %v709_v20  ;;  %v414_v41 = vadd.f32 1e-07, %v350_v33  ;;  %v343_v42 = vsel %vm341_vm3, %v342_v29, %v340_v34  ;;  %618 = vrsqrt.f32 %v847_v7 }
 0x194   :  { %v597_v43 = vpop.eup %596  ;;  %v428_v46 = vmul.f32 %v595_v37, %v707_v19  ;;  %v413_v47 = vadd.f32 1e-07, %v343_v42  ;;  %v335_v19 = vand.u32 2147483648, %v793_v35 }
 0x195   :  { %v599_v48 = vpop.eup %598  ;;  %465 = vst [vmem:[%s956_s3 + $0x50] sm:$0xff] %v444_v40  ;;  %620 = vrcp.f32 %v414_v41  ;;  %v331_v15 = vmul.f32 %v597_v43, %v793_v35 }
 0x196   :  { %v601_v16 = vpop.eup %600  ;;  %457 = vst [vmem:[%s956_s3 + $0x10] sm:$0xff] %v428_v46  ;;  %622 = vrcp.f32 %v413_v47  ;;  %v324_v20 = vmul.f32 %v599_v48, %v795_v36 }
 0x197   :  { %v603_v49 = vpop.eup %602  ;;  %v430_v52 = vmul.f32 %v601_v16, %v717_v28  ;;  %v333_v53 = vsel %vm332_vm4, %v793_v35, %v331_v15 }
 0x198   :  { %v605_v58 = vpop.eup %604  ;;  %v424_v61 = vmul.f32 %v603_v49, %v711_v23  ;;  %v336_v62 = vsel %vm334_vm5, %v335_v19, %v333_v53  ;;  %v326_v63 = vsel %vm325_vm6, %v795_v36, %v324_v20  ;;  %v391_v23 = vand.u32 2147483648, %v809_v57 }
 0x199   :  { %458 = vst [vmem:[%s956_s3 + $0x18] sm:$0xff] %v430_v52  ;;  %v412_v0 = vadd.f32 1e-07, %v336_v62  ;;  %v329_v28 = vsel %vm327_vm7, %v328_v54, %v326_v63  ;;  %v387_v35 = vmul.f32 %v605_v58, %v809_v57 }
 0x19a   :  { %v607_v2 = vpop.eup %606  ;;  %455 = vst [vmem:[%s956_s3] sm:$0xff] %v424_v61  ;;  %v411_v3 = vadd.f32 1e-07, %v329_v28 }
 0x19b   :  { %v609_v4 = vpop.eup %608  ;;  %v446_v36 = vmul.f32 %v607_v2, %v721_v32  ;;  %624 = vrcp.f32 %v412_v0  ;;  %v389_v9 = vsel %vm388_vm8, %v809_v57, %v387_v35 }
 0x19c   :  { %v611_v10 = vpop.eup %610  ;;  %v440_v5 = vmul.f32 %v609_v4, %v719_v31  ;;  %626 = vrcp.f32 %v411_v3  ;;  %v392_v11 = vsel %vm390_vm9, %v391_v23, %v389_v9  ;;  %v384_v31 = vand.u32 2147483648, %v822_v1 }
 0x19d   :  { %v613_v12 = vpop.eup %612  ;;  %466 = vst [vmem:[%s956_s3 + $0x58] sm:$0xff] %v446_v36  ;;  %v420_v13 = vadd.f32 1e-07, %v392_v11  ;;  %v380_v14 = vmul.f32 %v611_v10, %v822_v1 }
 0x19e   :  { %v615_v32 = vpop.eup %614  ;;  %463 = vst [vmem:[%s956_s3 + $0x40] sm:$0xff] %v440_v5  ;;  %v401_v57 = vmul.f32 %v613_v12, %v836_v6 }
 0x19f   :  { %v617_v17 = vpop.eup %616  ;;  %v442_v18 = vmul.f32 %v615_v32, %v729_v39  ;;  %628 = vrcp.f32 %v420_v13  ;;  %v382_v21 = vsel %vm381_vm10, %v822_v1, %v380_v14 }
 0x1a0   :  { %v619_v24 = vpop.eup %618  ;;  %v426_v25 = vmul.f32 %v617_v17, %v727_v38  ;;  %v385_v26 = vsel %vm383_vm11, %v384_v31, %v382_v21  ;;  %v403_v27 = vsel %vm402_vm12, %v836_v6, %v401_v57  ;;  %v398_v38 = vand.u32 2147483648, %v847_v7 }
 0x1a1   :  { %464 = vst [vmem:[%s956_s3 + $0x48] sm:$0xff] %v442_v18  ;;  %v419_v8 = vadd.f32 1e-07, %v385_v26  ;;  %v406_v29 = vsel %vm404_vm13, %v405_v22, %v403_v27  ;;  %v394_v39 = vmul.f32 %v619_v24, %v847_v7 }
 0x1a2   :  { %v621_v30 = vpop.eup %620  ;;  %456 = vst [vmem:[%s956_s3 + $0x8] sm:$0xff] %v426_v25  ;;  %v422_v1 = vadd.f32 1e-07, %v406_v29 }
 0x1a3   :  { %v623_v33 = vpop.eup %622  ;;  %v438_v6 = vmul.f32 %v621_v30, %v737_v45  ;;  %630 = vrcp.f32 %v419_v8  ;;  %v396_v34 = vsel %vm395_vm14, %v847_v7, %v394_v39 }
 0x1a4   :  { %v436_v37 = vmul.f32 %v623_v33, %v735_v44  ;;  %632 = vrcp.f32 %v422_v1  ;;  %v399_v40 = vsel %vm397_vm15, %v398_v38, %v396_v34 }
 0x1a5   :  { %462 = vst [vmem:[%s956_s3 + $0x38] sm:$0xff] %v438_v6  ;;  %v421_v41 = vadd.f32 1e-07, %v399_v40 }
 0x1a6   :  { %461 = vst [vmem:[%s956_s3 + $0x30] sm:$0xff] %v436_v37 }
 0x1a7   :  { %634 = vrcp.f32 %v421_v41 }
 0x1a8   :  { %v625_v45 = vpop.eup %624 }
 0x1a9   :  { %v627_v42 = vpop.eup %626  ;;  %v434_v43 = vmul.f32 %v625_v45, %v745_v51 }
 0x1aa   :  { %v432_v7 = vmul.f32 %v627_v42, %v743_v50 }
 0x1ab   :  { %460 = vst [vmem:[%s956_s3 + $0x28] sm:$0xff] %v434_v43 }
 0x1ac   :  { %v629_v44 = vpop.eup %628  ;;  %459 = vst [vmem:[%s956_s3 + $0x20] sm:$0xff] %v432_v7 }
 0x1ad   :  { %v450_v46 = vmul.f32 %v629_v44, %v753_v56 }
 0x1af   :  { %468 = vst [vmem:[%s956_s3 + $0x68] sm:$0xff] %v450_v46 }
 0x1b0   :  { %v631_v47 = vpop.eup %630 }
 0x1b1   :  { %v633_v48 = vpop.eup %632  ;;  %v448_v51 = vmul.f32 %v631_v47, %v751_v55 }
 0x1b2   :  { %v454_v50 = vmul.f32 %v633_v48, %v761_v60 }
 0x1b3   :  { %467 = vst [vmem:[%s956_s3 + $0x60] sm:$0xff] %v448_v51 }
 0x1b4   :  { %v635_v15 = vpop.eup %634  ;;  %470 = vst [vmem:[%s956_s3 + $0x78] sm:$0xff] %v454_v50 }
 0x1b5   :  { %v452_v56 = vmul.f32 %v635_v15, %v759_v59 }
 0x1b7   :  { %469 = vst [vmem:[%s956_s3 + $0x70] sm:$0xff] %v452_v56 }

// kernel: cut_forward_impl.61
= control target key start
LH: loop header
LB: loop body
LE: loop exit
PB: predicated region body
PF: predicated region fallthrough
CT: control target
= control target key end

     0   :  { %s1523_s9 = smov 0   ;;  %s1934_s0 = inlined_call_operand.vmem [shape: f32[16,16,128], index: 0, kind: input, shape index: {}]   ;;  %s1935_s1 = inlined_call_operand.vmem [shape: f32[16,16,128], index: 1, kind: input, shape index: {}]   ;;  %s1936_s2 = inlined_call_operand.vmem [shape: f32[16,16,1], index: 2, kind: output, shape index: {}]  }
   0x1 LB: > { %s1289_s10 = sadd.s32 4294967295, %s1506_s9   ;;  %p1293_p0 = scmp.ge.s32.totalorder %s1506_s9, 1  ;;  %s1506_s9 = sphi %s1523_s9, %s12_s9  }
   0x2   : > { %p126_p1 = scmp.lt.s32.totalorder %s1506_s9, 3 }
   0x4   : > { %p127_p2 = pnand %p1293_p0, %p126_p1 }
   0x5   : > { %s1294_s11 = sshll.u32 (!%p127_p2), %s1289_s10, 3 }
   0x6   : > { %130 = sbr.rel (%p127_p2) target bundleno = 571 (0x23b), region = 28  ;;  %p157_p3 = scmp.lt.s32.totalorder (!%p127_p2), %s1294_s11, 15 }
   0xb   : > { %s1942_s11 = smov (!%p157_p3, %s1294_s11), 15  ;;  %v857_v48 = vlaneseq  ;;  %vm913_vm2 = vcmask 130048   ;;  %vm1202_vm3 = vcmask 7168  }
   0xc   : > { %s1531_s12 = sshll.u32 %s1942_s11, 4 }
   0xd   : > { %s1537_s15 = scalar_lea.vmem %s1935_s1, %s1531_s12  ;;  %s1546_s18 = scalar_lea.vmem %s1934_s0, %s1531_s12  ;;  %v858_v49 = vshrl.u32 %v857_v48, 7  ;;  %v861_v51 = vand.u32 127, %v857_v48 }
   0xe   : > { %v194_v0 = vld [vmem:[%s1537_s15 + $0x8] sm:$0xff]  ;;  %v196_v1 = vld [vmem:[%s1537_s15 + $0x18] sm:$0xff]  ;;  %v193_v2 = vld [vmem:[%s1537_s15] sm:$0xff]  ;;  %s1866_s21 = scalar_lea.vmem %s1936_s2, %s1531_s12 }
   0xf   : > { %1340 = vmatprep.subr.mxu0 %v194_v0  ;;  %1347 = vmatprep.subr.mxu1 %v196_v1  ;;  %v195_v3 = vld [vmem:[%s1537_s15 + $0x10] sm:$0xff]  ;;  %v177_v4 = vld [vmem:[%s1546_s18] sm:$0xff]  ;;  %v198_v8 = vld [vmem:[%s1537_s15 + $0x28] sm:$0xff]  ;;  %v859_v50 = vadd.s32 8, %v858_v49  ;;  %vm1586_vm1 = vcmp.eq.s32.totalorder %v858_v49, %v861_v51 }
  0x10   : > { %1341 = vmatpush3.xpose.msra.mxu0 %v194_v0  ;;  %1348 = vmatpush3.xpose.msra.mxu1 %v196_v1  ;;  %v179_v5 = vld [vmem:[%s1546_s18 + $0x10] sm:$0xff]  ;;  %v209_v6 = vmul.f32 %v193_v2, %v177_v4  ;;  %v1553_v9 = vld [vmem:[%s1537_s15 + $0x38] sm:$0xff]  ;;  %v178_v10 = vld [vmem:[%s1546_s18 + $0x8] sm:$0xff] }
  0x11   : > { %1342 = vmatprep.subr.mxu0 %v193_v2  ;;  %1349 = vmatprep.subr.mxu1 %v195_v3  ;;  %v211_v7 = vmul.f32 %v195_v3, %v179_v5  ;;  %v180_v11 = vld [vmem:[%s1546_s18 + $0x18] sm:$0xff]  ;;  %v197_v12 = vld [vmem:[%s1537_s15 + $0x20] sm:$0xff]  ;;  %v199_v13 = vld [vmem:[%s1537_s15 + $0x30] sm:$0xff]  ;;  %v210_v17 = vmul.f32 %v194_v0, %v178_v10  ;;  %vm1582_vm0 = vcmp.eq.s32.totalorder %v859_v50, %v861_v51 }
  0x12   : > { %1344 = vmatprep.mubr.f32.mxu0 %v177_v4  ;;  %1351 = vmatprep.mubr.f32.mxu1 %v179_v5  ;;  %v181_v14 = vld [vmem:[%s1546_s18 + $0x20] sm:$0xff]  ;;  %v183_v15 = vld [vmem:[%s1546_s18 + $0x30] sm:$0xff]  ;;  %v212_v16 = vmul.f32 %v196_v1, %v180_v11  ;;  %v202_v18 = vld [vmem:[%s1537_s15 + $0x48] sm:$0xff] }
  0x13   : > { %229 = vadd.xlane.f32.xlu1 %v211_v7  ;;  %225 = vadd.xlane.f32.xlu0 %v209_v6  ;;  %v204_v19 = vld [vmem:[%s1537_s15 + $0x58] sm:$0xff]  ;;  %v182_v20 = vld [vmem:[%s1546_s18 + $0x28] sm:$0xff]  ;;  %v201_v22 = vld [vmem:[%s1537_s15 + $0x40] sm:$0xff]  ;;  %v213_v27 = vmul.f32 %v197_v12, %v181_v14  ;;  %v215_v37 = vmul.f32 %v199_v13, %v183_v15 }
  0x14   : > { %1343 = vmatpush3.xpose.msra.mxu0 %v193_v2  ;;  %1350 = vmatpush3.xpose.msra.mxu1 %v195_v3  ;;  %v184_v21 = vld [vmem:[%s1546_s18 + $0x38] sm:$0xff]  ;;  %v203_v23 = vld [vmem:[%s1537_s15 + $0x50] sm:$0xff]  ;;  %v185_v24 = vld [vmem:[%s1546_s18 + $0x40] sm:$0xff]  ;;  %v214_v26 = vmul.f32 %v198_v8, %v182_v20 }
  0x15   : > { %1354 = vmatprep.subr.mxu0 %v198_v8  ;;  %1361 = vmatprep.subr.mxu1 %v1553_v9  ;;  %v187_v25 = vld [vmem:[%s1546_s18 + $0x50] sm:$0xff]  ;;  %v206_v28 = vld [vmem:[%s1537_s15 + $0x68] sm:$0xff]  ;;  %v208_v29 = vld [vmem:[%s1537_s15 + $0x78] sm:$0xff]  ;;  %v216_v36 = vmul.f32 %v1553_v9, %v184_v21  ;;  %v217_v41 = vmul.f32 %v201_v22, %v185_v24 }
  0x16   : > { %v186_v30 = vld [vmem:[%s1546_s18 + $0x48] sm:$0xff]  ;;  %v188_v31 = vld [vmem:[%s1546_s18 + $0x58] sm:$0xff]  ;;  %v205_v32 = vld [vmem:[%s1537_s15 + $0x60] sm:$0xff]  ;;  %v219_v43 = vmul.f32 %v203_v23, %v187_v25 }
  0x17   : > { %1345 = vmatmul.mubr.f32.vlgmr.msra.gmra.mxu0 %v178_v10  ;;  %1352 = vmatmul.mubr.f32.vlgmr.msra.gmra.mxu1 %v180_v11  ;;  %v207_v33 = vld [vmem:[%s1537_s15 + $0x70] sm:$0xff]  ;;  %v189_v34 = vld [vmem:[%s1546_s18 + $0x60] sm:$0xff]  ;;  %v190_v38 = vld [vmem:[%s1546_s18 + $0x68] sm:$0xff]  ;;  %v218_v40 = vmul.f32 %v202_v18, %v186_v30  ;;  %v220_v42 = vmul.f32 %v204_v19, %v188_v31 }
  0x18   : > { %1355 = vmatpush3.xpose.msra.mxu0 %v198_v8  ;;  %1362 = vmatpush3.xpose.msra.mxu1 %v1553_v9  ;;  %v191_v35 = vld [vmem:[%s1546_s18 + $0x70] sm:$0xff]  ;;  %v192_v39 = vld [vmem:[%s1546_s18 + $0x78] sm:$0xff]  ;;  %v222_v44 = vmul.f32 %v206_v28, %v190_v38  ;;  %v221_v45 = vmul.f32 %v205_v32, %v189_v34 }
  0x19   : > { %1356 = vmatprep.subr.mxu0 %v197_v12  ;;  %1363 = vmatprep.subr.mxu1 %v199_v13  ;;  %v224_v46 = vmul.f32 %v208_v29, %v192_v39  ;;  %v223_v47 = vmul.f32 %v207_v33, %v191_v35 }
  0x1a   : > { %1358 = vmatprep.mubr.f32.mxu0 %v181_v14  ;;  %1365 = vmatprep.mubr.f32.mxu1 %v183_v15 }
  0x1b   : > { %231 = vadd.xlane.f32.xlu1 %v212_v16  ;;  %227 = vadd.xlane.f32.xlu0 %v210_v17 }
  0x1c   : > { %1357 = vmatpush3.xpose.msra.mxu0 %v197_v12  ;;  %1364 = vmatpush3.xpose.msra.mxu1 %v199_v13 }
  0x1d   : > { %1368 = vmatprep.subr.mxu0 %v202_v18  ;;  %1375 = vmatprep.subr.mxu1 %v204_v19 }
  0x1f   : > { %1359 = vmatmul.mubr.f32.vlgmr.msra.gmra.mxu0 %v182_v20  ;;  %1366 = vmatmul.mubr.f32.vlgmr.msra.gmra.mxu1 %v184_v21 }
  0x20   : > { %1369 = vmatpush3.xpose.msra.mxu0 %v202_v18  ;;  %1376 = vmatpush3.xpose.msra.mxu1 %v204_v19 }
  0x21   : > { %1370 = vmatprep.subr.mxu0 %v201_v22  ;;  %1377 = vmatprep.subr.mxu1 %v203_v23 }
  0x22   : > { %1372 = vmatprep.mubr.f32.mxu0 %v185_v24  ;;  %1379 = vmatprep.mubr.f32.mxu1 %v187_v25 }
  0x23   : > { %235 = vadd.xlane.f32.xlu1 %v214_v26  ;;  %233 = vadd.xlane.f32.xlu0 %v213_v27 }
  0x24   : > { %1371 = vmatpush3.xpose.msra.mxu0 %v201_v22  ;;  %1378 = vmatpush3.xpose.msra.mxu1 %v203_v23 }
  0x25   : > { %1382 = vmatprep.subr.mxu0 %v206_v28  ;;  %1389 = vmatprep.subr.mxu1 %v208_v29 }
  0x27   : > { %1373 = vmatmul.mubr.f32.vlgmr.msra.gmra.mxu0 %v186_v30  ;;  %1380 = vmatmul.mubr.f32.vlgmr.msra.gmra.mxu1 %v188_v31 }
  0x28   : > { %1383 = vmatpush3.xpose.msra.mxu0 %v206_v28  ;;  %1390 = vmatpush3.xpose.msra.mxu1 %v208_v29 }
  0x29   : > { %1384 = vmatprep.subr.mxu0 %v205_v32  ;;  %1391 = vmatprep.subr.mxu1 %v207_v33 }
  0x2a   : > { %1386 = vmatprep.mubr.f32.mxu0 %v189_v34  ;;  %1393 = vmatprep.mubr.f32.mxu1 %v191_v35 }
  0x2b   : > { %239 = vadd.xlane.f32.xlu1 %v216_v36  ;;  %237 = vadd.xlane.f32.xlu0 %v215_v37 }
  0x2c   : > { %1385 = vmatpush3.xpose.msra.mxu0 %v205_v32  ;;  %1392 = vmatpush3.xpose.msra.mxu1 %v207_v33 }
  0x2f   : > { %1387 = vmatmul.mubr.f32.vlgmr.msra.gmra.mxu0 %v190_v38  ;;  %1394 = vmatmul.mubr.f32.vlgmr.msra.gmra.mxu1 %v192_v39 }
  0x30   : > { %243 = vadd.xlane.f32.xlu1 %v218_v40  ;;  %241 = vadd.xlane.f32.xlu0 %v217_v41 }
  0x34   : > { %247 = vadd.xlane.f32.xlu1 %v220_v42  ;;  %245 = vadd.xlane.f32.xlu0 %v219_v43 }
  0x38   : > { %251 = vadd.xlane.f32.xlu1 %v222_v44  ;;  %249 = vadd.xlane.f32.xlu0 %v221_v45 }
  0x3c   : > { %255 = vadd.xlane.f32.xlu1 %v224_v46  ;;  %253 = vadd.xlane.f32.xlu0 %v223_v47 }
  0x9c   : > { %v230_v54 = vpop.xlane.xlu1 %229 }
  0xd7   : > { %v1346_v53 = vpop.f32.mrf.mxu0  ;;  %v1353_v55 = vpop.f32.mrf.mxu1 }
  0xd8   : > { %v865_v56 = vsel %vm1582_vm0, -10.0, %v1346_v53  ;;  %v867_v57 = vsel %vm1582_vm0, -10.0, %v1353_v55  ;;  %v226_v55 = vpop.xlane.xlu0 %225 }
  0xd9   : > { %v1594_v58 = vmul.f32 14.285714, %v865_v56  ;;  %v323_v59 = vpop.f32.mrf.mxu0  ;;  %v1596_v60 = vmul.f32 14.285714, %v867_v57  ;;  %v398_v61 = vpop.f32.mrf.mxu1 }
  0xda   : > { %v864_v62 = vsel %vm1586_vm1, -10.0, %v323_v59  ;;  %v866_v63 = vsel %vm1586_vm1, -10.0, %v398_v61  ;;  %v232_v56 = vpop.xlane.xlu1 %231 }
  0xdb   : > { %v1602_v0 = vmul.f32 14.285714, %v864_v62  ;;  %v917_v1 = vsel %vm913_vm2, %v1594_v58, -inf  ;;  %v1606_v2 = vmul.f32 14.285714, %v866_v63  ;;  %v923_v4 = vsel %vm913_vm2, %v1596_v60, -inf }
  0xdc   : > { %918 = vmax.xlane.f32.xlu1 %v917_v1  ;;  %v228_v57 = vpop.xlane.xlu0 %227 }
  0xdd   : > { %v914_v3 = vsel %vm913_vm2, %v1602_v0, -inf  ;;  %v920_v12 = vsel %vm913_vm2, %v1606_v2, -inf }
  0xde   : > { %915 = vmax.xlane.f32.xlu0 %v914_v3  ;;  %v236_v59 = vpop.xlane.xlu1 %235 }
  0xdf   : > { %v1360_v5 = vpop.f32.mrf.mxu0  ;;  %v1367_v6 = vpop.f32.mrf.mxu1 }
  0xe0   : > { %v869_v7 = vsel %vm1582_vm0, -10.0, %v1360_v5  ;;  %924 = vmax.xlane.f32.xlu1 %v923_v4  ;;  %v871_v8 = vsel %vm1582_vm0, -10.0, %v1367_v6  ;;  %v234_v61 = vpop.xlane.xlu0 %233 }
  0xe1   : > { %v1616_v9 = vmul.f32 14.285714, %v869_v7  ;;  %v473_v10 = vpop.f32.mrf.mxu0  ;;  %v1618_v11 = vmul.f32 14.285714, %v871_v8  ;;  %v548_v13 = vpop.f32.mrf.mxu1 }
  0xe2   : > { %v868_v14 = vsel %vm1586_vm1, -10.0, %v473_v10  ;;  %921 = vmax.xlane.f32.xlu0 %v920_v12  ;;  %v870_v15 = vsel %vm1586_vm1, -10.0, %v548_v13  ;;  %v240_v62 = vpop.xlane.xlu1 %239  ;;  %v1696_v12 = vmul.f32 14.285714, %v228_v57 }
  0xe3   : > { %v1626_v16 = vmul.f32 14.285714, %v868_v14  ;;  %v929_v17 = vsel %vm913_vm2, %v1616_v9, -inf  ;;  %v1630_v18 = vmul.f32 14.285714, %v870_v15  ;;  %v935_v20 = vsel %vm913_vm2, %v1618_v11, -inf }
  0xe4   : > { %930 = vmax.xlane.f32.xlu1 %v929_v17  ;;  %v238_v63 = vpop.xlane.xlu0 %237  ;;  %v1698_v14 = vmul.f32 14.285714, %v226_v55 }
  0xe5   : > { %v926_v19 = vsel %vm913_vm2, %v1626_v16, -inf  ;;  %v932_v28 = vsel %vm913_vm2, %v1630_v18, -inf }
  0xe6   : > { %927 = vmax.xlane.f32.xlu0 %v926_v19  ;;  %v244_v1 = vpop.xlane.xlu1 %243 }
  0xe7   : > { %v1374_v21 = vpop.f32.mrf.mxu0  ;;  %v1381_v22 = vpop.f32.mrf.mxu1 }
  0xe8   : > { %v873_v23 = vsel %vm1582_vm0, -10.0, %v1374_v21  ;;  %936 = vmax.xlane.f32.xlu1 %v935_v20  ;;  %v875_v24 = vsel %vm1582_vm0, -10.0, %v1381_v22  ;;  %v242_v3 = vpop.xlane.xlu0 %241  ;;  %v1708_v21 = vmul.f32 14.285714, %v232_v56 }
  0xe9   : > { %v1640_v25 = vmul.f32 14.285714, %v873_v23  ;;  %v623_v26 = vpop.f32.mrf.mxu0  ;;  %v1642_v27 = vmul.f32 14.285714, %v875_v24  ;;  %v698_v29 = vpop.f32.mrf.mxu1  ;;  %v1710_v23 = vmul.f32 14.285714, %v230_v54 }
  0xea   : > { %v872_v30 = vsel %vm1586_vm1, -10.0, %v623_v26  ;;  %933 = vmax.xlane.f32.xlu0 %v932_v28  ;;  %v874_v31 = vsel %vm1586_vm1, -10.0, %v698_v29  ;;  %v248_v4 = vpop.xlane.xlu1 %247  ;;  %v1752_v56 = vmul.f32 14.285714, %v242_v3 }
  0xeb   : > { %v1650_v32 = vmul.f32 14.285714, %v872_v30  ;;  %v941_v33 = vsel %vm913_vm2, %v1640_v25, -inf  ;;  %v1654_v34 = vmul.f32 14.285714, %v874_v31  ;;  %v947_v36 = vsel %vm913_vm2, %v1642_v27, -inf }
  0xec   : > { %942 = vmax.xlane.f32.xlu1 %v941_v33  ;;  %v1686_v5 = vpop.xlane.xlu0 %245  ;;  %v1717_v30 = vmul.f32 14.285714, %v236_v59 }
  0xed   : > { %v938_v35 = vsel %vm913_vm2, %v1650_v32, -inf  ;;  %v944_v44 = vsel %vm913_vm2, %v1654_v34, -inf }
  0xee   : > { %939 = vmax.xlane.f32.xlu0 %v938_v35  ;;  %v1688_v6 = vpop.xlane.xlu1 %251 }
  0xef   : > { %v1388_v37 = vpop.f32.mrf.mxu0  ;;  %v1395_v38 = vpop.f32.mrf.mxu1 }
  0xf0   : > { %v877_v39 = vsel %vm1582_vm0, -10.0, %v1388_v37  ;;  %948 = vmax.xlane.f32.xlu1 %v947_v36  ;;  %v879_v40 = vsel %vm1582_vm0, -10.0, %v1395_v38  ;;  %v1690_v7 = vpop.xlane.xlu0 %249  ;;  %v1729_v37 = vmul.f32 14.285714, %v234_v61 }
  0xf1   : > { %v1664_v41 = vmul.f32 14.285714, %v877_v39  ;;  %v773_v42 = vpop.f32.mrf.mxu0  ;;  %v1666_v43 = vmul.f32 14.285714, %v879_v40  ;;  %v848_v45 = vpop.f32.mrf.mxu1  ;;  %v1731_v40 = vmul.f32 14.285714, %v240_v62 }
  0xf2   : > { %v876_v46 = vsel %vm1586_vm1, -10.0, %v773_v42  ;;  %945 = vmax.xlane.f32.xlu0 %v944_v44  ;;  %v878_v47 = vsel %vm1586_vm1, -10.0, %v848_v45  ;;  %v1692_v8 = vpop.xlane.xlu1 %255 }
  0xf3   : > { %v1674_v48 = vmul.f32 14.285714, %v876_v46  ;;  %v953_v49 = vsel %vm913_vm2, %v1664_v41, -inf  ;;  %v1678_v50 = vmul.f32 14.285714, %v878_v47  ;;  %v959_v52 = vsel %vm913_vm2, %v1666_v43, -inf }
  0xf4   : > { %954 = vmax.xlane.f32.xlu1 %v953_v49  ;;  %v1694_v10 = vpop.xlane.xlu0 %253  ;;  %v1738_v46 = vmul.f32 14.285714, %v238_v63 }
  0xf5   : > { %v950_v51 = vsel %vm913_vm2, %v1674_v48, -inf  ;;  %v956_v53 = vsel %vm913_vm2, %v1678_v50, -inf }
  0xf6   : > { %951 = vmax.xlane.f32.xlu0 %v950_v51 }
  0xf8   : > { %960 = vmax.xlane.f32.xlu1 %v959_v52 }
  0xfa   : > { %957 = vmax.xlane.f32.xlu0 %v956_v53  ;;  %v1750_v53 = vmul.f32 14.285714, %v244_v1 }
 0x165   : > { %v919_v13 = vpop.xlane.xlu1 %918 }
 0x166   : > { %v1701_v15 = vmax.f32 %v919_v13, %v1696_v12 }
 0x167   : > { %v916_v17 = vpop.xlane.xlu0 %915 }
 0x168   : > { %v979_v19 = vsub.f32 %v1594_v58, %v1701_v15  ;;  %v1706_v20 = vmax.f32 %v916_v17, %v1698_v14 }
 0x169   : > { %v925_v22 = vpop.xlane.xlu1 %924 }
 0x16a   : > { %v996_v24 = vmul.f32 1.442695, %v979_v19  ;;  %v978_v26 = vsub.f32 %v1602_v0, %v1706_v20  ;;  %v1715_v28 = vmax.f32 %v925_v22, %v1708_v21 }
 0x16b   : > { %v922_v29 = vpop.xlane.xlu0 %921 }
 0x16c   : > { %1404 = vpow2.f32 %v996_v24  ;;  %v994_v58 = vmul.f32 1.442695, %v978_v26  ;;  %v1720_v31 = vmax.f32 %v922_v29, %v1710_v23  ;;  %v981_v33 = vsub.f32 %v1596_v60, %v1715_v28 }
 0x16d   : > { %v931_v35 = vpop.xlane.xlu1 %930  ;;  %v1776_v29 = vmul.f32 14.285714, %v1688_v6  ;;  %v1788_v6 = vmul.f32 14.285714, %v1690_v7 }
 0x16e   : > { %1406 = vpow2.f32 %v994_v58  ;;  %v980_v36 = vsub.f32 %v1606_v2, %v1720_v31  ;;  %v1727_v0 = vmax.f32 %v931_v35, %v1717_v30  ;;  %v1000_v38 = vmul.f32 1.442695, %v981_v33 }
 0x16f   : > { %v928_v39 = vpop.xlane.xlu0 %927 }
 0x170   : > { %v998_v42 = vmul.f32 1.442695, %v980_v36  ;;  %v983_v44 = vsub.f32 %v1616_v9, %v1727_v0  ;;  %1408 = vpow2.f32 %v1000_v38  ;;  %v1736_v60 = vmax.f32 %v928_v39, %v1729_v37 }
 0x171   : > { %v937_v45 = vpop.xlane.xlu1 %936 }
 0x172   : > { %v1004_v2 = vmul.f32 1.442695, %v983_v44  ;;  %v1741_v47 = vmax.f32 %v937_v45, %v1731_v40  ;;  %1410 = vpow2.f32 %v998_v42  ;;  %v982_v49 = vsub.f32 %v1626_v16, %v1736_v60 }
 0x173   : > { %v934_v51 = vpop.xlane.xlu0 %933  ;;  %v1793_v44 = vmul.f32 14.285714, %v1692_v8  ;;  %v1805_v8 = vmul.f32 14.285714, %v1694_v10 }
 0x174   : > { %v985_v52 = vsub.f32 %v1618_v11, %v1741_v47  ;;  %v1748_v9 = vmax.f32 %v934_v51, %v1738_v46  ;;  %1412 = vpow2.f32 %v1004_v2  ;;  %v1002_v54 = vmul.f32 1.442695, %v982_v49 }
 0x175   : > { %v943_v55 = vpop.xlane.xlu1 %942  ;;  %v1759_v11 = vmul.f32 14.285714, %v248_v4  ;;  %v1772_v4 = vmul.f32 14.285714, %v1686_v5 }
 0x176   : > { %v1008_v57 = vmul.f32 1.442695, %v985_v52  ;;  %v984_v59 = vsub.f32 %v1630_v18, %v1748_v9  ;;  %1414 = vpow2.f32 %v1002_v54  ;;  %v1757_v16 = vmax.f32 %v943_v55, %v1750_v53 }
 0x177   : > { %v940_v61 = vpop.xlane.xlu0 %939 }
 0x178   : > { %v1006_v62 = vmul.f32 1.442695, %v984_v59  ;;  %v1762_v63 = vmax.f32 %v940_v61, %v1752_v56  ;;  %1416 = vpow2.f32 %v1008_v57  ;;  %v987_v3 = vsub.f32 %v1640_v25, %v1757_v16 }
 0x179   : > { %v1405_v1 = vpop.eup %1404  ;;  %v949_v13 = vpop.xlane.xlu1 %948 }
 0x17a   : > { %v986_v18 = vsub.f32 %v1650_v32, %v1762_v63  ;;  %v1769_v17 = vmax.f32 %v949_v13, %v1759_v11  ;;  %1418 = vpow2.f32 %v1006_v62  ;;  %v1012_v22 = vmul.f32 1.442695, %v987_v3 }
 0x17b   : > { %v1407_v19 = vpop.eup %1406  ;;  %v1029_v24 = vsel %vm913_vm2, %v1405_v1, 0.0  ;;  %v946_v26 = vpop.xlane.xlu0 %945 }
 0x17c   : > { %v1010_v25 = vmul.f32 1.442695, %v986_v18  ;;  %v989_v58 = vsub.f32 %v1642_v27, %v1769_v17  ;;  %1030 = vadd.xlane.f32.xlu1 %v1029_v24  ;;  %1420 = vpow2.f32 %v1012_v22  ;;  %v1781_v32 = vmax.f32 %v946_v26, %v1772_v4 }
 0x17d   : > { %v955_v33 = vpop.xlane.xlu1 %954  ;;  %v1026_v5 = vsel %vm913_vm2, %v1407_v19, 0.0  ;;  %v1409_v35 = vpop.eup %1408 }
 0x17e   : > { %v1016_v36 = vmul.f32 1.442695, %v989_v58  ;;  %v1785_v38 = vmax.f32 %v955_v33, %v1776_v29  ;;  %1027 = vadd.xlane.f32.xlu0 %v1026_v5  ;;  %1422 = vpow2.f32 %v1010_v25  ;;  %v988_v27 = vsub.f32 %v1654_v34, %v1781_v32 }
 0x17f   : > { %v952_v39 = vpop.xlane.xlu0 %951  ;;  %v1411_v42 = vpop.eup %1410  ;;  %v1035_v2 = vsel %vm913_vm2, %v1409_v35, 0.0 }
 0x180   : > { %v991_v45 = vsub.f32 %v1664_v41, %v1785_v38  ;;  %1424 = vpow2.f32 %v1016_v36  ;;  %v1014_v49 = vmul.f32 1.442695, %v988_v27  ;;  %1036 = vadd.xlane.f32.xlu1 %v1035_v2  ;;  %v1799_v7 = vmax.f32 %v952_v39, %v1788_v6 }
 0x181   : > { %v961_v51 = vpop.xlane.xlu1 %960  ;;  %v1413_v52 = vpop.eup %1412  ;;  %v1032_v55 = vsel %vm913_vm2, %v1411_v42, 0.0 }
 0x182   : > { %v1020_v54 = vmul.f32 1.442695, %v991_v45  ;;  %v1802_v34 = vmax.f32 %v961_v51, %v1793_v44  ;;  %1426 = vpow2.f32 %v1014_v49  ;;  %v990_v41 = vsub.f32 %v1674_v48, %v1799_v7  ;;  %1033 = vadd.xlane.f32.xlu0 %v1032_v55 }
 0x183   : > { %v958_v57 = vpop.xlane.xlu0 %957  ;;  %v1415_v59 = vpop.eup %1414  ;;  %v1041_v62 = vsel %vm913_vm2, %v1413_v52, 0.0 }
 0x184   : > { %v993_v61 = vsub.f32 %v1666_v43, %v1802_v34  ;;  %1428 = vpow2.f32 %v1020_v54  ;;  %v1018_v1 = vmul.f32 1.442695, %v990_v41  ;;  %1042 = vadd.xlane.f32.xlu1 %v1041_v62  ;;  %v1814_v10 = vmax.f32 %v958_v57, %v1805_v8 }
 0x185   : > { %v1417_v3 = vpop.eup %1416  ;;  %v1038_v48 = vsel %vm913_vm2, %v1415_v59, 0.0  ;;  %v1075_v54 = vsub.f32 %v1696_v12, %v1701_v15  ;;  %v1074_v41 = vsub.f32 %v1698_v14, %v1706_v20  ;;  %v1077_v57 = vsub.f32 %v1708_v21, %v1715_v28 }
 0x186   : > { %v1024_v13 = vmul.f32 1.442695, %v993_v61  ;;  %1430 = vpow2.f32 %v1018_v1  ;;  %v992_v18 = vsub.f32 %v1678_v50, %v1814_v10  ;;  %v1047_v19 = vsel %vm913_vm2, %v1417_v3, 0.0  ;;  %1039 = vadd.xlane.f32.xlu0 %v1038_v48 }
 0x187   : > { %v1419_v43 = vpop.eup %1418  ;;  %v1092_v55 = vmul.f32 1.442695, %v1075_v54  ;;  %v1090_v59 = vmul.f32 1.442695, %v1074_v41  ;;  %v1076_v61 = vsub.f32 %v1710_v23, %v1720_v31  ;;  %v1096_v62 = vmul.f32 1.442695, %v1077_v57 }
 0x188   : > { %1432 = vpow2.f32 %v1024_v13  ;;  %v1022_v22 = vmul.f32 1.442695, %v992_v18  ;;  %1048 = vadd.xlane.f32.xlu1 %v1047_v19  ;;  %v1044_v24 = vsel %vm913_vm2, %v1419_v43, 0.0  ;;  %v1079_v1 = vsub.f32 %v1717_v30, %v1727_v0 }
 0x189   : > { %v1421_v26 = vpop.eup %1420  ;;  %v1094_v3 = vmul.f32 1.442695, %v1076_v61  ;;  %v1078_v13 = vsub.f32 %v1729_v37, %v1736_v60  ;;  %v1081_v18 = vsub.f32 %v1731_v40, %v1741_v47  ;;  %v1080_v19 = vsub.f32 %v1738_v46, %v1748_v9 }
 0x18a   : > { %1434 = vpow2.f32 %v1022_v22  ;;  %v1053_v25 = vsel %vm913_vm2, %v1421_v26, 0.0  ;;  %1045 = vadd.xlane.f32.xlu0 %v1044_v24  ;;  %v1100_v48 = vmul.f32 1.442695, %v1079_v1  ;;  %v1083_v24 = vsub.f32 %v1750_v53, %v1757_v16 }
 0x18b   : > { %v1423_v58 = vpop.eup %1422  ;;  %1436 = vpow2.f32 %v1092_v55  ;;  %v1098_v43 = vmul.f32 1.442695, %v1078_v13  ;;  %v1104_v22 = vmul.f32 1.442695, %v1081_v18  ;;  %v1102_v26 = vmul.f32 1.442695, %v1080_v19 }
 0x18c   : > { %1054 = vadd.xlane.f32.xlu1 %v1053_v25  ;;  %v1050_v33 = vsel %vm913_vm2, %v1423_v58, 0.0  ;;  %1438 = vpow2.f32 %v1090_v59  ;;  %v1082_v25 = vsub.f32 %v1752_v56, %v1762_v63  ;;  %v1085_v58 = vsub.f32 %v1759_v11, %v1769_v17 }
 0x18d   : > { %v1425_v5 = vpop.eup %1424  ;;  %1440 = vpow2.f32 %v1096_v62  ;;  %v1086_v54 = vsub.f32 %v1788_v6, %v1799_v7  ;;  %v1089_v57 = vsub.f32 %v1793_v44, %v1802_v34  ;;  %v1088_v19 = vsub.f32 %v1805_v8, %v1814_v10 }
 0x18e   : > { %v1059_v50 = vsel %vm913_vm2, %v1425_v5, 0.0  ;;  %1051 = vadd.xlane.f32.xlu0 %v1050_v33  ;;  %1442 = vpow2.f32 %v1094_v3  ;;  %v1108_v5 = vmul.f32 1.442695, %v1083_v24 }
 0x18f   : > { %v1427_v35 = vpop.eup %1426  ;;  %1444 = vpow2.f32 %v1100_v48  ;;  %v1114_v3 = vmul.f32 1.442695, %v1086_v54  ;;  %v1120_v18 = vmul.f32 1.442695, %v1089_v57 }
 0x190   : > { %1060 = vadd.xlane.f32.xlu1 %v1059_v50  ;;  %v1056_v36 = vsel %vm913_vm2, %v1427_v35, 0.0  ;;  %1446 = vpow2.f32 %v1098_v43  ;;  %v1084_v35 = vsub.f32 %v1772_v4, %v1781_v32 }
 0x191   : > { %v1429_v27 = vpop.eup %1428  ;;  %1448 = vpow2.f32 %v1104_v22 }
 0x192   : > { %v1065_v39 = vsel %vm913_vm2, %v1429_v27, 0.0  ;;  %1057 = vadd.xlane.f32.xlu0 %v1056_v36  ;;  %1450 = vpow2.f32 %v1102_v26 }
 0x193   : > { %v1431_v42 = vpop.eup %1430 }
 0x194   : > { %1066 = vadd.xlane.f32.xlu1 %v1065_v39  ;;  %v1062_v45 = vsel %vm913_vm2, %v1431_v42, 0.0  ;;  %v1106_v39 = vmul.f32 1.442695, %v1082_v25  ;;  %v1087_v42 = vsub.f32 %v1776_v29, %v1785_v38 }
 0x195   : > { %v1433_v2 = vpop.eup %1432 }
 0x196   : > { %v1071_v49 = vsel %vm913_vm2, %v1433_v2, 0.0  ;;  %1063 = vadd.xlane.f32.xlu0 %v1062_v45  ;;  %v1112_v2 = vmul.f32 1.442695, %v1085_v58  ;;  %v1116_v55 = vmul.f32 1.442695, %v1087_v42 }
 0x197   : > { %v1435_v51 = vpop.eup %1434 }
 0x198   : > { %1072 = vadd.xlane.f32.xlu1 %v1071_v49  ;;  %v1068_v52 = vsel %vm913_vm2, %v1435_v51, 0.0  ;;  %v1437_v33 = vpop.eup %1436 }
 0x199   : > { %v1439_v27 = vpop.eup %1438 }
 0x19a   : > { %1069 = vadd.xlane.f32.xlu0 %v1068_v52  ;;  %v1441_v51 = vpop.eup %1440  ;;  %v1110_v52 = vmul.f32 1.442695, %v1084_v35 }
 0x19b   : > { %v1443_v61 = vpop.eup %1442 }
 0x19c   : > { %v1445_v1 = vpop.eup %1444 }
 0x19d   : > { %v1447_v22 = vpop.eup %1446 }
 0x19e   : > { %v1449_v26 = vpop.eup %1448 }
 0x205   : > { %v1031_v50 = vpop.xlane.xlu1 %1030 }
 0x206   : > { %v1123_v36 = vadd.f32 %v1437_v33, %v1031_v50  ;;  %v1118_v33 = vmul.f32 1.442695, %v1088_v19  ;;  %v1451_v50 = vpop.eup %1450 }
 0x207   : > { %v1028_v45 = vpop.xlane.xlu0 %1027 }
 0x208   : > { %1452 = vlog2.f32 %v1123_v36  ;;  %v1122_v49 = vadd.f32 %v1439_v27, %v1028_v45 }
 0x209   : > { %1454 = vpow2.f32 %v1108_v5  ;;  %v1037_v41 = vpop.xlane.xlu1 %1036 }
 0x20a   : > { %1456 = vlog2.f32 %v1122_v49  ;;  %v1125_v59 = vadd.f32 %v1441_v51, %v1037_v41 }
 0x20b   : > { %1458 = vpow2.f32 %v1106_v39  ;;  %v1034_v62 = vpop.xlane.xlu0 %1033 }
 0x20c   : > { %1460 = vpow2.f32 %v1112_v2  ;;  %v1124_v13 = vadd.f32 %v1443_v61, %v1034_v62 }
 0x20d   : > { %1462 = vlog2.f32 %v1125_v59  ;;  %v1043_v48 = vpop.xlane.xlu1 %1042 }
 0x20e   : > { %1464 = vpow2.f32 %v1110_v52  ;;  %v1127_v43 = vadd.f32 %v1445_v1, %v1043_v48 }
 0x20f   : > { %1466 = vpow2.f32 %v1116_v55  ;;  %v1040_v24 = vpop.xlane.xlu0 %1039 }
 0x210   : > { %1468 = vlog2.f32 %v1124_v13  ;;  %v1126_v25 = vadd.f32 %v1447_v22, %v1040_v24 }
 0x211   : > { %1470 = vlog2.f32 %v1127_v43  ;;  %v1049_v58 = vpop.xlane.xlu1 %1048 }
 0x212   : > { %1472 = vpow2.f32 %v1114_v3  ;;  %v1129_v5 = vadd.f32 %v1449_v26, %v1049_v58 }
 0x213   : > { %1474 = vpow2.f32 %v1120_v18  ;;  %v1046_v36 = vpop.xlane.xlu0 %1045 }
 0x214   : > { %1476 = vlog2.f32 %v1126_v25  ;;  %v1128_v42 = vadd.f32 %v1451_v50, %v1046_v36 }
 0x215   : > { %v1453_v35 = vpop.eup %1452  ;;  %1478 = vlog2.f32 %v1129_v5  ;;  %v1055_v45 = vpop.xlane.xlu1 %1054 }
 0x216   : > { %v1455_v27 = vpop.eup %1454  ;;  %v1141_v39 = vmul.f32 0.6931472, %v1453_v35  ;;  %1480 = vpow2.f32 %v1118_v33 }
 0x217   : > { %v1457_v2 = vpop.eup %1456  ;;  %v1131_v49 = vadd.f32 %v1455_v27, %v1055_v45  ;;  %1482 = vlog2.f32 %v1128_v42  ;;  %v1052_v55 = vpop.xlane.xlu0 %1051 }
 0x218   : > { %v1459_v51 = vpop.eup %1458  ;;  %v1171_v52 = vadd.f32 %v1141_v39, %v1701_v15  ;;  %v1139_v54 = vmul.f32 0.6931472, %v1457_v2 }
 0x219   : > { %v1461_v41 = vpop.eup %1460  ;;  %1484 = vlog2.f32 %v1131_v49  ;;  %v1130_v62 = vadd.f32 %v1459_v51, %v1052_v55  ;;  %v1061_v15 = vpop.xlane.xlu1 %1060 }
 0x21a   : > { %v1463_v57 = vpop.eup %1462  ;;  %v1187_v59 = vsub.f32 %v1171_v52, %v1696_v12  ;;  %v1170_v61 = vadd.f32 %v1139_v54, %v1706_v20  ;;  %v1133_v13 = vadd.f32 %v1461_v41, %v1061_v15 }
 0x21b   : > { %v1465_v1 = vpop.eup %1464  ;;  %v1145_v3 = vmul.f32 0.6931472, %v1463_v57  ;;  %1486 = vlog2.f32 %v1130_v62  ;;  %v1058_v12 = vpop.xlane.xlu0 %1057 }
 0x21c   : > { %v1467_v48 = vpop.eup %1466  ;;  %1204 = vst.msk [vmem:[%s1866_s21 + $0x8] sm:$0xff] %vm1202_vm3, %v1187_v59  ;;  %v1186_v18 = vsub.f32 %v1170_v61, %v1698_v14  ;;  %1488 = vlog2.f32 %v1133_v13  ;;  %v1132_v24 = vadd.f32 %v1465_v1, %v1058_v12 }
 0x21d   : > { %v1469_v19 = vpop.eup %1468  ;;  %v1173_v43 = vadd.f32 %v1145_v3, %v1715_v28  ;;  %v1067_v26 = vpop.xlane.xlu1 %1066 }
 0x21e   : > { %v1471_v22 = vpop.eup %1470  ;;  %1203 = vst.msk [vmem:[%s1866_s21] sm:$0xff] %vm1202_vm3, %v1186_v18  ;;  %v1143_v20 = vmul.f32 0.6931472, %v1469_v19  ;;  %v1135_v5 = vadd.f32 %v1467_v48, %v1067_v26  ;;  %1490 = vlog2.f32 %v1132_v24 }
 0x21f   : > { %v1473_v25 = vpop.eup %1472  ;;  %v1189_v58 = vsub.f32 %v1173_v43, %v1708_v21  ;;  %v1149_v33 = vmul.f32 0.6931472, %v1471_v22  ;;  %v1064_v36 = vpop.xlane.xlu0 %1063 }
 0x220   : > { %v1475_v50 = vpop.eup %1474  ;;  %v1172_v14 = vadd.f32 %v1143_v20, %v1720_v31  ;;  %1492 = vlog2.f32 %v1135_v5  ;;  %v1134_v21 = vadd.f32 %v1473_v25, %v1064_v36 }
 0x221   : > { %v1477_v28 = vpop.eup %1476  ;;  %1206 = vst.msk [vmem:[%s1866_s21 + $0x18] sm:$0xff] %vm1202_vm3, %v1189_v58  ;;  %v1175_v35 = vadd.f32 %v1149_v33, %v1727_v0  ;;  %v1073_v45 = vpop.xlane.xlu1 %1072 }
 0x222   : > { %v1479_v27 = vpop.eup %1478  ;;  %v1188_v39 = vsub.f32 %v1172_v14, %v1710_v23  ;;  %v1147_v42 = vmul.f32 0.6931472, %v1477_v28  ;;  %v1137_v31 = vadd.f32 %v1475_v50, %v1073_v45  ;;  %1494 = vlog2.f32 %v1134_v21 }
 0x223   : > { %v1191_v2 = vsub.f32 %v1175_v35, %v1717_v30  ;;  %v1153_v49 = vmul.f32 0.6931472, %v1479_v27  ;;  %v1481_v51 = vpop.eup %1480  ;;  %v1070_v54 = vpop.xlane.xlu0 %1069 }
 0x224   : > { %1205 = vst.msk [vmem:[%s1866_s21 + $0x10] sm:$0xff] %vm1202_vm3, %v1188_v39  ;;  %v1174_v52 = vadd.f32 %v1147_v42, %v1736_v60  ;;  %v1483_v0 = vpop.eup %1482  ;;  %1496 = vlog2.f32 %v1137_v31  ;;  %v1136_v57 = vadd.f32 %v1481_v51, %v1070_v54 }
 0x225   : > { %1208 = vst.msk [vmem:[%s1866_s21 + $0x28] sm:$0xff] %vm1202_vm3, %v1191_v2  ;;  %v1177_v23 = vadd.f32 %v1153_v49, %v1741_v47  ;;  %v1151_v55 = vmul.f32 0.6931472, %v1483_v0 }
 0x226   : > { %v1485_v41 = vpop.eup %1484  ;;  %v1190_v30 = vsub.f32 %v1174_v52, %v1729_v37  ;;  %1498 = vlog2.f32 %v1136_v57 }
 0x227   : > { %v1193_v59 = vsub.f32 %v1177_v23, %v1731_v40  ;;  %v1157_v61 = vmul.f32 0.6931472, %v1485_v41  ;;  %v1176_v60 = vadd.f32 %v1151_v55, %v1748_v9 }
 0x228   : > { %1207 = vst.msk [vmem:[%s1866_s21 + $0x20] sm:$0xff] %vm1202_vm3, %v1190_v30  ;;  %v1487_v62 = vpop.eup %1486 }
 0x229   : > { %1210 = vst.msk [vmem:[%s1866_s21 + $0x38] sm:$0xff] %vm1202_vm3, %v1193_v59  ;;  %v1179_v47 = vadd.f32 %v1157_v61, %v1757_v16  ;;  %v1489_v15 = vpop.eup %1488  ;;  %v1192_v37 = vsub.f32 %v1176_v60, %v1738_v46  ;;  %v1155_v1 = vmul.f32 0.6931472, %v1487_v62 }
 0x22a   : > { %v1161_v3 = vmul.f32 0.6931472, %v1489_v15 }
 0x22b   : > { %v1195_v40 = vsub.f32 %v1179_v47, %v1750_v53  ;;  %1209 = vst.msk [vmem:[%s1866_s21 + $0x30] sm:$0xff] %vm1202_vm3, %v1192_v37  ;;  %v1178_v13 = vadd.f32 %v1155_v1, %v1762_v63  ;;  %v1491_v9 = vpop.eup %1490 }
 0x22c   : > { %v1181_v48 = vadd.f32 %v1161_v3, %v1769_v17  ;;  %v1159_v19 = vmul.f32 0.6931472, %v1491_v9 }
 0x22d   : > { %1212 = vst.msk [vmem:[%s1866_s21 + $0x48] sm:$0xff] %vm1202_vm3, %v1195_v40  ;;  %v1493_v16 = vpop.eup %1492  ;;  %v1194_v18 = vsub.f32 %v1178_v13, %v1752_v56 }
 0x22e   : > { %v1197_v46 = vsub.f32 %v1181_v48, %v1759_v11  ;;  %v1165_v43 = vmul.f32 0.6931472, %v1493_v16  ;;  %v1180_v53 = vadd.f32 %v1159_v19, %v1781_v32 }
 0x22f   : > { %1211 = vst.msk [vmem:[%s1866_s21 + $0x40] sm:$0xff] %vm1202_vm3, %v1194_v18  ;;  %v1495_v12 = vpop.eup %1494 }
 0x230   : > { %1214 = vst.msk [vmem:[%s1866_s21 + $0x58] sm:$0xff] %vm1202_vm3, %v1197_v46  ;;  %v1183_v63 = vadd.f32 %v1165_v43, %v1785_v38  ;;  %v1196_v22 = vsub.f32 %v1180_v53, %v1772_v4  ;;  %v1163_v56 = vmul.f32 0.6931472, %v1495_v12 }
 0x231   : > { %v1497_v17 = vpop.eup %1496 }
 0x232   : > { %v1199_v20 = vsub.f32 %v1183_v63, %v1776_v29  ;;  %v1169_v11 = vmul.f32 0.6931472, %v1497_v17  ;;  %1213 = vst.msk [vmem:[%s1866_s21 + $0x50] sm:$0xff] %vm1202_vm3, %v1196_v22  ;;  %v1182_v24 = vadd.f32 %v1163_v56, %v1799_v7 }
 0x233   : > { %v1499_v32 = vpop.eup %1498 }
 0x234   : > { %1216 = vst.msk [vmem:[%s1866_s21 + $0x68] sm:$0xff] %vm1202_vm3, %v1199_v20  ;;  %v1185_v26 = vadd.f32 %v1169_v11, %v1802_v34  ;;  %v1198_v38 = vsub.f32 %v1182_v24, %v1788_v6  ;;  %v1167_v25 = vmul.f32 0.6931472, %v1499_v32 }
 0x236   : > { %v1201_v58 = vsub.f32 %v1185_v26, %v1793_v44  ;;  %1215 = vst.msk [vmem:[%s1866_s21 + $0x60] sm:$0xff] %vm1202_vm3, %v1198_v38  ;;  %v1184_v4 = vadd.f32 %v1167_v25, %v1814_v10 }
 0x238   : > { %1218 = vst.msk [vmem:[%s1866_s21 + $0x78] sm:$0xff] %vm1202_vm3, %v1201_v58  ;;  %v1200_v29 = vsub.f32 %v1184_v4, %v1805_v8 }
 0x23a   : > { %1217 = vst.msk [vmem:[%s1866_s21 + $0x70] sm:$0xff] %vm1202_vm3, %v1200_v29 }
 0x23b PF: > { %s12_s9 = sadd.s32 1, %s1506_s9  }
 0x23c   : > { %p9_p4 = scmp.ge.s32.totalorder %s12_s9, 4  }
 0x23e   :  { %11 = sbr.rel (!%p9_p4) target bundleno = 1 (0x1), region = 61 }

</bundles_post_ra>
